<compile_context>
chip_gen: v7x
topology: tpu7x:2x2x1
jax: 0.10.0
libtpu: 0.0.40
codegen_flags: <defaults>
</compile_context>

<pallas_src>
import functools

import jax
import jax.numpy as jnp
from jax import lax
from jax.experimental import pallas as pl
from jax.experimental.pallas import tpu as pltpu

NEG_SLOPE = 0.2          # LeakyReLU(negative_slope=0.2)
BN_EPS = 1e-5            # nn.BatchNorm2d default eps
PAD_T = 2                # top padding rows (5x5 conv needs 2)
PAD_BOT = 3              # bottom padding rows (2 for the 5x5 + 1 row absorbs flat-shift spill)
PAD_L = 2                # left padding cols (5x5 conv needs 2)
NEG_BIG = -1e30          # stands in for -inf in the max-pool


def _leaky(v):
    return jnp.where(v >= 0.0, v, NEG_SLOPE * v)


def _round_up(v, m):
    return (v + m - 1) // m * m


# ----------------------------- Pallas kernel -------------------------------

def make_inception_kernel(H, TH, Wp, out1x1, red3, red5):
    """Static-shape kernel closure.

    Padded rows are flattened as r = y*Wp + x.  Each grid step processes TH
    output rows of one image; the output slab keeps the (Wp - W) garbage
    columns, which the wrapper drops.
    """
    T_rows = TH + PAD_T + PAD_BOT          # padded rows carried per tile (halo incl.)
    P_t = T_rows * Wp                      # flattened padded rows per tile
    Mext = TH * Wp                         # output slab rows per tile
    off_c = PAD_T * Wp + PAD_L             # flat offset of the center (1x1) tap
    off_p = (PAD_T - 1) * Wp + (PAD_L - 1)  # flat offset of the pool window origin
    Lv = Mext + 2 * Wp                     # rows needed of the vertical pool max

    def kernel(col_ref, x_ref, w1_ref, b1_ref, w3_ref, b3_ref,
               w5_ref, b5_ref, w4_ref, b4_ref, o_ref):
        t_idx = pl.program_id(1)

        # ---- image-interior validity mask, built in-kernel ------------------
        #   rows: a [lo, hi) flat interval that depends only on the tile index
        #   cols: tiny grid-invariant (P_t, 1) column-validity input
        r = lax.broadcasted_iota(jnp.int32, (P_t, 1), 0)
        row_lo = jnp.maximum(PAD_T - t_idx * TH, 0) * Wp
        row_hi = jnp.minimum(PAD_T + H - t_idx * TH, T_rows) * Wp
        col_f = col_ref[...]                                   # (P_t, 1) f32
        valid = (r >= row_lo) & (r < row_hi) & (col_f > 0.5)

        xp = x_ref[0, 0]                                       # (P_t, Cin)
        dot_dtype = xp.dtype

        # ---- merged 1x1 ConvBlocks (branch1 + 3x3-reduce + 5x5-reduce) ------
        t = jnp.dot(xp, w1_ref[...],
                    preferred_element_type=jnp.float32) + b1_ref[...]
        t = jnp.where(valid, _leaky(t), 0.0)   # zero outside image == conv zero pad

        out1 = t[off_c:off_c + Mext, 0:out1x1]        # branch1 output (f32)
        t_red = t[:, out1x1:].astype(dot_dtype)       # reduce activations for kxk convs

        # ---- branch2: 3x3 conv as ONE matmul (K = 9*red3, concatenated taps) ----
        cat3 = jnp.concatenate(
            [t_red[(dy + 1) * Wp + (dx + 1):(dy + 1) * Wp + (dx + 1) + Mext, 0:red3]
             for dy in range(3) for dx in range(3)], axis=-1)
        o3 = _leaky(jnp.dot(cat3, w3_ref[...],
                            preferred_element_type=jnp.float32) + b3_ref[...])

        # ---- branch3: 5x5 conv as ONE matmul (K = 25*red5) ----
        cat5 = jnp.concatenate(
            [t_red[dy * Wp + dx:dy * Wp + dx + Mext, red3:red3 + red5]
             for dy in range(5) for dx in range(5)], axis=-1)
        o5 = _leaky(jnp.dot(cat5, w5_ref[...],
                            preferred_element_type=jnp.float32) + b5_ref[...])

        # ---- branch4: separable 3x3 max-pool (-inf padding) + 1x1 ConvBlock ----
        xneg = jnp.where(valid, xp, jnp.asarray(NEG_BIG, dot_dtype))
        vmax = jnp.maximum(jnp.maximum(xneg[0:Lv], xneg[Wp:Wp + Lv]),
                           xneg[2 * Wp:2 * Wp + Lv])
        pooled = jnp.maximum(jnp.maximum(vmax[off_p:off_p + Mext],
                                         vmax[off_p + 1:off_p + 1 + Mext]),
                             vmax[off_p + 2:off_p + 2 + Mext])
        # zero the -1e30 sentinels in garbage columns before the matmul
        pooled = pooled * col_f[off_c:off_c + Mext].astype(dot_dtype)
        o4 = _leaky(jnp.dot(pooled, w4_ref[...],
                            preferred_element_type=jnp.float32) + b4_ref[...])

        # ---- single lane-dense slab store (all four branches at once) ----
        o_ref[0, 0] = jnp.concatenate([out1, o3, o5, o4], axis=-1).astype(o_ref.dtype)

    return kernel, P_t, Mext


# ----------------------------- weight folding ------------------------------

def fold_bn_1x1(p):
    """Fold eval-mode BN into a 1x1 conv; return (Cin, Cout) weight, (1, Cout) bias."""
    scale = p["gamma"] / jnp.sqrt(p["var"] + BN_EPS)
    w_f = p["w"][:, :, 0, 0] * scale[:, None]            # (Cout, Cin)
    b_f = (p["b"] - p["mean"]) * scale + p["beta"]
    return jnp.transpose(w_f), b_f.reshape(1, -1)


def fold_bn_kxk(p):
    """Fold eval-mode BN into a kxk conv; return (k*k*Cin, Cout) weight, (1, Cout) bias.

    Rows are ordered (dy, dx) major, Cin minor -> matches the in-kernel tap concat.
    """
    scale = p["gamma"] / jnp.sqrt(p["var"] + BN_EPS)
    w_f = p["w"] * scale[:, None, None, None]             # (Cout, Cin, kh, kw)
    b_f = (p["b"] - p["mean"]) * scale + p["beta"]
    Cout, Cin, kh, kw = p["w"].shape
    w_t = jnp.transpose(w_f, (2, 3, 1, 0)).reshape(kh * kw * Cin, Cout)
    return w_t, b_f.reshape(1, Cout)


# ----------------------------- public wrapper -------------------------------

def inception_block(x_nchw, params, *, compute_dtype=jnp.bfloat16):
    x = jnp.transpose(x_nchw, (0, 2, 3, 1))               # NCHW -> NHWC
    N, H, W, C = x.shape

    # fold BN (eval mode) and merge the three 1x1 convs that read x
    w_b1, b_b1 = fold_bn_1x1(params["branch1"])
    w_2a, b_2a = fold_bn_1x1(params["branch2a"])
    w_3a, b_3a = fold_bn_1x1(params["branch3a"])
    w_2b, b_2b = fold_bn_kxk(params["branch2b"])           # (9*red3,  out3)
    w_3b, b_3b = fold_bn_kxk(params["branch3b"])           # (25*red5, out5)
    w_4, b_4 = fold_bn_1x1(params["branch4"])

    out1x1, red3, red5 = w_b1.shape[1], w_2a.shape[1], w_3a.shape[1]
    out3, out5, out_pool = w_2b.shape[1], w_3b.shape[1], w_4.shape[1]
    Ctot = out1x1 + out3 + out5 + out_pool

    w1 = jnp.concatenate([w_b1, w_2a, w_3a], axis=1).astype(compute_dtype)
    b1 = jnp.concatenate([b_b1, b_2a, b_3a], axis=1).astype(jnp.float32)
    w3c = w_2b.astype(compute_dtype)
    w5c = w_3b.astype(compute_dtype)
    w4c = w_4.astype(compute_dtype)
    b3 = b_2b.astype(jnp.float32)
    b5 = b_3b.astype(jnp.float32)
    b4 = b_4.astype(jnp.float32)

    # spatial row tiling: TH output rows per grid step, halo rows replicated per tile
    TH = 8 if (H % 8 == 0 and H > 8) else H
    n_th = H // TH
    T_rows = TH + PAD_T + PAD_BOT
    Wp = _round_up(W + 2 * PAD_L, 8)        # sublane-align the dy*Wp tap offsets
    pad_r = Wp - W - PAD_L

    xp = jnp.pad(x.astype(compute_dtype),
                 ((0, 0), (PAD_T, PAD_BOT), (PAD_L, pad_r), (0, 0)))
    tiles = jnp.stack([xp[:, t * TH:t * TH + T_rows] for t in range(n_th)], axis=1)
    xp_tiles = tiles.reshape(N, n_th, T_rows * Wp, C)

    # grid-invariant column-validity mask (1.0 where the padded column holds real data)
    cols = jnp.arange(Wp)
    col_ok = (cols >= PAD_L) & (cols < PAD_L + W)
    col_mask = jnp.tile(col_ok, T_rows).astype(jnp.float32).reshape(T_rows * Wp, 1)

    kernel, P_t, Mext = make_inception_kernel(H, TH, Wp, out1x1, red3, red5)

    out_ext = pl.pallas_call(
        kernel,
        out_shape=jax.ShapeDtypeStruct((N, n_th, Mext, Ctot), jnp.float32),
        grid_spec=pltpu.PrefetchScalarGridSpec(
            num_scalar_prefetch=0,
            grid=(N, n_th),
            in_specs=[
                pl.BlockSpec((P_t, 1), lambda n, t: (0, 0)),
                pl.BlockSpec((1, 1, P_t, C), lambda n, t: (n, t, 0, 0)),
                pl.BlockSpec(w1.shape, lambda n, t: (0, 0)),
                pl.BlockSpec(b1.shape, lambda n, t: (0, 0)),
                pl.BlockSpec(w3c.shape, lambda n, t: (0, 0)),
                pl.BlockSpec(b3.shape, lambda n, t: (0, 0)),
                pl.BlockSpec(w5c.shape, lambda n, t: (0, 0)),
                pl.BlockSpec(b5.shape, lambda n, t: (0, 0)),
                pl.BlockSpec(w4c.shape, lambda n, t: (0, 0)),
                pl.BlockSpec(b4.shape, lambda n, t: (0, 0)),
            ],
            out_specs=pl.BlockSpec((1, 1, Mext, Ctot), lambda n, t: (n, t, 0, 0)),
        ),
        compiler_params=pltpu.CompilerParams(
            dimension_semantics=("parallel", "parallel"),
        ),
    )(col_mask, xp_tiles, w1, b1, w3c, b3, w5c, b5, w4c, b4)

    # drop the extended (garbage) columns; back to NCHW to match the PyTorch contract
    out_nhwc = out_ext.reshape(N, n_th * TH, Wp, Ctot)[:, :, :W, :]
    return jnp.transpose(out_nhwc, (0, 3, 1, 2))


# ----------------------- parameter init (deterministic) --------------------

def init_conv_block(key, in_c, out_c, k):
    k1, k2, k3, k4, k5, k6 = jax.random.split(key, 6)
    return dict(
        w=jax.random.normal(k1, (out_c, in_c, k, k), jnp.float32) * 0.1,
        b=jax.random.normal(k2, (out_c,), jnp.float32) * 0.1,
        gamma=1.0 + 0.1 * jax.random.normal(k3, (out_c,), jnp.float32),
        beta=0.1 * jax.random.normal(k4, (out_c,), jnp.float32),
        mean=0.1 * jax.random.normal(k5, (out_c,), jnp.float32),
        var=jax.random.uniform(k6, (out_c,), jnp.float32, 0.5, 1.5),
    )


def init_inception(key, in_c, out1x1, red3, out3, red5, out5, out_pool):
    keys = jax.random.split(key, 6)
    return dict(
        branch1=init_conv_block(keys[0], in_c, out1x1, 1),
        branch2a=init_conv_block(keys[1], in_c, red3, 1),
        branch2b=init_conv_block(keys[2], red3, out3, 3),
        branch3a=init_conv_block(keys[3], in_c, red5, 1),
        branch3b=init_conv_block(keys[4], red5, out5, 5),
        branch4=init_conv_block(keys[5], in_c, out_pool, 1),
    )


# ----------------------- pure-JAX reference (for sanity) -------------------

def ref_conv_block(x_nchw, p):
    Cout, Cin, kh, kw = p["w"].shape
    y = lax.conv_general_dilated(
        x_nchw, p["w"], (1, 1),
        padding=[(kh // 2, kh // 2), (kw // 2, kw // 2)],
        dimension_numbers=("NCHW", "OIHW", "NCHW"))
    y = y + p["b"][None, :, None, None]
    y = ((y - p["mean"][None, :, None, None])
         / jnp.sqrt(p["var"] + BN_EPS)[None, :, None, None]
         * p["gamma"][None, :, None, None] + p["beta"][None, :, None, None])
    return jnp.where(y >= 0.0, y, NEG_SLOPE * y)


def ref_inception(x_nchw, params):
    b1 = ref_conv_block(x_nchw, params["branch1"])
    b2 = ref_conv_block(ref_conv_block(x_nchw, params["branch2a"]), params["branch2b"])
    b3 = ref_conv_block(ref_conv_block(x_nchw, params["branch3a"]), params["branch3b"])
    pooled = lax.reduce_window(x_nchw, -jnp.inf, lax.max,
                               (1, 1, 3, 3), (1, 1, 1, 1),
                               ((0, 0), (0, 0), (1, 1), (1, 1)))
    b4 = ref_conv_block(pooled, params["branch4"])
    return jnp.concatenate([b1, b2, b3, b4], axis=1)


# --------------------------------- main -------------------------------------

if __name__ == "__main__":
    key = jax.random.PRNGKey(0)
    kx, kp = jax.random.split(key)

    # small shapes: batch=2, in_channels=4, 16x16 spatial
    N, C, H, W = 2, 4, 16, 16
    out1x1, red3, out3, red5, out5, out_pool = 8, 4, 8, 4, 8, 8

    x = jax.random.normal(kx, (N, C, H, W), jnp.float32)
    params = init_inception(kp, C, out1x1, red3, out3, red5, out5, out_pool)
    expected_channels = out1x1 + out3 + out5 + out_pool

    ref = jax.block_until_ready(ref_inception(x, params))

    # f32 operands: tight check of the fused kernel algebra
    fwd_f32 = jax.jit(functools.partial(inception_block, compute_dtype=jnp.float32))
    out_f32 = jax.block_until_ready(fwd_f32(x, params))
    assert out_f32.shape == (N, expected_channels, H, W), out_f32.shape
    assert jnp.allclose(out_f32, ref, atol=1e-4, rtol=1e-4), \
        float(jnp.max(jnp.abs(out_f32 - ref)))

    # bf16 operands, f32 accumulation: the production path for v6e/v7x
    fwd_bf16 = jax.jit(functools.partial(inception_block, compute_dtype=jnp.bfloat16))
    out_bf16 = jax.block_until_ready(fwd_bf16(x, params))
    assert out_bf16.shape == (N, expected_channels, H, W), out_bf16.shape
    assert jnp.allclose(out_bf16, ref, atol=5e-2, rtol=5e-2), \
        float(jnp.max(jnp.abs(out_bf16 - ref)))

    print("KERNEL_OK")
</pallas_src>

<mosaic_0001>
module attributes {stable_mosaic.version = 11 : i64} {
  func.func @kernel(%arg0: i32, %arg1: i32, %arg2: memref<312x1xf32, #tpu.memory_space<vmem>>, %arg3: memref<1x1x312x4xf32, #tpu.memory_space<vmem>>, %arg4: memref<4x16xf32, #tpu.memory_space<vmem>>, %arg5: memref<1x16xf32, #tpu.memory_space<vmem>>, %arg6: memref<36x8xf32, #tpu.memory_space<vmem>>, %arg7: memref<1x8xf32, #tpu.memory_space<vmem>>, %arg8: memref<100x8xf32, #tpu.memory_space<vmem>>, %arg9: memref<1x8xf32, #tpu.memory_space<vmem>>, %arg10: memref<4x8xf32, #tpu.memory_space<vmem>>, %arg11: memref<1x8xf32, #tpu.memory_space<vmem>>, %arg12: memref<1x1x192x32xf32, #tpu.memory_space<vmem>>) attributes {dimension_semantics = [#tpu.dimension_semantics<parallel>, #tpu.dimension_semantics<parallel>], iteration_bounds = array<i64: 2, 2>, scalar_prefetch = 0 : i64, scratch_operands = 0 : i64, tpu.core_type = #tpu.core_type<tc>, window_params = [{pipeline_mode = #tpu.pipeline_mode<synchronous>, transform_indices = @transform_0, window_bounds = array<i64: 312, 1>}, {transform_indices = @transform_1, window_bounds = array<i64: 1, 1, 312, 4>}, {pipeline_mode = #tpu.pipeline_mode<synchronous>, transform_indices = @transform_2, window_bounds = array<i64: 4, 16>}, {pipeline_mode = #tpu.pipeline_mode<synchronous>, transform_indices = @transform_3, window_bounds = array<i64: 1, 16>}, {pipeline_mode = #tpu.pipeline_mode<synchronous>, transform_indices = @transform_4, window_bounds = array<i64: 36, 8>}, {pipeline_mode = #tpu.pipeline_mode<synchronous>, transform_indices = @transform_5, window_bounds = array<i64: 1, 8>}, {pipeline_mode = #tpu.pipeline_mode<synchronous>, transform_indices = @transform_6, window_bounds = array<i64: 100, 8>}, {pipeline_mode = #tpu.pipeline_mode<synchronous>, transform_indices = @transform_7, window_bounds = array<i64: 1, 8>}, {pipeline_mode = #tpu.pipeline_mode<synchronous>, transform_indices = @transform_8, window_bounds = array<i64: 4, 8>}, {pipeline_mode = #tpu.pipeline_mode<synchronous>, transform_indices = @transform_9, window_bounds = array<i64: 1, 8>}, {transform_indices = @transform_10, window_bounds = array<i64: 1, 1, 192, 32>}]} {
    %0 = tpu.iota {dimensions = array<i32: 0>} : vector<312x1xi32>
    %c8_i32 = arith.constant 8 : i32
    %1 = arith.muli %arg1, %c8_i32 : i32
    %c2_i32 = arith.constant 2 : i32
    %2 = arith.subi %c2_i32, %1 : i32
    %c0_i32 = arith.constant 0 : i32
    %3 = arith.maxsi %2, %c0_i32 : i32
    %c24_i32 = arith.constant 24 : i32
    %4 = arith.muli %3, %c24_i32 : i32
    %c8_i32_0 = arith.constant 8 : i32
    %5 = arith.muli %arg1, %c8_i32_0 : i32
    %c18_i32 = arith.constant 18 : i32
    %6 = arith.subi %c18_i32, %5 : i32
    %c13_i32 = arith.constant 13 : i32
    %7 = arith.minsi %6, %c13_i32 : i32
    %c24_i32_1 = arith.constant 24 : i32
    %8 = arith.muli %7, %c24_i32_1 : i32
    %c0 = arith.constant 0 : index
    %c0_2 = arith.constant 0 : index
    %9 = vector.load %arg2[%c0, %c0_2] : memref<312x1xf32, #tpu.memory_space<vmem>>, vector<312x1xf32>
    %10 = vector.broadcast %4 : i32 to vector<312x1xi32>
    %11 = arith.cmpi sge, %0, %10 : vector<312x1xi32>
    %12 = vector.broadcast %8 : i32 to vector<312x1xi32>
    %13 = arith.cmpi slt, %0, %12 : vector<312x1xi32>
    %14 = arith.andi %11, %13 : vector<312x1xi1>
    %cst = arith.constant 5.000000e-01 : f32
    %15 = vector.broadcast %cst : f32 to vector<312x1xf32>
    %16 = arith.cmpf ogt, %9, %15 : vector<312x1xf32>
    %17 = arith.andi %14, %16 : vector<312x1xi1>
    %c0_3 = arith.constant 0 : index
    %c0_4 = arith.constant 0 : index
    %c0_5 = arith.constant 0 : index
    %c0_6 = arith.constant 0 : index
    %18 = vector.load %arg3[%c0_3, %c0_4, %c0_5, %c0_6] : memref<1x1x312x4xf32, #tpu.memory_space<vmem>>, vector<1x1x312x4xf32>
    %19 = vector.shape_cast %18 : vector<1x1x312x4xf32> to vector<312x4xf32>
    %c0_7 = arith.constant 0 : index
    %c0_8 = arith.constant 0 : index
    %20 = vector.load %arg4[%c0_7, %c0_8] : memref<4x16xf32, #tpu.memory_space<vmem>>, vector<4x16xf32>
    %cst_9 = arith.constant dense<0.000000e+00> : vector<312x16xf32>
    %21 = tpu.matmul %19, %20, %cst_9 {dimension_numbers = #tpu.dot_dimension_numbers<[1], [0], [0], [1], [0, 0, 1, 1], [], []>} : vector<312x4xf32>, vector<4x16xf32>, vector<312x16xf32> -> vector<312x16xf32>
    %c0_10 = arith.constant 0 : index
    %c0_11 = arith.constant 0 : index
    %22 = vector.load %arg5[%c0_10, %c0_11] : memref<1x16xf32, #tpu.memory_space<vmem>>, vector<1x16xf32>
    %23 = vector.broadcast %22 : vector<1x16xf32> to vector<312x16xf32>
    %24 = arith.addf %21, %23 : vector<312x16xf32>
    %cst_12 = arith.constant 0.000000e+00 : f32
    %25 = vector.broadcast %cst_12 : f32 to vector<312x16xf32>
    %26 = arith.cmpf oge, %24, %25 : vector<312x16xf32>
    %cst_13 = arith.constant 2.000000e-01 : f32
    %27 = vector.broadcast %cst_13 : f32 to vector<312x16xf32>
    %28 = arith.mulf %27, %24 : vector<312x16xf32>
    %29 = arith.select %26, %24, %28 : vector<312x16xi1>, vector<312x16xf32>
    %cst_14 = arith.constant 0.000000e+00 : f32
    %30 = vector.shape_cast %17 : vector<312x1xi1> to vector<312x1xi1>
    %31 = vector.broadcast %30 : vector<312x1xi1> to vector<312x16xi1>
    %32 = vector.broadcast %cst_14 : f32 to vector<312x16xf32>
    %33 = arith.select %31, %29, %32 : vector<312x16xi1>, vector<312x16xf32>
    %34 = vector.extract_strided_slice %33 {offsets = [50, 0], sizes = [192, 8], strides = [1, 1]} : vector<312x16xf32> to vector<192x8xf32>
    %35 = vector.extract_strided_slice %33 {offsets = [0, 8], sizes = [312, 8], strides = [1, 1]} : vector<312x16xf32> to vector<312x8xf32>
    %36 = vector.extract_strided_slice %35 {offsets = [25, 0], sizes = [192, 4], strides = [1, 1]} : vector<312x8xf32> to vector<192x4xf32>
    %37 = vector.extract_strided_slice %35 {offsets = [26, 0], sizes = [192, 4], strides = [1, 1]} : vector<312x8xf32> to vector<192x4xf32>
    %38 = vector.extract_strided_slice %35 {offsets = [27, 0], sizes = [192, 4], strides = [1, 1]} : vector<312x8xf32> to vector<192x4xf32>
    %39 = vector.extract_strided_slice %35 {offsets = [49, 0], sizes = [192, 4], strides = [1, 1]} : vector<312x8xf32> to vector<192x4xf32>
    %40 = vector.extract_strided_slice %35 {offsets = [50, 0], sizes = [192, 4], strides = [1, 1]} : vector<312x8xf32> to vector<192x4xf32>
    %41 = vector.extract_strided_slice %35 {offsets = [51, 0], sizes = [192, 4], strides = [1, 1]} : vector<312x8xf32> to vector<192x4xf32>
    %42 = vector.extract_strided_slice %35 {offsets = [73, 0], sizes = [192, 4], strides = [1, 1]} : vector<312x8xf32> to vector<192x4xf32>
    %43 = vector.extract_strided_slice %35 {offsets = [74, 0], sizes = [192, 4], strides = [1, 1]} : vector<312x8xf32> to vector<192x4xf32>
    %44 = vector.extract_strided_slice %35 {offsets = [75, 0], sizes = [192, 4], strides = [1, 1]} : vector<312x8xf32> to vector<192x4xf32>
    %45 = tpu.concatenate %36, %37, %38, %39, %40, %41, %42, %43, %44 in 1 : vector<192x4xf32>, vector<192x4xf32>, vector<192x4xf32>, vector<192x4xf32>, vector<192x4xf32>, vector<192x4xf32>, vector<192x4xf32>, vector<192x4xf32>, vector<192x4xf32> -> vector<192x36xf32>
    %c0_15 = arith.constant 0 : index
    %c0_16 = arith.constant 0 : index
    %46 = vector.load %arg6[%c0_15, %c0_16] : memref<36x8xf32, #tpu.memory_space<vmem>>, vector<36x8xf32>
    %cst_17 = arith.constant dense<0.000000e+00> : vector<192x8xf32>
    %47 = tpu.matmul %45, %46, %cst_17 {dimension_numbers = #tpu.dot_dimension_numbers<[1], [0], [0], [1], [0, 0, 1, 1], [], []>} : vector<192x36xf32>, vector<36x8xf32>, vector<192x8xf32> -> vector<192x8xf32>
    %c0_18 = arith.constant 0 : index
    %c0_19 = arith.constant 0 : index
    %48 = vector.load %arg7[%c0_18, %c0_19] : memref<1x8xf32, #tpu.memory_space<vmem>>, vector<1x8xf32>
    %49 = vector.broadcast %48 : vector<1x8xf32> to vector<192x8xf32>
    %50 = arith.addf %47, %49 : vector<192x8xf32>
    %cst_20 = arith.constant 0.000000e+00 : f32
    %51 = vector.broadcast %cst_20 : f32 to vector<192x8xf32>
    %52 = arith.cmpf oge, %50, %51 : vector<192x8xf32>
    %cst_21 = arith.constant 2.000000e-01 : f32
    %53 = vector.broadcast %cst_21 : f32 to vector<192x8xf32>
    %54 = arith.mulf %53, %50 : vector<192x8xf32>
    %55 = arith.select %52, %50, %54 : vector<192x8xi1>, vector<192x8xf32>
    %56 = vector.extract_strided_slice %35 {offsets = [0, 4], sizes = [192, 4], strides = [1, 1]} : vector<312x8xf32> to vector<192x4xf32>
    %57 = vector.extract_strided_slice %35 {offsets = [1, 4], sizes = [192, 4], strides = [1, 1]} : vector<312x8xf32> to vector<192x4xf32>
    %58 = vector.extract_strided_slice %35 {offsets = [2, 4], sizes = [192, 4], strides = [1, 1]} : vector<312x8xf32> to vector<192x4xf32>
    %59 = vector.extract_strided_slice %35 {offsets = [3, 4], sizes = [192, 4], strides = [1, 1]} : vector<312x8xf32> to vector<192x4xf32>
    %60 = vector.extract_strided_slice %35 {offsets = [4, 4], sizes = [192, 4], strides = [1, 1]} : vector<312x8xf32> to vector<192x4xf32>
    %61 = vector.extract_strided_slice %35 {offsets = [24, 4], sizes = [192, 4], strides = [1, 1]} : vector<312x8xf32> to vector<192x4xf32>
    %62 = vector.extract_strided_slice %35 {offsets = [25, 4], sizes = [192, 4], strides = [1, 1]} : vector<312x8xf32> to vector<192x4xf32>
    %63 = vector.extract_strided_slice %35 {offsets = [26, 4], sizes = [192, 4], strides = [1, 1]} : vector<312x8xf32> to vector<192x4xf32>
    %64 = vector.extract_strided_slice %35 {offsets = [27, 4], sizes = [192, 4], strides = [1, 1]} : vector<312x8xf32> to vector<192x4xf32>
    %65 = vector.extract_strided_slice %35 {offsets = [28, 4], sizes = [192, 4], strides = [1, 1]} : vector<312x8xf32> to vector<192x4xf32>
    %66 = vector.extract_strided_slice %35 {offsets = [48, 4], sizes = [192, 4], strides = [1, 1]} : vector<312x8xf32> to vector<192x4xf32>
    %67 = vector.extract_strided_slice %35 {offsets = [49, 4], sizes = [192, 4], strides = [1, 1]} : vector<312x8xf32> to vector<192x4xf32>
    %68 = vector.extract_strided_slice %35 {offsets = [50, 4], sizes = [192, 4], strides = [1, 1]} : vector<312x8xf32> to vector<192x4xf32>
    %69 = vector.extract_strided_slice %35 {offsets = [51, 4], sizes = [192, 4], strides = [1, 1]} : vector<312x8xf32> to vector<192x4xf32>
    %70 = vector.extract_strided_slice %35 {offsets = [52, 4], sizes = [192, 4], strides = [1, 1]} : vector<312x8xf32> to vector<192x4xf32>
    %71 = vector.extract_strided_slice %35 {offsets = [72, 4], sizes = [192, 4], strides = [1, 1]} : vector<312x8xf32> to vector<192x4xf32>
    %72 = vector.extract_strided_slice %35 {offsets = [73, 4], sizes = [192, 4], strides = [1, 1]} : vector<312x8xf32> to vector<192x4xf32>
    %73 = vector.extract_strided_slice %35 {offsets = [74, 4], sizes = [192, 4], strides = [1, 1]} : vector<312x8xf32> to vector<192x4xf32>
    %74 = vector.extract_strided_slice %35 {offsets = [75, 4], sizes = [192, 4], strides = [1, 1]} : vector<312x8xf32> to vector<192x4xf32>
    %75 = vector.extract_strided_slice %35 {offsets = [76, 4], sizes = [192, 4], strides = [1, 1]} : vector<312x8xf32> to vector<192x4xf32>
    %76 = vector.extract_strided_slice %35 {offsets = [96, 4], sizes = [192, 4], strides = [1, 1]} : vector<312x8xf32> to vector<192x4xf32>
    %77 = vector.extract_strided_slice %35 {offsets = [97, 4], sizes = [192, 4], strides = [1, 1]} : vector<312x8xf32> to vector<192x4xf32>
    %78 = vector.extract_strided_slice %35 {offsets = [98, 4], sizes = [192, 4], strides = [1, 1]} : vector<312x8xf32> to vector<192x4xf32>
    %79 = vector.extract_strided_slice %35 {offsets = [99, 4], sizes = [192, 4], strides = [1, 1]} : vector<312x8xf32> to vector<192x4xf32>
    %80 = vector.extract_strided_slice %35 {offsets = [100, 4], sizes = [192, 4], strides = [1, 1]} : vector<312x8xf32> to vector<192x4xf32>
    %81 = tpu.concatenate %56, %57, %58, %59, %60, %61, %62, %63, %64, %65, %66, %67, %68, %69, %70, %71 in 1 : vector<192x4xf32>, vector<192x4xf32>, vector<192x4xf32>, vector<192x4xf32>, vector<192x4xf32>, vector<192x4xf32>, vector<192x4xf32>, vector<192x4xf32>, vector<192x4xf32>, vector<192x4xf32>, vector<192x4xf32>, vector<192x4xf32>, vector<192x4xf32>, vector<192x4xf32>, vector<192x4xf32>, vector<192x4xf32> -> vector<192x64xf32>
    %82 = tpu.concatenate %72, %73, %74, %75, %76, %77, %78, %79, %80 in 1 : vector<192x4xf32>, vector<192x4xf32>, vector<192x4xf32>, vector<192x4xf32>, vector<192x4xf32>, vector<192x4xf32>, vector<192x4xf32>, vector<192x4xf32>, vector<192x4xf32> -> vector<192x36xf32>
    %83 = tpu.concatenate %81, %82 in 1 : vector<192x64xf32>, vector<192x36xf32> -> vector<192x100xf32>
    %c0_22 = arith.constant 0 : index
    %c0_23 = arith.constant 0 : index
    %84 = vector.load %arg8[%c0_22, %c0_23] : memref<100x8xf32, #tpu.memory_space<vmem>>, vector<100x8xf32>
    %cst_24 = arith.constant dense<0.000000e+00> : vector<192x8xf32>
    %85 = tpu.matmul %83, %84, %cst_24 {dimension_numbers = #tpu.dot_dimension_numbers<[1], [0], [0], [1], [0, 0, 1, 1], [], []>} : vector<192x100xf32>, vector<100x8xf32>, vector<192x8xf32> -> vector<192x8xf32>
    %c0_25 = arith.constant 0 : index
    %c0_26 = arith.constant 0 : index
    %86 = vector.load %arg9[%c0_25, %c0_26] : memref<1x8xf32, #tpu.memory_space<vmem>>, vector<1x8xf32>
    %87 = vector.broadcast %86 : vector<1x8xf32> to vector<192x8xf32>
    %88 = arith.addf %85, %87 : vector<192x8xf32>
    %cst_27 = arith.constant 0.000000e+00 : f32
    %89 = vector.broadcast %cst_27 : f32 to vector<192x8xf32>
    %90 = arith.cmpf oge, %88, %89 : vector<192x8xf32>
    %cst_28 = arith.constant 2.000000e-01 : f32
    %91 = vector.broadcast %cst_28 : f32 to vector<192x8xf32>
    %92 = arith.mulf %91, %88 : vector<192x8xf32>
    %93 = arith.select %90, %88, %92 : vector<192x8xi1>, vector<192x8xf32>
    %cst_29 = arith.constant -1.000000e+30 : f32
    %94 = vector.shape_cast %17 : vector<312x1xi1> to vector<312x1xi1>
    %95 = vector.broadcast %94 : vector<312x1xi1> to vector<312x4xi1>
    %96 = vector.broadcast %cst_29 : f32 to vector<312x4xf32>
    %97 = arith.select %95, %19, %96 : vector<312x4xi1>, vector<312x4xf32>
    %98 = vector.extract_strided_slice %97 {offsets = [0, 0], sizes = [240, 4], strides = [1, 1]} : vector<312x4xf32> to vector<240x4xf32>
    %99 = vector.extract_strided_slice %97 {offsets = [24, 0], sizes = [240, 4], strides = [1, 1]} : vector<312x4xf32> to vector<240x4xf32>
    %100 = arith.maximumf %98, %99 : vector<240x4xf32>
    %101 = vector.extract_strided_slice %97 {offsets = [48, 0], sizes = [240, 4], strides = [1, 1]} : vector<312x4xf32> to vector<240x4xf32>
    %102 = arith.maximumf %100, %101 : vector<240x4xf32>
    %103 = vector.extract_strided_slice %102 {offsets = [25, 0], sizes = [192, 4], strides = [1, 1]} : vector<240x4xf32> to vector<192x4xf32>
    %104 = vector.extract_strided_slice %102 {offsets = [26, 0], sizes = [192, 4], strides = [1, 1]} : vector<240x4xf32> to vector<192x4xf32>
    %105 = arith.maximumf %103, %104 : vector<192x4xf32>
    %106 = vector.extract_strided_slice %102 {offsets = [27, 0], sizes = [192, 4], strides = [1, 1]} : vector<240x4xf32> to vector<192x4xf32>
    %107 = arith.maximumf %105, %106 : vector<192x4xf32>
    %108 = vector.extract_strided_slice %9 {offsets = [50, 0], sizes = [192, 1], strides = [1, 1]} : vector<312x1xf32> to vector<192x1xf32>
    %109 = vector.broadcast %108 : vector<192x1xf32> to vector<192x4xf32>
    %110 = arith.mulf %107, %109 : vector<192x4xf32>
    %c0_30 = arith.constant 0 : index
    %c0_31 = arith.constant 0 : index
    %111 = vector.load %arg10[%c0_30, %c0_31] : memref<4x8xf32, #tpu.memory_space<vmem>>, vector<4x8xf32>
    %cst_32 = arith.constant dense<0.000000e+00> : vector<192x8xf32>
    %112 = tpu.matmul %110, %111, %cst_32 {dimension_numbers = #tpu.dot_dimension_numbers<[1], [0], [0], [1], [0, 0, 1, 1], [], []>} : vector<192x4xf32>, vector<4x8xf32>, vector<192x8xf32> -> vector<192x8xf32>
    %c0_33 = arith.constant 0 : index
    %c0_34 = arith.constant 0 : index
    %113 = vector.load %arg11[%c0_33, %c0_34] : memref<1x8xf32, #tpu.memory_space<vmem>>, vector<1x8xf32>
    %114 = vector.broadcast %113 : vector<1x8xf32> to vector<192x8xf32>
    %115 = arith.addf %112, %114 : vector<192x8xf32>
    %cst_35 = arith.constant 0.000000e+00 : f32
    %116 = vector.broadcast %cst_35 : f32 to vector<192x8xf32>
    %117 = arith.cmpf oge, %115, %116 : vector<192x8xf32>
    %cst_36 = arith.constant 2.000000e-01 : f32
    %118 = vector.broadcast %cst_36 : f32 to vector<192x8xf32>
    %119 = arith.mulf %118, %115 : vector<192x8xf32>
    %120 = arith.select %117, %115, %119 : vector<192x8xi1>, vector<192x8xf32>
    %121 = tpu.concatenate %34, %55, %93, %120 in 1 : vector<192x8xf32>, vector<192x8xf32>, vector<192x8xf32>, vector<192x8xf32> -> vector<192x32xf32>
    %c0_37 = arith.constant 0 : index
    %c0_38 = arith.constant 0 : index
    %c0_39 = arith.constant 0 : index
    %c0_40 = arith.constant 0 : index
    %122 = vector.load %arg12[%c0_37, %c0_38, %c0_39, %c0_40] : memref<1x1x192x32xf32, #tpu.memory_space<vmem>>, vector<1x1x192x32xf32>
    %123 = vector.shape_cast %122 : vector<1x1x192x32xf32> to vector<192x32xf32>
    %124 = vector.shape_cast %121 : vector<192x32xf32> to vector<1x1x192x32xf32>
    tpu.vector_store %arg12[%c0_37, %c0_38, %c0_39, %c0_40], %124 {strides = array<i32>} : memref<1x1x192x32xf32, #tpu.memory_space<vmem>>, vector<1x1x192x32xf32>,
    return
  }
  func.func @transform_0(%arg0: i32, %arg1: i32) -> (i32, i32) {
    %c0_i32 = arith.constant 0 : i32
    %c0_i32_0 = arith.constant 0 : i32
    %c0_i32_1 = arith.constant 0 : i32
    return %c0_i32, %c0_i32_0 : i32, i32
  }
  func.func @transform_1(%arg0: i32, %arg1: i32) -> (i32, i32, i32, i32) {
    %c0_i32 = arith.constant 0 : i32
    %c0_i32_0 = arith.constant 0 : i32
    %c0_i32_1 = arith.constant 0 : i32
    return %arg0, %arg1, %c0_i32, %c0_i32_0 : i32, i32, i32, i32
  }
  func.func @transform_2(%arg0: i32, %arg1: i32) -> (i32, i32) {
    %c0_i32 = arith.constant 0 : i32
    %c0_i32_0 = arith.constant 0 : i32
    %c0_i32_1 = arith.constant 0 : i32
    return %c0_i32, %c0_i32_0 : i32, i32
  }
  func.func @transform_3(%arg0: i32, %arg1: i32) -> (i32, i32) {
    %c0_i32 = arith.constant 0 : i32
    %c0_i32_0 = arith.constant 0 : i32
    %c0_i32_1 = arith.constant 0 : i32
    return %c0_i32, %c0_i32_0 : i32, i32
  }
  func.func @transform_4(%arg0: i32, %arg1: i32) -> (i32, i32) {
    %c0_i32 = arith.constant 0 : i32
    %c0_i32_0 = arith.constant 0 : i32
    %c0_i32_1 = arith.constant 0 : i32
    return %c0_i32, %c0_i32_0 : i32, i32
  }
  func.func @transform_5(%arg0: i32, %arg1: i32) -> (i32, i32) {
    %c0_i32 = arith.constant 0 : i32
    %c0_i32_0 = arith.constant 0 : i32
    %c0_i32_1 = arith.constant 0 : i32
    return %c0_i32, %c0_i32_0 : i32, i32
  }
  func.func @transform_6(%arg0: i32, %arg1: i32) -> (i32, i32) {
    %c0_i32 = arith.constant 0 : i32
    %c0_i32_0 = arith.constant 0 : i32
    %c0_i32_1 = arith.constant 0 : i32
    return %c0_i32, %c0_i32_0 : i32, i32
  }
  func.func @transform_7(%arg0: i32, %arg1: i32) -> (i32, i32) {
    %c0_i32 = arith.constant 0 : i32
    %c0_i32_0 = arith.constant 0 : i32
    %c0_i32_1 = arith.constant 0 : i32
    return %c0_i32, %c0_i32_0 : i32, i32
  }
  func.func @transform_8(%arg0: i32, %arg1: i32) -> (i32, i32) {
    %c0_i32 = arith.constant 0 : i32
    %c0_i32_0 = arith.constant 0 : i32
    %c0_i32_1 = arith.constant 0 : i32
    return %c0_i32, %c0_i32_0 : i32, i32
  }
  func.func @transform_9(%arg0: i32, %arg1: i32) -> (i32, i32) {
    %c0_i32 = arith.constant 0 : i32
    %c0_i32_0 = arith.constant 0 : i32
    %c0_i32_1 = arith.constant 0 : i32
    return %c0_i32, %c0_i32_0 : i32, i32
  }
  func.func @transform_10(%arg0: i32, %arg1: i32) -> (i32, i32, i32, i32) {
    %c0_i32 = arith.constant 0 : i32
    %c0_i32_0 = arith.constant 0 : i32
    %c0_i32_1 = arith.constant 0 : i32
    return %arg0, %arg1, %c0_i32, %c0_i32_0 : i32, i32, i32, i32
  }
}

</mosaic_0001>

<bundles_post_ra>
// kernel: inception_block.1
= control target key start
LH: loop header
LB: loop body
LE: loop exit
PB: predicated region body
PF: predicated region fallthrough
CT: control target
= control target key end

     0   :  { %s7788_s13 = smov 0   ;;  %s7790_s14 = smov 0   ;;  %s14997_s0 = inlined_call_operand.vmem [shape: f32[312,1], index: 0, kind: input, shape index: {}]   ;;  %s14998_s1 = inlined_call_operand.vmem [shape: f32[2,2,312,4], index: 1, kind: input, shape index: {}]   ;;  %s14999_s2 = inlined_call_operand.vmem [shape: f32[4,16], index: 2, kind: input, shape index: {}]   ;;  %s15000_s3 = inlined_call_operand.vmem [shape: f32[1,16], index: 3, kind: input, shape index: {}]   ;;  %s15001_s4 = inlined_call_operand.vmem [shape: f32[36,8], index: 4, kind: input, shape index: {}]   ;;  %s15002_s5 = inlined_call_operand.vmem [shape: f32[1,8], index: 5, kind: input, shape index: {}]   ;;  %s15003_s6 = inlined_call_operand.vmem [shape: f32[100,8], index: 6, kind: input, shape index: {}]   ;;  %s15004_s7 = inlined_call_operand.vmem [shape: f32[1,8], index: 7, kind: input, shape index: {}]   ;;  %s15005_s8 = inlined_call_operand.vmem [shape: f32[4,8], index: 8, kind: input, shape index: {}]   ;;  %s15006_s9 = inlined_call_operand.vmem [shape: f32[1,8], index: 9, kind: input, shape index: {}]   ;;  %s15007_s10 = inlined_call_operand.vmem [shape: f32[2,2,192,32], index: 10, kind: output, shape index: {}]  }
   0x1   :  { %s7792_s15 = smov 0   ;;  %s7794_s16 = smov 0  }
   0x2   :  { %s7796_s17 = smov 0  }
   0x3 LB: > { %s29_s18 = sadd.s32 1, %s7704_s15  ;;  %s32_s19 = sadd.s32 1, %s7708_s16  ;;  %s7712_s17 = sphi %s7796_s17, %s20_s17   ;;  %s7708_s16 = sphi %s7794_s16, %s17413_s16   ;;  %s7704_s15 = sphi %s7792_s15, %s17412_s15   ;;  %s7700_s14 = sphi %s7790_s14, %s17411_s14   ;;  %s7696_s13 = sphi %s7788_s13, %s17410_s13  }
   0x4   : > { %p30_p0 = scmp.ge.s32.totalorder %s29_s18, 2  ;;  %p6999_p1 = scmp.ge.s32.totalorder %s7712_s17, 1 }
   0x5   : > { %p332_p2 = scmp.lt.s32.totalorder %s7712_s17, 5 }
   0x6   : > { %s17415_s18 = smov (%p30_p0, %s29_s18), 0  ;;  %s17417_s19 = smov (!%p30_p0, %s32_s19), %s7708_s16 }
   0x7   : > { %p333_p3 = pnand %p6999_p1, %p332_p2  ;;  %p34_p4 = scmp.ge.s32.totalorder %s17417_s19, 2 }
   0x9   : > { %s17419_s19 = smov (%p34_p4, %s17417_s19), 0  ;;  %336 = sbr.rel (%p333_p3) target bundleno = 2224 (0x8b0), region = 60 }
  0x10   : > { %v706_v0 = vld [vmem:[%s14999_s2] sm:$0xf]  ;;  %vm15008_vm0 = vcmask 1043456   ;;  %p378_p5 = scmp.lt.s32.totalorder %s7700_s14, 1  ;;  %v15009_v1 = vmov 0.0   ;;  %vm15039_vm1 = vmmov 0   ;;  %v396_v3 = vlaneseq }
  0x11   : > { %7255 = vmatprep.subr.mxu0 %v15009_v1  ;;  %7257 = vmatprep.mubr.msk.f32.mxu0 %vm15039_vm1, %v15009_v1  ;;  %p380_p6 = scmp.lt.s32.totalorder %s7696_s13, 1  ;;  %s7002_s22 = sshll.u32 %s7696_s13, 3  ;;  %v7716_v2 = vmov 0   ;;  %vm15484_vm2 = vcmask 31744   ;;  %v443_v7 = vld [vmem:[%s14997_s0] sm:$0xff]  ;;  %v444_v10 = vld [vmem:[%s14997_s0 + $0x8] sm:$0xff] }
  0x12   : > { %7256 = vmatpush3.msk.msra.mxu0 %vm15008_vm0, %v706_v0  ;;  %s17421_s14 = smov (!%p378_p5, %s7700_s14), 1  ;;  %7615 = vset.pattern.permute.xlu0 %v7716_v2  ;;  %s435_s24 = ssub.s32 2, %s7002_s22  ;;  %v7844_v5 = vshrl.u32 %v396_v3, 7  ;;  %vm593_vm4 = vcmp.gt.f32.partialorder %v443_v7, 0.5  ;;  %v445_v14 = vld [vmem:[%s14997_s0 + $0x10] sm:$0xff]  ;;  %vm594_vm9 = vcmp.gt.f32.partialorder %v444_v10, 0.5 }
  0x13   : > { %s17423_s13 = smov (!%p380_p6, %s7696_s13), 1  ;;  %7616 = vset.pattern.permute.xlu1 %v7716_v2  ;;  %s7553_s23 = smul.u32 78, %s17421_s14  ;;  %v447_v16 = vld [vmem:[%s14997_s0 + $0x20] sm:$0xff]  ;;  %vm595_vm14 = vcmp.gt.f32.partialorder %v445_v14, 0.5  ;;  %v446_v20 = vld [vmem:[%s14997_s0 + $0x18] sm:$0xff]  ;;  %v449_v23 = vld [vmem:[%s14997_s0 + $0x30] sm:$0xff] }
  0x14   : > { %s7552_s25 = smul.u32 39, %s17423_s13  ;;  %p436_p7 = scmp.gt.s32.totalorder %s435_s24, 0  ;;  %v398_v8 = vadd.s32 8, %v7844_v5  ;;  %v399_v11 = vadd.s32 16, %v7844_v5  ;;  %v401_v15 = vadd.s32 32, %v7844_v5  ;;  %v400_v17 = vadd.s32 24, %v7844_v5 }
  0x15   : > { %s439_s26 = ssub.s32 18, %s7002_s22  ;;  %v403_v21 = vadd.s32 48, %v7844_v5  ;;  %v402_v24 = vadd.s32 40, %v7844_v5  ;;  %v448_v27 = vld [vmem:[%s14997_s0 + $0x28] sm:$0xff]  ;;  %v405_v28 = vadd.s32 64, %v7844_v5  ;;  %v451_v30 = vld [vmem:[%s14997_s0 + $0x40] sm:$0xff] }
  0x16   : > { %s384_s27 = sadd.s32 %s7553_s23, %s7552_s25  ;;  %p440_p8 = scmp.lt.s32.totalorder %s439_s26, 13  ;;  %v404_v31 = vadd.s32 56, %v7844_v5  ;;  %v450_v34 = vld [vmem:[%s14997_s0 + $0x38] sm:$0xff]  ;;  %v407_v35 = vadd.s32 80, %v7844_v5  ;;  %v453_v37 = vld [vmem:[%s14997_s0 + $0x50] sm:$0xff]  ;;  %v406_v38 = vadd.s32 72, %v7844_v5 }
  0x17   : > { %s7000_s28 = sshll.u32 %s384_s27, 3  ;;  %s17425_s24 = smov (!%p436_p7, %s435_s24), 0  ;;  %v452_v41 = vld [vmem:[%s14997_s0 + $0x48] sm:$0xff]  ;;  %v409_v42 = vadd.s32 96, %v7844_v5  ;;  %v455_v44 = vld [vmem:[%s14997_s0 + $0x60] sm:$0xff]  ;;  %v408_v45 = vadd.s32 88, %v7844_v5 }
  0x18   : > { %s7841_s11 = scalar_lea.vmem %s14998_s1, %s7000_s28  ;;  %s17427_s26 = smov (!%p440_p8, %s439_s26), 13  ;;  %v454_v47 = vld [vmem:[%s14997_s0 + $0x58] sm:$0xff]  ;;  %v411_v48 = vadd.s32 112, %v7844_v5  ;;  %v457_v49 = vld [vmem:[%s14997_s0 + $0x70] sm:$0xff]  ;;  %v410_v51 = vadd.s32 104, %v7844_v5  ;;  %v456_v52 = vld [vmem:[%s14997_s0 + $0x68] sm:$0xff] }
  0x19   : > { %v667_v4 = vld [vmem:[%s7841_s11] sm:$0xff]  ;;  %v668_v6 = vld [vmem:[%s7841_s11 + $0x8] sm:$0xff]  ;;  %s438_s12 = smul.u32 24, %s17425_s24  ;;  %v669_v13 = vld [vmem:[%s7841_s11 + $0x10] sm:$0xff]  ;;  %v413_v54 = vadd.s32 128, %v7844_v5  ;;  %v412_v56 = vadd.s32 120, %v7844_v5 }
  0x1a   : > { %7258 = vmatmul.mubr.msk.f32.vlgmr.msra.gmra.mrb[0].mxu0 %vm15484_vm2, %v667_v4  ;;  %s442_s22 = smul.u32 24, %s17427_s26  ;;  %v670_v19 = vld [vmem:[%s7841_s11 + $0x18] sm:$0xff]  ;;  %v671_v26 = vld [vmem:[%s7841_s11 + $0x20] sm:$0xff]  ;;  %v672_v33 = vld [vmem:[%s7841_s11 + $0x28] sm:$0xff]  ;;  %v8020_v58 = vadd.s32 248, %v7844_v5  ;;  %v8029_v60 = vadd.s32 272, %v7844_v5 }
  0x1b   : > { %7260 = vmatprep.mubr.msk.f32.mxu0 %vm15039_vm1, %v15009_v1  ;;  %v7854_v9 = vstv %s438_s12  ;;  %v673_v40 = vld [vmem:[%s7841_s11 + $0x30] sm:$0xff]  ;;  %v674_v50 = vld [vmem:[%s7841_s11 + $0x38] sm:$0xff]  ;;  %v675_v57 = vld [vmem:[%s7841_s11 + $0x40] sm:$0xff]  ;;  %v8032_v61 = vadd.s32 264, %v7844_v5  ;;  %v8044_v63 = vadd.s32 288, %v7844_v5  ;;  %s7717_s24 = smov 120  }
  0x1c   : > { %vm481_vm3 = vcmp.ge.s32.totalorder %v7844_v5, %v7854_v9  ;;  %v7863_v12 = vstv %s442_s22  ;;  %vm482_vm6 = vcmp.ge.s32.totalorder %v398_v8, %v7854_v9  ;;  %vm483_vm11 = vcmp.ge.s32.totalorder %v399_v11, %v7854_v9  ;;  %v459_v62 = vld [vmem:[%s14997_s0 + $0x80] sm:$0xff]  ;;  %v676_v3 = vld [vmem:[%s7841_s11 + $0x48] sm:$0xff]  ;;  %v458_v4 = vld [vmem:[%s14997_s0 + $0x78] sm:$0xff]  ;;  %s7718_s26 = smov 124   ;;  %s7719_s27 = smov 4  }
  0x1d   : > { %vm519_vm5 = vcmp.lt.s32.totalorder %v7844_v5, %v7863_v12  ;;  %vm520_vm7 = vcmp.lt.s32.totalorder %v398_v8, %v7863_v12  ;;  %vm521_vm12 = vcmp.lt.s32.totalorder %v399_v11, %v7863_v12  ;;  %vm532_vm0 = vcmp.lt.s32.totalorder %v410_v51, %v7863_v12  ;;  %v461_v10 = vld [vmem:[%s14997_s0 + $0x90] sm:$0xff]  ;;  %s7720_s28 = smov 8   ;;  %s7721_s29 = smov 12  }
  0x1e   : > { %7261 = vmatmul.mubr.msk.f32.gmra.mrb[2].mxu0 %vm15484_vm2, %v668_v6  ;;  %vm556_vm8 = vmand %vm481_vm3, %vm519_vm5  ;;  %vm485_vm3 = vcmp.ge.s32.totalorder %v401_v15, %v7854_v9  ;;  %v415_v6 = vadd.s32 144, %v7844_v5  ;;  %v8078_v8 = vadd.s32 280, %v7844_v5  ;;  %v414_v11 = vadd.s32 136, %v7844_v5  ;;  %v677_v14 = vld [vmem:[%s7841_s11 + $0x50] sm:$0xff]  ;;  %s7722_s30 = smov 16   ;;  %s7723_s21 = smov 20  }
  0x1f   : > { %7263 = vmatprep.mubr.msk.f32.mxu0 %vm15039_vm1, %v15009_v1  ;;  %vm630_vm10 = vmand %vm556_vm8, %vm593_vm4  ;;  %vm523_vm4 = vcmp.lt.s32.totalorder %v401_v15, %v7863_v12  ;;  %vm484_vm8 = vcmp.ge.s32.totalorder %v400_v17, %v7854_v9  ;;  %v460_v15 = vld [vmem:[%s14997_s0 + $0x88] sm:$0xff]  ;;  %s15457_s22 = smov 24   ;;  %s7725_s23 = smov 116  }
  0x20   : > { %v1205_v18 = vsel %vm630_vm10, 1, %v7716_v2  ;;  %vm557_vm13 = vmand %vm482_vm6, %vm520_vm7  ;;  %vm597_vm6 = vcmp.gt.f32.partialorder %v447_v16, 0.5  ;;  %v417_v16 = vadd.s32 160, %v7844_v5  ;;  %s7726_s20 = smov 28   ;;  %s7727_s25 = smov 32  }
  0x21   : > { %1243 = vperm.xlu0 %7615, %v1205_v18   ;;  %vm631_vm15 = vmand %vm557_vm13, %vm594_vm9  ;;  %vm522_vm9 = vcmp.lt.s32.totalorder %v400_v17, %v7863_v12  ;;  %vm596_vm13 = vcmp.gt.f32.partialorder %v446_v20, 0.5  ;;  %v463_v18 = vld [vmem:[%s14997_s0 + $0xa0] sm:$0xff]  ;;  %s7728_s12 = smov 36  }
  0x22   : > { %7264 = vmatmul.mubr.msk.f32.gmra.mrb[4].mxu0 %vm15484_vm2, %v669_v13  ;;  %v1206_v22 = vsel %vm631_vm15, 1, %v7716_v2  ;;  %vm558_vm5 = vmand %vm483_vm11, %vm521_vm12  ;;  %vm487_vm12 = vcmp.ge.s32.totalorder %v403_v21, %v7854_v9 }
  0x23   : > { %7266 = vmatprep.mubr.msk.f32.mxu0 %vm15039_vm1, %v15009_v1  ;;  %vm632_vm7 = vmand %vm558_vm5, %vm595_vm14  ;;  %vm525_vm14 = vcmp.lt.s32.totalorder %v403_v21, %v7863_v12  ;;  %vm486_vm5 = vcmp.ge.s32.totalorder %v402_v24, %v7854_v9  ;;  %v678_v21 = vld [vmem:[%s7841_s11 + $0x58] sm:$0xff] }
  0x24   : > { %v1207_v25 = vsel %vm632_vm7, 1, %v7716_v2  ;;  %vm560_vm10 = vmand %vm485_vm3, %vm523_vm4  ;;  %vm599_vm3 = vcmp.gt.f32.partialorder %v449_v23, 0.5  ;;  %v419_v23 = vadd.s32 176, %v7844_v5 }
  0x25   : > { %1246 = vperm.xlu0 %7615, %v1206_v22   ;;  %vm634_vm11 = vmand %vm560_vm10, %vm597_vm6  ;;  %1249 = vperm.xlu1 %7616, %v1207_v25   ;;  %vm524_vm6 = vcmp.lt.s32.totalorder %v402_v24, %v7863_v12  ;;  %vm489_vm10 = vcmp.ge.s32.totalorder %v405_v28, %v7854_v9  ;;  %v462_v22 = vld [vmem:[%s14997_s0 + $0x98] sm:$0xff]  ;;  %v465_v25 = vld [vmem:[%s14997_s0 + $0xb0] sm:$0xff] }
  0x26   : > { %7267 = vmatmul.mubr.msk.f32.gmra.mrb[6].mxu0 %vm15484_vm2, %v670_v19  ;;  %v1209_v29 = vsel %vm634_vm11, 1, %v7716_v2  ;;  %vm559_vm15 = vmand %vm484_vm8, %vm522_vm9  ;;  %vm598_vm8 = vcmp.gt.f32.partialorder %v448_v27, 0.5  ;;  %v416_v19 = vadd.s32 152, %v7844_v5 }
  0x27   : > { %7269 = vmatprep.mubr.msk.f32.mxu0 %vm15039_vm1, %v15009_v1  ;;  %vm633_vm4 = vmand %vm559_vm15, %vm596_vm13  ;;  %vm527_vm13 = vcmp.lt.s32.totalorder %v405_v28, %v7863_v12  ;;  %vm488_vm15 = vcmp.ge.s32.totalorder %v404_v31, %v7854_v9  ;;  %v679_v28 = vld [vmem:[%s7841_s11 + $0x60] sm:$0xff] }
  0x28   : > { %v1208_v32 = vsel %vm633_vm4, 1, %v7716_v2  ;;  %vm562_vm7 = vmand %vm487_vm12, %vm525_vm14  ;;  %vm601_vm12 = vcmp.gt.f32.partialorder %v451_v30, 0.5  ;;  %v421_v30 = vadd.s32 192, %v7844_v5 }
  0x29   : > { %1255 = vperm.xlu0 %7615, %v1209_v29   ;;  %vm636_vm9 = vmand %vm562_vm7, %vm599_vm3  ;;  %1252 = vperm.xlu1 %7616, %v1208_v32   ;;  %vm526_vm3 = vcmp.lt.s32.totalorder %v404_v31, %v7863_v12  ;;  %vm491_vm7 = vcmp.ge.s32.totalorder %v407_v35, %v7854_v9  ;;  %v464_v29 = vld [vmem:[%s14997_s0 + $0xa8] sm:$0xff]  ;;  %v467_v32 = vld [vmem:[%s14997_s0 + $0xc0] sm:$0xff] }
  0x2a   : > { %7270 = vmatmul.mubr.msk.f32.gmra.mrb[8].mxu0 %vm15484_vm2, %v671_v26  ;;  %v1211_v36 = vsel %vm636_vm9, 1, %v7716_v2  ;;  %vm561_vm11 = vmand %vm486_vm5, %vm524_vm6  ;;  %vm600_vm5 = vcmp.gt.f32.partialorder %v450_v34, 0.5  ;;  %v418_v26 = vadd.s32 168, %v7844_v5 }
  0x2b   : > { %7272 = vmatprep.mubr.msk.f32.mxu0 %vm15039_vm1, %v15009_v1  ;;  %vm635_vm14 = vmand %vm561_vm11, %vm598_vm8  ;;  %vm529_vm8 = vcmp.lt.s32.totalorder %v407_v35, %v7863_v12  ;;  %vm490_vm11 = vcmp.ge.s32.totalorder %v406_v38, %v7854_v9  ;;  %v680_v35 = vld [vmem:[%s7841_s11 + $0x68] sm:$0xff] }
  0x2c   : > { %v1210_v39 = vsel %vm635_vm14, 1, %v7716_v2  ;;  %vm564_vm4 = vmand %vm489_vm10, %vm527_vm13  ;;  %vm603_vm10 = vcmp.gt.f32.partialorder %v453_v37, 0.5  ;;  %v423_v37 = vadd.s32 208, %v7844_v5 }
  0x2d   : > { %1261 = vperm.xlu0 %7615, %v1211_v36   ;;  %vm638_vm6 = vmand %vm564_vm4, %vm601_vm12  ;;  %1258 = vperm.xlu1 %7616, %v1210_v39   ;;  %vm528_vm12 = vcmp.lt.s32.totalorder %v406_v38, %v7863_v12  ;;  %vm493_vm4 = vcmp.ge.s32.totalorder %v409_v42, %v7854_v9  ;;  %v466_v36 = vld [vmem:[%s14997_s0 + $0xb8] sm:$0xff]  ;;  %v469_v39 = vld [vmem:[%s14997_s0 + $0xd0] sm:$0xff] }
  0x2e   : > { %7273 = vmatmul.mubr.msk.f32.gmra.mrb[10].mxu0 %vm15484_vm2, %v672_v33  ;;  %v1213_v43 = vsel %vm638_vm6, 1, %v7716_v2  ;;  %vm563_vm9 = vmand %vm488_vm15, %vm526_vm3  ;;  %vm602_vm15 = vcmp.gt.f32.partialorder %v452_v41, 0.5  ;;  %v420_v33 = vadd.s32 184, %v7844_v5 }
  0x2f   : > { %7275 = vmatprep.mubr.msk.f32.mxu0 %vm15039_vm1, %v15009_v1  ;;  %vm637_vm13 = vmand %vm563_vm9, %vm600_vm5  ;;  %vm531_vm5 = vcmp.lt.s32.totalorder %v409_v42, %v7863_v12  ;;  %vm492_vm9 = vcmp.ge.s32.totalorder %v408_v45, %v7854_v9  ;;  %v681_v42 = vld [vmem:[%s7841_s11 + $0x70] sm:$0xff] }
  0x30   : > { %v1212_v46 = vsel %vm637_vm13, 1, %v7716_v2  ;;  %vm566_vm14 = vmand %vm491_vm7, %vm529_vm8  ;;  %vm605_vm7 = vcmp.gt.f32.partialorder %v455_v44, 0.5  ;;  %vm604_vm13 = vcmp.gt.f32.partialorder %v454_v47, 0.5  ;;  %v425_v44 = vadd.s32 224, %v7844_v5 }
  0x31   : > { %1267 = vperm.xlu0 %7615, %v1213_v43   ;;  %vm640_vm3 = vmand %vm566_vm14, %vm603_vm10  ;;  %1264 = vperm.xlu1 %7616, %v1212_v46   ;;  %vm530_vm10 = vcmp.lt.s32.totalorder %v408_v45, %v7863_v12  ;;  %vm607_vm14 = vcmp.gt.f32.partialorder %v457_v49, 0.5  ;;  %v468_v43 = vld [vmem:[%s14997_s0 + $0xc8] sm:$0xff]  ;;  %v471_v46 = vld [vmem:[%s14997_s0 + $0xe0] sm:$0xff]  ;;  %v424_v47 = vadd.s32 216, %v7844_v5 }
  0x32   : > { %7276 = vmatmul.mubr.msk.f32.gmra.mrb[12].mxu0 %vm15484_vm2, %v673_v40  ;;  %v1215_v53 = vsel %vm640_vm3, 1, %v7716_v2  ;;  %vm565_vm6 = vmand %vm490_vm11, %vm528_vm12  ;;  %vm495_vm12 = vcmp.ge.s32.totalorder %v411_v48, %v7854_v9  ;;  %vm606_vm3 = vcmp.gt.f32.partialorder %v456_v52, 0.5  ;;  %v422_v40 = vadd.s32 200, %v7844_v5  ;;  %v682_v49 = vld [vmem:[%s7841_s11 + $0x78] sm:$0xff] }
  0x33   : > { %7278 = vmatprep.mubr.msk.f32.mxu0 %vm15039_vm1, %v15009_v1  ;;  %vm639_vm8 = vmand %vm565_vm6, %vm602_vm15  ;;  %vm533_vm6 = vcmp.lt.s32.totalorder %v411_v48, %v7863_v12 }
  0x34   : > { %v1214_v55 = vsel %vm639_vm8, 1, %v7716_v2  ;;  %vm568_vm11 = vmand %vm493_vm4, %vm531_vm5  ;;  %vm494_vm8 = vcmp.ge.s32.totalorder %v410_v51, %v7854_v9  ;;  %vm497_vm5 = vcmp.ge.s32.totalorder %v413_v54, %v7854_v9  ;;  %v427_v51 = vadd.s32 240, %v7844_v5 }
  0x35   : > { %1273 = vperm.xlu0 %7615, %v1215_v53   ;;  %vm642_vm15 = vmand %vm568_vm11, %vm605_vm7  ;;  %1270 = vperm.xlu1 %7616, %v1214_v55   ;;  %vm535_vm11 = vcmp.lt.s32.totalorder %v413_v54, %v7863_v12  ;;  %v473_v53 = vld [vmem:[%s14997_s0 + $0xf0] sm:$0xff]  ;;  %v426_v54 = vadd.s32 232, %v7844_v5 }
  0x36   : > { %7279 = vmatmul.mubr.msk.f32.gmra.mrb[14].mxu0 %vm15484_vm2, %v674_v50  ;;  %v1217_v59 = vsel %vm642_vm15, 1, %v7716_v2  ;;  %vm567_vm4 = vmand %vm492_vm9, %vm530_vm10  ;;  %vm550_vm10 = vcmp.lt.s32.totalorder %v8020_v58, %v7863_v12  ;;  %vm534_vm15 = vcmp.lt.s32.totalorder %v412_v56, %v7863_v12  ;;  %vm537_vm9 = vcmp.lt.s32.totalorder %v415_v6, %v7863_v12  ;;  %v470_v50 = vld [vmem:[%s14997_s0 + $0xd8] sm:$0xff] }
  0x37   : > { %7281 = vmatprep.mubr.msk.f32.mxu0 %vm15039_vm1, %v15009_v1  ;;  %vm641_vm7 = vmand %vm567_vm4, %vm604_vm13  ;;  %vm553_vm4 = vcmp.lt.s32.totalorder %v8029_v60, %v7863_v12 }
  0x38   : > { %v1216_v0 = vsel %vm641_vm7, 1, %v7716_v2  ;;  %vm570_vm13 = vmand %vm495_vm12, %vm533_vm6  ;;  %vm496_vm6 = vcmp.ge.s32.totalorder %v412_v56, %v7854_v9  ;;  %v683_v56 = vld [vmem:[%s7841_s11 + $0x80] sm:$0xff] }
  0x39   : > { %1279 = vperm.xlu0 %7615, %v1217_v59   ;;  %vm644_vm7 = vmand %vm570_vm13, %vm607_vm14  ;;  %1276 = vperm.xlu1 %7616, %v1216_v0   ;;  %vm609_vm13 = vcmp.gt.f32.partialorder %v459_v62, 0.5  ;;  %v429_v59 = vadd.s32 256, %v7844_v5  ;;  %v475_v0 = vld [vmem:[%s14997_s0 + $0x100] sm:$0xff] }
  0x3a   : > { %7282 = vmatmul.mubr.msk.f32.gmra.mrb[16].mxu0 %vm15484_vm2, %v675_v57  ;;  %v1219_v7 = vsel %vm644_vm7, 1, %v7716_v2  ;;  %vm569_vm14 = vmand %vm494_vm8, %vm532_vm0  ;;  %vm536_vm8 = vcmp.lt.s32.totalorder %v414_v11, %v7863_v12  ;;  %v472_v57 = vld [vmem:[%s14997_s0 + $0xe8] sm:$0xff] }
  0x3b   : > { %7284 = vmatprep.mubr.msk.f32.mxu0 %vm15039_vm1, %v15009_v1  ;;  %vm643_vm12 = vmand %vm569_vm14, %vm606_vm3  ;;  %vm608_vm3 = vcmp.gt.f32.partialorder %v458_v4, 0.5  ;;  %vm622_vm7 = vcmp.gt.f32.partialorder %v472_v57, 0.5  ;;  %v474_v4 = vld [vmem:[%s14997_s0 + $0xf8] sm:$0xff] }
  0x3c   : > { %v1218_v13 = vsel %vm643_vm12, 1, %v7716_v2  ;;  %vm572_vm0 = vmand %vm497_vm5, %vm535_vm11  ;;  %vm499_vm12 = vcmp.ge.s32.totalorder %v415_v6, %v7854_v9  ;;  %vm611_vm11 = vcmp.gt.f32.partialorder %v461_v10, 0.5 }
  0x3d   : > { %1285 = vperm.xlu0 %7615, %v1219_v7   ;;  %vm646_vm14 = vmand %vm572_vm0, %vm609_vm13  ;;  %1282 = vperm.xlu1 %7616, %v1218_v13   ;;  %vm498_vm0 = vcmp.ge.s32.totalorder %v414_v11, %v7854_v9  ;;  %v477_v7 = vld [vmem:[%s14997_s0 + $0x110] sm:$0xff]  ;;  %v476_v13 = vld [vmem:[%s14997_s0 + $0x108] sm:$0xff] }
  0x3e   : > { %7285 = vmatmul.mubr.msk.f32.gmra.mrb[18].mxu0 %vm15484_vm2, %v676_v3  ;;  %v1221_v17 = vsel %vm646_vm14, 1, %v7716_v2  ;;  %vm571_vm5 = vmand %vm496_vm6, %vm534_vm15  ;;  %vm610_vm6 = vcmp.gt.f32.partialorder %v460_v15, 0.5  ;;  %vm501_vm14 = vcmp.ge.s32.totalorder %v417_v16, %v7854_v9  ;;  %v684_v3 = vld [vmem:[%s7841_s11 + $0x88] sm:$0xff]  ;;  %v685_v11 = vld [vmem:[%s7841_s11 + $0x90] sm:$0xff] }
  0x3f   : > { %7287 = vmatprep.mubr.msk.f32.mxu0 %vm15039_vm1, %v15009_v1  ;;  %vm645_vm13 = vmand %vm571_vm5, %vm608_vm3  ;;  %vm539_vm5 = vcmp.lt.s32.totalorder %v417_v16, %v7863_v12  ;;  %v479_v15 = vld [vmem:[%s14997_s0 + $0x120] sm:$0xff] }
  0x40   : > { %v1220_v20 = vsel %vm645_vm13, 1, %v7716_v2  ;;  %vm574_vm15 = vmand %vm499_vm12, %vm537_vm9  ;;  %vm613_vm12 = vcmp.gt.f32.partialorder %v463_v18, 0.5  ;;  %vm500_vm13 = vcmp.ge.s32.totalorder %v416_v19, %v7854_v9 }
  0x41   : > { %1291 = vperm.xlu0 %7615, %v1221_v17   ;;  %vm648_vm3 = vmand %vm574_vm15, %vm611_vm11  ;;  %1288 = vperm.xlu1 %7616, %v1220_v20   ;;  %vm538_vm15 = vcmp.lt.s32.totalorder %v416_v19, %v7863_v12  ;;  %v478_v17 = vld [vmem:[%s14997_s0 + $0x118] sm:$0xff]  ;;  %v688_v20 = vld [vmem:[%s7841_s11 + $0xa8] sm:$0xff] }
  0x42   : > { %7288 = vmatmul.mubr.msk.f32.gmra.mrb[20].mxu0 %vm15484_vm2, %v677_v14  ;;  %v1223_v24 = vsel %vm648_vm3, 1, %v7716_v2  ;;  %vm573_vm9 = vmand %vm498_vm0, %vm536_vm8  ;;  %vm612_vm8 = vcmp.gt.f32.partialorder %v462_v22, 0.5  ;;  %v694_v22 = vld [vmem:[%s7841_s11 + $0xd8] sm:$0xff] }
  0x43   : > { %7290 = vmatprep.mubr.msk.f32.mxu0 %vm15039_vm1, %v15009_v1  ;;  %vm647_vm11 = vmand %vm573_vm9, %vm610_vm6  ;;  %vm503_vm6 = vcmp.ge.s32.totalorder %v419_v23, %v7854_v9  ;;  %vm541_vm9 = vcmp.lt.s32.totalorder %v419_v23, %v7863_v12  ;;  %v695_v23 = vld [vmem:[%s7841_s11 + $0xe0] sm:$0xff] }
  0x44   : > { %v1222_v27 = vsel %vm647_vm11, 1, %v7716_v2  ;;  %vm576_vm3 = vmand %vm501_vm14, %vm539_vm5  ;;  %vm615_vm5 = vcmp.gt.f32.partialorder %v465_v25, 0.5  ;;  %vm502_vm11 = vcmp.ge.s32.totalorder %v418_v26, %v7854_v9  ;;  %v697_v25 = vld [vmem:[%s7841_s11 + $0xf0] sm:$0xff] }
  0x45   : > { %1297 = vperm.xlu0 %7615, %v1223_v24   ;;  %vm650_vm0 = vmand %vm576_vm3, %vm613_vm12  ;;  %1294 = vperm.xlu1 %7616, %v1222_v27   ;;  %vm540_vm3 = vcmp.lt.s32.totalorder %v418_v26, %v7863_v12  ;;  %v696_v24 = vld [vmem:[%s7841_s11 + $0xe8] sm:$0xff]  ;;  %v698_v26 = vld [vmem:[%s7841_s11 + $0xf8] sm:$0xff] }
  0x46   : > { %7291 = vmatmul.mubr.msk.f32.gmra.mrb[22].mxu0 %vm15484_vm2, %v678_v21  ;;  %v1225_v31 = vsel %vm650_vm0, 1, %v7716_v2  ;;  %vm575_vm14 = vmand %vm500_vm13, %vm538_vm15  ;;  %vm614_vm13 = vcmp.gt.f32.partialorder %v464_v29, 0.5  ;;  %v693_v21 = vld [vmem:[%s7841_s11 + $0xd0] sm:$0xff]  ;;  %v699_v27 = vld [vmem:[%s7841_s11 + $0x100] sm:$0xff] }
  0x47   : > { %7293 = vmatprep.mubr.msk.f32.mxu0 %vm15039_vm1, %v15009_v1  ;;  %vm649_vm12 = vmand %vm575_vm14, %vm612_vm8  ;;  %vm505_vm8 = vcmp.ge.s32.totalorder %v421_v30, %v7854_v9  ;;  %vm543_vm14 = vcmp.lt.s32.totalorder %v421_v30, %v7863_v12  ;;  %v701_v29 = vld [vmem:[%s7841_s11 + $0x110] sm:$0xff]  ;;  %v702_v30 = vld [vmem:[%s7841_s11 + $0x118] sm:$0xff] }
  0x48   : > { %v1224_v34 = vsel %vm649_vm12, 1, %v7716_v2  ;;  %vm578_vm0 = vmand %vm503_vm6, %vm541_vm9  ;;  %vm617_vm9 = vcmp.gt.f32.partialorder %v467_v32, 0.5  ;;  %vm504_vm12 = vcmp.ge.s32.totalorder %v420_v33, %v7854_v9 }
  0x49   : > { %1303 = vperm.xlu0 %7615, %v1225_v31   ;;  %vm652_vm15 = vmand %vm578_vm0, %vm615_vm5  ;;  %1300 = vperm.xlu1 %7616, %v1224_v34   ;;  %vm542_vm0 = vcmp.lt.s32.totalorder %v420_v33, %v7863_v12  ;;  %v703_v31 = vld [vmem:[%s7841_s11 + $0x120] sm:$0xff] }
  0x4a   : > { %7294 = vmatmul.mubr.msk.f32.gmra.mrb[24].mxu0 %vm15484_vm2, %v679_v28  ;;  %v1227_v38 = vsel %vm652_vm15, 1, %v7716_v2  ;;  %vm577_vm6 = vmand %vm502_vm11, %vm540_vm3  ;;  %vm616_vm11 = vcmp.gt.f32.partialorder %v466_v36, 0.5  ;;  %v700_v28 = vld [vmem:[%s7841_s11 + $0x108] sm:$0xff] }
  0x4b   : > { %7296 = vmatprep.mubr.msk.f32.mxu0 %vm15039_vm1, %v15009_v1  ;;  %vm651_vm5 = vmand %vm577_vm6, %vm614_vm13  ;;  %vm507_vm13 = vcmp.ge.s32.totalorder %v423_v37, %v7854_v9  ;;  %vm545_vm6 = vcmp.lt.s32.totalorder %v423_v37, %v7863_v12 }
  0x4c   : > { %v1226_v41 = vsel %vm651_vm5, 1, %v7716_v2  ;;  %vm580_vm15 = vmand %vm505_vm8, %vm543_vm14  ;;  %vm619_vm14 = vcmp.gt.f32.partialorder %v469_v39, 0.5  ;;  %vm506_vm5 = vcmp.ge.s32.totalorder %v422_v40, %v7854_v9 }
  0x4d   : > { %1309 = vperm.xlu0 %7615, %v1227_v38   ;;  %vm654_vm3 = vmand %vm580_vm15, %vm617_vm9  ;;  %1306 = vperm.xlu1 %7616, %v1226_v41   ;;  %vm544_vm15 = vcmp.lt.s32.totalorder %v422_v40, %v7863_v12  ;;  %v8418_v40 = vld [vmem:[%s15000_s3] ss:$0 sm:$0xff] }
  0x4e   : > { %7297 = vmatmul.mubr.msk.f32.gmra.mrb[26].mxu0 %vm15484_vm2, %v680_v35  ;;  %v1229_v45 = vsel %vm654_vm3, 1, %v7716_v2  ;;  %vm579_vm8 = vmand %vm504_vm12, %vm542_vm0  ;;  %vm618_vm12 = vcmp.gt.f32.partialorder %v468_v43, 0.5 }
  0x4f   : > { %7299 = vmatprep.mubr.msk.f32.mxu0 %vm15039_vm1, %v15009_v1  ;;  %vm653_vm9 = vmand %vm579_vm8, %vm616_vm11  ;;  %vm509_vm11 = vcmp.ge.s32.totalorder %v425_v44, %v7854_v9  ;;  %vm547_vm8 = vcmp.lt.s32.totalorder %v425_v44, %v7863_v12 }
  0x50   : > { %v1228_v48 = vsel %vm653_vm9, 1, %v7716_v2  ;;  %vm582_vm3 = vmand %vm507_vm13, %vm545_vm6  ;;  %vm621_vm6 = vcmp.gt.f32.partialorder %v471_v46, 0.5  ;;  %vm508_vm9 = vcmp.ge.s32.totalorder %v424_v47, %v7854_v9 }
  0x51   : > { %1315 = vperm.xlu0 %7615, %v1229_v45   ;;  %vm656_vm0 = vmand %vm582_vm3, %vm619_vm14  ;;  %1312 = vperm.xlu1 %7616, %v1228_v48   ;;  %vm546_vm3 = vcmp.lt.s32.totalorder %v424_v47, %v7863_v12 }
  0x52   : > { %7300 = vmatmul.mubr.msk.f32.gmra.mrb[28].mxu0 %vm15484_vm2, %v681_v42  ;;  %v1231_v52 = vsel %vm656_vm0, 1, %v7716_v2  ;;  %vm581_vm13 = vmand %vm506_vm5, %vm544_vm15  ;;  %vm620_vm5 = vcmp.gt.f32.partialorder %v470_v50, 0.5 }
  0x53   : > { %7302 = vmatprep.mubr.msk.f32.mxu0 %vm15039_vm1, %v15009_v1  ;;  %vm655_vm14 = vmand %vm581_vm13, %vm618_vm12  ;;  %vm511_vm12 = vcmp.ge.s32.totalorder %v427_v51, %v7854_v9  ;;  %vm549_vm13 = vcmp.lt.s32.totalorder %v427_v51, %v7863_v12 }
  0x54   : > { %v1230_v55 = vsel %vm655_vm14, 1, %v7716_v2  ;;  %vm584_vm0 = vmand %vm509_vm11, %vm547_vm8  ;;  %vm623_vm8 = vcmp.gt.f32.partialorder %v473_v53, 0.5  ;;  %vm510_vm14 = vcmp.ge.s32.totalorder %v426_v54, %v7854_v9 }
  0x55   : > { %1321 = vperm.xlu0 %7615, %v1231_v52   ;;  %vm658_vm15 = vmand %vm584_vm0, %vm621_vm6  ;;  %1318 = vperm.xlu1 %7616, %v1230_v55   ;;  %vm548_vm0 = vcmp.lt.s32.totalorder %v426_v54, %v7863_v12 }
  0x56   : > { %7303 = vmatmul.mubr.msk.f32.gmra.mrb[30].mxu0 %vm15484_vm2, %v682_v49  ;;  %v1233_v62 = vsel %vm658_vm15, 1, %v7716_v2  ;;  %vm583_vm11 = vmand %vm508_vm9, %vm546_vm3  ;;  %vm513_vm3 = vcmp.ge.s32.totalorder %v429_v59, %v7854_v9 }
  0x57   : > { %7305 = vmatprep.mubr.msk.f32.mxu0 %vm15039_vm1, %v15009_v1  ;;  %vm657_vm6 = vmand %vm583_vm11, %vm620_vm5  ;;  %vm551_vm5 = vcmp.lt.s32.totalorder %v429_v59, %v7863_v12 }
  0x58   : > { %v1232_v5 = vsel %vm657_vm6, 1, %v7716_v2  ;;  %vm586_vm15 = vmand %vm511_vm12, %vm549_vm13  ;;  %vm625_vm13 = vcmp.gt.f32.partialorder %v475_v0, 0.5  ;;  %vm624_vm6 = vcmp.gt.f32.partialorder %v474_v4, 0.5 }
  0x59   : > { %1327 = vperm.xlu0 %7615, %v1233_v62   ;;  %vm660_vm9 = vmand %vm586_vm15, %vm623_vm8  ;;  %1324 = vperm.xlu1 %7616, %v1232_v5  }
  0x5a   : > { %7306 = vmatmul.mubr.msk.f32.gmra.mrb[32].mxu0 %vm15484_vm2, %v683_v56  ;;  %v1235_v6 = vsel %vm660_vm9, 1, %v7716_v2  ;;  %vm585_vm12 = vmand %vm510_vm14, %vm548_vm0  ;;  %vm627_vm0 = vcmp.gt.f32.partialorder %v477_v7, 0.5 }
  0x5b   : > { %7308 = vmatprep.mubr.msk.f32.mxu0 %vm15039_vm1, %v15009_v1  ;;  %vm659_vm11 = vmand %vm585_vm12, %vm622_vm7  ;;  %vm15495_vm7 = vcmp.ge.s32.totalorder %v8020_v58, %v7854_v9  ;;  %vm626_vm12 = vcmp.gt.f32.partialorder %v476_v13, 0.5  ;;  %v686_v58 = vld [vmem:[%s7841_s11 + $0x98] sm:$0xff] }
  0x5c   : > { %v1234_v10 = vsel %vm659_vm11, 1, %v7716_v2  ;;  %vm588_vm8 = vmand %vm513_vm3, %vm551_vm5  ;;  %vm15496_vm3 = vcmp.ge.s32.totalorder %v8029_v60, %v7854_v9 }
  0x5d   : > { %1333 = vperm.xlu0 %7615, %v1235_v6   ;;  %vm662_vm15 = vmand %vm588_vm8, %vm625_vm13  ;;  %1330 = vperm.xlu1 %7616, %v1234_v10   ;;  %vm15497_vm13 = vcmp.lt.s32.totalorder %v8032_v61, %v7863_v12  ;;  %vm629_vm8 = vcmp.gt.f32.partialorder %v479_v15, 0.5 }
  0x5e   : > { %7309 = vmatmul.mubr.msk.f32.gmra.mrb[34].mxu0 %vm15484_vm2, %v684_v3  ;;  %v1237_v14 = vsel %vm662_vm15, 1, %v7716_v2  ;;  %vm587_vm14 = vmand %vm15495_vm7, %vm550_vm10  ;;  %vm15499_vm15 = vcmp.lt.s32.totalorder %v8044_v63, %v7863_v12  ;;  %vm15500_vm7 = vcmp.ge.s32.totalorder %v8044_v63, %v7854_v9 }
  0x5f   : > { %7311 = vmatprep.mubr.msk.f32.mxu0 %vm15039_vm1, %v15009_v1  ;;  %vm661_vm9 = vmand %vm587_vm14, %vm624_vm6 }
  0x60   : > { %v1236_v16 = vsel %vm661_vm9, 1, %v7716_v2  ;;  %vm590_vm5 = vmand %vm15496_vm3, %vm553_vm4  ;;  %vm15498_vm4 = vcmp.ge.s32.totalorder %v8032_v61, %v7854_v9  ;;  %v687_v61 = vld [vmem:[%s7841_s11 + $0xa0] sm:$0xff]  ;;  %vm15501_vm3 = vcmp.lt.s32.totalorder %v8078_v8, %v7863_v12 }
  0x61   : > { %1339 = vperm.xlu0 %7615, %v1237_v14   ;;  %vm664_vm10 = vmand %vm590_vm5, %vm627_vm0  ;;  %1336 = vperm.xlu1 %7616, %v1236_v16   ;;  %vm628_vm0 = vcmp.gt.f32.partialorder %v478_v17, 0.5  ;;  %vm15502_vm5 = vcmp.ge.s32.totalorder %v8078_v8, %v7854_v9  ;;  %v689_v9 = vld [vmem:[%s7841_s11 + $0xb0] sm:$0xff]  ;;  %v691_v12 = vld [vmem:[%s7841_s11 + $0xc0] sm:$0xff] }
  0x62   : > { %7312 = vmatmul.mubr.msk.f32.gmra.mrb[36].mxu0 %vm15484_vm2, %v685_v11  ;;  %v1239_v18 = vsel %vm664_vm10, 1, %v7716_v2  ;;  %vm589_vm11 = vmand %vm15498_vm4, %vm15497_vm13  ;;  %v692_v8 = vld [vmem:[%s7841_s11 + $0xc8] sm:$0xff] }
  0x63   : > { %7314 = vmatprep.mubr.msk.f32.mxu0 %vm15039_vm1, %v15009_v1  ;;  %vm663_vm6 = vmand %vm589_vm11, %vm626_vm12 }
  0x64   : > { %v1238_v60 = vsel %vm663_vm6, 1, %v7716_v2  ;;  %vm592_vm14 = vmand %vm15500_vm7, %vm15499_vm15  ;;  %vm15316_vm15 = vcmask 1046528  }
  0x65   : > { %1345 = vperm.xlu0 %7615, %v1239_v18   ;;  %vm666_vm9 = vmand %vm592_vm14, %vm629_vm8  ;;  %1342 = vperm.xlu1 %7616, %v1238_v60  }
  0x66   : > { %7315 = vmatmul.mubr.msk.f32.gmra.mrb[38].mxu0 %vm15484_vm2, %v686_v58  ;;  %v1241_v19 = vsel %vm666_vm9, 1, %v7716_v2  ;;  %vm591_vm12 = vmand %vm15502_vm5, %vm15501_vm3 }
  0x67   : > { %7317 = vmatprep.mubr.msk.f32.mxu0 %vm15039_vm1, %v15009_v1  ;;  %vm665_vm10 = vmand %vm591_vm12, %vm628_vm0 }
  0x68   : > { %v1240_v63 = vsel %vm665_vm10, 1, %v7716_v2  ;;  %v690_v2 = vld [vmem:[%s7841_s11 + $0xb8] sm:$0xff]  ;;  %vm15261_vm10 = vcmask 1045504  }
  0x69   : > { %1351 = vperm.xlu0 %7615, %v1241_v19   ;;  %1348 = vperm.xlu1 %7616, %v1240_v63  }
  0x6a   : > { %7318 = vmatmul.mubr.msk.f32.gmra.mrb[40].mxu0 %vm15484_vm2, %v687_v61 }
  0x6b   : > { %7320 = vmatprep.mubr.msk.f32.mxu0 %vm15039_vm1, %v15009_v1 }
  0x6e   : > { %7321 = vmatmul.mubr.msk.f32.gmra.mrb[42].mxu0 %vm15484_vm2, %v688_v20 }
  0x6f   : > { %7323 = vmatprep.mubr.msk.f32.mxu0 %vm15039_vm1, %v15009_v1 }
  0x72   : > { %7324 = vmatmul.mubr.msk.f32.gmra.mrb[44].mxu0 %vm15484_vm2, %v689_v9 }
  0x73   : > { %7326 = vmatprep.mubr.msk.f32.mxu0 %vm15039_vm1, %v15009_v1 }
  0x76   : > { %7327 = vmatmul.mubr.msk.f32.gmra.mrb[46].mxu0 %vm15484_vm2, %v690_v2 }
  0x77   : > { %7329 = vmatprep.mubr.msk.f32.mxu0 %vm15039_vm1, %v15009_v1 }
  0x7a   : > { %7330 = vmatmul.mubr.msk.f32.gmra.mrb[48].mxu0 %vm15484_vm2, %v691_v12 }
  0x7b   : > { %7332 = vmatprep.mubr.msk.f32.mxu0 %vm15039_vm1, %v15009_v1 }
  0x7e   : > { %7333 = vmatmul.mubr.msk.f32.gmra.mrb[50].mxu0 %vm15484_vm2, %v692_v8 }
  0x7f   : > { %7335 = vmatprep.mubr.msk.f32.mxu0 %vm15039_vm1, %v15009_v1 }
  0x82   : > { %7336 = vmatmul.mubr.msk.f32.gmra.mrb[52].mxu0 %vm15484_vm2, %v693_v21 }
  0x83   : > { %7338 = vmatprep.mubr.msk.f32.mxu0 %vm15039_vm1, %v15009_v1 }
  0x86   : > { %7339 = vmatmul.mubr.msk.f32.gmra.mrb[54].mxu0 %vm15484_vm2, %v694_v22 }
  0x87   : > { %7341 = vmatprep.mubr.msk.f32.mxu0 %vm15039_vm1, %v15009_v1 }
  0x8a   : > { %7342 = vmatmul.mubr.msk.f32.gmra.mrb[56].mxu0 %vm15484_vm2, %v695_v23 }
  0x8b   : > { %7344 = vmatprep.mubr.msk.f32.mxu0 %vm15039_vm1, %v15009_v1 }
  0x8e   : > { %7345 = vmatmul.mubr.msk.f32.gmra.mrb[58].mxu0 %vm15484_vm2, %v696_v24 }
  0x8f   : > { %7347 = vmatprep.mubr.msk.f32.mxu0 %vm15039_vm1, %v15009_v1 }
  0x92   : > { %7348 = vmatmul.mubr.msk.f32.gmra.mrb[60].mxu0 %vm15484_vm2, %v697_v25 }
  0x93   : > { %7350 = vmatprep.mubr.msk.f32.mxu0 %vm15039_vm1, %v15009_v1 }
  0x96   : > { %7351 = vmatmul.mubr.msk.f32.gmra.mrb[62].mxu0 %vm15484_vm2, %v698_v26 }
  0x97   : > { %7353 = vmatprep.mubr.msk.f32.mxu0 %vm15039_vm1, %v15009_v1 }
  0x9a   : > { %7354 = vmatmul.mubr.msk.f32.gmra.mrb[64].mxu0 %vm15484_vm2, %v699_v27 }
  0x9b   : > { %7356 = vmatprep.mubr.msk.f32.mxu0 %vm15039_vm1, %v15009_v1 }
  0x9e   : > { %7357 = vmatmul.mubr.msk.f32.gmra.mrb[66].mxu0 %vm15484_vm2, %v700_v28 }
  0x9f   : > { %7359 = vmatprep.mubr.msk.f32.mxu0 %vm15039_vm1, %v15009_v1 }
  0xa0   : > { %v8409_v36 = vpop.permute.xlu0 %1243 }
  0xa1   : > { %15505 = vst [vmem:[#allocation4_spill] sm:$0xff] %v8409_v36 }
  0xa2   : > { %7360 = vmatmul.mubr.msk.f32.gmra.mrb[68].mxu0 %vm15484_vm2, %v701_v29 }
  0xa3   : > { %7362 = vmatprep.mubr.msk.f32.mxu0 %vm15039_vm1, %v15009_v1 }
  0xa4   : > { %v8413_v39 = vpop.permute.xlu1 %1249  ;;  %v8421_v44 = vpop.permute.xlu0 %1246 }
  0xa5   : > { %15507 = vst [vmem:[#allocation6_spill] sm:$0xff] %v8413_v39  ;;  %15508 = vst [vmem:[#allocation7_spill] sm:$0xff] %v8421_v44 }
  0xa6   : > { %7363 = vmatmul.mubr.msk.f32.gmra.mrb[70].mxu0 %vm15484_vm2, %v702_v30 }
  0xa7   : > { %7365 = vmatprep.mubr.msk.f32.mxu0 %vm15039_vm1, %v15009_v1 }
  0xa8   : > { %v8423_v46 = vpop.permute.xlu1 %1252  ;;  %v8433_v53 = vpop.permute.xlu0 %1255 }
  0xa9   : > { %15509 = vst [vmem:[#allocation8_spill] sm:$0xff] %v8423_v46  ;;  %vm15259_vm4 = vcmp.eq.s32.totalorder %v8423_v46, 1  ;;  %15511 = vst [vmem:[#allocation10_spill] sm:$0xff] %v8433_v53  ;;  %vm15260_vm8 = vcmp.eq.s32.totalorder %v8433_v53, 1 }
  0xaa   : > { %7366 = vmatmul.mubr.msk.f32.gmra.mrb[72].mxu0 %vm15484_vm2, %v703_v31 }
  0xab   : > { %7368 = vmatprep.mubr.msk.f32.mxu0 %vm15039_vm1, %v15009_v1 }
  0xac   : > { %v8445_v3 = vpop.permute.xlu1 %1258  ;;  %v8463_v16 = vpop.permute.xlu0 %1261 }
  0xad   : > { %15513 = vst [vmem:[#allocation12_spill] sm:$0xff] %v8445_v3  ;;  %vm15253_vm7 = vcmp.eq.s32.totalorder %v8445_v3, 1  ;;  %15516 = vst [vmem:[#allocation15_spill] sm:$0xff] %v8463_v16  ;;  %vm15258_vm0 = vcmp.eq.s32.totalorder %v8463_v16, 1 }
  0xb0   : > { %v8479_v2 = vpop.permute.xlu1 %1264  ;;  %v8499_v30 = vpop.permute.xlu0 %1267 }
  0xb1   : > { %15519 = vst [vmem:[#allocation18_spill] sm:$0xff] %v8479_v2  ;;  %vm15257_vm3 = vcmp.eq.s32.totalorder %v8479_v2, 1  ;;  %15522 = vst [vmem:[#allocation21_spill] sm:$0xff] %v8499_v30  ;;  %vm15210_vm12 = vcmp.eq.s32.totalorder %v8499_v30, 1 }
  0xed   : > { %v8405_v32 = vpop.f32.mrb[0].mxu0 }
  0xee   : > { %15503 = vst [vmem:[#allocation2_spill] sm:$0xff] %v8405_v32  ;;  %v7259_v33 = vpop.f32.mrb[1].mxu0 }
  0xf1   : > { %v8407_v34 = vpop.f32.mrb[2].mxu0 }
  0xf2   : > { %15504 = vst [vmem:[#allocation3_spill] sm:$0xff] %v8407_v34  ;;  %v7262_v35 = vpop.f32.mrb[3].mxu0 }
  0xf5   : > { %v8411_v37 = vpop.f32.mrb[4].mxu0 }
  0xf6   : > { %15506 = vst [vmem:[#allocation5_spill] sm:$0xff] %v8411_v37  ;;  %v7265_v38 = vpop.f32.mrb[5].mxu0 }
  0xf9   : > { %v917_v41 = vpop.f32.mrb[6].mxu0 }
  0xfa   : > { %v918_v42 = vadd.f32 %v8418_v40, %v917_v41  ;;  %v7268_v43 = vpop.f32.mrb[7].mxu0 }
  0xfc   : > { %vm1097_vm13 = vcmp.ge.f32.partialorder %v918_v42, 0.0  ;;  %v1134_v45 = vmul.f32 0.2, %v918_v42 }
  0xfd   : > { %v922_v47 = vpop.f32.mrb[8].mxu0 }
  0xfe   : > { %v1171_v48 = vsel %vm1097_vm13, %v918_v42, %v1134_v45  ;;  %v923_v49 = vadd.f32 %v8418_v40, %v922_v47  ;;  %v7271_v50 = vpop.f32.mrb[9].mxu0 }
  0xff   : > { %v8429_v51 = vsel %vm15259_vm4, %v1171_v48, 0.0 }
 0x100   : > { %15510 = vst [vmem:[#allocation9_spill] sm:$0xff] %v8429_v51  ;;  %vm1098_vm11 = vcmp.ge.f32.partialorder %v923_v49, 0.0  ;;  %v1135_v52 = vmul.f32 0.2, %v923_v49  ;;  %1452 = vrot.lane.b32.xlu1 %v8429_v51, %s7717_s24  ;;  %v15011_v0 = vrot.slane %v8429_v51, 1 }
 0x101   : > { %v927_v54 = vpop.f32.mrb[10].mxu0 }
 0x102   : > { %v1172_v55 = vsel %vm1098_vm11, %v923_v49, %v1135_v52  ;;  %v928_v56 = vadd.f32 %v8418_v40, %v927_v54  ;;  %v7274_v57 = vpop.f32.mrb[11].mxu0 }
 0x103   : > { %v8439_v59 = vsel %vm15260_vm8, %v1172_v55, 0.0 }
 0x104   : > { %15512 = vst [vmem:[#allocation11_spill] sm:$0xff] %v8439_v59  ;;  %vm1099_vm6 = vcmp.ge.f32.partialorder %v928_v56, 0.0  ;;  %v1136_v62 = vmul.f32 0.2, %v928_v56  ;;  %1454 = vrot.lane.b32.xlu0 %v8439_v59, %s7717_s24  ;;  %v1529_v5 = vrot.slane %v8439_v59, 1 }
 0x105   : > { %v932_v4 = vpop.f32.mrb[12].mxu0 }
 0x106   : > { %v1173_v6 = vsel %vm1099_vm6, %v928_v56, %v1136_v62  ;;  %v933_v7 = vadd.f32 %v8418_v40, %v932_v4  ;;  %v7277_v10 = vpop.f32.mrb[13].mxu0  ;;  %v8452_v11 = vsel %vm15316_vm15, %v15011_v0, %v1529_v5  ;;  %v8538_v62 = vpop.permute.xlu1 %1270 }
 0x107   : > { %15514 = vst [vmem:[#allocation13_spill] sm:$0xff] %v8452_v11  ;;  %v8456_v13 = vsel %vm15253_vm7, %v1173_v6, 0.0  ;;  %15527 = vst [vmem:[#allocation26_spill] sm:$0xff] %v8538_v62  ;;  %vm15078_vm11 = vcmp.eq.s32.totalorder %v8538_v62, 1  ;;  %v8544_v6 = vpop.permute.xlu0 %1273  ;;  %vm2388_vm7 = vcmask 261120  }
 0x108   : > { %15515 = vst [vmem:[#allocation14_spill] sm:$0xff] %v8456_v13  ;;  %vm1100_vm14 = vcmp.ge.f32.partialorder %v933_v7, 0.0  ;;  %v1137_v14 = vmul.f32 0.2, %v933_v7  ;;  %1577 = vrot.lane.b32.xlu0 %v8452_v11, %s7718_s26  ;;  %1456 = vrot.lane.b32.xlu1 %v8456_v13, %s7717_s24  ;;  %v1531_v15 = vrot.slane %v8456_v13, 1  ;;  %15529 = vst [vmem:[#allocation28_spill] sm:$0xff] %v8544_v6 }
 0x109   : > { %v937_v58 = vpop.f32.mrb[14].mxu0 }
 0x10a   : > { %v1174_v17 = vsel %vm1100_vm14, %v933_v7, %v1137_v14  ;;  %v938_v18 = vadd.f32 %v8418_v40, %v937_v58  ;;  %v8468_v60 = vsel %vm15316_vm15, %v1529_v5, %v1531_v15  ;;  %v7280_v61 = vpop.f32.mrb[15].mxu0  ;;  %vm15143_vm14 = vcmp.eq.s32.totalorder %v8544_v6, 1 }
 0x10b   : > { %15517 = vst [vmem:[#allocation16_spill] sm:$0xff] %v8468_v60  ;;  %v8472_v19 = vsel %vm15258_vm0, %v1174_v17, 0.0  ;;  %v8564_v61 = vpop.permute.xlu0 %1279  ;;  %vm16041_vm0 = vcmask 1043456  }
 0x10c   : > { %15518 = vst [vmem:[#allocation17_spill] sm:$0xff] %v8472_v19  ;;  %vm1101_vm9 = vcmp.ge.f32.partialorder %v938_v18, 0.0  ;;  %v1138_v63 = vmul.f32 0.2, %v938_v18  ;;  %1579 = vrot.lane.b32.xlu1 %v8468_v60, %s7718_s26  ;;  %1458 = vrot.lane.b32.xlu0 %v8472_v19, %s7717_s24  ;;  %v1533_v20 = vrot.slane %v8472_v19, 1  ;;  %v15010_v43 = vrot.slane %v8472_v19, 2  ;;  %vm16042_vm4 = vmmov %vm16041_vm0 }
 0x10d   : > { %v942_v9 = vpop.f32.mrb[16].mxu0  ;;  %15531 = vst [vmem:[#allocation30_spill] sm:$0xff] %v8564_v61  ;;  %vm16047_vm8 = vmmov %vm16041_vm0 }
 0x10e   : > { %v1175_v12 = vsel %vm1101_vm9, %v938_v18, %v1138_v63  ;;  %v943_v8 = vadd.f32 %v8418_v40, %v942_v9  ;;  %v8483_v21 = vsel %vm15316_vm15, %v1531_v15, %v1533_v20  ;;  %v7283_v22 = vpop.f32.mrb[17].mxu0 }
 0x10f   : > { %15520 = vst [vmem:[#allocation19_spill] sm:$0xff] %v8483_v21  ;;  %v8488_v23 = vsel %vm15257_vm3, %v1175_v12, 0.0  ;;  %vm2500_vm3 = vcmask 293888  }
 0x110   : > { %15521 = vst [vmem:[#allocation20_spill] sm:$0xff] %v8488_v23  ;;  %1730 = vrot.lane.b32.xlu1 %v8472_v19, %s7719_s27  ;;  %1581 = vrot.lane.b32.xlu0 %v8483_v21, %s7718_s26  ;;  %v1139_v24 = vmul.f32 0.2, %v943_v8  ;;  %vm1102_vm5 = vcmp.ge.f32.partialorder %v943_v8, 0.0  ;;  %v1535_v27 = vrot.slane %v8488_v23, 1  ;;  %v1660_v35 = vrot.slane %v8488_v23, 2 }
 0x111   : > { %v947_v25 = vpop.f32.mrb[18].mxu0 }
 0x112   : > { %v7286_v26 = vpop.f32.mrb[19].mxu0  ;;  %v1176_v28 = vsel %vm1102_vm5, %v943_v8, %v1139_v24  ;;  %v8503_v33 = vsel %vm15316_vm15, %v1533_v20, %v1535_v27  ;;  %v948_v41 = vadd.f32 %v8418_v40, %v947_v25  ;;  %v8519_v47 = vsel %vm15261_vm10, %v15010_v43, %v1660_v35  ;;  %v8566_v20 = vpop.permute.xlu1 %1276 }
 0x113   : > { %15523 = vst [vmem:[#allocation22_spill] sm:$0xff] %v8503_v33  ;;  %v8508_v38 = vsel %vm15210_vm12, %v1176_v28, 0.0  ;;  %15525 = vst [vmem:[#allocation24_spill] sm:$0xff] %v8519_v47  ;;  %v8582_v26 = vpop.permute.xlu0 %1285  ;;  %vm15077_vm5 = vcmp.eq.s32.totalorder %v8566_v20, 1 }
 0x114   : > { %1732 = vrot.lane.b32.xlu0 %v8488_v23, %s7719_s27  ;;  %1460 = vrot.lane.b32.xlu1 %v8488_v23, %s7717_s24  ;;  %15524 = vst [vmem:[#allocation23_spill] sm:$0xff] %v8508_v38  ;;  %v1537_v48 = vrot.slane %v8508_v38, 1  ;;  %v1140_v49 = vmul.f32 0.2, %v948_v41  ;;  %vm1103_vm13 = vcmp.ge.f32.partialorder %v948_v41, 0.0  ;;  %v1662_v55 = vrot.slane %v8508_v38, 2 }
 0x115   : > { %v952_v29 = vpop.f32.mrb[20].mxu0  ;;  %15532 = vst [vmem:[#allocation31_spill] sm:$0xff] %v8566_v20  ;;  %15535 = vst [vmem:[#allocation34_spill] sm:$0xff] %v8582_v26  ;;  %vm15057_vm1 = vcmp.eq.s32.totalorder %v8582_v26, 1 }
 0x116   : > { %v7289_v31 = vpop.f32.mrb[21].mxu0  ;;  %v8529_v54 = vsel %vm15316_vm15, %v1535_v27, %v1537_v48  ;;  %v1177_v56 = vsel %vm1103_vm13, %v948_v41, %v1140_v49  ;;  %v8542_v4 = vsel %vm15261_vm10, %v1660_v35, %v1662_v55  ;;  %v953_v10 = vadd.f32 %v8418_v40, %v952_v29  ;;  %v8592_v28 = vpop.permute.xlu1 %1282 }
 0x117   : > { %15526 = vst [vmem:[#allocation25_spill] sm:$0xff] %v8529_v54  ;;  %15528 = vst [vmem:[#allocation27_spill] sm:$0xff] %v8542_v4  ;;  %v8548_v7 = vsel %vm15078_vm11, %v1177_v56, 0.0  ;;  %v8604_v49 = vpop.permute.xlu0 %1291 }
 0x118   : > { %1811 = vrot.lane.b32.xlu0 %v8503_v33, %s7720_s28  ;;  %1583 = vrot.lane.b32.xlu1 %v8503_v33, %s7718_s26  ;;  %15530 = vst [vmem:[#allocation29_spill] sm:$0xff] %v8548_v7  ;;  %v1539_v58 = vrot.slane %v8548_v7, 1  ;;  %v1141_v17 = vmul.f32 0.2, %v953_v10  ;;  %vm1104_vm6 = vcmp.ge.f32.partialorder %v953_v10, 0.0  ;;  %v1664_v12 = vrot.slane %v8548_v7, 2 }
 0x119   : > { %v957_v42 = vpop.f32.mrb[22].mxu0  ;;  %15537 = vst [vmem:[#allocation36_spill] sm:$0xff] %v8592_v28  ;;  %15538 = vst [vmem:[#allocation37_spill] sm:$0xff] %v8604_v49 }
 0x11a   : > { %v7292_v45 = vpop.f32.mrb[23].mxu0  ;;  %v8569_v9 = vsel %vm15316_vm15, %v1537_v48, %v1539_v58  ;;  %v1178_v8 = vsel %vm1104_vm6, %v953_v10, %v1141_v17  ;;  %v8580_v25 = vsel %vm15261_vm10, %v1662_v55, %v1664_v12  ;;  %v958_v29 = vadd.f32 %v8418_v40, %v957_v42  ;;  %v8606_v55 = vpop.permute.xlu1 %1288 }
 0x11b   : > { %15533 = vst [vmem:[#allocation32_spill] sm:$0xff] %v8569_v9  ;;  %15534 = vst [vmem:[#allocation33_spill] sm:$0xff] %v8580_v25  ;;  %v8586_v27 = vsel %vm15143_vm14, %v1178_v8, 0.0  ;;  %vm15074_vm6 = vcmp.eq.s32.totalorder %v8564_v61, 1 }
 0x11c   : > { %1892 = vrot.lane.b32.xlu1 %v8519_v47, %s7721_s29  ;;  %1462 = vrot.lane.b32.xlu0 %v8508_v38, %s7717_s24  ;;  %15536 = vst [vmem:[#allocation35_spill] sm:$0xff] %v8586_v27  ;;  %v1541_v41 = vrot.slane %v8586_v27, 1  ;;  %v1142_v45 = vmul.f32 0.2, %v958_v29  ;;  %vm1105_vm9 = vcmp.ge.f32.partialorder %v958_v29, 0.0  ;;  %15539 = vst [vmem:[#allocation38_spill] sm:$0xff] %v8606_v55 }
 0x11d   : > { %v8526_v50 = vpop.f32.mrb[24].mxu0  ;;  %v1666_v56 = vrot.slane %v8586_v27, 2 }
 0x11e   : > { %v7295_v52 = vpop.f32.mrb[25].mxu0  ;;  %v8609_v42 = vsel %vm15316_vm15, %v1539_v58, %v1541_v41  ;;  %v8632_v8 = vpop.permute.xlu1 %1294 }
 0x11f   : > { %15540 = vst [vmem:[#allocation39_spill] sm:$0xff] %v8609_v42  ;;  %v8620_v17 = vsel %vm15261_vm10, %v1664_v12, %v1666_v56  ;;  %15544 = vst [vmem:[#allocation43_spill] sm:$0xff] %v8632_v8 }
 0x120   : > { %1734 = vrot.lane.b32.xlu1 %v8508_v38, %s7719_s27  ;;  %1585 = vrot.lane.b32.xlu0 %v8529_v54, %s7718_s26  ;;  %15541 = vst [vmem:[#allocation40_spill] sm:$0xff] %v8620_v17 }
 0x121   : > { %v8536_v57 = vpop.f32.mrb[26].mxu0 }
 0x122   : > { %v7298_v5 = vpop.f32.mrb[27].mxu0  ;;  %v8647_v1 = vpop.permute.xlu1 %1300 }
 0x123   : > { %v1179_v5 = vsel %vm1105_vm9, %v958_v29, %v1142_v45  ;;  %15546 = vst [vmem:[#allocation45_spill] sm:$0xff] %v8647_v1 }
 0x124   : > { %1813 = vrot.lane.b32.xlu1 %v8529_v54, %s7720_s28  ;;  %1894 = vrot.lane.b32.xlu0 %v8542_v4, %s7721_s29  ;;  %v8626_v58 = vsel %vm15077_vm5, %v1179_v5, 0.0  ;;  %vm4525_vm5 = vcmask 1040384  }
 0x125   : > { %v8555_v14 = vpop.f32.mrb[28].mxu0  ;;  %15543 = vst [vmem:[#allocation42_spill] sm:$0xff] %v8626_v58 }
 0x126   : > { %v7301_v15 = vpop.f32.mrb[29].mxu0 }
 0x128   : > { %1736 = vrot.lane.b32.xlu0 %v8548_v7, %s7719_s27  ;;  %1464 = vrot.lane.b32.xlu1 %v8548_v7, %s7717_s24 }
 0x129   : > { %v8562_v18 = vpop.f32.mrb[30].mxu0 }
 0x12a   : > { %v7304_v63 = vpop.f32.mrb[31].mxu0 }
 0x12b   : > { %v8622_v63 = vpop.permute.xlu0 %1297 }
 0x12c   : > { %1970 = vrot.lane.b32.xlu0 %v8548_v7, %s7722_s30  ;;  %1587 = vrot.lane.b32.xlu1 %v8569_v9, %s7718_s26  ;;  %15542 = vst [vmem:[#allocation41_spill] sm:$0xff] %v8622_v63 }
 0x12d   : > { %v8576_v22 = vpop.f32.mrb[32].mxu0 }
 0x12e   : > { %v7307_v24 = vpop.f32.mrb[33].mxu0 }
 0x12f   : > { %v963_v24 = vadd.f32 %v8418_v40, %v8526_v50  ;;  %v8645_v5 = vpop.permute.xlu0 %1303 }
 0x130   : > { %1815 = vrot.lane.b32.xlu0 %v8569_v9, %s7720_s28  ;;  %1896 = vrot.lane.b32.xlu1 %v8580_v25, %s7721_s29  ;;  %15545 = vst [vmem:[#allocation44_spill] sm:$0xff] %v8645_v5 }
 0x131   : > { %v8595_v31 = vpop.f32.mrb[34].mxu0  ;;  %v1143_v45 = vmul.f32 0.2, %v963_v24  ;;  %vm1106_vm13 = vcmp.ge.f32.partialorder %v963_v24, 0.0 }
 0x132   : > { %v7310_v35 = vpop.f32.mrb[35].mxu0 }
 0x133   : > { %v1543_v35 = vrot.slane %v8626_v58, 1  ;;  %v1180_v43 = vsel %vm1106_vm13, %v963_v24, %v1143_v45  ;;  %v8663_v62 = vpop.permute.xlu0 %1309  ;;  %v8673_v24 = vpop.permute.xlu1 %1306  ;;  %vm15070_vm13 = vcmp.eq.s32.totalorder %v8592_v28, 1 }
 0x134   : > { %1738 = vrot.lane.b32.xlu1 %v8586_v27, %s7719_s27  ;;  %1466 = vrot.lane.b32.xlu0 %v8586_v27, %s7717_s24  ;;  %15548 = vst [vmem:[#allocation47_spill] sm:$0xff] %v8663_v62  ;;  %15550 = vst [vmem:[#allocation49_spill] sm:$0xff] %v8673_v24 }
 0x135   : > { %v8602_v48 = vpop.f32.mrb[36].mxu0  ;;  %v8650_v50 = vsel %vm15316_vm15, %v1541_v41, %v1543_v35  ;;  %v8667_v41 = vsel %vm15074_vm6, %v1180_v43, 0.0 }
 0x136   : > { %v7313_v52 = vpop.f32.mrb[37].mxu0  ;;  %15549 = vst [vmem:[#allocation48_spill] sm:$0xff] %v8667_v41  ;;  %v1545_v6 = vrot.slane %v8667_v41, 1 }
 0x137   : > { %v8686_v30 = vpop.permute.xlu0 %1315  ;;  %v8688_v2 = vpop.permute.xlu1 %1312 }
 0x138   : > { %1972 = vrot.lane.b32.xlu1 %v8586_v27, %s7722_s30  ;;  %1589 = vrot.lane.b32.xlu0 %v8609_v42, %s7718_s26  ;;  %15551 = vst [vmem:[#allocation50_spill] sm:$0xff] %v8686_v30  ;;  %15552 = vst [vmem:[#allocation51_spill] sm:$0xff] %v8688_v2 }
 0x139   : > { %v8616_v10 = vpop.f32.mrb[38].mxu0 }
 0x13a   : > { %v7316_v15 = vpop.f32.mrb[39].mxu0 }
 0x13b   : > { %v8704_v9 = vpop.permute.xlu0 %1321 }
 0x13c   : > { %1817 = vrot.lane.b32.xlu1 %v8609_v42, %s7720_s28  ;;  %1898 = vrot.lane.b32.xlu0 %v8620_v17, %s7721_s29  ;;  %15554 = vst [vmem:[#allocation53_spill] sm:$0xff] %v8704_v9 }
 0x13d   : > { %v8636_v29 = vpop.f32.mrb[40].mxu0 }
 0x13e   : > { %v7319_v12 = vpop.f32.mrb[41].mxu0 }
 0x13f   : > { %v1668_v12 = vrot.slane %v8626_v58, 2  ;;  %v8727_v33 = vpop.permute.xlu0 %1327 }
 0x140   : > { %1740 = vrot.lane.b32.xlu0 %v8626_v58, %s7719_s27  ;;  %1468 = vrot.lane.b32.xlu1 %v8626_v58, %s7717_s24  ;;  %15557 = vst [vmem:[#allocation56_spill] sm:$0xff] %v8727_v33 }
 0x141   : > { %v8643_v52 = vpop.f32.mrb[42].mxu0 }
 0x142   : > { %v7322_v15 = vpop.f32.mrb[43].mxu0 }
 0x143   : > { %v8661_v15 = vsel %vm15261_vm10, %v1666_v56, %v1668_v12  ;;  %v8745_v47 = vpop.permute.xlu0 %1333 }
 0x144   : > { %1974 = vrot.lane.b32.xlu0 %v8626_v58, %s7722_s30  ;;  %1591 = vrot.lane.b32.xlu1 %v8650_v50, %s7718_s26  ;;  %15547 = vst [vmem:[#allocation46_spill] sm:$0xff] %v8661_v15  ;;  %15560 = vst [vmem:[#allocation59_spill] sm:$0xff] %v8745_v47 }
 0x145   : > { %v8657_v0 = vpop.f32.mrb[44].mxu0 }
 0x146   : > { %v7325_v20 = vpop.f32.mrb[45].mxu0 }
 0x147   : > { %v968_v20 = vadd.f32 %v8418_v40, %v8536_v57  ;;  %v8691_v57 = vsel %vm15316_vm15, %v1543_v35, %v1545_v6 }
 0x148   : > { %1819 = vrot.lane.b32.xlu0 %v8650_v50, %s7720_s28  ;;  %1900 = vrot.lane.b32.xlu1 %v8661_v15, %s7721_s29 }
 0x149   : > { %v8677_v45 = vpop.f32.mrb[46].mxu0  ;;  %v1144_v43 = vmul.f32 0.2, %v968_v20  ;;  %vm1107_vm9 = vcmp.ge.f32.partialorder %v968_v20, 0.0 }
 0x14a   : > { %v7328_v56 = vpop.f32.mrb[47].mxu0 }
 0x14b   : > { %v1670_v56 = vrot.slane %v8667_v41, 2  ;;  %v1181_v16 = vsel %vm1107_vm9, %v968_v20, %v1144_v43  ;;  %v8714_v20 = vpop.permute.xlu1 %1318 }
 0x14c   : > { %1742 = vrot.lane.b32.xlu1 %v8667_v41, %s7719_s27  ;;  %1470 = vrot.lane.b32.xlu0 %v8667_v41, %s7717_s24  ;;  %v8708_v35 = vsel %vm15070_vm13, %v1181_v16, 0.0  ;;  %15556 = vst [vmem:[#allocation55_spill] sm:$0xff] %v8714_v20 }
 0x14d   : > { %v8684_v61 = vpop.f32.mrb[48].mxu0  ;;  %15555 = vst [vmem:[#allocation54_spill] sm:$0xff] %v8708_v35  ;;  %v1547_v54 = vrot.slane %v8708_v35, 1 }
 0x14e   : > { %v7331_v3 = vpop.f32.mrb[49].mxu0 }
 0x14f   : > { %v8702_v3 = vsel %vm15261_vm10, %v1668_v12, %v1670_v56  ;;  %v8729_v60 = vpop.permute.xlu1 %1324 }
 0x150   : > { %1976 = vrot.lane.b32.xlu1 %v8667_v41, %s7722_s30  ;;  %1593 = vrot.lane.b32.xlu0 %v8691_v57, %s7718_s26  ;;  %15553 = vst [vmem:[#allocation52_spill] sm:$0xff] %v8702_v3  ;;  %15558 = vst [vmem:[#allocation57_spill] sm:$0xff] %v8729_v60  ;;  %v8768_v41 = vpop.permute.xlu0 %1339 }
 0x151   : > { %v8698_v46 = vpop.f32.mrb[50].mxu0  ;;  %15563 = vst [vmem:[#allocation62_spill] sm:$0xff] %v8768_v41 }
 0x152   : > { %v7334_v53 = vpop.f32.mrb[51].mxu0 }
 0x153   : > { %v973_v53 = vadd.f32 %v8418_v40, %v8555_v14  ;;  %v8732_v14 = vsel %vm15316_vm15, %v1545_v6, %v1547_v54 }
 0x154   : > { %1821 = vrot.lane.b32.xlu1 %v8691_v57, %s7720_s28  ;;  %1902 = vrot.lane.b32.xlu0 %v8702_v3, %s7721_s29  ;;  %v1346_v19 = vpop.permute.xlu0 %1345 }
 0x155   : > { %v8718_v43 = vpop.f32.mrb[52].mxu0  ;;  %v1145_v16 = vmul.f32 0.2, %v973_v53  ;;  %vm1108_vm9 = vcmp.ge.f32.partialorder %v973_v53, 0.0  ;;  %vm1387_vm13 = vcmp.eq.s32.totalorder %v1346_v19, 1 }
 0x156   : > { %v7337_v12 = vpop.f32.mrb[53].mxu0 }
 0x157   : > { %v1672_v12 = vrot.slane %v8708_v35, 2  ;;  %v1182_v25 = vsel %vm1108_vm9, %v973_v53, %v1145_v16  ;;  %v8755_v53 = vpop.permute.xlu1 %1330 }
 0x158   : > { %1744 = vrot.lane.b32.xlu0 %v8708_v35, %s7719_s27  ;;  %1472 = vrot.lane.b32.xlu1 %v8708_v35, %s7717_s24  ;;  %v8749_v6 = vsel %vm15057_vm1, %v1182_v25, 0.0  ;;  %15562 = vst [vmem:[#allocation61_spill] sm:$0xff] %v8755_v53  ;;  %vm15069_vm1 = vcmp.eq.s32.totalorder %v8606_v55, 1  ;;  %v8807_v59 = vpop.permute.xlu0 %1351 }
 0x159   : > { %v8725_v28 = vpop.f32.mrb[54].mxu0  ;;  %15561 = vst [vmem:[#allocation60_spill] sm:$0xff] %v8749_v6 }
 0x15a   : > { %v7340_v21 = vpop.f32.mrb[55].mxu0 }
 0x15b   : > { %v8743_v21 = vsel %vm15261_vm10, %v1670_v56, %v1672_v12  ;;  %v8770_v27 = vpop.permute.xlu1 %1336 }
 0x15c   : > { %1978 = vrot.lane.b32.xlu0 %v8708_v35, %s7722_s30  ;;  %1595 = vrot.lane.b32.xlu1 %v8732_v14, %s7718_s26  ;;  %15559 = vst [vmem:[#allocation58_spill] sm:$0xff] %v8743_v21  ;;  %v1549_v35 = vrot.slane %v8749_v6, 1  ;;  %15564 = vst [vmem:[#allocation63_spill] sm:$0xff] %v8770_v27 }
 0x15d   : > { %v8739_v11 = vpop.f32.mrb[56].mxu0 }
 0x15e   : > { %v7343_v4 = vpop.f32.mrb[57].mxu0 }
 0x15f   : > { %v978_v4 = vadd.f32 %v8418_v40, %v8562_v18  ;;  %v8773_v18 = vsel %vm15316_vm15, %v1547_v54, %v1549_v35 }
 0x160   : > { %1823 = vrot.lane.b32.xlu0 %v8732_v14, %s7720_s28  ;;  %1904 = vrot.lane.b32.xlu1 %v8743_v21, %s7721_s29  ;;  %15565 = vst [vmem:[#allocation64_spill] sm:$0xff] %v8773_v18 }
 0x161   : > { %v8759_v16 = vpop.f32.mrb[58].mxu0  ;;  %v1146_v25 = vmul.f32 0.2, %v978_v4  ;;  %vm1109_vm9 = vcmp.ge.f32.partialorder %v978_v4, 0.0 }
 0x162   : > { %v7346_v56 = vpop.f32.mrb[59].mxu0 }
 0x163   : > { %v1674_v56 = vrot.slane %v8749_v6, 2  ;;  %v1183_v7 = vsel %vm1109_vm9, %v978_v4, %v1146_v25  ;;  %v8794_v4 = vpop.permute.xlu1 %1342 }
 0x164   : > { %1746 = vrot.lane.b32.xlu1 %v8749_v6, %s7719_s27  ;;  %1474 = vrot.lane.b32.xlu0 %v8749_v6, %s7717_s24  ;;  %v8788_v54 = vsel %vm15069_vm1, %v1183_v7, 0.0  ;;  %15568 = vst [vmem:[#allocation67_spill] sm:$0xff] %v8794_v4  ;;  %vm15073_vm1 = vcmp.eq.s32.totalorder %v8604_v49, 1  ;;  %vm15201_vm14 = vcmp.eq.s32.totalorder %v8794_v4, 1 }
 0x165   : > { %v8766_v26 = vpop.f32.mrb[60].mxu0  ;;  %15567 = vst [vmem:[#allocation66_spill] sm:$0xff] %v8788_v54 }
 0x166   : > { %v7349_v58 = vpop.f32.mrb[61].mxu0 }
 0x167   : > { %v8784_v58 = vsel %vm15261_vm10, %v1672_v12, %v1674_v56  ;;  %v1349_v7 = vpop.permute.xlu1 %1348 }
 0x168   : > { %1980 = vrot.lane.b32.xlu1 %v8749_v6, %s7722_s30  ;;  %1597 = vrot.lane.b32.xlu0 %v8773_v18, %s7718_s26  ;;  %15566 = vst [vmem:[#allocation65_spill] sm:$0xff] %v8784_v58  ;;  %v1551_v6 = vrot.slane %v8788_v54, 1  ;;  %vm1388_vm11 = vcmp.eq.s32.totalorder %v1349_v7, 1 }
 0x169   : > { %v8780_v38 = vpop.f32.mrb[62].mxu0 }
 0x16a   : > { %v7352_v23 = vpop.f32.mrb[63].mxu0 }
 0x16b   : > { %v983_v23 = vadd.f32 %v8418_v40, %v8576_v22  ;;  %v8810_v22 = vsel %vm15316_vm15, %v1549_v35, %v1551_v6  ;;  %v988_v35 = vadd.f32 %v8418_v40, %v8595_v31 }
 0x16c   : > { %1825 = vrot.lane.b32.xlu1 %v8773_v18, %s7720_s28  ;;  %1906 = vrot.lane.b32.xlu0 %v8784_v58, %s7721_s29  ;;  %15569 = vst [vmem:[#allocation68_spill] sm:$0xff] %v8810_v22 }
 0x16d   : > { %v8798_v25 = vpop.f32.mrb[64].mxu0  ;;  %v1147_v55 = vmul.f32 0.2, %v983_v23  ;;  %vm1110_vm9 = vcmp.ge.f32.partialorder %v983_v23, 0.0 }
 0x16e   : > { %v7355_v12 = vpop.f32.mrb[65].mxu0 }
 0x16f   : > { %v15071_v12 = vrot.slane %v8788_v54, 2  ;;  %v1184_v39 = vsel %vm1110_vm9, %v983_v23, %v1147_v55 }
 0x170   : > { %1748 = vrot.lane.b32.xlu0 %v8788_v54, %s7719_s27  ;;  %1476 = vrot.lane.b32.xlu1 %v8788_v54, %s7717_s24  ;;  %v8832_v55 = vsel %vm15073_vm1, %v1184_v39, 0.0  ;;  %vm1111_vm1 = vcmp.ge.f32.partialorder %v988_v35, 0.0 }
 0x171   : > { %v8805_v13 = vpop.f32.mrb[66].mxu0  ;;  %v8828_v32 = vsel %vm15261_vm10, %v1674_v56, %v15071_v12  ;;  %15573 = vst [vmem:[#allocation72_spill] sm:$0xff] %v8832_v55  ;;  %v1148_v12 = vmul.f32 0.2, %v988_v35 }
 0x172   : > { %v7358_v51 = vpop.f32.mrb[67].mxu0  ;;  %v8817_v44 = vpop.permute.xlu1 %1452  ;;  %15572 = vst [vmem:[#allocation71_spill] sm:$0xff] %v8828_v32 }
 0x173   : > { %15570 = vst [vmem:[#allocation69_spill] sm:$0xff] %v8817_v44  ;;  %v1185_v49 = vsel %vm1111_vm1, %v988_v35, %v1148_v12  ;;  %vm15140_vm1 = vcmp.eq.s32.totalorder %v8632_v8, 1 }
 0x174   : > { %1982 = vrot.lane.b32.xlu0 %v8788_v54, %s7722_s30  ;;  %1599 = vrot.lane.b32.xlu1 %v8810_v22, %s7718_s26 }
 0x175   : > { %v1072_v36 = vpop.f32.mrb[68].mxu0 }
 0x176   : > { %v1073_v37 = vadd.f32 %v8418_v40, %v1072_v36  ;;  %v8820_v34 = vpop.permute.xlu0 %1454  ;;  %v7361_v51 = vpop.f32.mrb[69].mxu0 }
 0x177   : > { %15571 = vst [vmem:[#allocation70_spill] sm:$0xff] %v8820_v34 }
 0x178   : > { %vm1128_vm9 = vcmp.ge.f32.partialorder %v1073_v37, 0.0  ;;  %v1165_v23 = vmul.f32 0.2, %v1073_v37  ;;  %1827 = vrot.lane.b32.xlu0 %v8810_v22, %s7720_s28  ;;  %1908 = vrot.lane.b32.xlu1 %v8828_v32, %s7721_s29 }
 0x179   : > { %v1077_v36 = vpop.f32.mrb[70].mxu0 }
 0x17a   : > { %v1202_v51 = vsel %vm1128_vm9, %v1073_v37, %v1165_v23  ;;  %v1078_v31 = vadd.f32 %v8418_v40, %v1077_v36  ;;  %v8839_v34 = vpop.permute.xlu0 %1577  ;;  %v8841_v56 = vpop.permute.xlu1 %1456  ;;  %vm3040_vm9 = vcmask 1044480  }
 0x17b   : > { %15574 = vst [vmem:[#allocation73_spill] sm:$0xff] %v8839_v34  ;;  %15575 = vst [vmem:[#allocation74_spill] sm:$0xff] %v8841_v56  ;;  %v7364_v39 = vpop.f32.mrb[71].mxu0  ;;  %v8844_v44 = vsel %vm1387_vm13, %v1202_v51, 0.0  ;;  %v1678_v51 = vrot.slane %v8832_v55, 2  ;;  %v15580_v34 = vrot.slane %v8832_v55, 1 }
 0x17c   : > { %15576 = vst [vmem:[#allocation75_spill] sm:$0xff] %v8844_v44  ;;  %vm1129_vm6 = vcmp.ge.f32.partialorder %v1078_v31, 0.0  ;;  %v1166_v58 = vmul.f32 0.2, %v1078_v31  ;;  %1750 = vrot.lane.b32.xlu1 %v8832_v55, %s7719_s27  ;;  %1478 = vrot.lane.b32.xlu0 %v8832_v55, %s7717_s24  ;;  %v15085_v12 = vrot.slane %v8844_v44, 1 }
 0x17d   : > { %v1082_v37 = vpop.f32.mrb[72].mxu0  ;;  %v8861_v32 = vsel %vm15316_vm15, %v1551_v6, %v15580_v34  ;;  %v15585_v34 = vrot.slane %v8788_v54, 2 }
 0x17e   : > { %v1203_v19 = vsel %vm1129_vm6, %v1078_v31, %v1166_v58  ;;  %v1083_v23 = vadd.f32 %v8418_v40, %v1082_v37  ;;  %v8851_v36 = vpop.permute.xlu1 %1579  ;;  %v8853_v39 = vpop.permute.xlu0 %1458  ;;  %15581 = vst [vmem:[#allocation79_spill] sm:$0xff] %v8861_v32 }
 0x17f   : > { %15577 = vst [vmem:[#allocation76_spill] sm:$0xff] %v8851_v36  ;;  %15578 = vst [vmem:[#allocation77_spill] sm:$0xff] %v8853_v39  ;;  %v8856_v56 = vsel %vm1388_vm11, %v1203_v19, 0.0  ;;  %v7367_v7 = vpop.f32.mrb[73].mxu0  ;;  %v15089_v39 = vrot.slane %v8844_v44, 3  ;;  %vm1389_vm11 = vcmp.eq.s32.totalorder %v8807_v59, 1  ;;  %v8889_v36 = vsel %vm15261_vm10, %v15585_v34, %v1678_v51 }
 0x180   : > { %15579 = vst [vmem:[#allocation78_spill] sm:$0xff] %v8856_v56  ;;  %vm1130_vm6 = vcmp.ge.f32.partialorder %v1083_v23, 0.0  ;;  %v1167_v58 = vmul.f32 0.2, %v1083_v23  ;;  %1984 = vrot.lane.b32.xlu1 %v8832_v55, %s7722_s30  ;;  %1601 = vrot.lane.b32.xlu0 %v8861_v32, %s7718_s26  ;;  %v4681_v35 = vrot.slane %v8856_v56, 1  ;;  %v4717_v6 = vrot.slane %v8856_v56, 2 }
 0x181   : > { %v4753_v37 = vrot.slane %v8856_v56, 3  ;;  %v15586_v3 = vrot.slane %v8856_v56, 7  ;;  %v8905_v59 = vsel %vm15140_vm1, %v1185_v49, 0.0  ;;  %vm15204_vm1 = vcmp.eq.s32.totalorder %v8770_v27, 1 }
 0x182   : > { %v8875_v19 = vpop.permute.xlu1 %1730  ;;  %v8877_v7 = vpop.permute.xlu0 %1581  ;;  %v8882_v21 = vsel %vm15316_vm15, %v15085_v12, %v4681_v35  ;;  %v1204_v31 = vsel %vm1130_vm6, %v1083_v23, %v1167_v58  ;;  %v15589_v12 = vrot.slane %v8844_v44, 2  ;;  %15591 = vst [vmem:[#allocation85_spill] sm:$0xff] %v8905_v59  ;;  %v993_v58 = vadd.f32 %v8418_v40, %v8602_v48 }
 0x183   : > { %15582 = vst [vmem:[#allocation80_spill] sm:$0xff] %v8875_v19  ;;  %15583 = vst [vmem:[#allocation81_spill] sm:$0xff] %v8877_v7  ;;  %v15587_v19 = vrot.slane %v8844_v44, 7  ;;  %v8916_v23 = vsel %vm1389_vm11, %v1204_v31, 0.0  ;;  %v1555_v56 = vrot.slane %v8905_v59, 1  ;;  %vm15139_vm6 = vcmp.eq.s32.totalorder %v8622_v63, 1 }
 0x184   : > { %15584 = vst [vmem:[#allocation82_spill] sm:$0xff] %v8882_v21  ;;  %v8901_v21 = vsel %vm15261_vm10, %v15589_v12, %v4717_v6  ;;  %1829 = vrot.lane.b32.xlu1 %v8861_v32, %s7720_s28  ;;  %1910 = vrot.lane.b32.xlu0 %v8889_v36, %s7721_s29  ;;  %15593 = vst [vmem:[#allocation87_spill] sm:$0xff] %v8916_v23  ;;  %v15090_v12 = vrot.slane %v8916_v23, 1  ;;  %v15091_v49 = vrot.slane %v8916_v23, 2  ;;  %v15092_v34 = vrot.slane %v8916_v23, 3 }
 0x185   : > { %v8896_v7 = vsel %vm4525_vm5, %v15587_v19, %v15586_v3  ;;  %15590 = vst [vmem:[#allocation84_spill] sm:$0xff] %v8901_v21  ;;  %v8914_v3 = vsel %vm3040_vm9, %v15089_v39, %v4753_v37  ;;  %vm1112_vm13 = vcmp.ge.f32.partialorder %v993_v58, 0.0 }
 0x186   : > { %15588 = vst [vmem:[#allocation83_spill] sm:$0xff] %v8896_v7  ;;  %15592 = vst [vmem:[#allocation86_spill] sm:$0xff] %v8914_v3  ;;  %v8923_v19 = vpop.permute.xlu0 %1732  ;;  %v8925_v8 = vpop.permute.xlu1 %1460  ;;  %v8931_v31 = vsel %vm15316_vm15, %v4681_v35, %v15090_v12  ;;  %v8936_v48 = vsel %vm15261_vm10, %v4717_v6, %v15091_v49  ;;  %v8941_v39 = vsel %vm3040_vm9, %v4753_v37, %v15092_v34  ;;  %v1149_v3 = vmul.f32 0.2, %v993_v58 }
 0x187   : > { %15594 = vst [vmem:[#allocation88_spill] sm:$0xff] %v8923_v19  ;;  %15595 = vst [vmem:[#allocation89_spill] sm:$0xff] %v8925_v8  ;;  %v15601_v6 = vrot.slane %v8832_v55, 1  ;;  %v1680_v37 = vrot.slane %v8905_v59, 2 }
 0x188   : > { %15596 = vst [vmem:[#allocation90_spill] sm:$0xff] %v8931_v31  ;;  %15597 = vst [vmem:[#allocation91_spill] sm:$0xff] %v8936_v48  ;;  %1752 = vrot.lane.b32.xlu0 %v8905_v59, %s7719_s27  ;;  %1480 = vrot.lane.b32.xlu1 %v8905_v59, %s7717_s24  ;;  %v1186_v34 = vsel %vm1112_vm13, %v993_v58, %v1149_v3  ;;  %v998_v3 = vadd.f32 %v8418_v40, %v8616_v10  ;;  %vm15099_vm13 = vcmp.eq.s32.totalorder %v8647_v1, 1 }
 0x189   : > { %15598 = vst [vmem:[#allocation92_spill] sm:$0xff] %v8941_v39  ;;  %v8954_v49 = vsel %vm15316_vm15, %v15601_v6, %v1555_v56  ;;  %v8967_v31 = vsel %vm15261_vm10, %v1678_v51, %v1680_v37  ;;  %v8971_v6 = vsel %vm15139_vm6, %v1186_v34, 0.0 }
 0x18a   : > { %v8947_v35 = vpop.permute.xlu0 %1811  ;;  %v8949_v12 = vpop.permute.xlu1 %1583  ;;  %15602 = vst [vmem:[#allocation95_spill] sm:$0xff] %v8954_v49  ;;  %15605 = vst [vmem:[#allocation98_spill] sm:$0xff] %v8971_v6  ;;  %v1557_v51 = vrot.slane %v8971_v6, 1  ;;  %v1150_v34 = vmul.f32 0.2, %v998_v3  ;;  %vm1113_vm11 = vcmp.ge.f32.partialorder %v998_v3, 0.0 }
 0x18b   : > { %15599 = vst [vmem:[#allocation93_spill] sm:$0xff] %v8947_v35  ;;  %15600 = vst [vmem:[#allocation94_spill] sm:$0xff] %v8949_v12  ;;  %v1682_v7 = vrot.slane %v8971_v6, 2 }
 0x18c   : > { %1986 = vrot.lane.b32.xlu0 %v8905_v59, %s7722_s30  ;;  %1603 = vrot.lane.b32.xlu1 %v8954_v49, %s7718_s26  ;;  %v8993_v10 = vsel %vm15316_vm15, %v1555_v56, %v1557_v51  ;;  %v1187_v44 = vsel %vm1113_vm11, %v998_v3, %v1150_v34  ;;  %v1003_v3 = vadd.f32 %v8418_v40, %v8636_v29 }
 0x18d   : > { %15610 = vst [vmem:[#allocation103_spill] sm:$0xff] %v8993_v10  ;;  %v9010_v56 = vsel %vm15099_vm13, %v1187_v44, 0.0  ;;  %vm15101_vm13 = vcmp.eq.s32.totalorder %v8645_v5, 1 }
 0x18e   : > { %v8961_v39 = vpop.permute.xlu1 %1892  ;;  %v8963_v48 = vpop.permute.xlu0 %1462  ;;  %15613 = vst [vmem:[#allocation106_spill] sm:$0xff] %v9010_v56  ;;  %v1151_v44 = vmul.f32 0.2, %v1003_v3  ;;  %vm1114_vm11 = vcmp.ge.f32.partialorder %v1003_v3, 0.0 }
 0x18f   : > { %15603 = vst [vmem:[#allocation96_spill] sm:$0xff] %v8961_v39  ;;  %15604 = vst [vmem:[#allocation97_spill] sm:$0xff] %v8963_v48 }
 0x190   : > { %1831 = vrot.lane.b32.xlu0 %v8954_v49, %s7720_s28  ;;  %1912 = vrot.lane.b32.xlu1 %v8967_v31, %s7721_s29 }
 0x192   : > { %v8979_v58 = vpop.permute.xlu1 %1734  ;;  %v8981_v23 = vpop.permute.xlu0 %1585 }
 0x193   : > { %15606 = vst [vmem:[#allocation99_spill] sm:$0xff] %v8979_v58  ;;  %15607 = vst [vmem:[#allocation100_spill] sm:$0xff] %v8981_v23 }
 0x194   : > { %1754 = vrot.lane.b32.xlu1 %v8971_v6, %s7719_s27  ;;  %1482 = vrot.lane.b32.xlu0 %v8971_v6, %s7717_s24 }
 0x196   : > { %v8988_v63 = vpop.permute.xlu1 %1813  ;;  %v8990_v21 = vpop.permute.xlu0 %1894 }
 0x197   : > { %15608 = vst [vmem:[#allocation101_spill] sm:$0xff] %v8988_v63  ;;  %15609 = vst [vmem:[#allocation102_spill] sm:$0xff] %v8990_v21  ;;  %v9006_v21 = vsel %vm15261_vm10, %v1680_v37, %v1682_v7  ;;  %v1559_v37 = vrot.slane %v9010_v56, 1 }
 0x198   : > { %1988 = vrot.lane.b32.xlu1 %v8971_v6, %s7722_s30  ;;  %1605 = vrot.lane.b32.xlu0 %v8993_v10, %s7718_s26 }
 0x199   : > { %v9032_v29 = vsel %vm15316_vm15, %v1557_v51, %v1559_v37 }
 0x19a   : > { %v9000_v39 = vpop.permute.xlu0 %1736  ;;  %v9002_v48 = vpop.permute.xlu1 %1464  ;;  %15618 = vst [vmem:[#allocation111_spill] sm:$0xff] %v9032_v29 }
 0x19b   : > { %15611 = vst [vmem:[#allocation104_spill] sm:$0xff] %v9000_v39  ;;  %15612 = vst [vmem:[#allocation105_spill] sm:$0xff] %v9002_v48 }
 0x19c   : > { %1833 = vrot.lane.b32.xlu1 %v8993_v10, %s7720_s28  ;;  %1914 = vrot.lane.b32.xlu0 %v9006_v21, %s7721_s29 }
 0x19e   : > { %v9018_v34 = vpop.permute.xlu0 %1970  ;;  %v9020_v48 = vpop.permute.xlu1 %1587 }
 0x19f   : > { %15614 = vst [vmem:[#allocation107_spill] sm:$0xff] %v9018_v34  ;;  %15615 = vst [vmem:[#allocation108_spill] sm:$0xff] %v9020_v48  ;;  %v1684_v34 = vrot.slane %v9010_v56, 2  ;;  %v1188_v48 = vsel %vm1114_vm11, %v1003_v3, %v1151_v44  ;;  %v1008_v3 = vadd.f32 %v8418_v40, %v8643_v52 }
 0x1a0   : > { %1756 = vrot.lane.b32.xlu0 %v9010_v56, %s7719_s27  ;;  %1484 = vrot.lane.b32.xlu1 %v9010_v56, %s7717_s24  ;;  %v9049_v51 = vsel %vm15101_vm13, %v1188_v48, 0.0  ;;  %vm15103_vm13 = vcmp.eq.s32.totalorder %v8673_v24, 1 }
 0x1a1   : > { %15621 = vst [vmem:[#allocation114_spill] sm:$0xff] %v9049_v51  ;;  %v1152_v48 = vmul.f32 0.2, %v1008_v3  ;;  %vm1115_vm11 = vcmp.ge.f32.partialorder %v1008_v3, 0.0 }
 0x1a2   : > { %v9027_v1 = vpop.permute.xlu0 %1815  ;;  %v9029_v39 = vpop.permute.xlu1 %1896 }
 0x1a3   : > { %15616 = vst [vmem:[#allocation109_spill] sm:$0xff] %v9027_v1  ;;  %15617 = vst [vmem:[#allocation110_spill] sm:$0xff] %v9029_v39  ;;  %v9045_v39 = vsel %vm15261_vm10, %v1682_v7, %v1684_v34  ;;  %v1561_v7 = vrot.slane %v9049_v51, 1 }
 0x1a4   : > { %1990 = vrot.lane.b32.xlu0 %v9010_v56, %s7722_s30  ;;  %1607 = vrot.lane.b32.xlu1 %v9032_v29, %s7718_s26 }
 0x1a5   : > { %v9071_v52 = vsel %vm15316_vm15, %v1559_v37, %v1561_v7 }
 0x1a6   : > { %v9039_v58 = vpop.permute.xlu1 %1738  ;;  %v9041_v35 = vpop.permute.xlu0 %1466  ;;  %15626 = vst [vmem:[#allocation119_spill] sm:$0xff] %v9071_v52 }
 0x1a7   : > { %15619 = vst [vmem:[#allocation112_spill] sm:$0xff] %v9039_v58  ;;  %15620 = vst [vmem:[#allocation113_spill] sm:$0xff] %v9041_v35 }
 0x1a8   : > { %1835 = vrot.lane.b32.xlu0 %v9032_v29, %s7720_s28  ;;  %1916 = vrot.lane.b32.xlu1 %v9045_v39, %s7721_s29 }
 0x1aa   : > { %v9057_v44 = vpop.permute.xlu1 %1972  ;;  %v9059_v35 = vpop.permute.xlu0 %1589 }
 0x1ab   : > { %15622 = vst [vmem:[#allocation115_spill] sm:$0xff] %v9057_v44  ;;  %15623 = vst [vmem:[#allocation116_spill] sm:$0xff] %v9059_v35  ;;  %v1686_v44 = vrot.slane %v9049_v51, 2  ;;  %v1189_v35 = vsel %vm1115_vm11, %v1008_v3, %v1152_v48  ;;  %v1013_v3 = vadd.f32 %v8418_v40, %v8657_v0 }
 0x1ac   : > { %1758 = vrot.lane.b32.xlu1 %v9049_v51, %s7719_s27  ;;  %1486 = vrot.lane.b32.xlu0 %v9049_v51, %s7717_s24  ;;  %v9088_v37 = vsel %vm15103_vm13, %v1189_v35, 0.0  ;;  %vm15105_vm13 = vcmp.eq.s32.totalorder %v8663_v62, 1 }
 0x1ad   : > { %15630 = vst [vmem:[#allocation123_spill] sm:$0xff] %v9088_v37  ;;  %v1153_v35 = vmul.f32 0.2, %v1013_v3  ;;  %vm1116_vm11 = vcmp.ge.f32.partialorder %v1013_v3, 0.0 }
 0x1ae   : > { %v9066_v5 = vpop.permute.xlu1 %1817  ;;  %v9068_v58 = vpop.permute.xlu0 %1898 }
 0x1af   : > { %15624 = vst [vmem:[#allocation117_spill] sm:$0xff] %v9066_v5  ;;  %15625 = vst [vmem:[#allocation118_spill] sm:$0xff] %v9068_v58  ;;  %v9084_v58 = vsel %vm15261_vm10, %v1684_v34, %v1686_v44  ;;  %v1563_v34 = vrot.slane %v9088_v37, 1 }
 0x1b0   : > { %1992 = vrot.lane.b32.xlu1 %v9049_v51, %s7722_s30  ;;  %1609 = vrot.lane.b32.xlu0 %v9071_v52, %s7718_s26  ;;  %15629 = vst [vmem:[#allocation122_spill] sm:$0xff] %v9084_v58 }
 0x1b1   : > { %v9110_v0 = vsel %vm15316_vm15, %v1561_v7, %v1563_v34 }
 0x1b2   : > { %v9078_v1 = vpop.permute.xlu0 %1740  ;;  %v9080_v63 = vpop.permute.xlu1 %1468  ;;  %15635 = vst [vmem:[#allocation128_spill] sm:$0xff] %v9110_v0 }
 0x1b3   : > { %15627 = vst [vmem:[#allocation120_spill] sm:$0xff] %v9078_v1  ;;  %15628 = vst [vmem:[#allocation121_spill] sm:$0xff] %v9080_v63 }
 0x1b4   : > { %1837 = vrot.lane.b32.xlu1 %v9071_v52, %s7720_s28  ;;  %1918 = vrot.lane.b32.xlu0 %v9084_v58, %s7721_s29 }
 0x1b6   : > { %v9096_v48 = vpop.permute.xlu0 %1974  ;;  %v9098_v63 = vpop.permute.xlu1 %1591 }
 0x1b7   : > { %15631 = vst [vmem:[#allocation124_spill] sm:$0xff] %v9096_v48  ;;  %15632 = vst [vmem:[#allocation125_spill] sm:$0xff] %v9098_v63  ;;  %v1688_v48 = vrot.slane %v9088_v37, 2  ;;  %v1190_v63 = vsel %vm1116_vm11, %v1013_v3, %v1153_v35  ;;  %v1018_v3 = vadd.f32 %v8418_v40, %v8677_v45 }
 0x1b8   : > { %1760 = vrot.lane.b32.xlu0 %v9088_v37, %s7719_s27  ;;  %1488 = vrot.lane.b32.xlu1 %v9088_v37, %s7717_s24  ;;  %v9127_v7 = vsel %vm15105_vm13, %v1190_v63, 0.0  ;;  %vm15107_vm13 = vcmp.eq.s32.totalorder %v8688_v2, 1 }
 0x1b9   : > { %15639 = vst [vmem:[#allocation132_spill] sm:$0xff] %v9127_v7  ;;  %v1154_v63 = vmul.f32 0.2, %v1018_v3  ;;  %vm1117_vm11 = vcmp.ge.f32.partialorder %v1018_v3, 0.0 }
 0x1ba   : > { %v9105_v24 = vpop.permute.xlu0 %1819  ;;  %v9107_v1 = vpop.permute.xlu1 %1900 }
 0x1bb   : > { %15633 = vst [vmem:[#allocation126_spill] sm:$0xff] %v9105_v24  ;;  %15634 = vst [vmem:[#allocation127_spill] sm:$0xff] %v9107_v1  ;;  %v9123_v1 = vsel %vm15261_vm10, %v1686_v44, %v1688_v48  ;;  %v1565_v44 = vrot.slane %v9127_v7, 1  ;;  %v1023_v24 = vadd.f32 %v8418_v40, %v8684_v61 }
 0x1bc   : > { %1994 = vrot.lane.b32.xlu0 %v9088_v37, %s7722_s30  ;;  %1611 = vrot.lane.b32.xlu1 %v9110_v0, %s7718_s26  ;;  %15638 = vst [vmem:[#allocation131_spill] sm:$0xff] %v9123_v1 }
 0x1bd   : > { %v9149_v45 = vsel %vm15316_vm15, %v1563_v34, %v1565_v44  ;;  %v1155_v61 = vmul.f32 0.2, %v1023_v24 }
 0x1be   : > { %v9117_v5 = vpop.permute.xlu1 %1742  ;;  %v9119_v8 = vpop.permute.xlu0 %1470  ;;  %15644 = vst [vmem:[#allocation137_spill] sm:$0xff] %v9149_v45 }
 0x1bf   : > { %15636 = vst [vmem:[#allocation129_spill] sm:$0xff] %v9117_v5  ;;  %15637 = vst [vmem:[#allocation130_spill] sm:$0xff] %v9119_v8 }
 0x1c0   : > { %1839 = vrot.lane.b32.xlu0 %v9110_v0, %s7720_s28  ;;  %1920 = vrot.lane.b32.xlu1 %v9123_v1, %s7721_s29 }
 0x1c2   : > { %v9135_v35 = vpop.permute.xlu1 %1976  ;;  %v9137_v5 = vpop.permute.xlu0 %1593 }
 0x1c3   : > { %15640 = vst [vmem:[#allocation133_spill] sm:$0xff] %v9135_v35  ;;  %15641 = vst [vmem:[#allocation134_spill] sm:$0xff] %v9137_v5  ;;  %v1690_v35 = vrot.slane %v9127_v7, 2  ;;  %v1191_v5 = vsel %vm1117_vm11, %v1018_v3, %v1154_v63  ;;  %vm1118_vm11 = vcmp.ge.f32.partialorder %v1023_v24, 0.0 }
 0x1c4   : > { %1762 = vrot.lane.b32.xlu1 %v9127_v7, %s7719_s27  ;;  %1490 = vrot.lane.b32.xlu0 %v9127_v7, %s7717_s24 }
 0x1c5   : > { %v9164_v34 = vsel %vm15261_vm10, %v1688_v48, %v1690_v35 }
 0x1c6   : > { %v9144_v62 = vpop.permute.xlu1 %1821  ;;  %v9146_v8 = vpop.permute.xlu0 %1902  ;;  %15647 = vst [vmem:[#allocation140_spill] sm:$0xff] %v9164_v34 }
 0x1c7   : > { %15642 = vst [vmem:[#allocation135_spill] sm:$0xff] %v9144_v62  ;;  %15643 = vst [vmem:[#allocation136_spill] sm:$0xff] %v9146_v8  ;;  %v9168_v8 = vsel %vm15107_vm13, %v1191_v5, 0.0  ;;  %v1192_v5 = vsel %vm1118_vm11, %v1023_v24, %v1155_v61  ;;  %vm15109_vm13 = vcmp.eq.s32.totalorder %v8686_v30, 1  ;;  %v1028_v24 = vadd.f32 %v8418_v40, %v8698_v46 }
 0x1c8   : > { %1996 = vrot.lane.b32.xlu1 %v9127_v7, %s7722_s30  ;;  %1613 = vrot.lane.b32.xlu0 %v9149_v45, %s7718_s26  ;;  %15648 = vst [vmem:[#allocation141_spill] sm:$0xff] %v9168_v8 }
 0x1c9   : > { %vm1119_vm11 = vcmp.ge.f32.partialorder %v1028_v24, 0.0 }
 0x1ca   : > { %v9158_v23 = vpop.permute.xlu0 %1744  ;;  %v9160_v62 = vpop.permute.xlu1 %1472 }
 0x1cb   : > { %15645 = vst [vmem:[#allocation138_spill] sm:$0xff] %v9158_v23  ;;  %15646 = vst [vmem:[#allocation139_spill] sm:$0xff] %v9160_v62  ;;  %v1567_v62 = vrot.slane %v9168_v8, 1 }
 0x1cc   : > { %1841 = vrot.lane.b32.xlu1 %v9149_v45, %s7720_s28  ;;  %1922 = vrot.lane.b32.xlu0 %v9164_v34, %s7721_s29 }
 0x1cd   : > { %v9189_v23 = vsel %vm15316_vm15, %v1565_v44, %v1567_v62 }
 0x1ce   : > { %v9174_v3 = vpop.permute.xlu0 %1978  ;;  %v9176_v63 = vpop.permute.xlu1 %1595  ;;  %15653 = vst [vmem:[#allocation146_spill] sm:$0xff] %v9189_v23 }
 0x1cf   : > { %15649 = vst [vmem:[#allocation142_spill] sm:$0xff] %v9174_v3  ;;  %15650 = vst [vmem:[#allocation143_spill] sm:$0xff] %v9176_v63  ;;  %v1692_v3 = vrot.slane %v9168_v8, 2  ;;  %v9194_v63 = vsel %vm15109_vm13, %v1192_v5, 0.0  ;;  %v1156_v5 = vmul.f32 0.2, %v1028_v24 }
 0x1d0   : > { %1764 = vrot.lane.b32.xlu0 %v9168_v8, %s7719_s27  ;;  %1492 = vrot.lane.b32.xlu1 %v9168_v8, %s7717_s24  ;;  %15654 = vst [vmem:[#allocation147_spill] sm:$0xff] %v9194_v63  ;;  %v1569_v30 = vrot.slane %v9194_v63, 1  ;;  %vm15111_vm13 = vcmp.eq.s32.totalorder %v8714_v20, 1 }
 0x1d1   : > { %v9207_v44 = vsel %vm15261_vm10, %v1690_v35, %v1692_v3  ;;  %v1694_v35 = vrot.slane %v9194_v63, 2 }
 0x1d2   : > { %v9183_v48 = vpop.permute.xlu0 %1823  ;;  %v9185_v2 = vpop.permute.xlu1 %1904  ;;  %15657 = vst [vmem:[#allocation150_spill] sm:$0xff] %v9207_v44  ;;  %v9219_v46 = vsel %vm15316_vm15, %v1567_v62, %v1569_v30 }
 0x1d3   : > { %15651 = vst [vmem:[#allocation144_spill] sm:$0xff] %v9183_v48  ;;  %15652 = vst [vmem:[#allocation145_spill] sm:$0xff] %v9185_v2  ;;  %v9239_v12 = vsel %vm15261_vm10, %v1692_v3, %v1694_v35 }
 0x1d4   : > { %1843 = vrot.lane.b32.xlu0 %v9189_v23, %s7720_s28  ;;  %1615 = vrot.lane.b32.xlu1 %v9189_v23, %s7718_s26  ;;  %15660 = vst [vmem:[#allocation153_spill] sm:$0xff] %v9219_v46  ;;  %15663 = vst [vmem:[#allocation156_spill] sm:$0xff] %v9239_v12 }
 0x1d6   : > { %v9202_v61 = vpop.permute.xlu1 %1746  ;;  %v9204_v2 = vpop.permute.xlu0 %1474 }
 0x1d7   : > { %15655 = vst [vmem:[#allocation148_spill] sm:$0xff] %v9202_v61  ;;  %15656 = vst [vmem:[#allocation149_spill] sm:$0xff] %v9204_v2  ;;  %v1193_v2 = vsel %vm1119_vm11, %v1028_v24, %v1156_v5  ;;  %v9229_v61 = vld [vmem:[%s15000_s3] ss:$0 sm:$0xff] }
 0x1d8   : > { %1924 = vrot.lane.b32.xlu1 %v9207_v44, %s7721_s29  ;;  %1494 = vrot.lane.b32.xlu0 %v9194_v63, %s7717_s24  ;;  %v9243_v24 = vsel %vm15111_vm13, %v1193_v2, 0.0  ;;  %vm15117_vm13 = vcmp.eq.s32.totalorder %v8704_v9, 1  ;;  %v1043_v7 = vadd.f32 %v9229_v61, %v8739_v11 }
 0x1d9   : > { %15664 = vst [vmem:[#allocation157_spill] sm:$0xff] %v9243_v24 }
 0x1da   : > { %v9214_v48 = vpop.permute.xlu1 %1980  ;;  %v9216_v40 = vpop.permute.xlu0 %1597  ;;  %v1159_v11 = vmul.f32 0.2, %v1043_v7 }
 0x1db   : > { %15658 = vst [vmem:[#allocation151_spill] sm:$0xff] %v9214_v48  ;;  %15659 = vst [vmem:[#allocation152_spill] sm:$0xff] %v9216_v40  ;;  %v1033_v48 = vadd.f32 %v9229_v61, %v8718_v43 }
 0x1dc   : > { %1766 = vrot.lane.b32.xlu1 %v9194_v63, %s7719_s27  ;;  %1617 = vrot.lane.b32.xlu0 %v9219_v46, %s7718_s26 }
 0x1dd   : > { %v1157_v43 = vmul.f32 0.2, %v1033_v48  ;;  %vm1120_vm11 = vcmp.ge.f32.partialorder %v1033_v48, 0.0 }
 0x1de   : > { %v9233_v40 = vpop.permute.xlu1 %1825  ;;  %v9235_v62 = vpop.permute.xlu0 %1906 }
 0x1df   : > { %15661 = vst [vmem:[#allocation154_spill] sm:$0xff] %v9233_v40  ;;  %15662 = vst [vmem:[#allocation155_spill] sm:$0xff] %v9235_v62  ;;  %v1571_v40 = vrot.slane %v9243_v24, 1  ;;  %v1194_v2 = vsel %vm1120_vm11, %v1033_v48, %v1157_v43  ;;  %v1038_v48 = vadd.f32 %v9229_v61, %v8725_v28 }
 0x1e0   : > { %1845 = vrot.lane.b32.xlu1 %v9219_v46, %s7720_s28  ;;  %1926 = vrot.lane.b32.xlu0 %v9239_v12, %s7721_s29 }
 0x1e1   : > { %v9264_v19 = vsel %vm15316_vm15, %v1569_v30, %v1571_v40  ;;  %vm1121_vm11 = vcmp.ge.f32.partialorder %v1038_v48, 0.0 }
 0x1e2   : > { %v9249_v5 = vpop.permute.xlu0 %1748  ;;  %v9251_v62 = vpop.permute.xlu1 %1476  ;;  %15669 = vst [vmem:[#allocation162_spill] sm:$0xff] %v9264_v19 }
 0x1e3   : > { %15665 = vst [vmem:[#allocation158_spill] sm:$0xff] %v9249_v5  ;;  %15666 = vst [vmem:[#allocation159_spill] sm:$0xff] %v9251_v62  ;;  %v1696_v62 = vrot.slane %v9243_v24, 2  ;;  %v9269_v5 = vsel %vm15117_vm13, %v1194_v2, 0.0  ;;  %v1158_v2 = vmul.f32 0.2, %v1038_v48 }
 0x1e4   : > { %1768 = vrot.lane.b32.xlu0 %v9243_v24, %s7719_s27  ;;  %1496 = vrot.lane.b32.xlu1 %v9243_v24, %s7717_s24  ;;  %15670 = vst [vmem:[#allocation163_spill] sm:$0xff] %v9269_v5  ;;  %v1573_v9 = vrot.slane %v9269_v5, 1  ;;  %vm15119_vm13 = vcmp.eq.s32.totalorder %v8729_v60, 1 }
 0x1e5   : > { %v9282_v30 = vsel %vm15261_vm10, %v1694_v35, %v1696_v62  ;;  %v1698_v35 = vrot.slane %v9269_v5, 2 }
 0x1e6   : > { %v9258_v3 = vpop.permute.xlu0 %1982  ;;  %v9260_v20 = vpop.permute.xlu1 %1599  ;;  %15673 = vst [vmem:[#allocation166_spill] sm:$0xff] %v9282_v30 }
 0x1e7   : > { %15667 = vst [vmem:[#allocation160_spill] sm:$0xff] %v9258_v3  ;;  %15668 = vst [vmem:[#allocation161_spill] sm:$0xff] %v9260_v20 }
 0x1e8   : > { %1847 = vrot.lane.b32.xlu0 %v9264_v19, %s7720_s28  ;;  %1619 = vrot.lane.b32.xlu1 %v9264_v19, %s7718_s26 }
 0x1ea   : > { %v9277_v43 = vpop.permute.xlu0 %1827  ;;  %v9279_v3 = vpop.permute.xlu1 %1908 }
 0x1eb   : > { %15671 = vst [vmem:[#allocation164_spill] sm:$0xff] %v9277_v43  ;;  %15672 = vst [vmem:[#allocation165_spill] sm:$0xff] %v9279_v3  ;;  %v9294_v43 = vsel %vm15316_vm15, %v1571_v40, %v1573_v9  ;;  %v1195_v3 = vsel %vm1121_vm11, %v1038_v48, %v1158_v2  ;;  %v9309_v40 = vsel %vm15261_vm10, %v1696_v62, %v1698_v35  ;;  %vm1122_vm11 = vcmp.ge.f32.partialorder %v1043_v7, 0.0 }
 0x1ec   : > { %1928 = vrot.lane.b32.xlu1 %v9282_v30, %s7721_s29  ;;  %1498 = vrot.lane.b32.xlu0 %v9269_v5, %s7717_s24  ;;  %15676 = vst [vmem:[#allocation169_spill] sm:$0xff] %v9294_v43  ;;  %15679 = vst [vmem:[#allocation172_spill] sm:$0xff] %v9309_v40  ;;  %v1196_v62 = vsel %vm1122_vm11, %v1043_v7, %v1159_v11 }
 0x1ee   : > { %v9289_v20 = vpop.permute.xlu1 %1750  ;;  %v9291_v28 = vpop.permute.xlu0 %1478 }
 0x1ef   : > { %15674 = vst [vmem:[#allocation167_spill] sm:$0xff] %v9289_v20  ;;  %15675 = vst [vmem:[#allocation168_spill] sm:$0xff] %v9291_v28  ;;  %v9313_v28 = vsel %vm15119_vm13, %v1195_v3, 0.0  ;;  %v1048_v3 = vadd.f32 %v9229_v61, %v8759_v16  ;;  %vm15123_vm13 = vcmp.eq.s32.totalorder %v8727_v33, 1 }
 0x1f0   : > { %1770 = vrot.lane.b32.xlu1 %v9269_v5, %s7719_s27  ;;  %1621 = vrot.lane.b32.xlu0 %v9294_v43, %s7718_s26  ;;  %15680 = vst [vmem:[#allocation173_spill] sm:$0xff] %v9313_v28  ;;  %v9343_v51 = vsel %vm15123_vm13, %v1196_v62, 0.0  ;;  %v1053_v62 = vadd.f32 %v9229_v61, %v8766_v26  ;;  %vm15128_vm13 = vcmp.eq.s32.totalorder %v8755_v53, 1 }
 0x1f1   : > { %15687 = vst [vmem:[#allocation180_spill] sm:$0xff] %v9343_v51  ;;  %v1160_v16 = vmul.f32 0.2, %v1048_v3  ;;  %vm1123_vm11 = vcmp.ge.f32.partialorder %v1048_v3, 0.0 }
 0x1f2   : > { %v9303_v37 = vpop.permute.xlu1 %1984  ;;  %v9305_v20 = vpop.permute.xlu0 %1601  ;;  %v1161_v56 = vmul.f32 0.2, %v1053_v62 }
 0x1f3   : > { %15677 = vst [vmem:[#allocation170_spill] sm:$0xff] %v9303_v37  ;;  %15678 = vst [vmem:[#allocation171_spill] sm:$0xff] %v9305_v20  ;;  %v1575_v37 = vrot.slane %v9313_v28, 1  ;;  %v1197_v33 = vsel %vm1123_vm11, %v1048_v3, %v1160_v16  ;;  %vm1124_vm11 = vcmp.ge.f32.partialorder %v1053_v62, 0.0 }
 0x1f4   : > { %1849 = vrot.lane.b32.xlu1 %v9294_v43, %s7720_s28  ;;  %1930 = vrot.lane.b32.xlu0 %v9309_v40, %s7721_s29  ;;  %v9375_v26 = vsel %vm15128_vm13, %v1197_v33, 0.0  ;;  %v1198_v53 = vsel %vm1124_vm11, %v1053_v62, %v1161_v56  ;;  %vm15138_vm13 = vcmp.eq.s32.totalorder %v8745_v47, 1 }
 0x1f5   : > { %15694 = vst [vmem:[#allocation187_spill] sm:$0xff] %v9375_v26  ;;  %v1807_v33 = vrot.slane %v9375_v26, 1 }
 0x1f6   : > { %v9319_v48 = vpop.permute.xlu1 %1829  ;;  %v9321_v2 = vpop.permute.xlu0 %1910 }
 0x1f7   : > { %15681 = vst [vmem:[#allocation174_spill] sm:$0xff] %v9319_v48  ;;  %15682 = vst [vmem:[#allocation175_spill] sm:$0xff] %v9321_v2  ;;  %v9336_v2 = vsel %vm15316_vm15, %v1573_v9, %v1575_v37  ;;  %v9339_v48 = vrot.slane %v9313_v28, 2 }
 0x1f8   : > { %1772 = vrot.lane.b32.xlu0 %v9313_v28, %s7719_s27  ;;  %1500 = vrot.lane.b32.xlu1 %v9313_v28, %s7717_s24  ;;  %15685 = vst [vmem:[#allocation178_spill] sm:$0xff] %v9336_v2 }
 0x1f9   : > { %15686 = vst [vmem:[#allocation179_spill] sm:$0xff] %v9339_v48  ;;  %v9354_v9 = vsel %vm15261_vm10, %v1698_v35, %v9339_v48 }
 0x1fa   : > { %v9330_v60 = vpop.permute.xlu0 %1752  ;;  %v9332_v20 = vpop.permute.xlu1 %1480  ;;  %15690 = vst [vmem:[#allocation183_spill] sm:$0xff] %v9354_v9 }
 0x1fb   : > { %15683 = vst [vmem:[#allocation176_spill] sm:$0xff] %v9330_v60  ;;  %15684 = vst [vmem:[#allocation177_spill] sm:$0xff] %v9332_v20  ;;  %v1886_v20 = vrot.slane %v9343_v51, 2 }
 0x1fc   : > { %1625 = vrot.lane.b32.xlu0 %v1575_v37, %s7718_s26  ;;  %1623 = vrot.lane.b32.xlu1 %v9336_v2, %s7718_s26 }
 0x1fd   : > { %v9370_v35 = vsel %vm15261_vm10, %v9339_v48, %v1886_v20 }
 0x1fe   : > { %v9348_v7 = vpop.permute.xlu0 %1986  ;;  %v9350_v11 = vpop.permute.xlu1 %1603  ;;  %15693 = vst [vmem:[#allocation186_spill] sm:$0xff] %v9370_v35 }
 0x1ff   : > { %15688 = vst [vmem:[#allocation181_spill] sm:$0xff] %v9348_v7  ;;  %15689 = vst [vmem:[#allocation182_spill] sm:$0xff] %v9350_v11  ;;  %v1805_v11 = vrot.slane %v9343_v51, 1 }
 0x200   : > { %1851 = vrot.lane.b32.xlu0 %v9336_v2, %s7720_s28  ;;  %1932 = vrot.lane.b32.xlu1 %v9354_v9, %s7721_s29 }
 0x201   : > { %v9386_v48 = vsel %vm15316_vm15, %v1575_v37, %v1805_v11  ;;  %v9401_v37 = vsel %vm15138_vm13, %v1198_v53, 0.0  ;;  %v9407_v56 = vsel %vm15316_vm15, %v1805_v11, %v1807_v33 }
 0x202   : > { %v9363_v60 = vpop.permute.xlu0 %1831  ;;  %v9365_v7 = vpop.permute.xlu1 %1912  ;;  %15697 = vst [vmem:[#allocation190_spill] sm:$0xff] %v9386_v48  ;;  %15700 = vst [vmem:[#allocation193_spill] sm:$0xff] %v9401_v37  ;;  %v9418_v47 = vrot.slane %v9401_v37, 1  ;;  %v9421_v53 = vrot.slane %v9401_v37, 2 }
 0x203   : > { %15691 = vst [vmem:[#allocation184_spill] sm:$0xff] %v9363_v60  ;;  %15692 = vst [vmem:[#allocation185_spill] sm:$0xff] %v9365_v7  ;;  %v1888_v7 = vrot.slane %v9375_v26, 2 }
 0x204   : > { %1774 = vrot.lane.b32.xlu1 %v9343_v51, %s7719_s27  ;;  %1934 = vrot.lane.b32.xlu0 %v9370_v35, %s7721_s29  ;;  %15702 = vst [vmem:[#allocation195_spill] sm:$0xff] %v9407_v56  ;;  %v9445_v6 = vsel %vm15316_vm15, %v1807_v33, %v9418_v47 }
 0x205   : > { %15710 = vst [vmem:[#allocation203_spill] sm:$0xff] %v9445_v6 }
 0x206   : > { %v9381_v3 = vpop.permute.xlu1 %1754  ;;  %v9383_v16 = vpop.permute.xlu0 %1482 }
 0x207   : > { %15695 = vst [vmem:[#allocation188_spill] sm:$0xff] %v9381_v3  ;;  %15696 = vst [vmem:[#allocation189_spill] sm:$0xff] %v9383_v16  ;;  %v9404_v16 = vsel %vm15261_vm10, %v1886_v20, %v1888_v7 }
 0x208   : > { %1853 = vrot.lane.b32.xlu1 %v9386_v48, %s7720_s28  ;;  %1776 = vrot.lane.b32.xlu0 %v9375_v26, %s7719_s27  ;;  %15701 = vst [vmem:[#allocation194_spill] sm:$0xff] %v9404_v16 }
 0x20a   : > { %v9395_v60 = vpop.permute.xlu1 %1988  ;;  %v9397_v3 = vpop.permute.xlu0 %1605 }
 0x20b   : > { %15698 = vst [vmem:[#allocation191_spill] sm:$0xff] %v9395_v60  ;;  %15699 = vst [vmem:[#allocation192_spill] sm:$0xff] %v9397_v3 }
 0x20c   : > { %1936 = vrot.lane.b32.xlu1 %v9404_v16, %s7721_s29  ;;  %1855 = vrot.lane.b32.xlu0 %v9407_v56, %s7720_s28 }
 0x20e   : > { %v9413_v62 = vpop.permute.xlu1 %1833  ;;  %v9415_v60 = vpop.permute.xlu0 %1914 }
 0x20f   : > { %15703 = vst [vmem:[#allocation196_spill] sm:$0xff] %v9413_v62  ;;  %15704 = vst [vmem:[#allocation197_spill] sm:$0xff] %v9415_v60  ;;  %v9433_v62 = vsel %vm15261_vm10, %v1888_v7, %v9421_v53 }
 0x210   : > { %1778 = vrot.lane.b32.xlu1 %v9401_v37, %s7719_s27  ;;  %1859 = vrot.lane.b32.xlu0 %v9418_v47, %s7720_s28  ;;  %15707 = vst [vmem:[#allocation200_spill] sm:$0xff] %v9433_v62 }
 0x212   : > { %v9427_v20 = vpop.permute.xlu0 %1756  ;;  %v9429_v11 = vpop.permute.xlu1 %1484 }
 0x213   : > { %15705 = vst [vmem:[#allocation198_spill] sm:$0xff] %v9427_v20  ;;  %15706 = vst [vmem:[#allocation199_spill] sm:$0xff] %v9429_v11  ;;  %v1058_v20 = vadd.f32 %v9229_v61, %v8780_v38 }
 0x214   : > { %1940 = vrot.lane.b32.xlu1 %v9421_v53, %s7721_s29  ;;  %1938 = vrot.lane.b32.xlu0 %v9433_v62, %s7721_s29 }
 0x215   : > { %vm1125_vm11 = vcmp.ge.f32.partialorder %v1058_v20, 0.0 }
 0x216   : > { %v9439_v60 = vpop.permute.xlu0 %1990  ;;  %v9441_v3 = vpop.permute.xlu1 %1607 }
 0x217   : > { %15708 = vst [vmem:[#allocation201_spill] sm:$0xff] %v9439_v60  ;;  %15709 = vst [vmem:[#allocation202_spill] sm:$0xff] %v9441_v3  ;;  %v1162_v3 = vmul.f32 0.2, %v1058_v20 }
 0x218   : > { %1998 = vrot.lane.b32.xlu0 %v9168_v8, %s7722_s30  ;;  %1857 = vrot.lane.b32.xlu1 %v9445_v6, %s7720_s28  ;;  %v1063_v8 = vadd.f32 %v9229_v61, %v8798_v25 }
 0x21a   : > { %v9451_v7 = vpop.permute.xlu0 %1835  ;;  %v9453_v11 = vpop.permute.xlu1 %1916  ;;  %vm1126_vm13 = vcmp.ge.f32.partialorder %v1063_v8, 0.0 }
 0x21b   : > { %15711 = vst [vmem:[#allocation204_spill] sm:$0xff] %v9453_v11  ;;  %v1068_v11 = vadd.f32 %v9229_v61, %v8805_v13 }
 0x21c   : > { %2002 = vrot.lane.b32.xlu0 %v9243_v24, %s7722_s30  ;;  %2000 = vrot.lane.b32.xlu1 %v9194_v63, %s7722_s30  ;;  %v1199_v63 = vsel %vm1125_vm11, %v1058_v20, %v1162_v3  ;;  %vm15207_vm11 = vcmp.eq.s32.totalorder %v8768_v41, 1 }
 0x21d   : > { %vm1127_vm6 = vcmp.ge.f32.partialorder %v1068_v11, 0.0 }
 0x21e   : > { %v9461_v33 = vpop.permute.xlu1 %1758  ;;  %v9463_v60 = vpop.permute.xlu0 %1486 }
 0x21f   : > { %15712 = vst [vmem:[#allocation205_spill] sm:$0xff] %v9461_v33  ;;  %15713 = vst [vmem:[#allocation206_spill] sm:$0xff] %v9463_v60  ;;  %v1163_v60 = vmul.f32 0.2, %v1063_v8  ;;  %v1164_v33 = vmul.f32 0.2, %v1068_v11 }
 0x220   : > { %2006 = vrot.lane.b32.xlu0 %v9313_v28, %s7722_s30  ;;  %2004 = vrot.lane.b32.xlu1 %v9269_v5, %s7722_s30  ;;  %v9488_v28 = vsel %vm15204_vm1, %v1199_v63, 0.0 }
 0x221   : > { %15714 = vst [vmem:[#allocation207_spill] sm:$0xff] %v9488_v28  ;;  %v1200_v3 = vsel %vm1126_vm13, %v1063_v8, %v1163_v60  ;;  %v1201_v20 = vsel %vm1127_vm6, %v1068_v11, %v1164_v33  ;;  %vm15736_vm6 = vcmask 1043456  }
 0x222   : > { %v9473_v38 = vpop.permute.xlu1 %1992  ;;  %v9475_v24 = vpop.permute.xlu0 %1609  ;;  %v9502_v63 = vsel %vm15207_vm11, %v1200_v3, 0.0  ;;  %v9506_v60 = vsel %vm15201_vm14, %v1201_v20, 0.0  ;;  %vm15741_vm13 = vmmov %vm15736_vm6 }
 0x223   : > { %15715 = vst [vmem:[#allocation208_spill] sm:$0xff] %v9502_v63  ;;  %15716 = vst [vmem:[#allocation209_spill] sm:$0xff] %v9506_v60 }
 0x224   : > { %2010 = vrot.lane.b32.xlu0 %v9375_v26, %s7722_s30  ;;  %2008 = vrot.lane.b32.xlu1 %v9343_v51, %s7722_s30 }
 0x226   : > { %v9482_v13 = vpop.permute.xlu1 %1837  ;;  %v9484_v25 = vpop.permute.xlu0 %1918 }
 0x228   : > { %2012 = vrot.lane.b32.xlu1 %v9401_v37, %s7722_s30  ;;  %2014 = vrot.lane.b32.xlu0 %v9488_v28, %s7722_s30 }
 0x22a   : > { %v9496_v26 = vpop.permute.xlu0 %1760  ;;  %v9498_v51 = vpop.permute.xlu1 %1488 }
 0x22c   : > { %2016 = vrot.lane.b32.xlu1 %v9502_v63, %s7722_s30  ;;  %2018 = vrot.lane.b32.xlu0 %v9506_v60, %s7722_s30 }
 0x22e   : > { %v9512_v8 = vpop.permute.xlu0 %1994  ;;  %v9514_v11 = vpop.permute.xlu1 %1611 }
 0x230   : > { %2051 = vrot.lane.b32.xlu1 %v8609_v42, %s7723_s21  ;;  %2053 = vrot.lane.b32.xlu0 %v8650_v50, %s7723_s21 }
 0x232   : > { %v9520_v33 = vpop.permute.xlu0 %1839  ;;  %v9522_v3 = vpop.permute.xlu1 %1920 }
 0x234   : > { %2055 = vrot.lane.b32.xlu1 %v8691_v57, %s7723_s21  ;;  %2057 = vrot.lane.b32.xlu0 %v8732_v14, %s7723_s21 }
 0x236   : > { %v9528_v20 = vpop.permute.xlu1 %1762  ;;  %v9530_v4 = vpop.permute.xlu0 %1490 }
 0x237   : > { %15717 = vst [vmem:[#allocation210_spill] sm:$0xff] %v9528_v20  ;;  %15718 = vst [vmem:[#allocation211_spill] sm:$0xff] %v9530_v4 }
 0x238   : > { %2059 = vrot.lane.b32.xlu1 %v8773_v18, %s7723_s21  ;;  %2061 = vrot.lane.b32.xlu0 %v8810_v22, %s7723_s21 }
 0x23a   : > { %v9536_v27 = vpop.permute.xlu1 %1996  ;;  %v9538_v41 = vpop.permute.xlu0 %1613 }
 0x23b   : > { %15719 = vst [vmem:[#allocation212_spill] sm:$0xff] %v9536_v27 }
 0x23c   : > { %2063 = vrot.lane.b32.xlu1 %v8861_v32, %s7723_s21  ;;  %2065 = vrot.lane.b32.xlu0 %v8954_v49, %s7723_s21 }
 0x23e   : > { %v9544_v37 = vpop.permute.xlu1 %1841  ;;  %v9546_v5 = vpop.permute.xlu0 %1922 }
 0x23f   : > { %15720 = vst [vmem:[#allocation213_spill] sm:$0xff] %v9544_v37  ;;  %15721 = vst [vmem:[#allocation214_spill] sm:$0xff] %v9546_v5 }
 0x240   : > { %2067 = vrot.lane.b32.xlu1 %v8993_v10, %s7723_s21  ;;  %2069 = vrot.lane.b32.xlu0 %v9032_v29, %s7723_s21 }
 0x242   : > { %v9552_v4 = vpop.permute.xlu0 %1764  ;;  %v9554_v27 = vpop.permute.xlu1 %1492 }
 0x243   : > { %15722 = vst [vmem:[#allocation215_spill] sm:$0xff] %v9552_v4  ;;  %15723 = vst [vmem:[#allocation216_spill] sm:$0xff] %v9554_v27  ;;  %v15816_v4 = vld [vmem:[#allocation73_spill] sm:$0xff] }
 0x244   : > { %2071 = vrot.lane.b32.xlu1 %v9071_v52, %s7723_s21  ;;  %2073 = vrot.lane.b32.xlu0 %v9110_v0, %s7723_s21 }
 0x246   : > { %v9560_v20 = vpop.permute.xlu0 %1843  ;;  %v9562_v37 = vpop.permute.xlu1 %1615 }
 0x247   : > { %15724 = vst [vmem:[#allocation217_spill] sm:$0xff] %v9560_v20  ;;  %15725 = vst [vmem:[#allocation218_spill] sm:$0xff] %v9562_v37 }
 0x248   : > { %2075 = vrot.lane.b32.xlu1 %v9149_v45, %s7723_s21  ;;  %2077 = vrot.lane.b32.xlu0 %v9189_v23, %s7723_s21  ;;  %v2414_v45 = vld [vmem:[%s15001_s4] sm:$0xff]  ;;  %v2415_v23 = vld [vmem:[%s15001_s4 + $0x8] sm:$0xff] }
 0x24a   : > { %v9568_v5 = vpop.permute.xlu1 %1924  ;;  %v9570_v29 = vpop.permute.xlu0 %1494 }
 0x24b   : > { %15726 = vst [vmem:[#allocation219_spill] sm:$0xff] %v9568_v5  ;;  %15727 = vst [vmem:[#allocation220_spill] sm:$0xff] %v9570_v29  ;;  %v2416_v5 = vld [vmem:[%s15001_s4 + $0x10] sm:$0xff] }
 0x24c   : > { %2079 = vrot.lane.b32.xlu1 %v9219_v46, %s7723_s21  ;;  %2081 = vrot.lane.b32.xlu0 %v9264_v19, %s7723_s21  ;;  %v7520_v46 = vpack.c.bf16 %v2415_v23, %v2414_v45 }
 0x24e   : > { %v9576_v0 = vpop.permute.xlu1 %1766  ;;  %v9578_v27 = vpop.permute.xlu0 %1617  ;;  %7521 = vmatprep.subr.bf16.mxu1 %v7520_v46 }
 0x24f   : > { %15728 = vst [vmem:[#allocation221_spill] sm:$0xff] %v9576_v0  ;;  %15729 = vst [vmem:[#allocation222_spill] sm:$0xff] %v9578_v27  ;;  %v2045_v0 = vrot.slane %v9488_v28, 1  ;;  %7523 = vmatpush3.bf16.msra.mxu1 %v7520_v46 }
 0x250   : > { %2083 = vrot.lane.b32.xlu1 %v9294_v43, %s7723_s21  ;;  %2085 = vrot.lane.b32.xlu0 %v9336_v2, %s7723_s21  ;;  %v2417_v43 = vld [vmem:[%s15001_s4 + $0x18] sm:$0xff] }
 0x251   : > { %v7524_v23 = vpack.c.bf16 %v2417_v43, %v2416_v5  ;;  %v9611_v46 = vsel %vm15316_vm15, %v9418_v47, %v2045_v0  ;;  %v2418_v5 = vld [vmem:[%s15001_s4 + $0x20] sm:$0xf] }
 0x252   : > { %v9590_v19 = vpop.permute.xlu1 %1845  ;;  %v9592_v29 = vpop.permute.xlu0 %1926  ;;  %15734 = vst [vmem:[#allocation227_spill] sm:$0xff] %v9611_v46 }
 0x253   : > { %15730 = vst [vmem:[#allocation223_spill] sm:$0xff] %v9590_v19  ;;  %15731 = vst [vmem:[#allocation224_spill] sm:$0xff] %v9592_v29  ;;  %7525 = vmatprep.subr.bf16.mxu1 %v7524_v23  ;;  %v2047_v29 = vrot.slane %v9502_v63, 1  ;;  %v9615_v19 = vrot.slane %v9506_v60, 1 }
 0x254   : > { %2087 = vrot.lane.b32.xlu1 %v9386_v48, %s7723_s21  ;;  %2089 = vrot.lane.b32.xlu0 %v9407_v56, %s7723_s21  ;;  %v15750_v48 = vld [vmem:[#allocation65_spill] sm:$0xff] }
 0x255   : > { %15735 = vst [vmem:[#allocation228_spill] sm:$0xff] %v9615_v19  ;;  %7527 = vmatpush3.bf16.msra.mxu1 %v7524_v23  ;;  %v9630_v56 = vsel %vm15316_vm15, %v2045_v0, %v2047_v29  ;;  %v9634_v23 = vsel %vm15316_vm15, %v2047_v29, %v9615_v19 }
 0x256   : > { %v9605_v45 = vpop.permute.xlu0 %1768  ;;  %v9607_v2 = vpop.permute.xlu1 %1496  ;;  %7382 = vmatprep.subr.msk.mxu1 %vm15736_vm6, %v2418_v5  ;;  %15739 = vst [vmem:[#allocation231_spill] sm:$0xff] %v9630_v56  ;;  %15740 = vst [vmem:[#allocation232_spill] sm:$0xff] %v9634_v23 }
 0x257   : > { %15732 = vst [vmem:[#allocation225_spill] sm:$0xff] %v9605_v45  ;;  %15733 = vst [vmem:[#allocation226_spill] sm:$0xff] %v9607_v2  ;;  %v15804_v45 = vld [vmem:[#allocation60_spill] sm:$0xff] }
 0x258   : > { %2091 = vrot.lane.b32.xlu1 %v9445_v6, %s7723_s21  ;;  %2093 = vrot.lane.b32.xlu0 %v9611_v46, %s7723_s21 }
 0x259   : > { %7383 = vmatpush3.msk.msra.mxu1 %vm15741_vm13, %v2418_v5  ;;  %v15746_v5 = vld [vmem:[#allocation52_spill] sm:$0xff] }
 0x25a   : > { %v9625_v47 = vpop.permute.xlu0 %1847  ;;  %v9627_v43 = vpop.permute.xlu1 %1619 }
 0x25b   : > { %15737 = vst [vmem:[#allocation229_spill] sm:$0xff] %v9625_v47  ;;  %15738 = vst [vmem:[#allocation230_spill] sm:$0xff] %v9627_v43  ;;  %v15808_v43 = vld [vmem:[#allocation98_spill] sm:$0xff] }
 0x25c   : > { %2095 = vrot.lane.b32.xlu1 %v9630_v56, %s7723_s21  ;;  %2097 = vrot.lane.b32.xlu0 %v9634_v23, %s7723_s21 }
 0x25e   : > { %v9641_v46 = vpop.permute.xlu1 %1928  ;;  %v9643_v6 = vpop.permute.xlu0 %1498 }
 0x25f   : > { %15742 = vst [vmem:[#allocation233_spill] sm:$0xff] %v9641_v46  ;;  %15743 = vst [vmem:[#allocation234_spill] sm:$0xff] %v9643_v6  ;;  %v15753_v46 = vld [vmem:[#allocation71_spill] sm:$0xff] }
 0x260   : > { %2099 = vrot.lane.b32.xlu1 %v9615_v19, %s7723_s21  ;;  %2132 = vrot.lane.b32.xlu0 %v8620_v17, %s15457_s22  ;;  %v15749_v19 = vld [vmem:[#allocation58_spill] sm:$0xff] }
 0x262   : > { %v9649_v29 = vpop.permute.xlu1 %1770  ;;  %v9651_v0 = vpop.permute.xlu0 %1621 }
 0x263   : > { %15744 = vst [vmem:[#allocation235_spill] sm:$0xff] %v9649_v29  ;;  %15745 = vst [vmem:[#allocation236_spill] sm:$0xff] %v9651_v0  ;;  %v2128_v0 = vrot.slane %v9502_v63, 2 }
 0x264   : > { %2134 = vrot.lane.b32.xlu1 %v8661_v15, %s15457_s22  ;;  %2136 = vrot.lane.b32.xlu0 %v15746_v5, %s15457_s22 }
 0x266   : > { %v9657_v23 = vpop.permute.xlu1 %1849  ;;  %v9659_v56 = vpop.permute.xlu0 %1930 }
 0x267   : > { %15747 = vst [vmem:[#allocation237_spill] sm:$0xff] %v9657_v23  ;;  %15748 = vst [vmem:[#allocation238_spill] sm:$0xff] %v9659_v56 }
 0x268   : > { %2138 = vrot.lane.b32.xlu1 %v15749_v19, %s15457_s22  ;;  %2140 = vrot.lane.b32.xlu0 %v15750_v48, %s15457_s22 }
 0x26a   : > { %v9665_v6 = vpop.permute.xlu0 %1772  ;;  %v9667_v29 = vpop.permute.xlu1 %1500 }
 0x26b   : > { %15751 = vst [vmem:[#allocation239_spill] sm:$0xff] %v9665_v6  ;;  %15752 = vst [vmem:[#allocation240_spill] sm:$0xff] %v9667_v29 }
 0x26c   : > { %2142 = vrot.lane.b32.xlu1 %v15753_v46, %s15457_s22  ;;  %2144 = vrot.lane.b32.xlu0 %v8889_v36, %s15457_s22 }
 0x26e   : > { %v9673_v2 = vpop.permute.xlu0 %1625  ;;  %v9675_v23 = vpop.permute.xlu1 %1623 }
 0x26f   : > { %15754 = vst [vmem:[#allocation71_spill] sm:$0xff] %v9673_v2  ;;  %15755 = vst [vmem:[#allocation241_spill] sm:$0xff] %v9675_v23 }
 0x270   : > { %2146 = vrot.lane.b32.xlu1 %v8967_v31, %s15457_s22  ;;  %2148 = vrot.lane.b32.xlu0 %v9006_v21, %s15457_s22 }
 0x272   : > { %v9681_v56 = vpop.permute.xlu0 %1851  ;;  %v9683_v6 = vpop.permute.xlu1 %1932 }
 0x273   : > { %15756 = vst [vmem:[#allocation242_spill] sm:$0xff] %v9681_v56  ;;  %15757 = vst [vmem:[#allocation243_spill] sm:$0xff] %v9683_v6 }
 0x274   : > { %2150 = vrot.lane.b32.xlu1 %v9045_v39, %s15457_s22  ;;  %2152 = vrot.lane.b32.xlu0 %v9084_v58, %s15457_s22 }
 0x276   : > { %v9689_v29 = vpop.permute.xlu1 %1774  ;;  %v9691_v2 = vpop.permute.xlu0 %1934 }
 0x277   : > { %15758 = vst [vmem:[#allocation244_spill] sm:$0xff] %v9689_v29  ;;  %15759 = vst [vmem:[#allocation245_spill] sm:$0xff] %v9691_v2 }
 0x278   : > { %2154 = vrot.lane.b32.xlu1 %v9123_v1, %s15457_s22  ;;  %2156 = vrot.lane.b32.xlu0 %v9164_v34, %s15457_s22  ;;  %v15817_v34 = vld [vmem:[#allocation69_spill] sm:$0xff] }
 0x27a   : > { %v9697_v23 = vpop.permute.xlu1 %1853  ;;  %v9699_v56 = vpop.permute.xlu0 %1776 }
 0x27b   : > { %15760 = vst [vmem:[#allocation246_spill] sm:$0xff] %v9697_v23  ;;  %15761 = vst [vmem:[#allocation247_spill] sm:$0xff] %v9699_v56 }
 0x27c   : > { %2158 = vrot.lane.b32.xlu1 %v9207_v44, %s15457_s22  ;;  %2160 = vrot.lane.b32.xlu0 %v9239_v12, %s15457_s22 }
 0x27e   : > { %v9705_v6 = vpop.permute.xlu1 %1936  ;;  %v9707_v29 = vpop.permute.xlu0 %1855 }
 0x27f   : > { %15762 = vst [vmem:[#allocation248_spill] sm:$0xff] %v9705_v6  ;;  %15763 = vst [vmem:[#allocation249_spill] sm:$0xff] %v9707_v29  ;;  %v2126_v29 = vrot.slane %v9488_v28, 2 }
 0x280   : > { %2162 = vrot.lane.b32.xlu1 %v9282_v30, %s15457_s22  ;;  %2164 = vrot.lane.b32.xlu0 %v9309_v40, %s15457_s22  ;;  %v15768_v30 = vld [vmem:[#allocation2_spill] sm:$0xff] }
 0x281   : > { %v903_v40 = vadd.f32 %v9229_v61, %v15768_v30  ;;  %v9741_v28 = vsel %vm15261_vm10, %v9421_v53, %v2126_v29  ;;  %v9744_v63 = vsel %vm15261_vm10, %v2126_v29, %v2128_v0  ;;  %v9747_v30 = vrot.slane %v9506_v60, 2 }
 0x282   : > { %v9713_v2 = vpop.permute.xlu1 %1778  ;;  %v9715_v23 = vpop.permute.xlu0 %1859  ;;  %15772 = vst [vmem:[#allocation254_spill] sm:$0xff] %v9741_v28  ;;  %15773 = vst [vmem:[#allocation255_spill] sm:$0xff] %v9744_v63 }
 0x283   : > { %15764 = vst [vmem:[#allocation250_spill] sm:$0xff] %v9713_v2  ;;  %15765 = vst [vmem:[#allocation251_spill] sm:$0xff] %v9715_v23  ;;  %v15769_v2 = vld [vmem:[#allocation3_spill] sm:$0xff]  ;;  %vm1094_vm6 = vcmp.ge.f32.partialorder %v903_v40, 0.0  ;;  %v9762_v60 = vsel %vm15261_vm10, %v2128_v0, %v9747_v30 }
 0x284   : > { %2166 = vrot.lane.b32.xlu1 %v9354_v9, %s15457_s22  ;;  %2168 = vrot.lane.b32.xlu0 %v9370_v35, %s15457_s22  ;;  %v908_v23 = vadd.f32 %v9229_v61, %v15769_v2  ;;  %15774 = vst [vmem:[#allocation256_spill] sm:$0xff] %v9747_v30  ;;  %v1131_v2 = vmul.f32 0.2, %v903_v40 }
 0x286   : > { %v9721_v56 = vpop.permute.xlu1 %1940  ;;  %v9723_v6 = vpop.permute.xlu0 %1938  ;;  %vm1095_vm13 = vcmp.ge.f32.partialorder %v908_v23, 0.0 }
 0x287   : > { %15766 = vst [vmem:[#allocation252_spill] sm:$0xff] %v9721_v56  ;;  %15767 = vst [vmem:[#allocation253_spill] sm:$0xff] %v9723_v6  ;;  %v1132_v6 = vmul.f32 0.2, %v908_v23 }
 0x288   : > { %2170 = vrot.lane.b32.xlu1 %v9404_v16, %s15457_s22  ;;  %2172 = vrot.lane.b32.xlu0 %v9433_v62, %s15457_s22  ;;  %v15775_v16 = vld [vmem:[#allocation5_spill] sm:$0xff]  ;;  %v15778_v62 = vld [vmem:[#allocation4_spill] sm:$0xff] }
 0x289   : > { %v913_v9 = vadd.f32 %v9229_v61, %v15775_v16  ;;  %vm1353_vm14 = vcmp.eq.s32.totalorder %v15778_v62, 1  ;;  %15779 = vst [vmem:[#allocation4_spill] sm:$0xff] %v9762_v60  ;;  %v1168_v61 = vsel %vm1094_vm6, %v903_v40, %v1131_v2  ;;  %v1169_v16 = vsel %vm1095_vm13, %v908_v23, %v1132_v6  ;;  %v15789_v2 = vld [vmem:[#allocation9_spill] sm:$0xff] }
 0x28a   : > { %v9735_v35 = vpop.permute.xlu0 %1998  ;;  %v9737_v56 = vpop.permute.xlu1 %1857  ;;  %v9773_v62 = vsel %vm1353_vm14, %v1168_v61, 0.0  ;;  %v15793_v61 = vld [vmem:[#allocation14_spill] sm:$0xff]  ;;  %vm2258_vm14 = vcmask 97280   ;;  %vm2336_vm6 = vcmask 195584   ;;  %vm2362_vm13 = vcmask 228352  }
 0x28b   : > { %15770 = vst [vmem:[#allocation2_spill] sm:$0xff] %v9735_v35  ;;  %15771 = vst [vmem:[#allocation3_spill] sm:$0xff] %v9737_v56  ;;  %v15780_v56 = vld [vmem:[#allocation7_spill] sm:$0xff]  ;;  %vm1096_vm11 = vcmp.ge.f32.partialorder %v913_v9, 0.0  ;;  %v15802_v35 = vld [vmem:[#allocation48_spill] sm:$0xff] }
 0x28c   : > { %2174 = vrot.lane.b32.xlu1 %v9741_v28, %s15457_s22  ;;  %2176 = vrot.lane.b32.xlu0 %v9744_v63, %s15457_s22  ;;  %vm1354_vm1 = vcmp.eq.s32.totalorder %v15780_v56, 1  ;;  %v1133_v28 = vmul.f32 0.2, %v913_v9  ;;  %15783 = vst [vmem:[#allocation259_spill] sm:$0xff] %v9773_v62 }
 0x28d   : > { %v9775_v0 = vsel %vm1354_vm1, %v1169_v16, 0.0  ;;  %vm2284_vm1 = vcmask 130048  }
 0x28e   : > { %v9755_v53 = vpop.permute.xlu0 %2002  ;;  %v9757_v29 = vpop.permute.xlu1 %2000  ;;  %15784 = vst [vmem:[#allocation260_spill] sm:$0xff] %v9775_v0  ;;  %v1170_v40 = vsel %vm1096_vm11, %v913_v9, %v1133_v28  ;;  %v2885_v27 = vrot.slane %v9775_v0, 1  ;;  %vm2310_vm11 = vcmask 162816  }
 0x28f   : > { %15776 = vst [vmem:[#allocation5_spill] sm:$0xff] %v9755_v53  ;;  %15777 = vst [vmem:[#allocation257_spill] sm:$0xff] %v9757_v29  ;;  %v15785_v53 = vld [vmem:[#allocation6_spill] sm:$0xff] }
 0x290   : > { %2178 = vrot.lane.b32.xlu1 %v9762_v60, %s15457_s22  ;;  %2180 = vrot.lane.b32.xlu0 %v9747_v30, %s15457_s22  ;;  %vm1355_vm12 = vcmp.eq.s32.totalorder %v15785_v53, 1  ;;  %v15792_v53 = vld [vmem:[#allocation11_spill] sm:$0xff]  ;;  %v15796_v30 = vld [vmem:[#allocation17_spill] sm:$0xff]  ;;  %v15797_v60 = vld [vmem:[#allocation20_spill] sm:$0xff] }
 0x291   : > { %v9786_v23 = vsel %vm1355_vm12, %v1170_v40, 0.0  ;;  %vm15483_vm12 = vcmask 64512  }
 0x292   : > { %v9769_v63 = vpop.permute.xlu0 %2006  ;;  %v9771_v29 = vpop.permute.xlu1 %2004  ;;  %15788 = vst [vmem:[#allocation262_spill] sm:$0xff] %v9786_v23  ;;  %v2887_v20 = vrot.slane %v9786_v23, 1 }
 0x293   : > { %15781 = vst [vmem:[#allocation7_spill] sm:$0xff] %v9769_v63  ;;  %15782 = vst [vmem:[#allocation258_spill] sm:$0xff] %v9771_v29  ;;  %v15801_v63 = vld [vmem:[#allocation42_spill] sm:$0xff] }
 0x294   : > { %2812 = vrot.lane.b32.xlu1 %v9773_v62, %s7725_s23  ;;  %2814 = vrot.lane.b32.xlu0 %v9775_v0, %s7725_s23 }
 0x296   : > { %v9782_v6 = vpop.permute.xlu0 %2010  ;;  %v9784_v56 = vpop.permute.xlu1 %2008 }
 0x297   : > { %15786 = vst [vmem:[#allocation6_spill] sm:$0xff] %v9782_v6  ;;  %15787 = vst [vmem:[#allocation261_spill] sm:$0xff] %v9784_v56  ;;  %v15799_v6 = vld [vmem:[#allocation29_spill] sm:$0xff] }
 0x298   : > { %2816 = vrot.lane.b32.xlu1 %v9786_v23, %s7725_s23  ;;  %2818 = vrot.lane.b32.xlu0 %v15789_v2, %s7725_s23 }
 0x29a   : > { %v9792_v28 = vpop.permute.xlu1 %2012  ;;  %v9794_v9 = vpop.permute.xlu0 %2014 }
 0x29b   : > { %15790 = vst [vmem:[#allocation263_spill] sm:$0xff] %v9792_v28  ;;  %15791 = vst [vmem:[#allocation264_spill] sm:$0xff] %v9794_v9  ;;  %v15798_v9 = vld [vmem:[#allocation23_spill] sm:$0xff] }
 0x29c   : > { %2820 = vrot.lane.b32.xlu1 %v15792_v53, %s7725_s23  ;;  %2822 = vrot.lane.b32.xlu0 %v15793_v61, %s7725_s23 }
 0x29e   : > { %v9800_v16 = vpop.permute.xlu1 %2016  ;;  %v9802_v40 = vpop.permute.xlu0 %2018 }
 0x29f   : > { %15794 = vst [vmem:[#allocation265_spill] sm:$0xff] %v9800_v16  ;;  %15795 = vst [vmem:[#allocation266_spill] sm:$0xff] %v9802_v40  ;;  %v15800_v40 = vld [vmem:[#allocation35_spill] sm:$0xff] }
 0x2a0   : > { %2824 = vrot.lane.b32.xlu1 %v15796_v30, %s7725_s23  ;;  %2826 = vrot.lane.b32.xlu0 %v15797_v60, %s7725_s23 }
 0x2a2   : > { %v9808_v56 = vpop.permute.xlu1 %2051  ;;  %v9810_v28 = vpop.permute.xlu0 %2053 }
 0x2a4   : > { %2828 = vrot.lane.b32.xlu1 %v15798_v9, %s7725_s23  ;;  %2830 = vrot.lane.b32.xlu0 %v15799_v6, %s7725_s23  ;;  %v15803_v9 = vld [vmem:[#allocation54_spill] sm:$0xff] }
 0x2a6   : > { %v9816_v29 = vpop.permute.xlu1 %2055  ;;  %v9818_v16 = vpop.permute.xlu0 %2057 }
 0x2a8   : > { %2832 = vrot.lane.b32.xlu1 %v15800_v40, %s7725_s23  ;;  %2834 = vrot.lane.b32.xlu0 %v15801_v63, %s7725_s23 }
 0x2aa   : > { %v9824_v60 = vpop.permute.xlu1 %2059  ;;  %v9826_v47 = vpop.permute.xlu0 %2061 }
 0x2ac   : > { %2836 = vrot.lane.b32.xlu1 %v15802_v35, %s7725_s23  ;;  %2838 = vrot.lane.b32.xlu0 %v15803_v9, %s7725_s23 }
 0x2ae   : > { %v9832_v6 = vpop.permute.xlu1 %2063  ;;  %v9834_v12 = vpop.permute.xlu0 %2065 }
 0x2b0   : > { %2840 = vrot.lane.b32.xlu1 %v15804_v45, %s7725_s23  ;;  %2842 = vrot.lane.b32.xlu0 %v8788_v54, %s7725_s23  ;;  %v15809_v45 = vld [vmem:[#allocation106_spill] sm:$0xff] }
 0x2b2   : > { %v9840_v63 = vpop.permute.xlu1 %2067  ;;  %v9842_v40 = vpop.permute.xlu0 %2069 }
 0x2b3   : > { %15805 = vst [vmem:[#allocation267_spill] sm:$0xff] %v9842_v40  ;;  %v15818_v40 = vld [vmem:[#allocation76_spill] sm:$0xff] }
 0x2b4   : > { %2844 = vrot.lane.b32.xlu1 %v8832_v55, %s7725_s23  ;;  %2846 = vrot.lane.b32.xlu0 %v8905_v59, %s7725_s23  ;;  %v15812_v55 = vld [vmem:[#allocation114_spill] sm:$0xff]  ;;  %v15813_v59 = vld [vmem:[#allocation123_spill] sm:$0xff] }
 0x2b6   : > { %v9848_v9 = vpop.permute.xlu1 %2071  ;;  %v9850_v35 = vpop.permute.xlu0 %2073 }
 0x2b7   : > { %15806 = vst [vmem:[#allocation268_spill] sm:$0xff] %v9848_v9  ;;  %15807 = vst [vmem:[#allocation269_spill] sm:$0xff] %v9850_v35  ;;  %v2884_v35 = vrot.slane %v9773_v62, 1  ;;  %v2207_v9 = vsel %vm15484_vm2, %v15817_v34, %v15816_v4 }
 0x2b8   : > { %2848 = vrot.lane.b32.xlu1 %v15808_v43, %s7725_s23  ;;  %2850 = vrot.lane.b32.xlu0 %v15809_v45, %s7725_s23  ;;  %v2963_v43 = vrot.slane %v9775_v0, 2  ;;  %v2965_v45 = vrot.slane %v9786_v23, 2  ;;  %v15819_v0 = vld [vmem:[#allocation70_spill] sm:$0xff] }
 0x2b9   : > { %v2208_v23 = vsel %vm15484_vm2, %v15819_v0, %v15818_v40  ;;  %v15825_v0 = vld [vmem:[#allocation81_spill] sm:$0xff]  ;;  %v15826_v40 = vld [vmem:[#allocation74_spill] sm:$0xff] }
 0x2ba   : > { %v9856_v54 = vpop.permute.xlu1 %2075  ;;  %v9858_v44 = vpop.permute.xlu0 %2077  ;;  %v9893_v4 = vsel %vm15261_vm10, %v2963_v43, %v2965_v45 }
 0x2bb   : > { %15810 = vst [vmem:[#allocation270_spill] sm:$0xff] %v9856_v54  ;;  %15811 = vst [vmem:[#allocation271_spill] sm:$0xff] %v9858_v44  ;;  %v1654_v54 = vrot.slane %v15792_v53, 2  ;;  %v1656_v44 = vrot.slane %v15793_v61, 2  ;;  %v1653_v53 = vrot.slane %v15789_v2, 2  ;;  %v15820_v61 = vld [vmem:[#allocation132_spill] sm:$0xff] }
 0x2bc   : > { %2852 = vrot.lane.b32.xlu1 %v15812_v55, %s7725_s23  ;;  %2854 = vrot.lane.b32.xlu0 %v15813_v59, %s7725_s23  ;;  %v2886_v55 = vsel %vm15316_vm15, %v2884_v35, %v2885_v27  ;;  %v2962_v59 = vrot.slane %v9773_v62, 2  ;;  %v2888_v35 = vsel %vm15316_vm15, %v2885_v27, %v2887_v20  ;;  %15823 = vst [vmem:[#allocation69_spill] sm:$0xff] %v9893_v4  ;;  %v15830_v27 = vrot.slane %v15789_v2, 1 }
 0x2bd   : > { %v9896_v34 = vsel %vm15261_vm10, %v1653_v53, %v1654_v54 }
 0x2be   : > { %v9871_v52 = vpop.permute.xlu1 %2079  ;;  %v9873_v37 = vpop.permute.xlu0 %2081  ;;  %v9890_v62 = vsel %vm15261_vm10, %v2962_v59, %v2963_v43  ;;  %15824 = vst [vmem:[#allocation76_spill] sm:$0xff] %v9896_v34  ;;  %v2889_v59 = vsel %vm15316_vm15, %v2887_v20, %v15830_v27  ;;  %v2233_v43 = vsel %vm15483_vm12, %v2207_v9, %v9896_v34  ;;  %v15836_v20 = vld [vmem:[#allocation100_spill] sm:$0xff]  ;;  %v15837_v27 = vld [vmem:[#allocation89_spill] sm:$0xff] }
 0x2bf   : > { %15814 = vst [vmem:[#allocation272_spill] sm:$0xff] %v9871_v52  ;;  %15815 = vst [vmem:[#allocation273_spill] sm:$0xff] %v9873_v37  ;;  %v15821_v37 = vld [vmem:[#allocation141_spill] sm:$0xff]  ;;  %v2209_v52 = vsel %vm15484_vm2, %v15826_v40, %v15825_v0  ;;  %v15831_v0 = vrot.slane %v15796_v30, 2  ;;  %v15833_v40 = vld [vmem:[#allocation88_spill] sm:$0xff]  ;;  %v2211_v9 = vsel %vm15484_vm2, %v15837_v27, %v15836_v20 }
 0x2c0   : > { %2856 = vrot.lane.b32.xlu1 %v15820_v61, %s7725_s23  ;;  %2858 = vrot.lane.b32.xlu0 %v15821_v37, %s7725_s23  ;;  %15822 = vst [vmem:[#allocation73_spill] sm:$0xff] %v9890_v62  ;;  %v9902_v61 = vsel %vm15261_vm10, %v1654_v54, %v1656_v44  ;;  %v15842_v20 = vld [vmem:[#allocation99_spill] sm:$0xff]  ;;  %v15844_v27 = vld [vmem:[#allocation97_spill] sm:$0xff]  ;;  %v15852_v34 = vld [vmem:[#allocation116_spill] sm:$0xff] }
 0x2c1   : > { %15827 = vst [vmem:[#allocation70_spill] sm:$0xff] %v9902_v61  ;;  %v2234_v4 = vsel %vm15483_vm12, %v2208_v23, %v9902_v61  ;;  %v9918_v54 = vsel %vm15261_vm10, %v1656_v44, %v15831_v0  ;;  %v15838_v23 = vld [vmem:[#allocation80_spill] sm:$0xff] }
 0x2c2   : > { %v9904_v37 = vpop.permute.xlu1 %2083  ;;  %v9906_v1 = vpop.permute.xlu0 %2085  ;;  %15832 = vst [vmem:[#allocation274_spill] sm:$0xff] %v9918_v54  ;;  %v2260_v62 = vsel %vm2258_vm14, %v2234_v4, %v15833_v40  ;;  %v2259_v44 = vsel %vm2258_vm14, %v2233_v43, %v15838_v23  ;;  %v2235_v0 = vsel %vm15483_vm12, %v2209_v52, %v9918_v54  ;;  %v15839_v4 = vld [vmem:[#allocation101_spill] sm:$0xff]  ;;  %v15846_v54 = vld [vmem:[#allocation96_spill] sm:$0xff] }
 0x2c3   : > { %15828 = vst [vmem:[#allocation81_spill] sm:$0xff] %v9904_v37  ;;  %15829 = vst [vmem:[#allocation74_spill] sm:$0xff] %v9906_v1  ;;  %v15834_v1 = vld [vmem:[#allocation94_spill] sm:$0xff]  ;;  %v15835_v37 = vld [vmem:[#allocation77_spill] sm:$0xff]  ;;  %v2286_v40 = vsel %vm2284_vm1, %v2260_v62, %v15839_v4 }
 0x2c4   : > { %v2210_v2 = vsel %vm15484_vm2, %v15835_v37, %v15834_v1  ;;  %2890 = vrot.lane.b32.xlu1 %v2886_v55, %s7717_s24  ;;  %2892 = vrot.lane.b32.xlu0 %v2888_v35, %s7717_s24  ;;  %v9937_v1 = vsel %vm15261_vm10, %v2965_v45, %v1653_v53  ;;  %v15841_v37 = vld [vmem:[#allocation93_spill] sm:$0xff]  ;;  %v2261_v55 = vsel %vm2258_vm14, %v2235_v0, %v15842_v20  ;;  %v15843_v35 = vld [vmem:[#allocation108_spill] sm:$0xff]  ;;  %v15850_v20 = vld [vmem:[#allocation102_spill] sm:$0xff] }
 0x2c5   : > { %15840 = vst [vmem:[#allocation88_spill] sm:$0xff] %v9937_v1  ;;  %v2285_v30 = vsel %vm2284_vm1, %v2259_v44, %v15841_v37  ;;  %v2212_v43 = vsel %vm15484_vm2, %v15844_v27, %v15843_v35  ;;  %v15847_v45 = vld [vmem:[#allocation24_spill] sm:$0xff]  ;;  %v15848_v4 = vld [vmem:[#allocation109_spill] sm:$0xff]  ;;  %v15849_v37 = vld [vmem:[#allocation27_spill] sm:$0xff]  ;;  %v2312_v61 = vsel %vm2310_vm11, %v2286_v40, %v15850_v20 }
 0x2c6   : > { %v9946_v23 = vpop.permute.xlu1 %2087  ;;  %v9948_v52 = vpop.permute.xlu0 %2089  ;;  %v2311_v62 = vsel %vm2310_vm11, %v2285_v30, %v15846_v54  ;;  %v2236_v53 = vsel %vm15483_vm12, %v2210_v2, %v15847_v45  ;;  %v2287_v44 = vsel %vm2284_vm1, %v2261_v55, %v15848_v4  ;;  %v2237_v0 = vsel %vm15483_vm12, %v2211_v9, %v15849_v37  ;;  %v15851_v35 = vld [vmem:[#allocation104_spill] sm:$0xff]  ;;  %v15854_v30 = vld [vmem:[#allocation13_spill] sm:$0xff]  ;;  %v15855_v2 = vld [vmem:[#allocation107_spill] sm:$0xff] }
 0x2c7   : > { %15845 = vst [vmem:[#allocation94_spill] sm:$0xff] %v9948_v52  ;;  %v2262_v27 = vsel %vm2258_vm14, %v2236_v53, %v15851_v35  ;;  %v15853_v52 = vld [vmem:[#allocation105_spill] sm:$0xff]  ;;  %v2337_v54 = vsel %vm2336_vm6, %v2311_v62, %v15855_v2  ;;  %v15856_v55 = vld [vmem:[#allocation112_spill] sm:$0xff]  ;;  %v15859_v35 = vld [vmem:[#allocation110_spill] sm:$0xff] }
 0x2c8   : > { %v2213_v1 = vsel %vm15484_vm2, %v15853_v52, %v15852_v34  ;;  %2894 = vrot.lane.b32.xlu1 %v2889_v59, %s7717_s24  ;;  %2896 = vrot.lane.b32.xlu0 %v15854_v30, %s7717_s24  ;;  %v2263_v9 = vsel %vm2258_vm14, %v2237_v0, %v15856_v55  ;;  %v15857_v4 = vld [vmem:[#allocation117_spill] sm:$0xff]  ;;  %v2313_v34 = vsel %vm2310_vm11, %v2287_v44, %v15859_v35  ;;  %v15860_v52 = vld [vmem:[#allocation120_spill] sm:$0xff]  ;;  %v15863_v62 = vld [vmem:[#allocation126_spill] sm:$0xff] }
 0x2c9   : > { %v2288_v40 = vsel %vm2284_vm1, %v2262_v27, %v15857_v4  ;;  %v15858_v20 = vld [vmem:[#allocation33_spill] sm:$0xff]  ;;  %v2289_v2 = vsel %vm2284_vm1, %v2263_v9, %v15863_v62  ;;  %v15866_v27 = vld [vmem:[#allocation115_spill] sm:$0xff]  ;;  %v2239_v44 = vsel %vm15483_vm12, %v2213_v1, %v8620_v17  ;;  %v15867_v4 = vld [vmem:[#allocation134_spill] sm:$0xff] }
 0x2ca   : > { %v2238_v53 = vsel %vm15483_vm12, %v2212_v43, %v15858_v20  ;;  %v15861_v37 = vld [vmem:[#allocation125_spill] sm:$0xff]  ;;  %v9985_v0 = vpop.permute.xlu1 %2091  ;;  %v9987_v55 = vpop.permute.xlu0 %2093  ;;  %v2338_v43 = vsel %vm2336_vm6, %v2312_v61, %v15866_v27  ;;  %v15871_v62 = vld [vmem:[#allocation124_spill] sm:$0xff]  ;;  %v15875_v1 = vld [vmem:[#allocation19_spill] sm:$0xff] }
 0x2cb   : > { %v2264_v59 = vsel %vm2258_vm14, %v2238_v53, %v15860_v52  ;;  %v15862_v30 = vld [vmem:[#allocation113_spill] sm:$0xff]  ;;  %15864 = vst [vmem:[#allocation77_spill] sm:$0xff] %v9985_v0  ;;  %15865 = vst [vmem:[#allocation100_spill] sm:$0xff] %v9987_v55  ;;  %v15869_v52 = vld [vmem:[#allocation135_spill] sm:$0xff]  ;;  %v2339_v20 = vsel %vm2336_vm6, %v2313_v34, %v15871_v62 }
 0x2cc   : > { %v2214_v45 = vsel %vm15484_vm2, %v15862_v30, %v15861_v37  ;;  %v15868_v35 = vld [vmem:[#allocation121_spill] sm:$0xff]  ;;  %v2290_v37 = vsel %vm2284_vm1, %v2264_v59, %v15869_v52  ;;  %v15870_v30 = vld [vmem:[#allocation118_spill] sm:$0xff]  ;;  %v15872_v55 = vld [vmem:[#allocation143_spill] sm:$0xff]  ;;  %2900 = vrot.lane.b32.xlu0 %v15875_v1, %s7717_s24 }
 0x2cd   : > { %v2215_v53 = vsel %vm15484_vm2, %v15868_v35, %v15867_v4  ;;  %v2314_v9 = vsel %vm2310_vm11, %v2288_v40, %v15870_v30  ;;  %v15873_v0 = vld [vmem:[#allocation130_spill] sm:$0xff]  ;;  %v15874_v27 = vld [vmem:[#allocation16_spill] sm:$0xff]  ;;  %v15876_v4 = vld [vmem:[#allocation127_spill] sm:$0xff]  ;;  %v2240_v34 = vsel %vm15483_vm12, %v2214_v45, %v8661_v15 }
 0x2ce   : > { %v2216_v61 = vsel %vm15484_vm2, %v15873_v0, %v15872_v55  ;;  %2898 = vrot.lane.b32.xlu1 %v15874_v27, %s7717_s24  ;;  %v2315_v35 = vsel %vm2310_vm11, %v2289_v2, %v15876_v4  ;;  %v15877_v59 = vld [vmem:[#allocation129_spill] sm:$0xff]  ;;  %v15879_v62 = vld [vmem:[#allocation136_spill] sm:$0xff]  ;;  %v15880_v55 = vld [vmem:[#allocation138_spill] sm:$0xff]  ;;  %v2241_v2 = vsel %vm15483_vm12, %v2215_v53, %v15746_v5  ;;  %v10025_v4 = vpop.permute.xlu1 %2095 }
 0x2cf   : > { %v2265_v52 = vsel %vm2258_vm14, %v2239_v44, %v15877_v59  ;;  %v15878_v40 = vld [vmem:[#allocation133_spill] sm:$0xff]  ;;  %v2316_v0 = vsel %vm2310_vm11, %v2290_v37, %v15879_v62  ;;  %v2266_v27 = vsel %vm2258_vm14, %v2240_v34, %v15880_v55  ;;  %v15881_v17 = vld [vmem:[#allocation144_spill] sm:$0xff]  ;;  %v10027_v44 = vpop.permute.xlu0 %2097  ;;  %v15886_v62 = vld [vmem:[#allocation139_spill] sm:$0xff] }
 0x2d0   : > { %v2340_v30 = vsel %vm2336_vm6, %v2314_v9, %v15878_v40  ;;  %v2291_v1 = vsel %vm2284_vm1, %v2265_v52, %v15881_v17  ;;  %15882 = vst [vmem:[#allocation89_spill] sm:$0xff] %v10027_v44  ;;  %v15883_v9 = vld [vmem:[#allocation142_spill] sm:$0xff]  ;;  %v15884_v45 = vld [vmem:[#allocation148_spill] sm:$0xff]  ;;  %v2242_v17 = vsel %vm15483_vm12, %v2216_v61, %v15749_v19  ;;  %v15888_v55 = vld [vmem:[#allocation161_spill] sm:$0xff] }
 0x2d1   : > { %v2341_v59 = vsel %vm2336_vm6, %v2315_v35, %v15883_v9  ;;  %v2267_v40 = vsel %vm2258_vm14, %v2241_v2, %v15884_v45  ;;  %v15885_v37 = vld [vmem:[#allocation152_spill] sm:$0xff]  ;;  %v15887_v52 = vld [vmem:[#allocation154_spill] sm:$0xff]  ;;  %v15889_v5 = vld [vmem:[#allocation149_spill] sm:$0xff] }
 0x2d2   : > { %v2217_v34 = vsel %vm15484_vm2, %v15886_v62, %v15885_v37  ;;  %v2292_v53 = vsel %vm2284_vm1, %v2266_v27, %v15887_v52  ;;  %v2218_v15 = vsel %vm15484_vm2, %v15889_v5, %v15888_v55  ;;  %v15890_v44 = vld [vmem:[#allocation164_spill] sm:$0xff]  ;;  %v15891_v9 = vld [vmem:[#allocation22_spill] sm:$0xff]  ;;  %v15892_v2 = vld [vmem:[#allocation25_spill] sm:$0xff]  ;;  %v10064_v19 = vpop.permute.xlu1 %2099 }
 0x2d3   : > { %v2293_v35 = vsel %vm2284_vm1, %v2267_v40, %v15890_v44  ;;  %2902 = vrot.lane.b32.xlu1 %v15891_v9, %s7717_s24  ;;  %2904 = vrot.lane.b32.xlu0 %v15892_v2, %s7717_s24  ;;  %v15893_v45 = vld [vmem:[#allocation145_spill] sm:$0xff]  ;;  %v15894_v61 = vld [vmem:[#allocation151_spill] sm:$0xff]  ;;  %v15895_v27 = vld [vmem:[#allocation158_spill] sm:$0xff]  ;;  %v2243_v5 = vsel %vm15483_vm12, %v2217_v34, %v15750_v48  ;;  %15899 = vst [vmem:[#allocation80_spill] sm:$0xff] %v10064_v19 }
 0x2d4   : > { %v2317_v37 = vsel %vm2310_vm11, %v2291_v1, %v15893_v45  ;;  %v10053_v62 = vsel %vm2336_vm6, %v2316_v0, %v15894_v61  ;;  %v2268_v52 = vsel %vm2258_vm14, %v2242_v17, %v15895_v27  ;;  %v15896_v44 = vld [vmem:[#allocation171_spill] sm:$0xff]  ;;  %v15898_v9 = vld [vmem:[#allocation174_spill] sm:$0xff]  ;;  %v2133_v1 = vpop.permute.xlu0 %2132  ;;  %v15901_v61 = vld [vmem:[#allocation160_spill] sm:$0xff]  ;;  %v2244_v48 = vsel %vm15483_vm12, %v2218_v15, %v15753_v46 }
 0x2d5   : > { %v15897_v40 = vld [vmem:[#allocation159_spill] sm:$0xff]  ;;  %v2294_v2 = vsel %vm2284_vm1, %v2268_v52, %v15898_v9  ;;  %v2343_v17 = vsel %vm2336_vm6, %v2317_v37, %v15901_v61  ;;  %v15902_v27 = vld [vmem:[#allocation165_spill] sm:$0xff]  ;;  %v15904_v9 = vld [vmem:[#allocation170_spill] sm:$0xff]  ;;  %v2363_v19 = vsel %vm2362_vm13, %v2337_v54, %v9808_v56 }
 0x2d6   : > { %v2219_v55 = vsel %vm15484_vm2, %v15897_v40, %v15896_v44  ;;  %v15900_v0 = vld [vmem:[#allocation155_spill] sm:$0xff]  ;;  %v2319_v34 = vsel %vm2310_vm11, %v2293_v35, %v15902_v27  ;;  %v15907_v15 = vld [vmem:[#allocation176_spill] sm:$0xff]  ;;  %v15908_v61 = vld [vmem:[#allocation182_spill] sm:$0xff] }
 0x2d7   : > { %v2318_v45 = vsel %vm2310_vm11, %v2292_v53, %v15900_v0  ;;  %v15903_v44 = vld [vmem:[#allocation167_spill] sm:$0xff]  ;;  %v15905_v53 = vld [vmem:[#allocation32_spill] sm:$0xff]  ;;  %2908 = vrot.lane.b32.xlu0 %v8609_v42, %s7717_s24  ;;  %v2270_v0 = vsel %vm2258_vm14, %v2244_v48, %v15907_v15  ;;  %v15911_v15 = vld [vmem:[#allocation181_spill] sm:$0xff] }
 0x2d8   : > { %v2269_v40 = vsel %vm2258_vm14, %v2243_v5, %v15903_v44  ;;  %v10078_v52 = vsel %vm2336_vm6, %v2318_v45, %v15904_v9  ;;  %2906 = vrot.lane.b32.xlu1 %v15905_v53, %s7717_s24  ;;  %v15906_v35 = vld [vmem:[#allocation175_spill] sm:$0xff]  ;;  %v2245_v5 = vsel %vm15483_vm12, %v2219_v55, %v8889_v36  ;;  %v2389_v45 = vsel %vm2388_vm7, %v2363_v19, %v2133_v1  ;;  %v15909_v27 = vld [vmem:[#allocation168_spill] sm:$0xff]  ;;  %v2137_v48 = vpop.permute.xlu0 %2136  ;;  %v15913_v19 = vld [vmem:[#allocation177_spill] sm:$0xff] }
 0x2d9   : > { %v2320_v37 = vsel %vm2310_vm11, %v2294_v2, %v15906_v35  ;;  %v2220_v56 = vsel %vm15484_vm2, %v15909_v27, %v15908_v61  ;;  %v15910_v54 = vld [vmem:[#allocation184_spill] sm:$0xff]  ;;  %v2364_v9 = vsel %vm2362_vm13, %v2338_v43, %v9810_v28  ;;  %v2365_v2 = vsel %vm2362_vm13, %v2339_v20, %v9816_v29  ;;  %v2135_v35 = vpop.permute.xlu1 %2134  ;;  %v15914_v29 = vld [vmem:[#allocation185_spill] sm:$0xff]  ;;  %vm16048_vm10 = vmmov %vm16041_vm0 }
 0x2da   : > { %v2295_v44 = vsel %vm2284_vm1, %v2269_v40, %v15910_v54  ;;  %v2345_v55 = vsel %vm2336_vm6, %v2319_v34, %v15911_v15  ;;  %v15912_v42 = vld [vmem:[#allocation192_spill] sm:$0xff]  ;;  %v2390_v61 = vsel %vm2388_vm7, %v2364_v9, %v2135_v35  ;;  %v2391_v27 = vsel %vm2388_vm7, %v2365_v2, %v2137_v48 }
 0x2db   : > { %v2221_v1 = vsel %vm15484_vm2, %v15913_v19, %v15912_v42  ;;  %v2451_v40 = vrot.slane %v2389_v45, 1  ;;  %v2452_v54 = vrot.slane %v2390_v61, 1  ;;  %v2454_v53 = vrot.slane %v2391_v27, 1  ;;  %2912 = vrot.lane.b32.xlu0 %v8691_v57, %s7717_s24  ;;  %v15915_v20 = vld [vmem:[#allocation188_spill] sm:$0xff]  ;;  %v15917_v19 = vld [vmem:[#allocation191_spill] sm:$0xff] }
 0x2dc   : > { %2910 = vrot.lane.b32.xlu1 %v8650_v50, %s7717_s24  ;;  %v2321_v28 = vsel %vm2310_vm11, %v2295_v44, %v15914_v29  ;;  %v2271_v42 = vsel %vm2258_vm14, %v2245_v5, %v15915_v20  ;;  %v15916_v43 = vld [vmem:[#allocation196_spill] sm:$0xff]  ;;  %v2246_v45 = vsel %vm15483_vm12, %v2220_v56, %v8967_v31  ;;  %v2366_v9 = vsel %vm2362_vm13, %v2340_v30, %v9818_v16  ;;  %v2141_v48 = vpop.permute.xlu0 %2140  ;;  %v15918_v16 = vld [vmem:[#allocation202_spill] sm:$0xff]  ;;  %v15922_v20 = vld [vmem:[#allocation201_spill] sm:$0xff] }
 0x2dd   : > { %v2296_v34 = vsel %vm2284_vm1, %v2270_v0, %v15916_v43  ;;  %v2367_v2 = vsel %vm2362_vm13, %v2341_v59, %v9824_v60  ;;  %v2139_v35 = vpop.permute.xlu1 %2138  ;;  %v2453_v15 = vsel %vm15316_vm15, %v2451_v40, %v2452_v54  ;;  %v2455_v44 = vsel %vm15316_vm15, %v2452_v54, %v2454_v53  ;;  %v15919_v60 = vld [vmem:[#allocation189_spill] sm:$0xff]  ;;  %v15921_v54 = vld [vmem:[#allocation198_spill] sm:$0xff] }
 0x2de   : > { %v2346_v5 = vsel %vm2336_vm6, %v2320_v37, %v15917_v19  ;;  %v2247_v0 = vsel %vm15483_vm12, %v2221_v1, %v9006_v21  ;;  %v2392_v56 = vsel %vm2388_vm7, %v2366_v9, %v2139_v35  ;;  %v2393_v61 = vsel %vm2388_vm7, %v2367_v2, %v2141_v48  ;;  %7384 = vmatprep.mubr.msk.f32.mxu1 %vm2500_vm3, %v2453_v15  ;;  %v15920_v37 = vld [vmem:[#allocation197_spill] sm:$0xff]  ;;  %v15923_v9 = vld [vmem:[#allocation199_spill] sm:$0xff] }
 0x2df   : > { %v2222_v30 = vsel %vm15484_vm2, %v15919_v60, %v15918_v16  ;;  %v2297_v59 = vsel %vm2284_vm1, %v2271_v42, %v9451_v7  ;;  %v2456_v27 = vrot.slane %v2392_v56, 1  ;;  %v2458_v40 = vrot.slane %v2393_v61, 1  ;;  %2916 = vrot.lane.b32.xlu0 %v8773_v18, %s7717_s24  ;;  %7385 = vmatmul.mubr.msk.f32.vlgmr.msra.gmra.mrb[0].mxu1 %vm2500_vm3, %v2455_v44  ;;  %v15926_v61 = vld [vmem:[#allocation206_spill] sm:$0xff] }
 0x2e0   : > { %2914 = vrot.lane.b32.xlu1 %v8732_v14, %s7717_s24  ;;  %v2322_v1 = vsel %vm2310_vm11, %v2296_v34, %v15920_v37  ;;  %v2272_v29 = vsel %vm2258_vm14, %v2246_v45, %v15921_v54  ;;  %v2347_v43 = vsel %vm2336_vm6, %v2321_v28, %v15922_v20  ;;  %v2223_v7 = vsel %vm15484_vm2, %v15923_v9, %v9475_v24  ;;  %v2145_v35 = vpop.permute.xlu0 %2144  ;;  %v15924_v28 = vld [vmem:[#allocation204_spill] sm:$0xff]  ;;  %v15929_v20 = vld [vmem:[#allocation131_spill] sm:$0xff] }
 0x2e1   : > { %v2368_v42 = vsel %vm2362_vm13, %v10053_v62, %v9826_v47  ;;  %v2369_v2 = vsel %vm2362_vm13, %v2343_v17, %v9832_v6  ;;  %v2143_v34 = vpop.permute.xlu1 %2142  ;;  %v2457_v45 = vsel %vm15316_vm15, %v2454_v53, %v2456_v27  ;;  %v2459_v48 = vsel %vm15316_vm15, %v2456_v27, %v2458_v40  ;;  %v15925_v47 = vld [vmem:[#allocation205_spill] sm:$0xff] }
 0x2e2   : > { %v2323_v15 = vsel %vm2310_vm11, %v2297_v59, %v15924_v28  ;;  %v2248_v24 = vsel %vm15483_vm12, %v2222_v30, %v9045_v39  ;;  %v2394_v44 = vsel %vm2388_vm7, %v2368_v42, %v2143_v34  ;;  %v2395_v19 = vsel %vm2388_vm7, %v2369_v2, %v2145_v35  ;;  %7387 = vmatprep.mubr.msk.f32.mxu1 %vm2500_vm3, %v2457_v45  ;;  %v15932_v45 = vld [vmem:[#allocation212_spill] sm:$0xff] }
 0x2e3   : > { %v2273_v6 = vsel %vm2258_vm14, %v2247_v0, %v15925_v47  ;;  %v2298_v62 = vsel %vm2284_vm1, %v2272_v29, %v9482_v13  ;;  %v2460_v17 = vrot.slane %v2394_v44, 1  ;;  %v2462_v53 = vrot.slane %v2395_v19, 1  ;;  %2920 = vrot.lane.b32.xlu0 %v8861_v32, %s7717_s24  ;;  %7388 = vmatmul.mubr.msk.f32.gmra.mrb[2].mxu1 %vm2500_vm3, %v2459_v48  ;;  %v15928_v29 = vld [vmem:[#allocation213_spill] sm:$0xff]  ;;  %v15933_v28 = vld [vmem:[#allocation140_spill] sm:$0xff]  ;;  %v15935_v19 = vld [vmem:[#allocation218_spill] sm:$0xff] }
 0x2e4   : > { %2918 = vrot.lane.b32.xlu1 %v8810_v22, %s7717_s24  ;;  %v2348_v56 = vsel %vm2336_vm6, %v2322_v1, %v9473_v38  ;;  %v2224_v16 = vsel %vm15484_vm2, %v15926_v61, %v9514_v11  ;;  %v2299_v0 = vsel %vm2284_vm1, %v2273_v6, %v9520_v33  ;;  %v2249_v13 = vsel %vm15483_vm12, %v2223_v7, %v9084_v58  ;;  %v2149_v59 = vpop.permute.xlu0 %2148  ;;  %v15931_v7 = vld [vmem:[#allocation268_spill] sm:$0xff]  ;;  %v15936_v47 = vld [vmem:[#allocation211_spill] sm:$0xff] }
 0x2e5   : > { %v2370_v60 = vsel %vm2362_vm13, %v10078_v52, %v9834_v12  ;;  %v2371_v30 = vsel %vm2362_vm13, %v2345_v55, %v9840_v63  ;;  %v2147_v38 = vpop.permute.xlu1 %2146  ;;  %v2461_v27 = vsel %vm15316_vm15, %v2458_v40, %v2460_v17  ;;  %v2463_v11 = vsel %vm15316_vm15, %v2460_v17, %v2462_v53  ;;  %v15938_v61 = vld [vmem:[#allocation119_spill] sm:$0xff] }
 0x2e6   : > { %v2324_v33 = vsel %vm2310_vm11, %v2298_v62, %v9484_v25  ;;  %v2274_v37 = vsel %vm2258_vm14, %v2248_v24, %v9496_v26  ;;  %v2396_v1 = vsel %vm2388_vm7, %v2370_v60, %v2147_v38  ;;  %v2397_v54 = vsel %vm2388_vm7, %v2371_v30, %v2149_v59  ;;  %7390 = vmatprep.mubr.msk.f32.mxu1 %vm2500_vm3, %v2461_v27  ;;  %v15927_v25 = vld [vmem:[#allocation210_spill] sm:$0xff]  ;;  %v15942_v38 = vld [vmem:[#allocation216_spill] sm:$0xff]  ;;  %v15943_v27 = vld [vmem:[#allocation223_spill] sm:$0xff] }
 0x2e7   : > { %v2349_v12 = vsel %vm2336_vm6, %v2323_v15, %v9512_v8  ;;  %v2225_v63 = vsel %vm15484_vm2, %v9498_v51, %v9538_v41  ;;  %v2464_v52 = vrot.slane %v2396_v1, 1  ;;  %v2466_v55 = vrot.slane %v2397_v54, 1  ;;  %2924 = vrot.lane.b32.xlu0 %v8993_v10, %s7717_s24  ;;  %7391 = vmatmul.mubr.msk.f32.gmra.mrb[4].mxu1 %vm2500_vm3, %v2463_v11  ;;  %v15930_v51 = vld [vmem:[#allocation267_spill] sm:$0xff]  ;;  %v15941_v30 = vld [vmem:[#allocation222_spill] sm:$0xff] }
 0x2e8   : > { %2922 = vrot.lane.b32.xlu1 %v8954_v49, %s7717_s24  ;;  %v2325_v26 = vsel %vm2310_vm11, %v2299_v0, %v9522_v3  ;;  %v2275_v40 = vsel %vm2258_vm14, %v2249_v13, %v15927_v25  ;;  %v2300_v8 = vsel %vm2284_vm1, %v2274_v37, %v15928_v29  ;;  %v2250_v41 = vsel %vm15483_vm12, %v2224_v16, %v15929_v20  ;;  %v2153_v34 = vpop.permute.xlu0 %2152  ;;  %v15939_v16 = vld [vmem:[#allocation214_spill] sm:$0xff]  ;;  %v15940_v13 = vld [vmem:[#allocation217_spill] sm:$0xff]  ;;  %v15946_v29 = vld [vmem:[#allocation219_spill] sm:$0xff] }
 0x2e9   : > { %v2372_v9 = vsel %vm2362_vm13, %v2346_v5, %v15930_v51  ;;  %v2373_v42 = vsel %vm2362_vm13, %v2347_v43, %v15931_v7  ;;  %v2151_v2 = vpop.permute.xlu1 %2150  ;;  %v2465_v3 = vsel %vm15316_vm15, %v2462_v53, %v2464_v52  ;;  %v2467_v35 = vsel %vm15316_vm15, %v2464_v52, %v2466_v55  ;;  %v15934_v5 = vld [vmem:[#allocation215_spill] sm:$0xff]  ;;  %v15945_v1 = vld [vmem:[#allocation270_spill] sm:$0xff] }
 0x2ea   : > { %v2350_v48 = vsel %vm2336_vm6, %v2324_v33, %v15932_v45  ;;  %v2251_v15 = vsel %vm15483_vm12, %v2225_v63, %v15933_v28  ;;  %v2398_v24 = vsel %vm2388_vm7, %v2372_v9, %v2151_v2  ;;  %v2399_v44 = vsel %vm2388_vm7, %v2373_v42, %v2153_v34  ;;  %7393 = vmatprep.mubr.msk.f32.mxu1 %vm2500_vm3, %v2465_v3  ;;  %v15937_v53 = vld [vmem:[#allocation111_spill] sm:$0xff]  ;;  %v15944_v33 = vld [vmem:[#allocation269_spill] sm:$0xff]  ;;  %v15949_v42 = vld [vmem:[#allocation230_spill] sm:$0xff] }
 0x2eb   : > { %v2276_v43 = vsel %vm2258_vm14, %v2250_v41, %v15934_v5  ;;  %v2226_v6 = vsel %vm15484_vm2, %v15936_v47, %v15935_v19  ;;  %v2468_v62 = vrot.slane %v2398_v24, 1  ;;  %v2470_v17 = vrot.slane %v2399_v44, 1  ;;  %2928 = vrot.lane.b32.xlu0 %v15938_v61, %s7717_s24  ;;  %7394 = vmatmul.mubr.msk.f32.gmra.mrb[6].mxu1 %vm2500_vm3, %v2467_v35  ;;  %v15947_v41 = vld [vmem:[#allocation150_spill] sm:$0xff]  ;;  %v15950_v2 = vld [vmem:[#allocation220_spill] sm:$0xff]  ;;  %v15952_v45 = vld [vmem:[#allocation137_spill] sm:$0xff] }
 0x2ec   : > { %2926 = vrot.lane.b32.xlu1 %v15937_v53, %s7717_s24  ;;  %v2326_v0 = vsel %vm2310_vm11, %v2300_v8, %v15939_v16  ;;  %v2301_v60 = vsel %vm2284_vm1, %v2275_v40, %v15940_v13  ;;  %v2227_v59 = vsel %vm15484_vm2, %v15942_v38, %v15941_v30  ;;  %v2302_v11 = vsel %vm2284_vm1, %v2276_v43, %v15943_v27  ;;  %v2157_v52 = vpop.permute.xlu0 %2156  ;;  %v15951_v35 = vld [vmem:[#allocation128_spill] sm:$0xff]  ;;  %v15954_v5 = vld [vmem:[#allocation225_spill] sm:$0xff]  ;;  %v15956_v47 = vld [vmem:[#allocation2_spill] sm:$0xff] }
 0x2ed   : > { %v2374_v37 = vsel %vm2362_vm13, %v2348_v56, %v15944_v33  ;;  %v2375_v54 = vsel %vm2362_vm13, %v2349_v12, %v15945_v1  ;;  %v2155_v63 = vpop.permute.xlu1 %2154  ;;  %v2469_v25 = vsel %vm15316_vm15, %v2466_v55, %v2468_v62  ;;  %v2471_v40 = vsel %vm15316_vm15, %v2468_v62, %v2470_v17  ;;  %v15948_v56 = vld [vmem:[#allocation221_spill] sm:$0xff]  ;;  %v15953_v24 = vld [vmem:[#allocation224_spill] sm:$0xff]  ;;  %v15957_v62 = vld [vmem:[#allocation271_spill] sm:$0xff] }
 0x2ee   : > { %v2327_v8 = vsel %vm2310_vm11, %v2301_v60, %v15946_v29  ;;  %v2252_v51 = vsel %vm15483_vm12, %v2226_v6, %v15947_v41  ;;  %v2400_v9 = vsel %vm2388_vm7, %v2374_v37, %v2155_v63  ;;  %v2401_v7 = vsel %vm2388_vm7, %v2375_v54, %v2157_v52  ;;  %7396 = vmatprep.mubr.msk.f32.mxu1 %vm2500_vm3, %v2469_v25  ;;  %v15955_v19 = vld [vmem:[#allocation156_spill] sm:$0xff]  ;;  %v15959_v33 = vld [vmem:[#allocation229_spill] sm:$0xff]  ;;  %v15960_v37 = vld [vmem:[#allocation166_spill] sm:$0xff] }
 0x2ef   : > { %v2277_v12 = vsel %vm2258_vm14, %v2251_v15, %v15948_v56  ;;  %v2228_v55 = vsel %vm15484_vm2, %v15950_v2, %v15949_v42  ;;  %v2472_v34 = vrot.slane %v2400_v9, 1  ;;  %v2474_v3 = vrot.slane %v2401_v7, 1  ;;  %2932 = vrot.lane.b32.xlu0 %v15952_v45, %s7717_s24  ;;  %7397 = vmatmul.mubr.msk.f32.gmra.mrb[8].mxu1 %vm2500_vm3, %v2471_v40  ;;  %v15958_v13 = vld [vmem:[#allocation272_spill] sm:$0xff]  ;;  %v15962_v63 = vld [vmem:[#allocation226_spill] sm:$0xff]  ;;  %v15963_v25 = vld [vmem:[#allocation237_spill] sm:$0xff] }
 0x2f0   : > { %2930 = vrot.lane.b32.xlu1 %v15951_v35, %s7717_s24  ;;  %v2328_v44 = vsel %vm2310_vm11, %v2302_v11, %v15953_v24  ;;  %v2278_v43 = vsel %vm2258_vm14, %v2252_v51, %v15954_v5  ;;  %v2253_v15 = vsel %vm15483_vm12, %v2227_v59, %v15955_v19  ;;  %v2351_v6 = vsel %vm2336_vm6, %v2325_v26, %v15956_v47  ;;  %v2161_v38 = vpop.permute.xlu0 %2160  ;;  %v15964_v51 = vld [vmem:[#allocation146_spill] sm:$0xff]  ;;  %v15965_v9 = vld [vmem:[#allocation153_spill] sm:$0xff] }
 0x2f1   : > { %v2376_v16 = vsel %vm2362_vm13, %v2350_v48, %v15957_v62  ;;  %v2377_v60 = vsel %vm2362_vm13, %v2351_v6, %v15958_v13  ;;  %v2159_v30 = vpop.permute.xlu1 %2158  ;;  %v2473_v27 = vsel %vm15316_vm15, %v2470_v17, %v2472_v34  ;;  %v2475_v11 = vsel %vm15316_vm15, %v2472_v34, %v2474_v3  ;;  %v15961_v48 = vld [vmem:[#allocation236_spill] sm:$0xff]  ;;  %v15966_v7 = vld [vmem:[#allocation233_spill] sm:$0xff] }
 0x2f2   : > { %v2303_v59 = vsel %vm2284_vm1, %v2277_v12, %v15959_v33  ;;  %v2254_v26 = vsel %vm15483_vm12, %v2228_v55, %v15960_v37  ;;  %v2402_v1 = vsel %vm2388_vm7, %v2376_v16, %v2159_v30  ;;  %v2403_v54 = vsel %vm2388_vm7, %v2377_v60, %v2161_v38  ;;  %7399 = vmatprep.mubr.msk.f32.mxu1 %vm2500_vm3, %v2473_v27  ;;  %v15967_v12 = vld [vmem:[#allocation235_spill] sm:$0xff]  ;;  %v15968_v2 = vld [vmem:[#allocation5_spill] sm:$0xff]  ;;  %v15972_v60 = vld [vmem:[#allocation238_spill] sm:$0xff] }
 0x2f3   : > { %v2229_v52 = vsel %vm15484_vm2, %v15962_v63, %v15961_v48  ;;  %v2304_v17 = vsel %vm2284_vm1, %v2278_v43, %v15963_v25  ;;  %v2476_v40 = vrot.slane %v2402_v1, 1  ;;  %v2478_v29 = vrot.slane %v2403_v54, 1  ;;  %2936 = vrot.lane.b32.xlu0 %v15965_v9, %s7717_s24  ;;  %v15969_v34 = vld [vmem:[#allocation257_spill] sm:$0xff]  ;;  %7400 = vmatmul.mubr.msk.f32.gmra.mrb[10].mxu1 %vm2500_vm3, %v2475_v11  ;;  %v15973_v30 = vld [vmem:[#allocation172_spill] sm:$0xff]  ;;  %v15975_v33 = vld [vmem:[#allocation234_spill] sm:$0xff] }
 0x2f4   : > { %2934 = vrot.lane.b32.xlu1 %v15964_v51, %s7717_s24  ;;  %v2329_v56 = vsel %vm2310_vm11, %v2303_v59, %v15966_v7  ;;  %v2279_v42 = vsel %vm2258_vm14, %v2253_v15, %v15967_v12  ;;  %v2353_v55 = vsel %vm2336_vm6, %v2327_v8, %v15968_v2  ;;  %v2352_v24 = vsel %vm2336_vm6, %v2326_v0, %v15969_v34  ;;  %v15970_v5 = vld [vmem:[#allocation273_spill] sm:$0xff]  ;;  %v2165_v16 = vpop.permute.xlu0 %2164  ;;  %v15976_v1 = vld [vmem:[#allocation242_spill] sm:$0xff]  ;;  %v15979_v25 = vld [vmem:[#allocation239_spill] sm:$0xff] }
 0x2f5   : > { %v2378_v43 = vsel %vm2362_vm13, %v2352_v24, %v15970_v5  ;;  %v15971_v47 = vld [vmem:[#allocation81_spill] sm:$0xff]  ;;  %v2163_v62 = vpop.permute.xlu1 %2162  ;;  %v2477_v13 = vsel %vm15316_vm15, %v2474_v3, %v2476_v40  ;;  %v2479_v15 = vsel %vm15316_vm15, %v2476_v40, %v2478_v29  ;;  %v2330_v8 = vsel %vm2310_vm11, %v2304_v17, %v15972_v60  ;;  %v15980_v40 = vld [vmem:[#allocation71_spill] sm:$0xff]  ;;  %v15981_v7 = vld [vmem:[#allocation240_spill] sm:$0xff] }
 0x2f6   : > { %v2379_v6 = vsel %vm2362_vm13, %v2353_v55, %v15971_v47  ;;  %v2255_v0 = vsel %vm15483_vm12, %v2229_v52, %v15973_v30  ;;  %v2404_v38 = vsel %vm2388_vm7, %v2378_v43, %v2163_v62  ;;  %7402 = vmatprep.mubr.msk.f32.mxu1 %vm2500_vm3, %v2477_v13  ;;  %v15974_v11 = vld [vmem:[#allocation241_spill] sm:$0xff]  ;;  %v2305_v3 = vsel %vm2284_vm1, %v2279_v42, %v15976_v1  ;;  %v15982_v2 = vld [vmem:[#allocation7_spill] sm:$0xff]  ;;  %v15983_v34 = vld [vmem:[#allocation258_spill] sm:$0xff] }
 0x2f7   : > { %v2405_v27 = vsel %vm2388_vm7, %v2379_v6, %v2165_v16  ;;  %v2230_v59 = vsel %vm15484_vm2, %v15975_v33, %v15974_v11  ;;  %v2480_v54 = vrot.slane %v2404_v38, 1  ;;  %v15977_v63 = vld [vmem:[#allocation73_spill] sm:$0xff]  ;;  %v2280_v17 = vsel %vm2258_vm14, %v2254_v26, %v15979_v25  ;;  %7403 = vmatmul.mubr.msk.f32.gmra.mrb[12].mxu1 %vm2500_vm3, %v2479_v15  ;;  %v15984_v24 = vld [vmem:[#allocation74_spill] sm:$0xff]  ;;  %v15985_v16 = vld [vmem:[#allocation243_spill] sm:$0xff] }
 0x2f8   : > { %v2482_v48 = vrot.slane %v2405_v27, 1  ;;  %2968 = vrot.lane.b32.xlu1 %v15977_v63, %s7718_s26  ;;  %v15978_v52 = vld [vmem:[#allocation69_spill] sm:$0xff]  ;;  %v2231_v12 = vsel %vm15484_vm2, %v15981_v7, %v15980_v40  ;;  %v2355_v55 = vsel %vm2336_vm6, %v2329_v56, %v15982_v2  ;;  %v2354_v42 = vsel %vm2336_vm6, %v2328_v44, %v15983_v34  ;;  %v2169_v26 = vpop.permute.xlu0 %2168  ;;  %v15986_v13 = vld [vmem:[#allocation183_spill] sm:$0xff]  ;;  %v15987_v38 = vld [vmem:[#allocation244_spill] sm:$0xff] }
 0x2f9   : > { %2970 = vrot.lane.b32.xlu0 %v15978_v52, %s7718_s26  ;;  %v2380_v5 = vsel %vm2362_vm13, %v2354_v42, %v15984_v24  ;;  %v2381_v43 = vsel %vm2362_vm13, %v2355_v55, %v9946_v23  ;;  %v2167_v47 = vpop.permute.xlu1 %2166  ;;  %v2481_v6 = vsel %vm15316_vm15, %v2478_v29, %v2480_v54  ;;  %v2331_v56 = vsel %vm2310_vm11, %v2305_v3, %v15985_v16  ;;  %v15988_v27 = vld [vmem:[#allocation246_spill] sm:$0xff]  ;;  %v15989_v1 = vld [vmem:[#allocation88_spill] sm:$0xff]  ;;  %v15992_v63 = vld [vmem:[#allocation179_spill] sm:$0xff] }
 0x2fa   : > { %v2483_v62 = vsel %vm15316_vm15, %v2480_v54, %v2482_v48  ;;  %v2256_v44 = vsel %vm15483_vm12, %v2230_v59, %v15986_v13  ;;  %v2406_v15 = vsel %vm2388_vm7, %v2380_v5, %v2167_v47  ;;  %v2407_v60 = vsel %vm2388_vm7, %v2381_v43, %v2169_v26  ;;  %7405 = vmatprep.mubr.msk.f32.mxu1 %vm2500_vm3, %v2481_v6  ;;  %v15990_v3 = vld [vmem:[#allocation76_spill] sm:$0xff]  ;;  %v15991_v59 = vld [vmem:[#allocation249_spill] sm:$0xff]  ;;  %v15993_v25 = vld [vmem:[#allocation6_spill] sm:$0xff] }
 0x2fb   : > { %v2281_v23 = vsel %vm2258_vm14, %v2255_v0, %v15987_v38  ;;  %v2306_v29 = vsel %vm2284_vm1, %v2280_v17, %v15988_v27  ;;  %v2484_v11 = vrot.slane %v2406_v15, 1  ;;  %v2486_v33 = vrot.slane %v2407_v60, 1  ;;  %v15994_v40 = vld [vmem:[#allocation261_spill] sm:$0xff]  ;;  %7406 = vmatmul.mubr.msk.f32.gmra.mrb[14].mxu1 %vm2500_vm3, %v2483_v62  ;;  %v15995_v7 = vld [vmem:[#allocation94_spill] sm:$0xff]  ;;  %v15997_v43 = vld [vmem:[#allocation247_spill] sm:$0xff] }
 0x2fc   : > { %2972 = vrot.lane.b32.xlu1 %v15989_v1, %s7718_s26  ;;  %v2307_v54 = vsel %vm2284_vm1, %v2281_v23, %v15991_v59  ;;  %v2257_v52 = vsel %vm15483_vm12, %v2231_v12, %v15992_v63  ;;  %v2357_v0 = vsel %vm2336_vm6, %v2331_v56, %v15993_v25  ;;  %v2356_v17 = vsel %vm2336_vm6, %v2330_v8, %v15994_v40  ;;  %v15996_v55 = vld [vmem:[#allocation77_spill] sm:$0xff]  ;;  %v2173_v24 = vpop.permute.xlu0 %2172  ;;  %v15999_v16 = vld [vmem:[#allocation250_spill] sm:$0xff]  ;;  %v16000_v15 = vld [vmem:[#allocation248_spill] sm:$0xff] }
 0x2fd   : > { %2974 = vrot.lane.b32.xlu0 %v15990_v3, %s7718_s26  ;;  %v2382_v2 = vsel %vm2362_vm13, %v2356_v17, %v15995_v7  ;;  %v2383_v34 = vsel %vm2362_vm13, %v2357_v0, %v15996_v55  ;;  %v2171_v42 = vpop.permute.xlu1 %2170  ;;  %v2485_v5 = vsel %vm15316_vm15, %v2482_v48, %v2484_v11  ;;  %v2487_v12 = vsel %vm15316_vm15, %v2484_v11, %v2486_v33  ;;  %v15998_v26 = vld [vmem:[#allocation245_spill] sm:$0xff]  ;;  %v16001_v23 = vld [vmem:[#allocation70_spill] sm:$0xff]  ;;  %v16003_v27 = vld [vmem:[#allocation3_spill] sm:$0xff] }
 0x2fe   : > { %v2282_v47 = vsel %vm2258_vm14, %v2256_v44, %v15997_v43  ;;  %v2332_v8 = vsel %vm2310_vm11, %v2306_v29, %v15998_v26  ;;  %v2408_v6 = vsel %vm2388_vm7, %v2382_v2, %v2171_v42  ;;  %v2409_v62 = vsel %vm2388_vm7, %v2383_v34, %v2173_v24  ;;  %7408 = vmatprep.mubr.msk.f32.mxu1 %vm2500_vm3, %v2485_v5  ;;  %v16002_v44 = vld [vmem:[#allocation274_spill] sm:$0xff]  ;;  %v16004_v11 = vld [vmem:[#allocation263_spill] sm:$0xff]  ;;  %v16005_v59 = vld [vmem:[#allocation264_spill] sm:$0xff] }
 0x2ff   : > { %v2283_v56 = vsel %vm2258_vm14, %v2257_v52, %v15999_v16  ;;  %v2333_v48 = vsel %vm2310_vm11, %v2307_v54, %v16000_v15  ;;  %v2488_v60 = vrot.slane %v2408_v6, 1  ;;  %v2490_v38 = vrot.slane %v2409_v62, 1  ;;  %7409 = vmatmul.mubr.msk.f32.gmra.mrb[16].mxu1 %vm2500_vm3, %v2487_v12  ;;  %v16006_v54 = vld [vmem:[#allocation100_spill] sm:$0xff]  ;;  %v16007_v2 = vld [vmem:[#allocation251_spill] sm:$0xff]  ;;  %v16009_v12 = vld [vmem:[#allocation253_spill] sm:$0xff] }
 0x300   : > { %2976 = vrot.lane.b32.xlu1 %v16001_v23, %s7718_s26  ;;  %v2308_v29 = vsel %vm2284_vm1, %v2282_v47, %v16003_v27  ;;  %v2358_v1 = vsel %vm2336_vm6, %v2332_v8, %v16004_v11  ;;  %v2359_v63 = vsel %vm2336_vm6, %v2333_v48, %v16005_v59  ;;  %v2177_v40 = vpop.permute.xlu0 %2176  ;;  %v2309_v55 = vsel %vm2284_vm1, %v2283_v56, %v16007_v2  ;;  %v16008_v24 = vld [vmem:[#allocation252_spill] sm:$0xff]  ;;  %v16011_v26 = vld [vmem:[#allocation27_spill] sm:$0xff]  ;;  %v16012_v8 = vld [vmem:[#allocation265_spill] sm:$0xff] }
 0x301   : > { %2978 = vrot.lane.b32.xlu0 %v16002_v44, %s7718_s26  ;;  %v2384_v52 = vsel %vm2362_vm13, %v2358_v1, %v16006_v54  ;;  %v2385_v25 = vsel %vm2362_vm13, %v2359_v63, %v10025_v4  ;;  %v2175_v0 = vpop.permute.xlu1 %2174  ;;  %v2489_v17 = vsel %vm15316_vm15, %v2486_v33, %v2488_v60  ;;  %v2491_v7 = vsel %vm15316_vm15, %v2488_v60, %v2490_v38  ;;  %v16010_v33 = vld [vmem:[#allocation24_spill] sm:$0xff]  ;;  %v16013_v62 = vld [vmem:[#allocation266_spill] sm:$0xff]  ;;  %v16014_v56 = vld [vmem:[#allocation89_spill] sm:$0xff] }
 0x302   : > { %v2410_v34 = vsel %vm2388_vm7, %v2384_v52, %v2175_v0  ;;  %v2411_v42 = vsel %vm2388_vm7, %v2385_v25, %v2177_v40  ;;  %7411 = vmatprep.mubr.msk.f32.mxu1 %vm2500_vm3, %v2489_v17  ;;  %v2335_v5 = vsel %vm2310_vm11, %v2309_v55, %v16008_v24  ;;  %v2334_v4 = vsel %vm2310_vm11, %v2308_v29, %v16009_v12  ;;  %v16015_v48 = vld [vmem:[#allocation80_spill] sm:$0xff]  ;;  %v16016_v25 = vld [vmem:[#allocation33_spill] sm:$0xff]  ;;  %v16020_v2 = vld [vmem:[#allocation46_spill] sm:$0xff] }
 0x303   : > { %v2492_v43 = vrot.slane %v2410_v34, 1  ;;  %v2494_v47 = vrot.slane %v2411_v42, 1  ;;  %v2360_v6 = vsel %vm2336_vm6, %v2334_v4, %v16012_v8  ;;  %v2361_v16 = vsel %vm2336_vm6, %v2335_v5, %v16013_v62  ;;  %7412 = vmatmul.mubr.msk.f32.gmra.mrb[18].mxu1 %vm2500_vm3, %v2491_v7  ;;  %v16017_v0 = vld [vmem:[#allocation40_spill] sm:$0xff]  ;;  %v16024_v24 = vld [vmem:[#allocation58_spill] sm:$0xff]  ;;  %v16025_v5 = vld [vmem:[#allocation65_spill] sm:$0xff] }
 0x304   : > { %2980 = vrot.lane.b32.xlu1 %v16010_v33, %s7718_s26  ;;  %v2386_v15 = vsel %vm2362_vm13, %v2360_v6, %v16014_v56  ;;  %v2387_v60 = vsel %vm2362_vm13, %v2361_v16, %v16015_v48  ;;  %v2181_v29 = vpop.permute.xlu0 %2180  ;;  %v16021_v55 = vld [vmem:[#allocation52_spill] sm:$0xff]  ;;  %v16104_v30 = vld [vmem:[#allocation114_spill] sm:$0xff] }
 0x305   : > { %2982 = vrot.lane.b32.xlu0 %v16011_v26, %s7718_s26  ;;  %v2179_v27 = vpop.permute.xlu1 %2178  ;;  %v2493_v11 = vsel %vm15316_vm15, %v2490_v38, %v2492_v43  ;;  %v2495_v1 = vsel %vm15316_vm15, %v2492_v43, %v2494_v47  ;;  %v2413_v63 = vsel %vm2388_vm7, %v2387_v60, %v2181_v29  ;;  %v16036_v48 = vld [vmem:[#allocation260_spill] sm:$0xff]  ;;  %v3153_v37 = vrot.slane %v16104_v30, 4 }
 0x306   : > { %v2412_v59 = vsel %vm2388_vm7, %v2386_v15, %v2179_v27  ;;  %7414 = vmatprep.mubr.msk.f32.mxu1 %vm2500_vm3, %v2493_v11  ;;  %v2498_v52 = vrot.slane %v2413_v63, 1  ;;  %v3115_v60 = vrot.slane %v16036_v48, 4  ;;  %v16037_v27 = vld [vmem:[#allocation262_spill] sm:$0xff]  ;;  %v16038_v11 = vld [vmem:[#allocation259_spill] sm:$0xff] }
 0x307   : > { %v2496_v54 = vrot.slane %v2412_v59, 1  ;;  %7415 = vmatmul.mubr.msk.f32.gmra.mrb[20].mxu1 %vm2500_vm3, %v2495_v1  ;;  %v3117_v29 = vrot.slane %v16037_v27, 4  ;;  %v3114_v1 = vrot.slane %v16038_v11, 4  ;;  %v16059_v27 = vld [vmem:[#allocation23_spill] sm:$0xff] }
 0x308   : > { %2984 = vrot.lane.b32.xlu1 %v16016_v25, %s7718_s26  ;;  %v10441_v38 = vpop.permute.xlu0 %2814  ;;  %v3129_v48 = vrot.slane %v16059_v27, 4 }
 0x309   : > { %2986 = vrot.lane.b32.xlu0 %v16017_v0, %s7718_s26  ;;  %v10439_v40 = vpop.permute.xlu1 %2812  ;;  %16019 = vst [vmem:[#allocation93_spill] sm:$0xff] %v10441_v38  ;;  %v2497_v17 = vsel %vm15316_vm15, %v2494_v47, %v2496_v54  ;;  %v2499_v7 = vsel %vm15316_vm15, %v2496_v54, %v2498_v52  ;;  %v3116_v54 = vsel %vm16041_vm0, %v3114_v1, %v3115_v60  ;;  %v16050_v1 = vld [vmem:[#allocation14_spill] sm:$0xff] }
 0x30a   : > { %16018 = vst [vmem:[#allocation101_spill] sm:$0xff] %v10439_v40  ;;  %7417 = vmatprep.mubr.msk.f32.mxu1 %vm2500_vm3, %v2497_v17  ;;  %v3118_v52 = vsel %vm16042_vm4, %v3115_v60, %v3117_v29  ;;  %v16043_v17 = vld [vmem:[#allocation9_spill] sm:$0xff]  ;;  %vm16054_vm4 = vmmov %vm16041_vm0 }
 0x30b   : > { %7418 = vmatmul.mubr.msk.f32.gmra.mrb[22].mxu1 %vm2500_vm3, %v2499_v7  ;;  %v3119_v7 = vrot.slane %v16043_v17, 4  ;;  %v16051_v60 = vld [vmem:[#allocation17_spill] sm:$0xff] }
 0x30c   : > { %2988 = vrot.lane.b32.xlu1 %v16020_v2, %s7718_s26  ;;  %v10453_v42 = vpop.permute.xlu0 %2818  ;;  %v3125_v38 = vrot.slane %v16051_v60, 4 }
 0x30d   : > { %2990 = vrot.lane.b32.xlu0 %v16021_v55, %s7718_s26  ;;  %v10451_v34 = vpop.permute.xlu1 %2816  ;;  %16023 = vst [vmem:[#allocation108_spill] sm:$0xff] %v10453_v42 }
 0x30e   : > { %16022 = vst [vmem:[#allocation99_spill] sm:$0xff] %v10451_v34  ;;  %v3123_v34 = vrot.slane %v16050_v1, 4 }
 0x310   : > { %2992 = vrot.lane.b32.xlu1 %v16024_v24, %s7718_s26  ;;  %v10461_v4 = vpop.permute.xlu0 %2822 }
 0x311   : > { %2994 = vrot.lane.b32.xlu0 %v16025_v5, %s7718_s26  ;;  %v10459_v12 = vpop.permute.xlu1 %2820  ;;  %16027 = vst [vmem:[#allocation96_spill] sm:$0xff] %v10461_v4 }
 0x312   : > { %16026 = vst [vmem:[#allocation97_spill] sm:$0xff] %v10459_v12  ;;  %v3120_v12 = vsel %vm16047_vm8, %v3117_v29, %v3119_v7  ;;  %vm16056_vm8 = vmmov %vm16041_vm0 }
 0x313   : > { %v10533_v29 = vsel %vm16056_vm8, %v3123_v34, %v3125_v38  ;;  %vm16071_vm8 = vmmov %vm16041_vm0 }
 0x314   : > { %2996 = vrot.lane.b32.xlu1 %v15753_v46, %s7718_s26  ;;  %v10469_v47 = vpop.permute.xlu0 %2826  ;;  %16057 = vst [vmem:[#allocation135_spill] sm:$0xff] %v10533_v29 }
 0x315   : > { %2998 = vrot.lane.b32.xlu0 %v8889_v36, %s7718_s26  ;;  %v10467_v43 = vpop.permute.xlu1 %2824  ;;  %16029 = vst [vmem:[#allocation102_spill] sm:$0xff] %v10469_v47 }
 0x316   : > { %16028 = vst [vmem:[#allocation109_spill] sm:$0xff] %v10467_v43 }
 0x318   : > { %3000 = vrot.lane.b32.xlu1 %v8967_v31, %s7718_s26  ;;  %v10477_v6 = vpop.permute.xlu0 %2830 }
 0x319   : > { %3002 = vrot.lane.b32.xlu0 %v9006_v21, %s7718_s26  ;;  %v10475_v8 = vpop.permute.xlu1 %2828  ;;  %16031 = vst [vmem:[#allocation116_spill] sm:$0xff] %v10477_v6  ;;  %v16073_v6 = vld [vmem:[#allocation42_spill] sm:$0xff] }
 0x31a   : > { %16030 = vst [vmem:[#allocation104_spill] sm:$0xff] %v10475_v8  ;;  %v16044_v8 = vld [vmem:[#allocation11_spill] sm:$0xff] }
 0x31b   : > { %v3121_v47 = vrot.slane %v16044_v8, 4 }
 0x31c   : > { %3004 = vrot.lane.b32.xlu1 %v9045_v39, %s7718_s26  ;;  %v10485_v16 = vpop.permute.xlu0 %2834 }
 0x31d   : > { %3006 = vrot.lane.b32.xlu0 %v9084_v58, %s7718_s26  ;;  %v10483_v62 = vpop.permute.xlu1 %2832  ;;  %16033 = vst [vmem:[#allocation107_spill] sm:$0xff] %v10485_v16  ;;  %v10518_v42 = vsel %vm16048_vm10, %v3119_v7, %v3121_v47  ;;  %v10530_v40 = vsel %vm16054_vm4, %v3121_v47, %v3123_v34  ;;  %v16058_v7 = vld [vmem:[#allocation20_spill] sm:$0xff]  ;;  %vm16063_vm10 = vmmov %vm16041_vm0 }
 0x31e   : > { %16032 = vst [vmem:[#allocation105_spill] sm:$0xff] %v10483_v62  ;;  %16049 = vst [vmem:[#allocation126_spill] sm:$0xff] %v10518_v42  ;;  %v3127_v11 = vrot.slane %v16058_v7, 4  ;;  %v3135_v62 = vrot.slane %v16073_v6, 4 }
 0x31f   : > { %16055 = vst [vmem:[#allocation121_spill] sm:$0xff] %v10530_v40  ;;  %vm16069_vm4 = vmmov %vm16041_vm0 }
 0x320   : > { %3008 = vrot.lane.b32.xlu1 %v15929_v20, %s7718_s26  ;;  %v10493_v15 = vpop.permute.xlu0 %2838  ;;  %v10546_v47 = vsel %vm16041_vm0, %v3125_v38, %v3127_v11  ;;  %v10549_v34 = vsel %vm16063_vm10, %v3127_v11, %v3129_v48  ;;  %vm16078_vm10 = vmmov %vm16041_vm0 }
 0x321   : > { %3010 = vrot.lane.b32.xlu0 %v15933_v28, %s7718_s26  ;;  %v10491_v56 = vpop.permute.xlu1 %2836  ;;  %16035 = vst [vmem:[#allocation117_spill] sm:$0xff] %v10493_v15  ;;  %16062 = vst [vmem:[#allocation143_spill] sm:$0xff] %v10546_v47  ;;  %v16119_v28 = vld [vmem:[#allocation147_spill] sm:$0xff] }
 0x322   : > { %16034 = vst [vmem:[#allocation112_spill] sm:$0xff] %v10491_v56  ;;  %16064 = vst [vmem:[#allocation130_spill] sm:$0xff] %v10549_v34  ;;  %v15297_v20 = vrot.slane %v16119_v28, 4 }
 0x324   : > { %3012 = vrot.lane.b32.xlu1 %v15947_v41, %s7718_s26  ;;  %v10504_v63 = vpop.permute.xlu0 %2842 }
 0x325   : > { %3014 = vrot.lane.b32.xlu0 %v15955_v19, %s7718_s26  ;;  %v10502_v59 = vpop.permute.xlu1 %2840  ;;  %16040 = vst [vmem:[#allocation120_spill] sm:$0xff] %v10504_v63  ;;  %v16111_v19 = vld [vmem:[#allocation132_spill] sm:$0xff] }
 0x326   : > { %16039 = vst [vmem:[#allocation110_spill] sm:$0xff] %v10502_v59  ;;  %v16066_v59 = vld [vmem:[#allocation35_spill] sm:$0xff]  ;;  %v3157_v41 = vrot.slane %v16111_v19, 4 }
 0x327   : > { %v3133_v15 = vrot.slane %v16066_v59, 4 }
 0x328   : > { %3163 = vrot.lane.b32.xlu1 %v3116_v54, %s7719_s27  ;;  %v10514_v4 = vpop.permute.xlu0 %2846 }
 0x329   : > { %3165 = vrot.lane.b32.xlu0 %v3118_v52, %s7719_s27  ;;  %v10512_v43 = vpop.permute.xlu1 %2844  ;;  %16046 = vst [vmem:[#allocation113_spill] sm:$0xff] %v10514_v4 }
 0x32a   : > { %16045 = vst [vmem:[#allocation125_spill] sm:$0xff] %v10512_v43  ;;  %v16065_v43 = vld [vmem:[#allocation29_spill] sm:$0xff] }
 0x32b   : > { %v3131_v63 = vrot.slane %v16065_v43, 4 }
 0x32c   : > { %3167 = vrot.lane.b32.xlu1 %v3120_v12, %s7719_s27  ;;  %v10527_v52 = vpop.permute.xlu0 %2850 }
 0x32d   : > { %3169 = vrot.lane.b32.xlu0 %v10518_v42, %s7719_s27  ;;  %v10525_v54 = vpop.permute.xlu1 %2848  ;;  %16053 = vst [vmem:[#allocation134_spill] sm:$0xff] %v10527_v52  ;;  %v10562_v38 = vsel %vm16069_vm4, %v3129_v48, %v3131_v63  ;;  %v10565_v11 = vsel %vm16071_vm8, %v3131_v63, %v3133_v15  ;;  %v10578_v48 = vsel %vm16041_vm0, %v3133_v15, %v3135_v62  ;;  %vm16084_vm4 = vmmov %vm16041_vm0  ;;  %v16096_v42 = vld [vmem:[#allocation98_spill] sm:$0xff] }
 0x32e   : > { %16052 = vst [vmem:[#allocation115_spill] sm:$0xff] %v10525_v54  ;;  %16070 = vst [vmem:[#allocation133_spill] sm:$0xff] %v10562_v38  ;;  %v3149_v13 = vrot.slane %v16096_v42, 4 }
 0x32f   : > { %16072 = vst [vmem:[#allocation136_spill] sm:$0xff] %v10565_v11  ;;  %16077 = vst [vmem:[#allocation142_spill] sm:$0xff] %v10578_v48 }
 0x330   : > { %3171 = vrot.lane.b32.xlu1 %v10530_v40, %s7719_s27  ;;  %v10543_v4 = vpop.permute.xlu0 %2854  ;;  %vm16086_vm8 = vmmov %vm16041_vm0 }
 0x331   : > { %3173 = vrot.lane.b32.xlu0 %v10533_v29, %s7719_s27  ;;  %v10541_v12 = vpop.permute.xlu1 %2852  ;;  %16061 = vst [vmem:[#allocation124_spill] sm:$0xff] %v10543_v4  ;;  %v16074_v4 = vld [vmem:[#allocation48_spill] sm:$0xff] }
 0x332   : > { %16060 = vst [vmem:[#allocation118_spill] sm:$0xff] %v10541_v12  ;;  %v3137_v12 = vrot.slane %v16074_v4, 4  ;;  %v16089_v29 = vld [vmem:[#allocation72_spill] sm:$0xff] }
 0x333   : > { %v3145_v40 = vrot.slane %v16089_v29, 4 }
 0x334   : > { %3175 = vrot.lane.b32.xlu1 %v10546_v47, %s7719_s27  ;;  %v10559_v16 = vpop.permute.xlu0 %2858  ;;  %v10581_v63 = vsel %vm16078_vm10, %v3135_v62, %v3137_v12  ;;  %vm16093_vm10 = vmmov %vm16041_vm0 }
 0x335   : > { %3177 = vrot.lane.b32.xlu0 %v10549_v34, %s7719_s27  ;;  %v10557_v56 = vpop.permute.xlu1 %2856  ;;  %16068 = vst [vmem:[#allocation129_spill] sm:$0xff] %v10559_v16  ;;  %16079 = vst [vmem:[#allocation148_spill] sm:$0xff] %v10581_v63  ;;  %v16080_v16 = vld [vmem:[#allocation54_spill] sm:$0xff]  ;;  %v16081_v34 = vld [vmem:[#allocation60_spill] sm:$0xff] }
 0x336   : > { %16067 = vst [vmem:[#allocation127_spill] sm:$0xff] %v10557_v56  ;;  %v3139_v54 = vrot.slane %v16080_v16, 4  ;;  %v3141_v47 = vrot.slane %v16081_v34, 4 }
 0x338   : > { %3179 = vrot.lane.b32.xlu1 %v10562_v38, %s7719_s27  ;;  %v10575_v56 = vpop.permute.xlu0 %2892  ;;  %v10594_v15 = vsel %vm16084_vm4, %v3137_v12, %v3139_v54  ;;  %v10597_v62 = vsel %vm16086_vm8, %v3139_v54, %v3141_v47  ;;  %vm16099_vm4 = vmmov %vm16041_vm0 }
 0x339   : > { %3181 = vrot.lane.b32.xlu0 %v10565_v11, %s7719_s27  ;;  %v10573_v52 = vpop.permute.xlu1 %2890  ;;  %16076 = vst [vmem:[#allocation144_spill] sm:$0xff] %v10575_v56  ;;  %16085 = vst [vmem:[#allocation154_spill] sm:$0xff] %v10594_v15  ;;  %v16088_v56 = vld [vmem:[#allocation66_spill] sm:$0xff] }
 0x33a   : > { %16075 = vst [vmem:[#allocation138_spill] sm:$0xff] %v10573_v52  ;;  %16087 = vst [vmem:[#allocation161_spill] sm:$0xff] %v10597_v62  ;;  %v3143_v38 = vrot.slane %v16088_v56, 4 }
 0x33b   : > { %vm16101_vm8 = vmmov %vm16041_vm0 }
 0x33c   : > { %3183 = vrot.lane.b32.xlu1 %v10578_v48, %s7719_s27  ;;  %v10591_v52 = vpop.permute.xlu0 %2896  ;;  %v10610_v12 = vsel %vm16041_vm0, %v3141_v47, %v3143_v38  ;;  %v10613_v54 = vsel %vm16093_vm10, %v3143_v38, %v3145_v40  ;;  %vm16108_vm10 = vmmov %vm16041_vm0 }
 0x33d   : > { %3185 = vrot.lane.b32.xlu0 %v10581_v63, %s7719_s27  ;;  %v10589_v11 = vpop.permute.xlu1 %2894  ;;  %16083 = vst [vmem:[#allocation139_spill] sm:$0xff] %v10591_v52  ;;  %16092 = vst [vmem:[#allocation145_spill] sm:$0xff] %v10610_v12  ;;  %v16095_v52 = vld [vmem:[#allocation85_spill] sm:$0xff] }
 0x33e   : > { %16082 = vst [vmem:[#allocation152_spill] sm:$0xff] %v10589_v11  ;;  %16094 = vst [vmem:[#allocation151_spill] sm:$0xff] %v10613_v54  ;;  %v3147_v48 = vrot.slane %v16095_v52, 4 }
 0x340   : > { %3187 = vrot.lane.b32.xlu1 %v10594_v15, %s7719_s27  ;;  %v10607_v11 = vpop.permute.xlu0 %2900  ;;  %v10626_v47 = vsel %vm16099_vm4, %v3145_v40, %v3147_v48  ;;  %v10629_v38 = vsel %vm16101_vm8, %v3147_v48, %v3149_v13  ;;  %vm16114_vm4 = vmmov %vm16041_vm0 }
 0x341   : > { %3189 = vrot.lane.b32.xlu0 %v10597_v62, %s7719_s27  ;;  %v10605_v63 = vpop.permute.xlu1 %2898  ;;  %16091 = vst [vmem:[#allocation164_spill] sm:$0xff] %v10607_v11  ;;  %16100 = vst [vmem:[#allocation159_spill] sm:$0xff] %v10626_v47  ;;  %v16103_v11 = vld [vmem:[#allocation106_spill] sm:$0xff] }
 0x342   : > { %16090 = vst [vmem:[#allocation149_spill] sm:$0xff] %v10605_v63  ;;  %16102 = vst [vmem:[#allocation174_spill] sm:$0xff] %v10629_v38  ;;  %v3151_v15 = vrot.slane %v16103_v11, 4 }
 0x343   : > { %vm16116_vm8 = vmmov %vm16041_vm0 }
 0x344   : > { %3191 = vrot.lane.b32.xlu1 %v10610_v12, %s7719_s27  ;;  %v10642_v40 = vsel %vm16041_vm0, %v3149_v13, %v3151_v15  ;;  %v10645_v48 = vsel %vm16108_vm10, %v3151_v15, %v3153_v37  ;;  %vm16123_vm10 = vmmov %vm16041_vm0 }
 0x345   : > { %3193 = vrot.lane.b32.xlu0 %v10613_v54, %s7719_s27  ;;  %v10621_v62 = vpop.permute.xlu1 %2902  ;;  %v10623_v63 = vpop.permute.xlu0 %2904  ;;  %16107 = vst [vmem:[#allocation165_spill] sm:$0xff] %v10642_v40  ;;  %16109 = vst [vmem:[#allocation167_spill] sm:$0xff] %v10645_v48 }
 0x346   : > { %16097 = vst [vmem:[#allocation158_spill] sm:$0xff] %v10621_v62  ;;  %16098 = vst [vmem:[#allocation171_spill] sm:$0xff] %v10623_v63  ;;  %v16110_v63 = vld [vmem:[#allocation123_spill] sm:$0xff] }
 0x347   : > { %v3155_v12 = vrot.slane %v16110_v63, 4 }
 0x348   : > { %3195 = vrot.lane.b32.xlu1 %v10626_v47, %s7719_s27 }
 0x349   : > { %3197 = vrot.lane.b32.xlu0 %v10629_v38, %s7719_s27  ;;  %v10639_v62 = vpop.permute.xlu0 %2908  ;;  %v10658_v13 = vsel %vm16114_vm4, %v3153_v37, %v3155_v12  ;;  %v10661_v15 = vsel %vm16116_vm8, %v3155_v12, %v3157_v41 }
 0x34a   : > { %v10637_v54 = vpop.permute.xlu1 %2906  ;;  %16106 = vst [vmem:[#allocation160_spill] sm:$0xff] %v10639_v62  ;;  %16115 = vst [vmem:[#allocation176_spill] sm:$0xff] %v10658_v13  ;;  %v16118_v62 = vld [vmem:[#allocation141_spill] sm:$0xff] }
 0x34b   : > { %16105 = vst [vmem:[#allocation155_spill] sm:$0xff] %v10637_v54  ;;  %16117 = vst [vmem:[#allocation182_spill] sm:$0xff] %v10661_v15  ;;  %v3159_v47 = vrot.slane %v16118_v62, 4 }
 0x34c   : > { %3199 = vrot.lane.b32.xlu1 %v10642_v40, %s7719_s27 }
 0x34d   : > { %3201 = vrot.lane.b32.xlu0 %v10645_v48, %s7719_s27  ;;  %v10655_v54 = vpop.permute.xlu0 %2912  ;;  %v10674_v37 = vsel %vm16041_vm0, %v3157_v41, %v3159_v47  ;;  %v10679_v12 = vsel %vm16123_vm10, %v3159_v47, %v15297_v20  ;;  %vm15436_vm0 = vcmask 1041408  }
 0x34e   : > { %v10653_v38 = vpop.permute.xlu1 %2910  ;;  %16113 = vst [vmem:[#allocation175_spill] sm:$0xff] %v10655_v54  ;;  %16122 = vst [vmem:[#allocation181_spill] sm:$0xff] %v10674_v37 }
 0x34f   : > { %16112 = vst [vmem:[#allocation170_spill] sm:$0xff] %v10653_v38  ;;  %16124 = vst [vmem:[#allocation192_spill] sm:$0xff] %v10679_v12 }
 0x350   : > { %3203 = vrot.lane.b32.xlu1 %v10658_v13, %s7719_s27  ;;  %v16158_v13 = vld [vmem:[#allocation22_spill] sm:$0xff] }
 0x351   : > { %3205 = vrot.lane.b32.xlu0 %v10661_v15, %s7719_s27  ;;  %v10671_v38 = vpop.permute.xlu0 %2916 }
 0x352   : > { %v10669_v48 = vpop.permute.xlu1 %2914  ;;  %16121 = vst [vmem:[#allocation184_spill] sm:$0xff] %v10671_v38 }
 0x353   : > { %16120 = vst [vmem:[#allocation168_spill] sm:$0xff] %v10669_v48 }
 0x354   : > { %3207 = vrot.lane.b32.xlu1 %v10674_v37, %s7719_s27 }
 0x355   : > { %3209 = vrot.lane.b32.xlu0 %v10679_v12, %s7719_s27  ;;  %v10687_v15 = vpop.permute.xlu0 %2920  ;;  %v16154_v12 = vld [vmem:[#allocation16_spill] sm:$0xff] }
 0x356   : > { %v10685_v54 = vpop.permute.xlu1 %2918  ;;  %16126 = vst [vmem:[#allocation185_spill] sm:$0xff] %v10687_v15 }
 0x357   : > { %16125 = vst [vmem:[#allocation177_spill] sm:$0xff] %v10685_v54 }
 0x358   : > { %3235 = vrot.lane.b32.xlu1 %v16043_v17, %s7720_s28 }
 0x359   : > { %3237 = vrot.lane.b32.xlu0 %v16044_v8, %s7720_s28  ;;  %v10695_v47 = vpop.permute.xlu0 %2924 }
 0x35a   : > { %v10693_v41 = vpop.permute.xlu1 %2922  ;;  %16128 = vst [vmem:[#allocation196_spill] sm:$0xff] %v10695_v47 }
 0x35b   : > { %16127 = vst [vmem:[#allocation188_spill] sm:$0xff] %v10693_v41 }
 0x35c   : > { %3239 = vrot.lane.b32.xlu1 %v16050_v1, %s7720_s28 }
 0x35d   : > { %3241 = vrot.lane.b32.xlu0 %v16051_v60, %s7720_s28  ;;  %v10703_v54 = vpop.permute.xlu0 %2928 }
 0x35e   : > { %v10701_v20 = vpop.permute.xlu1 %2926  ;;  %16130 = vst [vmem:[#allocation202_spill] sm:$0xff] %v10703_v54  ;;  %v16150_v54 = vld [vmem:[#allocation163_spill] sm:$0xff] }
 0x35f   : > { %16129 = vst [vmem:[#allocation191_spill] sm:$0xff] %v10701_v20 }
 0x360   : > { %3243 = vrot.lane.b32.xlu1 %v16058_v7, %s7720_s28 }
 0x361   : > { %3245 = vrot.lane.b32.xlu0 %v16059_v27, %s7720_s28  ;;  %v10711_v41 = vpop.permute.xlu0 %2932 }
 0x362   : > { %v10709_v15 = vpop.permute.xlu1 %2930  ;;  %16132 = vst [vmem:[#allocation197_spill] sm:$0xff] %v10711_v41 }
 0x363   : > { %16131 = vst [vmem:[#allocation189_spill] sm:$0xff] %v10709_v15 }
 0x364   : > { %3247 = vrot.lane.b32.xlu1 %v16065_v43, %s7720_s28 }
 0x365   : > { %3249 = vrot.lane.b32.xlu0 %v16066_v59, %s7720_s28  ;;  %v10719_v38 = vpop.permute.xlu0 %2936 }
 0x366   : > { %v10717_v47 = vpop.permute.xlu1 %2934  ;;  %16134 = vst [vmem:[#allocation201_spill] sm:$0xff] %v10719_v38 }
 0x367   : > { %16133 = vst [vmem:[#allocation198_spill] sm:$0xff] %v10717_v47 }
 0x368   : > { %3251 = vrot.lane.b32.xlu1 %v16073_v6, %s7720_s28 }
 0x369   : > { %3253 = vrot.lane.b32.xlu0 %v16074_v4, %s7720_s28 }
 0x36a   : > { %v10725_v48 = vpop.permute.xlu1 %2968 }
 0x36b   : > { %16135 = vst [vmem:[#allocation199_spill] sm:$0xff] %v10725_v48  ;;  %v10727_v15 = vpop.permute.xlu0 %2970 }
 0x36c   : > { %16136 = vst [vmem:[#allocation204_spill] sm:$0xff] %v10727_v15  ;;  %3255 = vrot.lane.b32.xlu1 %v16080_v16, %s7720_s28 }
 0x36d   : > { %3257 = vrot.lane.b32.xlu0 %v16081_v34, %s7720_s28 }
 0x36e   : > { %v10733_v41 = vpop.permute.xlu1 %2972 }
 0x36f   : > { %16137 = vst [vmem:[#allocation205_spill] sm:$0xff] %v10733_v41  ;;  %v10735_v47 = vpop.permute.xlu0 %2974 }
 0x370   : > { %16138 = vst [vmem:[#allocation206_spill] sm:$0xff] %v10735_v47  ;;  %3259 = vrot.lane.b32.xlu1 %v16088_v56, %s7720_s28 }
 0x371   : > { %3261 = vrot.lane.b32.xlu0 %v16089_v29, %s7720_s28 }
 0x372   : > { %v10741_v38 = vpop.permute.xlu1 %2976 }
 0x373   : > { %16139 = vst [vmem:[#allocation210_spill] sm:$0xff] %v10741_v38  ;;  %v10743_v48 = vpop.permute.xlu0 %2978 }
 0x374   : > { %16140 = vst [vmem:[#allocation213_spill] sm:$0xff] %v10743_v48  ;;  %3263 = vrot.lane.b32.xlu1 %v16095_v52, %s7720_s28 }
 0x375   : > { %3265 = vrot.lane.b32.xlu0 %v16096_v42, %s7720_s28 }
 0x376   : > { %v10749_v15 = vpop.permute.xlu1 %2980 }
 0x377   : > { %16141 = vst [vmem:[#allocation267_spill] sm:$0xff] %v10749_v15  ;;  %v10751_v41 = vpop.permute.xlu0 %2982 }
 0x378   : > { %16142 = vst [vmem:[#allocation268_spill] sm:$0xff] %v10751_v41  ;;  %3267 = vrot.lane.b32.xlu1 %v16103_v11, %s7720_s28 }
 0x379   : > { %3269 = vrot.lane.b32.xlu0 %v16104_v30, %s7720_s28 }
 0x37a   : > { %v10757_v47 = vpop.permute.xlu1 %2984 }
 0x37b   : > { %16143 = vst [vmem:[#allocation212_spill] sm:$0xff] %v10757_v47  ;;  %v10759_v38 = vpop.permute.xlu0 %2986 }
 0x37c   : > { %16144 = vst [vmem:[#allocation215_spill] sm:$0xff] %v10759_v38  ;;  %3271 = vrot.lane.b32.xlu1 %v16110_v63, %s7720_s28  ;;  %v16149_v38 = vld [vmem:[#allocation157_spill] sm:$0xff] }
 0x37d   : > { %3273 = vrot.lane.b32.xlu0 %v16111_v19, %s7720_s28 }
 0x37e   : > { %v10765_v48 = vpop.permute.xlu1 %2988 }
 0x37f   : > { %16145 = vst [vmem:[#allocation218_spill] sm:$0xff] %v10765_v48  ;;  %v10767_v15 = vpop.permute.xlu0 %2990 }
 0x380   : > { %16146 = vst [vmem:[#allocation211_spill] sm:$0xff] %v10767_v15  ;;  %3275 = vrot.lane.b32.xlu1 %v16118_v62, %s7720_s28  ;;  %v16153_v15 = vld [vmem:[#allocation13_spill] sm:$0xff] }
 0x381   : > { %3277 = vrot.lane.b32.xlu0 %v16119_v28, %s7720_s28 }
 0x382   : > { %v10773_v41 = vpop.permute.xlu1 %2992 }
 0x383   : > { %16147 = vst [vmem:[#allocation214_spill] sm:$0xff] %v10773_v41  ;;  %v10775_v47 = vpop.permute.xlu0 %2994 }
 0x384   : > { %16148 = vst [vmem:[#allocation217_spill] sm:$0xff] %v10775_v47  ;;  %3279 = vrot.lane.b32.xlu1 %v16149_v38, %s7720_s28  ;;  %v16157_v47 = vld [vmem:[#allocation19_spill] sm:$0xff] }
 0x385   : > { %3281 = vrot.lane.b32.xlu0 %v16150_v54, %s7720_s28 }
 0x386   : > { %v10781_v20 = vpop.permute.xlu1 %2996 }
 0x387   : > { %16151 = vst [vmem:[#allocation222_spill] sm:$0xff] %v10781_v20  ;;  %v10783_v48 = vpop.permute.xlu0 %2998 }
 0x388   : > { %16152 = vst [vmem:[#allocation216_spill] sm:$0xff] %v10783_v48  ;;  %3307 = vrot.lane.b32.xlu1 %v16153_v15, %s7721_s29  ;;  %v16161_v48 = vld [vmem:[#allocation25_spill] sm:$0xff]  ;;  %v16162_v15 = vld [vmem:[#allocation32_spill] sm:$0xff] }
 0x389   : > { %3309 = vrot.lane.b32.xlu0 %v16154_v12, %s7721_s29 }
 0x38a   : > { %v10789_v37 = vpop.permute.xlu1 %3000 }
 0x38b   : > { %16155 = vst [vmem:[#allocation223_spill] sm:$0xff] %v10789_v37  ;;  %v10791_v41 = vpop.permute.xlu0 %3002 }
 0x38c   : > { %16156 = vst [vmem:[#allocation269_spill] sm:$0xff] %v10791_v41  ;;  %3311 = vrot.lane.b32.xlu1 %v16157_v47, %s7721_s29  ;;  %v16165_v41 = vld [vmem:[#allocation39_spill] sm:$0xff] }
 0x38d   : > { %3313 = vrot.lane.b32.xlu0 %v16158_v13, %s7721_s29 }
 0x38e   : > { %v10797_v40 = vpop.permute.xlu1 %3004 }
 0x38f   : > { %16159 = vst [vmem:[#allocation270_spill] sm:$0xff] %v10797_v40  ;;  %v10799_v20 = vpop.permute.xlu0 %3006 }
 0x390   : > { %16160 = vst [vmem:[#allocation219_spill] sm:$0xff] %v10799_v20  ;;  %3315 = vrot.lane.b32.xlu1 %v16161_v48, %s7721_s29 }
 0x391   : > { %3317 = vrot.lane.b32.xlu0 %v16162_v15, %s7721_s29 }
 0x392   : > { %v10805_v12 = vpop.permute.xlu1 %3008 }
 0x393   : > { %16163 = vst [vmem:[#allocation221_spill] sm:$0xff] %v10805_v12  ;;  %v10807_v37 = vpop.permute.xlu0 %3010 }
 0x394   : > { %16164 = vst [vmem:[#allocation230_spill] sm:$0xff] %v10807_v37  ;;  %3319 = vrot.lane.b32.xlu1 %v16165_v41, %s7721_s29 }
 0x395   : > { %3321 = vrot.lane.b32.xlu0 %v8650_v50, %s7721_s29 }
 0x396   : > { %v10813_v47 = vpop.permute.xlu1 %3012 }
 0x397   : > { %16166 = vst [vmem:[#allocation220_spill] sm:$0xff] %v10813_v47  ;;  %v10815_v40 = vpop.permute.xlu0 %3014 }
 0x398   : > { %16167 = vst [vmem:[#allocation224_spill] sm:$0xff] %v10815_v40  ;;  %3323 = vrot.lane.b32.xlu1 %v8691_v57, %s7721_s29 }
 0x399   : > { %3325 = vrot.lane.b32.xlu0 %v8732_v14, %s7721_s29 }
 0x39a   : > { %v10821_v20 = vpop.permute.xlu1 %3163 }
 0x39b   : > { %16168 = vst [vmem:[#allocation225_spill] sm:$0xff] %v10821_v20  ;;  %v10823_v12 = vpop.permute.xlu0 %3165 }
 0x39c   : > { %16169 = vst [vmem:[#allocation2_spill] sm:$0xff] %v10823_v12  ;;  %3327 = vrot.lane.b32.xlu1 %v8773_v18, %s7721_s29 }
 0x39d   : > { %3329 = vrot.lane.b32.xlu0 %v8810_v22, %s7721_s29 }
 0x39e   : > { %v10829_v37 = vpop.permute.xlu1 %3167 }
 0x39f   : > { %16170 = vst [vmem:[#allocation271_spill] sm:$0xff] %v10829_v37  ;;  %v10831_v47 = vpop.permute.xlu0 %3169 }
 0x3a0   : > { %16171 = vst [vmem:[#allocation272_spill] sm:$0xff] %v10831_v47  ;;  %3331 = vrot.lane.b32.xlu1 %v8861_v32, %s7721_s29 }
 0x3a1   : > { %3333 = vrot.lane.b32.xlu0 %v8954_v49, %s7721_s29 }
 0x3a2   : > { %v10837_v40 = vpop.permute.xlu1 %3171 }
 0x3a3   : > { %16172 = vst [vmem:[#allocation229_spill] sm:$0xff] %v10837_v40  ;;  %v10839_v20 = vpop.permute.xlu0 %3173 }
 0x3a4   : > { %16173 = vst [vmem:[#allocation236_spill] sm:$0xff] %v10839_v20  ;;  %3335 = vrot.lane.b32.xlu1 %v8993_v10, %s7721_s29 }
 0x3a5   : > { %3337 = vrot.lane.b32.xlu0 %v15937_v53, %s7721_s29 }
 0x3a6   : > { %v10845_v12 = vpop.permute.xlu1 %3175 }
 0x3a7   : > { %16174 = vst [vmem:[#allocation226_spill] sm:$0xff] %v10845_v12  ;;  %v10847_v37 = vpop.permute.xlu0 %3177 }
 0x3a8   : > { %16175 = vst [vmem:[#allocation237_spill] sm:$0xff] %v10847_v37  ;;  %3339 = vrot.lane.b32.xlu1 %v15938_v61, %s7721_s29  ;;  %v16180_v37 = vld [vmem:[#allocation162_spill] sm:$0xff] }
 0x3a9   : > { %3341 = vrot.lane.b32.xlu0 %v15951_v35, %s7721_s29 }
 0x3aa   : > { %v10853_v47 = vpop.permute.xlu1 %3179 }
 0x3ab   : > { %16176 = vst [vmem:[#allocation233_spill] sm:$0xff] %v10853_v47  ;;  %v10855_v40 = vpop.permute.xlu0 %3181 }
 0x3ac   : > { %16177 = vst [vmem:[#allocation235_spill] sm:$0xff] %v10855_v40  ;;  %3343 = vrot.lane.b32.xlu1 %v15952_v45, %s7721_s29  ;;  %v10876_v40 = vld [vmem:[%s15002_s5] ss:$0 sm:$0xff] }
 0x3ad   : > { %3345 = vrot.lane.b32.xlu0 %v15964_v51, %s7721_s29 }
 0x3ae   : > { %v10861_v20 = vpop.permute.xlu1 %3183 }
 0x3af   : > { %16178 = vst [vmem:[#allocation5_spill] sm:$0xff] %v10861_v20  ;;  %v10863_v12 = vpop.permute.xlu0 %3185  ;;  %v16183_v20 = vld [vmem:[#allocation169_spill] sm:$0xff] }
 0x3b0   : > { %16179 = vst [vmem:[#allocation257_spill] sm:$0xff] %v10863_v12  ;;  %3347 = vrot.lane.b32.xlu1 %v15965_v9, %s7721_s29  ;;  %v16184_v12 = vld [vmem:[#allocation178_spill] sm:$0xff] }
 0x3b1   : > { %3349 = vrot.lane.b32.xlu0 %v16180_v37, %s7721_s29 }
 0x3b2   : > { %v10869_v35 = vpop.permute.xlu1 %3187  ;;  %v7386_v51 = vpop.f32.mrb[0].mxu1 }
 0x3b3   : > { %16181 = vst [vmem:[#allocation273_spill] sm:$0xff] %v10869_v35  ;;  %v10871_v47 = vpop.permute.xlu0 %3189  ;;  %v2624_v9 = vadd.f32 %v7386_v51, %v10876_v40  ;;  %v2618_v45 = vpop.f32.mrb[1].mxu1 }
 0x3b4   : > { %16182 = vst [vmem:[#allocation81_spill] sm:$0xff] %v10871_v47  ;;  %3351 = vrot.lane.b32.xlu1 %v16183_v20, %s7721_s29  ;;  %v2619_v37 = vadd.f32 %v10876_v40, %v2618_v45 }
 0x3b5   : > { %3353 = vrot.lane.b32.xlu0 %v16184_v12, %s7721_s29  ;;  %vm2738_vm4 = vcmp.ge.f32.partialorder %v2624_v9, 0.0  ;;  %v2762_v61 = vmul.f32 0.2, %v2624_v9 }
 0x3b6   : > { %v10884_v35 = vpop.permute.xlu1 %3191  ;;  %vm2737_vm8 = vcmp.ge.f32.partialorder %v2619_v37, 0.0  ;;  %v2761_v53 = vmul.f32 0.2, %v2619_v37  ;;  %v7389_v10 = vpop.f32.mrb[2].mxu1 }
 0x3b7   : > { %16185 = vst [vmem:[#allocation238_spill] sm:$0xff] %v10884_v35  ;;  %v10886_v47 = vpop.permute.xlu0 %3193  ;;  %v2786_v12 = vsel %vm2738_vm4, %v2624_v9, %v2762_v61  ;;  %v2634_v51 = vadd.f32 %v7389_v10, %v10876_v40  ;;  %v2628_v20 = vpop.f32.mrb[3].mxu1 }
 0x3b8   : > { %16186 = vst [vmem:[#allocation241_spill] sm:$0xff] %v10886_v47  ;;  %3379 = vrot.lane.b32.xlu1 %v15990_v3, %s7722_s30  ;;  %v6385_v45 = vrot.slane %v2786_v12, 6  ;;  %v10893_v49 = vsel %vm2737_vm8, %v2619_v37, %v2761_v53  ;;  %v2629_v47 = vadd.f32 %v10876_v40, %v2628_v20 }
 0x3b9   : > { %3381 = vrot.lane.b32.xlu0 %v16001_v23, %s7722_s30  ;;  %16187 = vst [vmem:[#allocation234_spill] sm:$0xff] %v10893_v49  ;;  %v15319_v22 = vrot.slane %v10893_v49, 6  ;;  %vm2740_vm10 = vcmp.ge.f32.partialorder %v2634_v51, 0.0  ;;  %v2764_v3 = vmul.f32 0.2, %v2634_v51 }
 0x3ba   : > { %v10896_v35 = vpop.permute.xlu1 %3195  ;;  %vm2739_vm15 = vcmp.ge.f32.partialorder %v2629_v47, 0.0  ;;  %v2763_v23 = vmul.f32 0.2, %v2629_v47  ;;  %v7392_v61 = vpop.f32.mrb[4].mxu1 }
 0x3bb   : > { %16188 = vst [vmem:[#allocation242_spill] sm:$0xff] %v10896_v35  ;;  %v10898_v32 = vpop.permute.xlu0 %3197  ;;  %v2788_v10 = vsel %vm2740_vm10, %v2634_v51, %v2764_v3  ;;  %v2644_v20 = vadd.f32 %v7392_v61, %v10876_v40  ;;  %v2638_v53 = vpop.f32.mrb[5].mxu1  ;;  %v10909_v9 = vsel %vm15436_vm0, %v15319_v22, %v6385_v45 }
 0x3bc   : > { %16189 = vst [vmem:[#allocation73_spill] sm:$0xff] %v10898_v32  ;;  %3383 = vrot.lane.b32.xlu1 %v16002_v44, %s7722_s30  ;;  %16190 = vst [vmem:[#allocation69_spill] sm:$0xff] %v10909_v9  ;;  %v6389_v37 = vrot.slane %v2788_v10, 6  ;;  %v2787_v12 = vsel %vm2739_vm15, %v2629_v47, %v2763_v23  ;;  %v2639_v32 = vadd.f32 %v10876_v40, %v2638_v53 }
 0x3bd   : > { %3385 = vrot.lane.b32.xlu0 %v16010_v33, %s7722_s30  ;;  %v6387_v44 = vrot.slane %v2787_v12, 6  ;;  %vm2742_vm4 = vcmp.ge.f32.partialorder %v2644_v20, 0.0  ;;  %v2766_v33 = vmul.f32 0.2, %v2644_v20 }
 0x3be   : > { %v10912_v35 = vpop.permute.xlu1 %3199  ;;  %vm2741_vm8 = vcmp.ge.f32.partialorder %v2639_v32, 0.0  ;;  %v2765_v51 = vmul.f32 0.2, %v2639_v32  ;;  %v7395_v3 = vpop.f32.mrb[6].mxu1 }
 0x3bf   : > { %16191 = vst [vmem:[#allocation239_spill] sm:$0xff] %v10912_v35  ;;  %v10914_v18 = vpop.permute.xlu0 %3201  ;;  %v2790_v61 = vsel %vm2742_vm4, %v2644_v20, %v2766_v33  ;;  %v2654_v47 = vadd.f32 %v7395_v3, %v10876_v40  ;;  %v2648_v23 = vpop.f32.mrb[7].mxu1  ;;  %v10922_v10 = vsel %vm15436_vm0, %v6385_v45, %v6387_v44  ;;  %v10925_v53 = vsel %vm15436_vm0, %v6387_v44, %v6389_v37 }
 0x3c0   : > { %16192 = vst [vmem:[#allocation71_spill] sm:$0xff] %v10914_v18  ;;  %3387 = vrot.lane.b32.xlu1 %v16011_v26, %s7722_s30  ;;  %16193 = vst [vmem:[#allocation240_spill] sm:$0xff] %v10922_v10  ;;  %v6393_v12 = vrot.slane %v2790_v61, 6  ;;  %v2789_v22 = vsel %vm2741_vm8, %v2639_v32, %v2765_v51  ;;  %v2649_v9 = vadd.f32 %v10876_v40, %v2648_v23 }
 0x3c1   : > { %3389 = vrot.lane.b32.xlu0 %v16016_v25, %s7722_s30  ;;  %16194 = vst [vmem:[#allocation7_spill] sm:$0xff] %v10925_v53  ;;  %v6391_v35 = vrot.slane %v2789_v22, 6  ;;  %vm2744_vm15 = vcmp.ge.f32.partialorder %v2654_v47, 0.0  ;;  %v2768_v33 = vmul.f32 0.2, %v2654_v47 }
 0x3c2   : > { %v10928_v49 = vpop.permute.xlu1 %3203  ;;  %vm2743_vm10 = vcmp.ge.f32.partialorder %v2649_v9, 0.0  ;;  %v2767_v20 = vmul.f32 0.2, %v2649_v9  ;;  %v7398_v3 = vpop.f32.mrb[8].mxu1 }
 0x3c3   : > { %16195 = vst [vmem:[#allocation258_spill] sm:$0xff] %v10928_v49  ;;  %v10930_v18 = vpop.permute.xlu0 %3205  ;;  %v2792_v45 = vsel %vm2744_vm15, %v2654_v47, %v2768_v33  ;;  %v2664_v32 = vadd.f32 %v7398_v3, %v10876_v40  ;;  %v2658_v44 = vpop.f32.mrb[9].mxu1  ;;  %v10938_v51 = vsel %vm15436_vm0, %v6389_v37, %v6391_v35  ;;  %v10941_v22 = vsel %vm15436_vm0, %v6391_v35, %v6393_v12 }
 0x3c4   : > { %16196 = vst [vmem:[#allocation74_spill] sm:$0xff] %v10930_v18  ;;  %3391 = vrot.lane.b32.xlu1 %v16017_v0, %s7722_s30  ;;  %16197 = vst [vmem:[#allocation243_spill] sm:$0xff] %v10938_v51  ;;  %v6397_v61 = vrot.slane %v2792_v45, 6  ;;  %v2791_v23 = vsel %vm2743_vm10, %v2649_v9, %v2767_v20  ;;  %v2659_v53 = vadd.f32 %v10876_v40, %v2658_v44 }
 0x3c5   : > { %3393 = vrot.lane.b32.xlu0 %v16020_v2, %s7722_s30  ;;  %16198 = vst [vmem:[#allocation244_spill] sm:$0xff] %v10941_v22  ;;  %v6395_v49 = vrot.slane %v2791_v23, 6  ;;  %vm2746_vm4 = vcmp.ge.f32.partialorder %v2664_v32, 0.0  ;;  %v2770_v47 = vmul.f32 0.2, %v2664_v32 }
 0x3c6   : > { %v10944_v10 = vpop.permute.xlu1 %3207  ;;  %vm2745_vm8 = vcmp.ge.f32.partialorder %v2659_v53, 0.0  ;;  %v2769_v33 = vmul.f32 0.2, %v2659_v53  ;;  %v7401_v3 = vpop.f32.mrb[10].mxu1 }
 0x3c7   : > { %16199 = vst [vmem:[#allocation246_spill] sm:$0xff] %v10944_v10  ;;  %v10946_v18 = vpop.permute.xlu0 %3209  ;;  %v2794_v35 = vsel %vm2746_vm4, %v2664_v32, %v2770_v47  ;;  %v2674_v9 = vadd.f32 %v7401_v3, %v10876_v40  ;;  %v2668_v37 = vpop.f32.mrb[11].mxu1  ;;  %v10954_v20 = vsel %vm15436_vm0, %v6393_v12, %v6395_v49  ;;  %v10957_v45 = vsel %vm15436_vm0, %v6395_v49, %v6397_v61 }
 0x3c8   : > { %16200 = vst [vmem:[#allocation88_spill] sm:$0xff] %v10946_v18  ;;  %3395 = vrot.lane.b32.xlu1 %v16021_v55, %s7722_s30  ;;  %16201 = vst [vmem:[#allocation76_spill] sm:$0xff] %v10954_v20  ;;  %v6401_v44 = vrot.slane %v2794_v35, 6  ;;  %v2793_v23 = vsel %vm2745_vm8, %v2659_v53, %v2769_v33  ;;  %v2669_v22 = vadd.f32 %v10876_v40, %v2668_v37 }
 0x3c9   : > { %3397 = vrot.lane.b32.xlu0 %v16024_v24, %s7722_s30  ;;  %16202 = vst [vmem:[#allocation249_spill] sm:$0xff] %v10957_v45  ;;  %v6399_v10 = vrot.slane %v2793_v23, 6  ;;  %vm2748_vm15 = vcmp.ge.f32.partialorder %v2674_v9, 0.0  ;;  %v2772_v32 = vmul.f32 0.2, %v2674_v9 }
 0x3ca   : > { %v10960_v51 = vpop.permute.xlu1 %3235  ;;  %vm2747_vm10 = vcmp.ge.f32.partialorder %v2669_v22, 0.0  ;;  %v2771_v47 = vmul.f32 0.2, %v2669_v22  ;;  %v7404_v3 = vpop.f32.mrb[12].mxu1 }
 0x3cb   : > { %16203 = vst [vmem:[#allocation179_spill] sm:$0xff] %v10960_v51  ;;  %v10962_v18 = vpop.permute.xlu0 %3237  ;;  %v2796_v49 = vsel %vm2748_vm15, %v2674_v9, %v2772_v32  ;;  %v2684_v53 = vadd.f32 %v7404_v3, %v10876_v40  ;;  %v2678_v12 = vpop.f32.mrb[13].mxu1  ;;  %v10970_v33 = vsel %vm15436_vm0, %v6397_v61, %v6399_v10  ;;  %v10973_v35 = vsel %vm15436_vm0, %v6399_v10, %v6401_v44 }
 0x3cc   : > { %16204 = vst [vmem:[#allocation6_spill] sm:$0xff] %v10962_v18  ;;  %3399 = vrot.lane.b32.xlu1 %v16025_v5, %s7722_s30  ;;  %16205 = vst [vmem:[#allocation261_spill] sm:$0xff] %v10970_v33  ;;  %v6405_v37 = vrot.slane %v2796_v49, 6  ;;  %v2795_v23 = vsel %vm2747_vm10, %v2669_v22, %v2771_v47  ;;  %v2679_v45 = vadd.f32 %v10876_v40, %v2678_v12 }
 0x3cd   : > { %3401 = vrot.lane.b32.xlu0 %v15753_v46, %s7722_s30  ;;  %16206 = vst [vmem:[#allocation94_spill] sm:$0xff] %v10973_v35  ;;  %v6403_v51 = vrot.slane %v2795_v23, 6  ;;  %vm2750_vm4 = vcmp.ge.f32.partialorder %v2684_v53, 0.0  ;;  %v2774_v9 = vmul.f32 0.2, %v2684_v53 }
 0x3ce   : > { %v10976_v20 = vpop.permute.xlu1 %3239  ;;  %vm2749_vm8 = vcmp.ge.f32.partialorder %v2679_v45, 0.0  ;;  %v2773_v32 = vmul.f32 0.2, %v2679_v45  ;;  %v7407_v3 = vpop.f32.mrb[14].mxu1 }
 0x3cf   : > { %16207 = vst [vmem:[#allocation77_spill] sm:$0xff] %v10976_v20  ;;  %v10978_v18 = vpop.permute.xlu0 %3241  ;;  %v2798_v10 = vsel %vm2750_vm4, %v2684_v53, %v2774_v9  ;;  %v2694_v22 = vadd.f32 %v7407_v3, %v10876_v40  ;;  %v2688_v61 = vpop.f32.mrb[15].mxu1  ;;  %v10986_v47 = vsel %vm15436_vm0, %v6401_v44, %v6403_v51  ;;  %v10989_v49 = vsel %vm15436_vm0, %v6403_v51, %v6405_v37 }
 0x3d0   : > { %16208 = vst [vmem:[#allocation247_spill] sm:$0xff] %v10978_v18  ;;  %3403 = vrot.lane.b32.xlu1 %v8889_v36, %s7722_s30  ;;  %16209 = vst [vmem:[#allocation245_spill] sm:$0xff] %v10986_v47  ;;  %v6409_v12 = vrot.slane %v2798_v10, 6  ;;  %v2797_v23 = vsel %vm2749_vm8, %v2679_v45, %v2773_v32  ;;  %v2689_v35 = vadd.f32 %v10876_v40, %v2688_v61 }
 0x3d1   : > { %3405 = vrot.lane.b32.xlu0 %v8967_v31, %s7722_s30  ;;  %16210 = vst [vmem:[#allocation250_spill] sm:$0xff] %v10989_v49  ;;  %v6407_v20 = vrot.slane %v2797_v23, 6  ;;  %vm2752_vm15 = vcmp.ge.f32.partialorder %v2694_v22, 0.0  ;;  %v2776_v53 = vmul.f32 0.2, %v2694_v22 }
 0x3d2   : > { %v10992_v33 = vpop.permute.xlu1 %3243  ;;  %vm2751_vm10 = vcmp.ge.f32.partialorder %v2689_v35, 0.0  ;;  %v2775_v9 = vmul.f32 0.2, %v2689_v35  ;;  %v7410_v3 = vpop.f32.mrb[16].mxu1 }
 0x3d3   : > { %16211 = vst [vmem:[#allocation248_spill] sm:$0xff] %v10992_v33  ;;  %v10994_v18 = vpop.permute.xlu0 %3245  ;;  %v2800_v51 = vsel %vm2752_vm15, %v2694_v22, %v2776_v53  ;;  %v2704_v45 = vadd.f32 %v7410_v3, %v10876_v40  ;;  %v2698_v44 = vpop.f32.mrb[17].mxu1  ;;  %v11002_v32 = vsel %vm15436_vm0, %v6405_v37, %v6407_v20  ;;  %v11005_v10 = vsel %vm15436_vm0, %v6407_v20, %v6409_v12  ;;  %v16217_v20 = vld [vmem:[#allocation131_spill] sm:$0xff] }
 0x3d4   : > { %16212 = vst [vmem:[#allocation70_spill] sm:$0xff] %v10994_v18  ;;  %3407 = vrot.lane.b32.xlu1 %v9006_v21, %s7722_s30  ;;  %16213 = vst [vmem:[#allocation274_spill] sm:$0xff] %v11002_v32  ;;  %v6413_v61 = vrot.slane %v2800_v51, 6  ;;  %v2799_v23 = vsel %vm2751_vm10, %v2689_v35, %v2775_v9  ;;  %v2699_v49 = vadd.f32 %v10876_v40, %v2698_v44 }
 0x3d5   : > { %3409 = vrot.lane.b32.xlu0 %v9045_v39, %s7722_s30  ;;  %16214 = vst [vmem:[#allocation3_spill] sm:$0xff] %v11005_v10  ;;  %v6411_v33 = vrot.slane %v2799_v23, 6  ;;  %vm2754_vm4 = vcmp.ge.f32.partialorder %v2704_v45, 0.0  ;;  %v2778_v22 = vmul.f32 0.2, %v2704_v45 }
 0x3d6   : > { %v11008_v47 = vpop.permute.xlu1 %3247  ;;  %vm2753_vm8 = vcmp.ge.f32.partialorder %v2699_v49, 0.0  ;;  %v2777_v53 = vmul.f32 0.2, %v2699_v49  ;;  %v7413_v3 = vpop.f32.mrb[18].mxu1 }
 0x3d7   : > { %16215 = vst [vmem:[#allocation263_spill] sm:$0xff] %v11008_v47  ;;  %v11010_v18 = vpop.permute.xlu0 %3249  ;;  %v2802_v37 = vsel %vm2754_vm4, %v2704_v45, %v2778_v22  ;;  %v2714_v35 = vadd.f32 %v7413_v3, %v10876_v40  ;;  %v2708_v9 = vpop.f32.mrb[19].mxu1  ;;  %v11018_v51 = vsel %vm15436_vm0, %v6409_v12, %v6411_v33  ;;  %v11021_v44 = vsel %vm15436_vm0, %v6411_v33, %v6413_v61  ;;  %v16222_v12 = vld [vmem:[#allocation140_spill] sm:$0xff]  ;;  %v16223_v33 = vld [vmem:[#allocation150_spill] sm:$0xff] }
 0x3d8   : > { %16216 = vst [vmem:[#allocation264_spill] sm:$0xff] %v11010_v18  ;;  %3411 = vrot.lane.b32.xlu1 %v9084_v58, %s7722_s30  ;;  %16218 = vst [vmem:[#allocation100_spill] sm:$0xff] %v11018_v51  ;;  %v6417_v23 = vrot.slane %v2802_v37, 6  ;;  %v2801_v10 = vsel %vm2753_vm8, %v2699_v49, %v2777_v53  ;;  %v2709_v32 = vadd.f32 %v10876_v40, %v2708_v9 }
 0x3d9   : > { %3413 = vrot.lane.b32.xlu0 %v16217_v20, %s7722_s30  ;;  %16219 = vst [vmem:[#allocation251_spill] sm:$0xff] %v11021_v44  ;;  %v6415_v58 = vrot.slane %v2801_v10, 6  ;;  %vm2756_vm15 = vcmp.ge.f32.partialorder %v2714_v35, 0.0  ;;  %v2780_v45 = vmul.f32 0.2, %v2714_v35 }
 0x3da   : > { %v11024_v18 = vpop.permute.xlu1 %3251  ;;  %vm2755_vm10 = vcmp.ge.f32.partialorder %v2709_v32, 0.0  ;;  %v2779_v22 = vmul.f32 0.2, %v2709_v32  ;;  %v7416_v3 = vpop.f32.mrb[20].mxu1 }
 0x3db   : > { %16220 = vst [vmem:[#allocation252_spill] sm:$0xff] %v11024_v18  ;;  %v11026_v47 = vpop.permute.xlu0 %3253  ;;  %v2804_v37 = vsel %vm2756_vm15, %v2714_v35, %v2780_v45  ;;  %v2724_v49 = vadd.f32 %v7416_v3, %v10876_v40  ;;  %v2718_v53 = vpop.f32.mrb[21].mxu1  ;;  %v11034_v9 = vsel %vm15436_vm0, %v6413_v61, %v6415_v58  ;;  %v11037_v10 = vsel %vm15436_vm0, %v6415_v58, %v6417_v23  ;;  %v16228_v61 = vld [vmem:[#allocation156_spill] sm:$0xff]  ;;  %v16229_v58 = vld [vmem:[#allocation166_spill] sm:$0xff] }
 0x3dc   : > { %16221 = vst [vmem:[#allocation253_spill] sm:$0xff] %v11026_v47  ;;  %3415 = vrot.lane.b32.xlu1 %v16222_v12, %s7722_s30  ;;  %16224 = vst [vmem:[#allocation27_spill] sm:$0xff] %v11034_v9  ;;  %v6421_v44 = vrot.slane %v2804_v37, 6  ;;  %v2803_v51 = vsel %vm2755_vm10, %v2709_v32, %v2779_v22  ;;  %v2719_v18 = vadd.f32 %v10876_v40, %v2718_v53 }
 0x3dd   : > { %3417 = vrot.lane.b32.xlu0 %v16223_v33, %s7722_s30  ;;  %16225 = vst [vmem:[#allocation265_spill] sm:$0xff] %v11037_v10  ;;  %v6419_v20 = vrot.slane %v2803_v51, 6  ;;  %vm2758_vm4 = vcmp.ge.f32.partialorder %v2724_v49, 0.0  ;;  %v2782_v35 = vmul.f32 0.2, %v2724_v49  ;;  %v3048_v10 = vrot.slane %v16044_v8, 3 }
 0x3de   : > { %v11040_v47 = vpop.permute.xlu1 %3255  ;;  %vm2757_vm8 = vcmp.ge.f32.partialorder %v2719_v18, 0.0  ;;  %v2781_v45 = vmul.f32 0.2, %v2719_v18  ;;  %v7419_v3 = vpop.f32.mrb[22].mxu1 }
 0x3df   : > { %16226 = vst [vmem:[#allocation266_spill] sm:$0xff] %v11040_v47  ;;  %v11042_v12 = vpop.permute.xlu0 %3257  ;;  %v2806_v37 = vsel %vm2758_vm4, %v2724_v49, %v2782_v35  ;;  %v2734_v32 = vadd.f32 %v7419_v3, %v10876_v40  ;;  %v2728_v22 = vpop.f32.mrb[23].mxu1  ;;  %v11050_v53 = vsel %vm15436_vm0, %v6417_v23, %v6419_v20  ;;  %v11053_v51 = vsel %vm15436_vm0, %v6419_v20, %v6421_v44 }
 0x3e0   : > { %16227 = vst [vmem:[#allocation89_spill] sm:$0xff] %v11042_v12  ;;  %3419 = vrot.lane.b32.xlu1 %v16228_v61, %s7722_s30  ;;  %16230 = vst [vmem:[#allocation80_spill] sm:$0xff] %v11050_v53  ;;  %v6425_v9 = vrot.slane %v2806_v37, 6  ;;  %v2805_v12 = vsel %vm2757_vm8, %v2719_v18, %v2781_v45  ;;  %v2729_v47 = vadd.f32 %v10876_v40, %v2728_v22  ;;  %v3050_v49 = vrot.slane %v16050_v1, 3  ;;  %v16235_v18 = vld [vmem:[#allocation183_spill] sm:$0xff] }
 0x3e1   : > { %3421 = vrot.lane.b32.xlu0 %v16229_v58, %s7722_s30  ;;  %16231 = vst [vmem:[#allocation33_spill] sm:$0xff] %v11053_v51  ;;  %v6423_v35 = vrot.slane %v2805_v12, 6  ;;  %vm2760_vm15 = vcmp.ge.f32.partialorder %v2734_v32, 0.0  ;;  %v2784_v3 = vmul.f32 0.2, %v2734_v32  ;;  %v15325_v23 = vrot.slane %v16043_v17, 3 }
 0x3e2   : > { %v11057_v61 = vpop.permute.xlu1 %3259  ;;  %vm2759_vm10 = vcmp.ge.f32.partialorder %v2729_v47, 0.0  ;;  %v2783_v20 = vmul.f32 0.2, %v2729_v47  ;;  %v16234_v51 = vld [vmem:[#allocation172_spill] sm:$0xff]  ;;  %vm16332_vm4 = vcmask 1043456  }
 0x3e3   : > { %16232 = vst [vmem:[#allocation40_spill] sm:$0xff] %v11057_v61  ;;  %v11059_v33 = vpop.permute.xlu0 %3261  ;;  %v11067_v8 = vsel %vm2760_vm15, %v2734_v32, %v2784_v3  ;;  %v11070_v40 = vsel %vm15436_vm0, %v6421_v44, %v6423_v35  ;;  %v11073_v1 = vsel %vm15436_vm0, %v6423_v35, %v6425_v9  ;;  %v11078_v12 = vsel %vm3040_vm9, %v15325_v23, %v3048_v10  ;;  %vm16337_vm8 = vmmov %vm16332_vm4 }
 0x3e4   : > { %16233 = vst [vmem:[#allocation46_spill] sm:$0xff] %v11059_v33  ;;  %3423 = vrot.lane.b32.xlu1 %v16234_v51, %s7722_s30  ;;  %16236 = vst [vmem:[#allocation52_spill] sm:$0xff] %v11067_v8  ;;  %v15326_v45 = vrot.slane %v11067_v8, 6  ;;  %v2807_v37 = vsel %vm2759_vm10, %v2729_v47, %v2783_v20  ;;  %v11086_v32 = vsel %vm3040_vm9, %v3048_v10, %v3050_v49  ;;  %v3052_v44 = vrot.slane %v16051_v60, 3 }
 0x3e5   : > { %3425 = vrot.lane.b32.xlu0 %v16235_v18, %s7722_s30  ;;  %16237 = vst [vmem:[#allocation58_spill] sm:$0xff] %v11070_v40  ;;  %16238 = vst [vmem:[#allocation65_spill] sm:$0xff] %v11073_v1  ;;  %v3054_v35 = vrot.slane %v16058_v7, 3  ;;  %v6427_v3 = vrot.slane %v2807_v37, 6  ;;  %v3056_v40 = vrot.slane %v16059_v27, 3  ;;  %v3062_v8 = vrot.slane %v16073_v6, 3 }
 0x3e6   : > { %16239 = vst [vmem:[#allocation11_spill] sm:$0xff] %v11078_v12  ;;  %v11081_v22 = vpop.permute.xlu1 %3263  ;;  %16242 = vst [vmem:[#allocation16_spill] sm:$0xff] %v11086_v32  ;;  %v11107_v37 = vsel %vm3040_vm9, %v3050_v49, %v3052_v44  ;;  %v3072_v61 = vrot.slane %v16089_v29, 3  ;;  %vm4267_vm10 = vcmask 326656  }
 0x3e7   : > { %16240 = vst [vmem:[#allocation14_spill] sm:$0xff] %v11081_v22  ;;  %v11083_v53 = vpop.permute.xlu0 %3265  ;;  %v11095_v47 = vsel %vm15436_vm0, %v6425_v9, %v6427_v3  ;;  %v11100_v20 = vsel %vm15436_vm0, %v6427_v3, %v15326_v45  ;;  %16247 = vst [vmem:[#allocation39_spill] sm:$0xff] %v11107_v37  ;;  %v11110_v1 = vsel %vm3040_vm9, %v3052_v44, %v3054_v35  ;;  %v3058_v9 = vrot.slane %v16065_v43, 3 }
 0x3e8   : > { %16241 = vst [vmem:[#allocation13_spill] sm:$0xff] %v11083_v53  ;;  %3457 = vrot.lane.b32.xlu1 %v11078_v12, %s7723_s21  ;;  %16243 = vst [vmem:[#allocation19_spill] sm:$0xff] %v11095_v47  ;;  %v11123_v49 = vsel %vm3040_vm9, %v3054_v35, %v3056_v40  ;;  %v3066_v12 = vrot.slane %v16080_v16, 3  ;;  %v3070_v53 = vrot.slane %v16088_v56, 3 }
 0x3e9   : > { %3459 = vrot.lane.b32.xlu0 %v11086_v32, %s7723_s21  ;;  %16244 = vst [vmem:[#allocation22_spill] sm:$0xff] %v11100_v20  ;;  %16248 = vst [vmem:[#allocation275_spill] sm:$0xff] %v11110_v1  ;;  %v11126_v44 = vsel %vm3040_vm9, %v3056_v40, %v3058_v9  ;;  %v3060_v20 = vrot.slane %v16066_v59, 3  ;;  %v3064_v32 = vrot.slane %v16074_v4, 3 }
 0x3ea   : > { %v11102_v10 = vpop.permute.xlu1 %3267  ;;  %16251 = vst [vmem:[#allocation278_spill] sm:$0xff] %v11123_v49  ;;  %16252 = vst [vmem:[#allocation279_spill] sm:$0xff] %v11126_v44 }
 0x3eb   : > { %16245 = vst [vmem:[#allocation25_spill] sm:$0xff] %v11102_v10  ;;  %v11104_v23 = vpop.permute.xlu0 %3269  ;;  %v11139_v35 = vsel %vm3040_vm9, %v3058_v9, %v3060_v20  ;;  %v11142_v40 = vsel %vm3040_vm9, %v3060_v20, %v3062_v8  ;;  %v11155_v9 = vsel %vm3040_vm9, %v3062_v8, %v3064_v32  ;;  %v11158_v20 = vsel %vm3040_vm9, %v3064_v32, %v3066_v12  ;;  %vm16338_vm15 = vmmov %vm16332_vm4 }
 0x3ec   : > { %16246 = vst [vmem:[#allocation32_spill] sm:$0xff] %v11104_v23  ;;  %3461 = vrot.lane.b32.xlu1 %v11107_v37, %s7723_s21  ;;  %16255 = vst [vmem:[#allocation282_spill] sm:$0xff] %v11139_v35  ;;  %v3068_v10 = vrot.slane %v16081_v34, 3 }
 0x3ed   : > { %3463 = vrot.lane.b32.xlu0 %v11110_v1, %s7723_s21  ;;  %16256 = vst [vmem:[#allocation283_spill] sm:$0xff] %v11142_v40  ;;  %16259 = vst [vmem:[#allocation286_spill] sm:$0xff] %v11155_v9 }
 0x3ee   : > { %v11118_v3 = vpop.permute.xlu1 %3271  ;;  %16260 = vst [vmem:[#allocation287_spill] sm:$0xff] %v11158_v20  ;;  %v11171_v8 = vsel %vm3040_vm9, %v3066_v12, %v3068_v10  ;;  %v11174_v32 = vsel %vm3040_vm9, %v3068_v10, %v3070_v53  ;;  %v11187_v12 = vsel %vm3040_vm9, %v3070_v53, %v3072_v61  ;;  %vm16536_vm0 = vmmov %vm16337_vm8 }
 0x3ef   : > { %16249 = vst [vmem:[#allocation276_spill] sm:$0xff] %v11118_v3  ;;  %v11120_v45 = vpop.permute.xlu0 %3273  ;;  %16263 = vst [vmem:[#allocation290_spill] sm:$0xff] %v11171_v8 }
 0x3f0   : > { %16250 = vst [vmem:[#allocation277_spill] sm:$0xff] %v11120_v45  ;;  %3465 = vrot.lane.b32.xlu1 %v11123_v49, %s7723_s21  ;;  %16264 = vst [vmem:[#allocation291_spill] sm:$0xff] %v11174_v32  ;;  %v3082_v45 = vrot.slane %v16110_v63, 3 }
 0x3f1   : > { %3467 = vrot.lane.b32.xlu0 %v11126_v44, %s7723_s21  ;;  %16267 = vst [vmem:[#allocation294_spill] sm:$0xff] %v11187_v12 }
 0x3f2   : > { %v11134_v47 = vpop.permute.xlu1 %3275 }
 0x3f3   : > { %16253 = vst [vmem:[#allocation280_spill] sm:$0xff] %v11134_v47  ;;  %v11136_v37 = vpop.permute.xlu0 %3277 }
 0x3f4   : > { %16254 = vst [vmem:[#allocation281_spill] sm:$0xff] %v11136_v37  ;;  %3469 = vrot.lane.b32.xlu1 %v11139_v35, %s7723_s21  ;;  %v3078_v37 = vrot.slane %v16103_v11, 3 }
 0x3f5   : > { %3471 = vrot.lane.b32.xlu0 %v11142_v40, %s7723_s21 }
 0x3f6   : > { %v11150_v17 = vpop.permute.xlu1 %3279 }
 0x3f7   : > { %16257 = vst [vmem:[#allocation284_spill] sm:$0xff] %v11150_v17  ;;  %v11152_v23 = vpop.permute.xlu0 %3281 }
 0x3f8   : > { %16258 = vst [vmem:[#allocation285_spill] sm:$0xff] %v11152_v23  ;;  %3473 = vrot.lane.b32.xlu1 %v11155_v9, %s7723_s21  ;;  %v3074_v23 = vrot.slane %v16095_v52, 3 }
 0x3f9   : > { %3475 = vrot.lane.b32.xlu0 %v11158_v20, %s7723_s21 }
 0x3fa   : > { %v11166_v22 = vpop.permute.xlu1 %3307  ;;  %v11190_v10 = vsel %vm3040_vm9, %v3072_v61, %v3074_v23 }
 0x3fb   : > { %16261 = vst [vmem:[#allocation288_spill] sm:$0xff] %v11166_v22  ;;  %v11168_v33 = vpop.permute.xlu0 %3309  ;;  %16268 = vst [vmem:[#allocation295_spill] sm:$0xff] %v11190_v10 }
 0x3fc   : > { %16262 = vst [vmem:[#allocation289_spill] sm:$0xff] %v11168_v33  ;;  %3477 = vrot.lane.b32.xlu1 %v11171_v8, %s7723_s21  ;;  %v3076_v33 = vrot.slane %v16096_v42, 3 }
 0x3fd   : > { %3479 = vrot.lane.b32.xlu0 %v11174_v32, %s7723_s21 }
 0x3fe   : > { %v11182_v17 = vpop.permute.xlu1 %3311  ;;  %v11203_v53 = vsel %vm3040_vm9, %v3074_v23, %v3076_v33  ;;  %v11206_v61 = vsel %vm3040_vm9, %v3076_v33, %v3078_v37 }
 0x3ff   : > { %16265 = vst [vmem:[#allocation292_spill] sm:$0xff] %v11182_v17  ;;  %v11184_v22 = vpop.permute.xlu0 %3313  ;;  %16271 = vst [vmem:[#allocation298_spill] sm:$0xff] %v11203_v53 }
 0x400   : > { %16266 = vst [vmem:[#allocation293_spill] sm:$0xff] %v11184_v22  ;;  %3481 = vrot.lane.b32.xlu1 %v11187_v12, %s7723_s21  ;;  %16272 = vst [vmem:[#allocation299_spill] sm:$0xff] %v11206_v61  ;;  %v3080_v22 = vrot.slane %v16104_v30, 3 }
 0x401   : > { %3483 = vrot.lane.b32.xlu0 %v11190_v10, %s7723_s21  ;;  %v3086_v10 = vrot.slane %v16118_v62, 3 }
 0x402   : > { %v11198_v47 = vpop.permute.xlu1 %3315  ;;  %v11219_v23 = vsel %vm3040_vm9, %v3078_v37, %v3080_v22  ;;  %v11222_v33 = vsel %vm3040_vm9, %v3080_v22, %v3082_v45 }
 0x403   : > { %16269 = vst [vmem:[#allocation296_spill] sm:$0xff] %v11198_v47  ;;  %v11200_v17 = vpop.permute.xlu0 %3317  ;;  %16275 = vst [vmem:[#allocation302_spill] sm:$0xff] %v11219_v23 }
 0x404   : > { %16270 = vst [vmem:[#allocation297_spill] sm:$0xff] %v11200_v17  ;;  %3485 = vrot.lane.b32.xlu1 %v11203_v53, %s7723_s21  ;;  %16276 = vst [vmem:[#allocation303_spill] sm:$0xff] %v11222_v33  ;;  %v3084_v17 = vrot.slane %v16111_v19, 3  ;;  %v3451_v53 = vrot.slane %v16149_v38, 3 }
 0x405   : > { %3487 = vrot.lane.b32.xlu0 %v11206_v61, %s7723_s21 }
 0x406   : > { %v11214_v3 = vpop.permute.xlu1 %3319  ;;  %v11235_v37 = vsel %vm3040_vm9, %v3082_v45, %v3084_v17  ;;  %v11238_v22 = vsel %vm3040_vm9, %v3084_v17, %v3086_v10 }
 0x407   : > { %16273 = vst [vmem:[#allocation300_spill] sm:$0xff] %v11214_v3  ;;  %v11216_v47 = vpop.permute.xlu0 %3321  ;;  %16279 = vst [vmem:[#allocation306_spill] sm:$0xff] %v11238_v22 }
 0x408   : > { %16274 = vst [vmem:[#allocation301_spill] sm:$0xff] %v11216_v47  ;;  %3489 = vrot.lane.b32.xlu1 %v11219_v23, %s7723_s21  ;;  %v3088_v47 = vrot.slane %v16119_v28, 3  ;;  %v16284_v23 = vld [vmem:[#allocation173_spill] sm:$0xff] }
 0x409   : > { %3491 = vrot.lane.b32.xlu0 %v11222_v33, %s7723_s21  ;;  %v15365_v12 = vrot.slane %v16284_v23, 3 }
 0x40a   : > { %v11230_v61 = vpop.permute.xlu1 %3323  ;;  %v11251_v45 = vsel %vm3040_vm9, %v3086_v10, %v3088_v47  ;;  %v11254_v17 = vsel %vm3040_vm9, %v3088_v47, %v3451_v53 }
 0x40b   : > { %16277 = vst [vmem:[#allocation304_spill] sm:$0xff] %v11230_v61  ;;  %v11232_v3 = vpop.permute.xlu0 %3325  ;;  %16282 = vst [vmem:[#allocation309_spill] sm:$0xff] %v11251_v45 }
 0x40c   : > { %16278 = vst [vmem:[#allocation305_spill] sm:$0xff] %v11232_v3  ;;  %3493 = vrot.lane.b32.xlu1 %v11235_v37, %s7723_s21  ;;  %16283 = vst [vmem:[#allocation310_spill] sm:$0xff] %v11254_v17  ;;  %v3453_v3 = vrot.slane %v16150_v54, 3 }
 0x40d   : > { %3495 = vrot.lane.b32.xlu0 %v11238_v22, %s7723_s21 }
 0x40e   : > { %v11246_v33 = vpop.permute.xlu1 %3327  ;;  %v11267_v10 = vsel %vm3040_vm9, %v3451_v53, %v3453_v3  ;;  %v11272_v47 = vsel %vm3040_vm9, %v3453_v3, %v15365_v12  ;;  %v16292_v53 = vld [vmem:[#allocation121_spill] sm:$0xff]  ;;  %v16295_v12 = vld [vmem:[#allocation135_spill] sm:$0xff] }
 0x40f   : > { %16280 = vst [vmem:[#allocation307_spill] sm:$0xff] %v11246_v33  ;;  %v11248_v61 = vpop.permute.xlu0 %3329  ;;  %16287 = vst [vmem:[#allocation313_spill] sm:$0xff] %v11267_v10 }
 0x410   : > { %16281 = vst [vmem:[#allocation308_spill] sm:$0xff] %v11248_v61  ;;  %3497 = vrot.lane.b32.xlu1 %v11251_v45, %s7723_s21  ;;  %16288 = vst [vmem:[#allocation314_spill] sm:$0xff] %v11272_v47  ;;  %v16334_v45 = vld [vmem:[#allocation192_spill] sm:$0xff] }
 0x411   : > { %3499 = vrot.lane.b32.xlu0 %v11254_v17, %s7723_s21 }
 0x412   : > { %v11262_v22 = vpop.permute.xlu1 %3331 }
 0x413   : > { %16285 = vst [vmem:[#allocation311_spill] sm:$0xff] %v11262_v22  ;;  %v11264_v33 = vpop.permute.xlu0 %3333 }
 0x414   : > { %16286 = vst [vmem:[#allocation312_spill] sm:$0xff] %v11264_v33  ;;  %3501 = vrot.lane.b32.xlu1 %v11267_v10, %s7723_s21  ;;  %v16291_v33 = vld [vmem:[#allocation126_spill] sm:$0xff]  ;;  %v16296_v10 = vld [vmem:[#allocation143_spill] sm:$0xff] }
 0x415   : > { %3503 = vrot.lane.b32.xlu0 %v11272_v47, %s7723_s21 }
 0x416   : > { %v11278_v61 = vpop.permute.xlu1 %3335 }
 0x417   : > { %16289 = vst [vmem:[#allocation315_spill] sm:$0xff] %v11278_v61  ;;  %v11280_v17 = vpop.permute.xlu0 %3337 }
 0x418   : > { %16290 = vst [vmem:[#allocation316_spill] sm:$0xff] %v11280_v17  ;;  %3535 = vrot.lane.b32.xlu1 %v16291_v33, %s15457_s22  ;;  %v16299_v17 = vld [vmem:[#allocation130_spill] sm:$0xff]  ;;  %v16300_v33 = vld [vmem:[#allocation133_spill] sm:$0xff] }
 0x419   : > { %3537 = vrot.lane.b32.xlu0 %v16292_v53, %s15457_s22 }
 0x41a   : > { %v11286_v22 = vpop.permute.xlu1 %3339 }
 0x41b   : > { %16293 = vst [vmem:[#allocation126_spill] sm:$0xff] %v11286_v22  ;;  %v11288_v3 = vpop.permute.xlu0 %3341 }
 0x41c   : > { %16294 = vst [vmem:[#allocation121_spill] sm:$0xff] %v11288_v3  ;;  %3539 = vrot.lane.b32.xlu1 %v16295_v12, %s15457_s22  ;;  %v16303_v3 = vld [vmem:[#allocation136_spill] sm:$0xff]  ;;  %v16304_v12 = vld [vmem:[#allocation142_spill] sm:$0xff] }
 0x41d   : > { %3541 = vrot.lane.b32.xlu0 %v16296_v10, %s15457_s22 }
 0x41e   : > { %v11294_v47 = vpop.permute.xlu1 %3343 }
 0x41f   : > { %16297 = vst [vmem:[#allocation135_spill] sm:$0xff] %v11294_v47  ;;  %v11296_v61 = vpop.permute.xlu0 %3345 }
 0x420   : > { %16298 = vst [vmem:[#allocation317_spill] sm:$0xff] %v11296_v61  ;;  %3543 = vrot.lane.b32.xlu1 %v16299_v17, %s15457_s22  ;;  %v16307_v61 = vld [vmem:[#allocation148_spill] sm:$0xff]  ;;  %v16308_v17 = vld [vmem:[#allocation154_spill] sm:$0xff] }
 0x421   : > { %3545 = vrot.lane.b32.xlu0 %v16300_v33, %s15457_s22 }
 0x422   : > { %v11302_v53 = vpop.permute.xlu1 %3347 }
 0x423   : > { %16301 = vst [vmem:[#allocation318_spill] sm:$0xff] %v11302_v53  ;;  %v11304_v22 = vpop.permute.xlu0 %3349 }
 0x424   : > { %16302 = vst [vmem:[#allocation319_spill] sm:$0xff] %v11304_v22  ;;  %3547 = vrot.lane.b32.xlu1 %v16303_v3, %s15457_s22  ;;  %v16311_v22 = vld [vmem:[#allocation161_spill] sm:$0xff] }
 0x425   : > { %3549 = vrot.lane.b32.xlu0 %v16304_v12, %s15457_s22  ;;  %v16312_v3 = vld [vmem:[#allocation145_spill] sm:$0xff] }
 0x426   : > { %v11310_v10 = vpop.permute.xlu1 %3351 }
 0x427   : > { %16305 = vst [vmem:[#allocation320_spill] sm:$0xff] %v11310_v10  ;;  %v11312_v47 = vpop.permute.xlu0 %3353 }
 0x428   : > { %16306 = vst [vmem:[#allocation321_spill] sm:$0xff] %v11312_v47  ;;  %3551 = vrot.lane.b32.xlu1 %v16307_v61, %s15457_s22  ;;  %v16315_v47 = vld [vmem:[#allocation151_spill] sm:$0xff] }
 0x429   : > { %3553 = vrot.lane.b32.xlu0 %v16308_v17, %s15457_s22  ;;  %v16316_v61 = vld [vmem:[#allocation159_spill] sm:$0xff] }
 0x42a   : > { %v11318_v33 = vpop.permute.xlu1 %3379 }
 0x42b   : > { %16309 = vst [vmem:[#allocation322_spill] sm:$0xff] %v11318_v33  ;;  %v11320_v53 = vpop.permute.xlu0 %3381 }
 0x42c   : > { %16310 = vst [vmem:[#allocation323_spill] sm:$0xff] %v11320_v53  ;;  %3555 = vrot.lane.b32.xlu1 %v16311_v22, %s15457_s22  ;;  %v16319_v53 = vld [vmem:[#allocation174_spill] sm:$0xff]  ;;  %v16320_v22 = vld [vmem:[#allocation165_spill] sm:$0xff] }
 0x42d   : > { %3557 = vrot.lane.b32.xlu0 %v16312_v3, %s15457_s22 }
 0x42e   : > { %v11326_v12 = vpop.permute.xlu1 %3383 }
 0x42f   : > { %16313 = vst [vmem:[#allocation324_spill] sm:$0xff] %v11326_v12  ;;  %v11328_v10 = vpop.permute.xlu0 %3385 }
 0x430   : > { %16314 = vst [vmem:[#allocation325_spill] sm:$0xff] %v11328_v10  ;;  %3559 = vrot.lane.b32.xlu1 %v16315_v47, %s15457_s22  ;;  %v16323_v10 = vld [vmem:[#allocation167_spill] sm:$0xff]  ;;  %v16324_v47 = vld [vmem:[#allocation176_spill] sm:$0xff] }
 0x431   : > { %3561 = vrot.lane.b32.xlu0 %v16316_v61, %s15457_s22 }
 0x432   : > { %v11334_v17 = vpop.permute.xlu1 %3387 }
 0x433   : > { %16317 = vst [vmem:[#allocation326_spill] sm:$0xff] %v11334_v17  ;;  %v11336_v33 = vpop.permute.xlu0 %3389 }
 0x434   : > { %16318 = vst [vmem:[#allocation327_spill] sm:$0xff] %v11336_v33  ;;  %3563 = vrot.lane.b32.xlu1 %v16319_v53, %s15457_s22  ;;  %v3529_v33 = vrot.slane %v16149_v38, 4  ;;  %v16327_v53 = vld [vmem:[#allocation182_spill] sm:$0xff] }
 0x435   : > { %3565 = vrot.lane.b32.xlu0 %v16320_v22, %s15457_s22  ;;  %v16328_v22 = vld [vmem:[#allocation181_spill] sm:$0xff] }
 0x436   : > { %v11342_v3 = vpop.permute.xlu1 %3391 }
 0x437   : > { %16321 = vst [vmem:[#allocation328_spill] sm:$0xff] %v11342_v3  ;;  %v11344_v12 = vpop.permute.xlu0 %3393 }
 0x438   : > { %16322 = vst [vmem:[#allocation329_spill] sm:$0xff] %v11344_v12  ;;  %3567 = vrot.lane.b32.xlu1 %v16323_v10, %s15457_s22  ;;  %v16331_v10 = vrot.slane %v16119_v28, 4 }
 0x439   : > { %3569 = vrot.lane.b32.xlu0 %v16324_v47, %s15457_s22 }
 0x43a   : > { %v11350_v61 = vpop.permute.xlu1 %3395  ;;  %v11366_v47 = vsel %vm16332_vm4, %v16331_v10, %v3529_v33  ;;  %vm4292_vm4 = vcmask 359424  }
 0x43b   : > { %16325 = vst [vmem:[#allocation330_spill] sm:$0xff] %v11350_v61  ;;  %v11352_v17 = vpop.permute.xlu0 %3397  ;;  %16333 = vst [vmem:[#allocation333_spill] sm:$0xff] %v11366_v47  ;;  %v3531_v61 = vrot.slane %v16150_v54, 4 }
 0x43c   : > { %16326 = vst [vmem:[#allocation331_spill] sm:$0xff] %v11352_v17  ;;  %3571 = vrot.lane.b32.xlu1 %v16327_v53, %s15457_s22  ;;  %v15386_v17 = vrot.slane %v16284_v23, 4 }
 0x43d   : > { %3573 = vrot.lane.b32.xlu0 %v16328_v22, %s15457_s22 }
 0x43e   : > { %v11359_v3 = vpop.permute.xlu1 %3399  ;;  %v11384_v10 = vsel %vm16338_vm15, %v3531_v61, %v15386_v17  ;;  %vm16535_vm15 = vmmov %vm16337_vm8 }
 0x43f   : > { %16329 = vst [vmem:[#allocation182_spill] sm:$0xff] %v11359_v3  ;;  %v11361_v12 = vpop.permute.xlu0 %3401 }
 0x440   : > { %16330 = vst [vmem:[#allocation332_spill] sm:$0xff] %v11361_v12  ;;  %3575 = vrot.lane.b32.xlu1 %v16334_v45, %s15457_s22  ;;  %v11379_v12 = vsel %vm16337_vm8, %v3529_v33, %v3531_v61 }
 0x441   : > { %3577 = vrot.lane.b32.xlu0 %v11366_v47, %s15457_s22 }
 0x442   : > { %v11374_v22 = vpop.permute.xlu1 %3403 }
 0x443   : > { %16335 = vst [vmem:[#allocation334_spill] sm:$0xff] %v11374_v22  ;;  %v11376_v3 = vpop.permute.xlu0 %3405 }
 0x444   : > { %16336 = vst [vmem:[#allocation335_spill] sm:$0xff] %v11376_v3  ;;  %3579 = vrot.lane.b32.xlu1 %v11379_v12, %s15457_s22 }
 0x445   : > { %3581 = vrot.lane.b32.xlu0 %v11384_v10, %s15457_s22 }
 0x446   : > { %v11390_v45 = vpop.permute.xlu1 %3407 }
 0x447   : > { %16339 = vst [vmem:[#allocation336_spill] sm:$0xff] %v11390_v45  ;;  %v11392_v47 = vpop.permute.xlu0 %3409 }
 0x448   : > { %16340 = vst [vmem:[#allocation337_spill] sm:$0xff] %v11392_v47  ;;  %3607 = vrot.lane.b32.xlu1 %v16051_v60, %s7726_s20 }
 0x449   : > { %3609 = vrot.lane.b32.xlu0 %v16058_v7, %s7726_s20 }
 0x44a   : > { %v11398_v33 = vpop.permute.xlu1 %3411 }
 0x44b   : > { %16341 = vst [vmem:[#allocation338_spill] sm:$0xff] %v11398_v33  ;;  %v11400_v61 = vpop.permute.xlu0 %3413 }
 0x44c   : > { %16342 = vst [vmem:[#allocation339_spill] sm:$0xff] %v11400_v61  ;;  %3611 = vrot.lane.b32.xlu1 %v16059_v27, %s7726_s20 }
 0x44d   : > { %3613 = vrot.lane.b32.xlu0 %v16065_v43, %s7726_s20 }
 0x44e   : > { %v11406_v17 = vpop.permute.xlu1 %3415 }
 0x44f   : > { %v11408_v47 = vpop.permute.xlu0 %3417 }
 0x450   : > { %3615 = vrot.lane.b32.xlu1 %v16066_v59, %s7726_s20 }
 0x451   : > { %3617 = vrot.lane.b32.xlu0 %v16073_v6, %s7726_s20 }
 0x452   : > { %v11414_v7 = vpop.permute.xlu1 %3419 }
 0x453   : > { %v11416_v60 = vpop.permute.xlu0 %3421 }
 0x454   : > { %3619 = vrot.lane.b32.xlu1 %v16074_v4, %s7726_s20 }
 0x455   : > { %3621 = vrot.lane.b32.xlu0 %v16080_v16, %s7726_s20 }
 0x456   : > { %v11422_v27 = vpop.permute.xlu1 %3423 }
 0x457   : > { %v11424_v61 = vpop.permute.xlu0 %3425 }
 0x458   : > { %16343 = vst [vmem:[#allocation340_spill] sm:$0xff] %v11424_v61  ;;  %3623 = vrot.lane.b32.xlu1 %v16081_v34, %s7726_s20 }
 0x459   : > { %3625 = vrot.lane.b32.xlu0 %v16088_v56, %s7726_s20 }
 0x45a   : > { %v11430_v33 = vpop.permute.xlu1 %3457 }
 0x45b   : > { %16344 = vst [vmem:[#allocation341_spill] sm:$0xff] %v11430_v33  ;;  %v11432_v45 = vpop.permute.xlu0 %3459 }
 0x45c   : > { %16345 = vst [vmem:[#allocation342_spill] sm:$0xff] %v11432_v45  ;;  %3627 = vrot.lane.b32.xlu1 %v16089_v29, %s7726_s20 }
 0x45d   : > { %3629 = vrot.lane.b32.xlu0 %v16095_v52, %s7726_s20 }
 0x45e   : > { %v11438_v3 = vpop.permute.xlu1 %3461 }
 0x45f   : > { %16346 = vst [vmem:[#allocation343_spill] sm:$0xff] %v11438_v3  ;;  %v11440_v22 = vpop.permute.xlu0 %3463 }
 0x460   : > { %16347 = vst [vmem:[#allocation344_spill] sm:$0xff] %v11440_v22  ;;  %3631 = vrot.lane.b32.xlu1 %v16096_v42, %s7726_s20  ;;  %v16471_v42 = vld [vmem:[#allocation221_spill] sm:$0xff] }
 0x461   : > { %3633 = vrot.lane.b32.xlu0 %v16103_v11, %s7726_s20 }
 0x462   : > { %v11446_v56 = vpop.permute.xlu1 %3465 }
 0x463   : > { %16348 = vst [vmem:[#allocation345_spill] sm:$0xff] %v11446_v56  ;;  %v11448_v33 = vpop.permute.xlu0 %3467 }
 0x464   : > { %16349 = vst [vmem:[#allocation346_spill] sm:$0xff] %v11448_v33  ;;  %3635 = vrot.lane.b32.xlu1 %v16104_v30, %s7726_s20  ;;  %v16469_v30 = vld [vmem:[#allocation270_spill] sm:$0xff] }
 0x465   : > { %3637 = vrot.lane.b32.xlu0 %v16110_v63, %s7726_s20 }
 0x466   : > { %v11454_v45 = vpop.permute.xlu1 %3469 }
 0x467   : > { %16350 = vst [vmem:[#allocation347_spill] sm:$0xff] %v11454_v45  ;;  %v11456_v3 = vpop.permute.xlu0 %3471 }
 0x468   : > { %16351 = vst [vmem:[#allocation348_spill] sm:$0xff] %v11456_v3  ;;  %3639 = vrot.lane.b32.xlu1 %v16111_v19, %s7726_s20  ;;  %v16378_v19 = vld [vmem:[#allocation111_spill] sm:$0xff] }
 0x469   : > { %3641 = vrot.lane.b32.xlu0 %v16118_v62, %s7726_s20 }
 0x46a   : > { %v11462_v22 = vpop.permute.xlu1 %3473 }
 0x46b   : > { %16352 = vst [vmem:[#allocation349_spill] sm:$0xff] %v11462_v22  ;;  %v11464_v56 = vpop.permute.xlu0 %3475 }
 0x46c   : > { %16353 = vst [vmem:[#allocation350_spill] sm:$0xff] %v11464_v56  ;;  %3643 = vrot.lane.b32.xlu1 %v16119_v28, %s7726_s20  ;;  %v16358_v56 = vld [vmem:[#allocation180_spill] sm:$0xff]  ;;  %v16359_v28 = vld [vmem:[#allocation187_spill] sm:$0xff] }
 0x46d   : > { %3645 = vrot.lane.b32.xlu0 %v16149_v38, %s7726_s20 }
 0x46e   : > { %v11470_v33 = vpop.permute.xlu1 %3477 }
 0x46f   : > { %16354 = vst [vmem:[#allocation351_spill] sm:$0xff] %v11470_v33  ;;  %v11472_v45 = vpop.permute.xlu0 %3479 }
 0x470   : > { %16355 = vst [vmem:[#allocation352_spill] sm:$0xff] %v11472_v45  ;;  %3647 = vrot.lane.b32.xlu1 %v16150_v54, %s7726_s20  ;;  %v16374_v54 = vld [vmem:[#allocation95_spill] sm:$0xff] }
 0x471   : > { %3649 = vrot.lane.b32.xlu0 %v16284_v23, %s7726_s20 }
 0x472   : > { %v11478_v3 = vpop.permute.xlu1 %3481 }
 0x473   : > { %16356 = vst [vmem:[#allocation353_spill] sm:$0xff] %v11478_v3  ;;  %v11480_v22 = vpop.permute.xlu0 %3483 }
 0x474   : > { %16357 = vst [vmem:[#allocation354_spill] sm:$0xff] %v11480_v22  ;;  %3651 = vrot.lane.b32.xlu1 %v16358_v56, %s7726_s20 }
 0x475   : > { %3653 = vrot.lane.b32.xlu0 %v16359_v28, %s7726_s20  ;;  %s7729_s20 = smov 40  }
 0x476   : > { %v11486_v38 = vpop.permute.xlu1 %3485 }
 0x477   : > { %16360 = vst [vmem:[#allocation355_spill] sm:$0xff] %v11486_v38  ;;  %v11488_v33 = vpop.permute.xlu0 %3487 }
 0x478   : > { %16361 = vst [vmem:[#allocation356_spill] sm:$0xff] %v11488_v33  ;;  %3679 = vrot.lane.b32.xlu1 %v16158_v13, %s7727_s25 }
 0x479   : > { %3681 = vrot.lane.b32.xlu0 %v16161_v48, %s7727_s25 }
 0x47a   : > { %v11494_v3 = vpop.permute.xlu1 %3489 }
 0x47b   : > { %16362 = vst [vmem:[#allocation357_spill] sm:$0xff] %v11494_v3  ;;  %v11496_v22 = vpop.permute.xlu0 %3491  ;;  %v16370_v3 = vld [vmem:[#allocation68_spill] sm:$0xff] }
 0x47c   : > { %16363 = vst [vmem:[#allocation358_spill] sm:$0xff] %v11496_v22  ;;  %3683 = vrot.lane.b32.xlu1 %v16162_v15, %s7727_s25  ;;  %v16367_v15 = vld [vmem:[#allocation64_spill] sm:$0xff] }
 0x47d   : > { %3685 = vrot.lane.b32.xlu0 %v16165_v41, %s7727_s25 }
 0x47e   : > { %v11502_v38 = vpop.permute.xlu1 %3493 }
 0x47f   : > { %16364 = vst [vmem:[#allocation359_spill] sm:$0xff] %v11502_v38  ;;  %v11504_v33 = vpop.permute.xlu0 %3495 }
 0x480   : > { %16365 = vst [vmem:[#allocation360_spill] sm:$0xff] %v11504_v33  ;;  %3687 = vrot.lane.b32.xlu1 %v8650_v50, %s7727_s25  ;;  %v16371_v50 = vld [vmem:[#allocation79_spill] sm:$0xff] }
 0x481   : > { %3689 = vrot.lane.b32.xlu0 %v8691_v57, %s7727_s25 }
 0x482   : > { %v11510_v48 = vpop.permute.xlu1 %3497 }
 0x483   : > { %v11512_v13 = vpop.permute.xlu0 %3499 }
 0x484   : > { %16366 = vst [vmem:[#allocation361_spill] sm:$0xff] %v11512_v13  ;;  %3691 = vrot.lane.b32.xlu1 %v8732_v14, %s7727_s25  ;;  %v16375_v14 = vld [vmem:[#allocation103_spill] sm:$0xff] }
 0x485   : > { %3693 = vrot.lane.b32.xlu0 %v16367_v15, %s7727_s25 }
 0x486   : > { %v11518_v41 = vpop.permute.xlu1 %3501 }
 0x487   : > { %16368 = vst [vmem:[#allocation64_spill] sm:$0xff] %v11518_v41  ;;  %v11520_v22 = vpop.permute.xlu0 %3503 }
 0x488   : > { %16369 = vst [vmem:[#allocation362_spill] sm:$0xff] %v11520_v22  ;;  %3695 = vrot.lane.b32.xlu1 %v16370_v3, %s7727_s25  ;;  %v16379_v3 = vld [vmem:[#allocation119_spill] sm:$0xff] }
 0x489   : > { %3697 = vrot.lane.b32.xlu0 %v16371_v50, %s7727_s25 }
 0x48a   : > { %v11526_v57 = vpop.permute.xlu1 %3535 }
 0x48b   : > { %16372 = vst [vmem:[#allocation68_spill] sm:$0xff] %v11526_v57  ;;  %v11528_v45 = vpop.permute.xlu0 %3537 }
 0x48c   : > { %16373 = vst [vmem:[#allocation79_spill] sm:$0xff] %v11528_v45  ;;  %3699 = vrot.lane.b32.xlu1 %v16374_v54, %s7727_s25  ;;  %v16382_v45 = vld [vmem:[#allocation128_spill] sm:$0xff]  ;;  %v16383_v54 = vld [vmem:[#allocation137_spill] sm:$0xff] }
 0x48d   : > { %3701 = vrot.lane.b32.xlu0 %v16375_v14, %s7727_s25 }
 0x48e   : > { %v11534_v15 = vpop.permute.xlu1 %3539 }
 0x48f   : > { %16376 = vst [vmem:[#allocation95_spill] sm:$0xff] %v11534_v15  ;;  %v11536_v62 = vpop.permute.xlu0 %3541 }
 0x490   : > { %16377 = vst [vmem:[#allocation103_spill] sm:$0xff] %v11536_v62  ;;  %3703 = vrot.lane.b32.xlu1 %v16378_v19, %s7727_s25  ;;  %v16386_v62 = vld [vmem:[#allocation146_spill] sm:$0xff]  ;;  %v16387_v19 = vld [vmem:[#allocation153_spill] sm:$0xff] }
 0x491   : > { %3705 = vrot.lane.b32.xlu0 %v16379_v3, %s7727_s25 }
 0x492   : > { %v11542_v50 = vpop.permute.xlu1 %3543 }
 0x493   : > { %16380 = vst [vmem:[#allocation111_spill] sm:$0xff] %v11542_v50  ;;  %v11544_v57 = vpop.permute.xlu0 %3545 }
 0x494   : > { %16381 = vst [vmem:[#allocation119_spill] sm:$0xff] %v11544_v57  ;;  %3707 = vrot.lane.b32.xlu1 %v16382_v45, %s7727_s25  ;;  %v16390_v57 = vld [vmem:[#allocation162_spill] sm:$0xff]  ;;  %v16391_v45 = vld [vmem:[#allocation169_spill] sm:$0xff] }
 0x495   : > { %3709 = vrot.lane.b32.xlu0 %v16383_v54, %s7727_s25 }
 0x496   : > { %v11550_v14 = vpop.permute.xlu1 %3547 }
 0x497   : > { %16384 = vst [vmem:[#allocation128_spill] sm:$0xff] %v11550_v14  ;;  %v11552_v15 = vpop.permute.xlu0 %3549 }
 0x498   : > { %16385 = vst [vmem:[#allocation137_spill] sm:$0xff] %v11552_v15  ;;  %3711 = vrot.lane.b32.xlu1 %v16386_v62, %s7727_s25  ;;  %v16394_v15 = vld [vmem:[#allocation178_spill] sm:$0xff] }
 0x499   : > { %3713 = vrot.lane.b32.xlu0 %v16387_v19, %s7727_s25  ;;  %v16395_v62 = vld [vmem:[#allocation190_spill] sm:$0xff] }
 0x49a   : > { %v11558_v3 = vpop.permute.xlu1 %3551 }
 0x49b   : > { %16388 = vst [vmem:[#allocation146_spill] sm:$0xff] %v11558_v3  ;;  %v11560_v50 = vpop.permute.xlu0 %3553 }
 0x49c   : > { %16389 = vst [vmem:[#allocation153_spill] sm:$0xff] %v11560_v50  ;;  %3715 = vrot.lane.b32.xlu1 %v16390_v57, %s7727_s25  ;;  %v16398_v50 = vld [vmem:[#allocation195_spill] sm:$0xff] }
 0x49d   : > { %3717 = vrot.lane.b32.xlu0 %v16391_v45, %s7727_s25  ;;  %v16399_v57 = vld [vmem:[#allocation203_spill] sm:$0xff] }
 0x49e   : > { %v11566_v54 = vpop.permute.xlu1 %3555 }
 0x49f   : > { %16392 = vst [vmem:[#allocation363_spill] sm:$0xff] %v11566_v54  ;;  %v11568_v14 = vpop.permute.xlu0 %3557 }
 0x4a0   : > { %16393 = vst [vmem:[#allocation364_spill] sm:$0xff] %v11568_v14  ;;  %3719 = vrot.lane.b32.xlu1 %v16394_v15, %s7727_s25  ;;  %v16402_v14 = vld [vmem:[#allocation24_spill] sm:$0xff]  ;;  %v16464_v15 = vld [vmem:[#allocation134_spill] sm:$0xff] }
 0x4a1   : > { %3721 = vrot.lane.b32.xlu0 %v16395_v62, %s7727_s25 }
 0x4a2   : > { %v11574_v19 = vpop.permute.xlu1 %3559 }
 0x4a3   : > { %16396 = vst [vmem:[#allocation365_spill] sm:$0xff] %v11574_v19  ;;  %v11576_v3 = vpop.permute.xlu0 %3561 }
 0x4a4   : > { %16397 = vst [vmem:[#allocation366_spill] sm:$0xff] %v11576_v3  ;;  %3723 = vrot.lane.b32.xlu1 %v16398_v50, %s7727_s25 }
 0x4a5   : > { %3725 = vrot.lane.b32.xlu0 %v16399_v57, %s7727_s25  ;;  %v3825_v57 = vrot.slane %v16359_v28, 3  ;;  %s7730_s25 = smov 44  }
 0x4a6   : > { %v11582_v45 = vpop.permute.xlu1 %3563 }
 0x4a7   : > { %16400 = vst [vmem:[#allocation367_spill] sm:$0xff] %v11582_v45  ;;  %v11584_v54 = vpop.permute.xlu0 %3565 }
 0x4a8   : > { %16401 = vst [vmem:[#allocation368_spill] sm:$0xff] %v11584_v54  ;;  %3751 = vrot.lane.b32.xlu1 %v16402_v14, %s7728_s12 }
 0x4a9   : > { %3753 = vrot.lane.b32.xlu0 %v16011_v26, %s7728_s12 }
 0x4aa   : > { %v11590_v19 = vpop.permute.xlu1 %3567 }
 0x4ab   : > { %16403 = vst [vmem:[#allocation24_spill] sm:$0xff] %v11590_v19  ;;  %v11592_v3 = vpop.permute.xlu0 %3569  ;;  %v16412_v19 = vld [vmem:[#allocation131_spill] sm:$0xff] }
 0x4ac   : > { %16404 = vst [vmem:[#allocation369_spill] sm:$0xff] %v11592_v3  ;;  %3755 = vrot.lane.b32.xlu1 %v16016_v25, %s7728_s12 }
 0x4ad   : > { %3757 = vrot.lane.b32.xlu0 %v16017_v0, %s7728_s12 }
 0x4ae   : > { %v11598_v45 = vpop.permute.xlu1 %3571 }
 0x4af   : > { %v11600_v54 = vpop.permute.xlu0 %3573 }
 0x4b0   : > { %3759 = vrot.lane.b32.xlu1 %v16020_v2, %s7728_s12 }
 0x4b1   : > { %3761 = vrot.lane.b32.xlu0 %v16021_v55, %s7728_s12 }
 0x4b2   : > { %v11606_v26 = vpop.permute.xlu1 %3575 }
 0x4b3   : > { %v11608_v14 = vpop.permute.xlu0 %3577 }
 0x4b4   : > { %3763 = vrot.lane.b32.xlu1 %v16024_v24, %s7728_s12 }
 0x4b5   : > { %3765 = vrot.lane.b32.xlu0 %v16025_v5, %s7728_s12 }
 0x4b6   : > { %v11614_v25 = vpop.permute.xlu1 %3579 }
 0x4b7   : > { %v11616_v0 = vpop.permute.xlu0 %3581 }
 0x4b8   : > { %3767 = vrot.lane.b32.xlu1 %v15753_v46, %s7728_s12  ;;  %v16409_v46 = vld [vmem:[#allocation122_spill] sm:$0xff] }
 0x4b9   : > { %3769 = vrot.lane.b32.xlu0 %v8889_v36, %s7728_s12 }
 0x4ba   : > { %v11622_v2 = vpop.permute.xlu1 %3607 }
 0x4bb   : > { %16405 = vst [vmem:[#allocation370_spill] sm:$0xff] %v11622_v2  ;;  %v11624_v55 = vpop.permute.xlu0 %3609 }
 0x4bc   : > { %16406 = vst [vmem:[#allocation371_spill] sm:$0xff] %v11624_v55  ;;  %3771 = vrot.lane.b32.xlu1 %v8967_v31, %s7728_s12  ;;  %v16413_v31 = vld [vmem:[#allocation140_spill] sm:$0xff]  ;;  %v16431_v55 = vld [vmem:[#allocation294_spill] sm:$0xff] }
 0x4bd   : > { %3773 = vrot.lane.b32.xlu0 %v9006_v21, %s7728_s12 }
 0x4be   : > { %v11630_v24 = vpop.permute.xlu1 %3611 }
 0x4bf   : > { %16407 = vst [vmem:[#allocation372_spill] sm:$0xff] %v11630_v24  ;;  %v11632_v5 = vpop.permute.xlu0 %3613 }
 0x4c0   : > { %16408 = vst [vmem:[#allocation373_spill] sm:$0xff] %v11632_v5  ;;  %3775 = vrot.lane.b32.xlu1 %v9045_v39, %s7728_s12  ;;  %v16416_v5 = vld [vmem:[#allocation150_spill] sm:$0xff]  ;;  %v16417_v39 = vld [vmem:[#allocation156_spill] sm:$0xff] }
 0x4c1   : > { %3777 = vrot.lane.b32.xlu0 %v16409_v46, %s7728_s12 }
 0x4c2   : > { %v11638_v36 = vpop.permute.xlu1 %3615 }
 0x4c3   : > { %16410 = vst [vmem:[#allocation122_spill] sm:$0xff] %v11638_v36  ;;  %v11640_v3 = vpop.permute.xlu0 %3617 }
 0x4c4   : > { %16411 = vst [vmem:[#allocation374_spill] sm:$0xff] %v11640_v3  ;;  %3779 = vrot.lane.b32.xlu1 %v16412_v19, %s7728_s12 }
 0x4c5   : > { %3781 = vrot.lane.b32.xlu0 %v16413_v31, %s7728_s12 }
 0x4c6   : > { %v11646_v21 = vpop.permute.xlu1 %3619 }
 0x4c7   : > { %16414 = vst [vmem:[#allocation131_spill] sm:$0xff] %v11646_v21  ;;  %v11648_v24 = vpop.permute.xlu0 %3621 }
 0x4c8   : > { %16415 = vst [vmem:[#allocation140_spill] sm:$0xff] %v11648_v24  ;;  %3783 = vrot.lane.b32.xlu1 %v16416_v5, %s7728_s12  ;;  %v16422_v5 = vld [vmem:[#allocation186_spill] sm:$0xff]  ;;  %v16426_v24 = vld [vmem:[#allocation200_spill] sm:$0xff] }
 0x4c9   : > { %3785 = vrot.lane.b32.xlu0 %v16417_v39, %s7728_s12 }
 0x4ca   : > { %v11654_v46 = vpop.permute.xlu1 %3623 }
 0x4cb   : > { %16418 = vst [vmem:[#allocation150_spill] sm:$0xff] %v11654_v46  ;;  %v11656_v36 = vpop.permute.xlu0 %3625 }
 0x4cc   : > { %16419 = vst [vmem:[#allocation156_spill] sm:$0xff] %v11656_v36  ;;  %3787 = vrot.lane.b32.xlu1 %v16229_v58, %s7728_s12  ;;  %v16425_v36 = vld [vmem:[#allocation194_spill] sm:$0xff]  ;;  %v16467_v58 = vld [vmem:[#allocation197_spill] sm:$0xff] }
 0x4cd   : > { %3789 = vrot.lane.b32.xlu0 %v16234_v51, %s7728_s12  ;;  %v16465_v51 = vld [vmem:[#allocation189_spill] sm:$0xff] }
 0x4ce   : > { %v11662_v19 = vpop.permute.xlu1 %3627 }
 0x4cf   : > { %16420 = vst [vmem:[#allocation375_spill] sm:$0xff] %v11662_v19  ;;  %v11664_v31 = vpop.permute.xlu0 %3629 }
 0x4d0   : > { %16421 = vst [vmem:[#allocation376_spill] sm:$0xff] %v11664_v31  ;;  %3791 = vrot.lane.b32.xlu1 %v16235_v18, %s7728_s12  ;;  %v16462_v18 = vld [vmem:[#allocation115_spill] sm:$0xff] }
 0x4d1   : > { %3793 = vrot.lane.b32.xlu0 %v16422_v5, %s7728_s12  ;;  %v16456_v5 = vld [vmem:[#allocation314_spill] sm:$0xff] }
 0x4d2   : > { %v11670_v39 = vpop.permute.xlu1 %3631 }
 0x4d3   : > { %16423 = vst [vmem:[#allocation377_spill] sm:$0xff] %v11670_v39  ;;  %v11672_v46 = vpop.permute.xlu0 %3633 }
 0x4d4   : > { %16424 = vst [vmem:[#allocation378_spill] sm:$0xff] %v11672_v46  ;;  %3795 = vrot.lane.b32.xlu1 %v16425_v36, %s7728_s12  ;;  %v16453_v36 = vld [vmem:[#allocation193_spill] sm:$0xff] }
 0x4d5   : > { %3797 = vrot.lane.b32.xlu0 %v16426_v24, %s7728_s12  ;;  %v16450_v24 = vld [vmem:[#allocation313_spill] sm:$0xff]  ;;  %v15427_v50 = vrot.slane %v16453_v36, 3  ;;  %s15462_s12 = smov 48  }
 0x4d6   : > { %v11678_v21 = vpop.permute.xlu1 %3635 }
 0x4d7   : > { %16427 = vst [vmem:[#allocation379_spill] sm:$0xff] %v11678_v21  ;;  %v11680_v19 = vpop.permute.xlu0 %3637 }
 0x4d8   : > { %16428 = vst [vmem:[#allocation380_spill] sm:$0xff] %v11680_v19  ;;  %3829 = vrot.lane.b32.xlu1 %v11110_v1, %s7729_s20  ;;  %v16435_v1 = vld [vmem:[#allocation298_spill] sm:$0xff] }
 0x4d9   : > { %3831 = vrot.lane.b32.xlu0 %v11123_v49, %s7729_s20  ;;  %v16434_v49 = vld [vmem:[#allocation295_spill] sm:$0xff] }
 0x4da   : > { %v11686_v39 = vpop.permute.xlu1 %3639 }
 0x4db   : > { %16429 = vst [vmem:[#allocation381_spill] sm:$0xff] %v11686_v39  ;;  %v11688_v46 = vpop.permute.xlu0 %3641 }
 0x4dc   : > { %16430 = vst [vmem:[#allocation382_spill] sm:$0xff] %v11688_v46  ;;  %3833 = vrot.lane.b32.xlu1 %v11126_v44, %s7729_s20 }
 0x4dd   : > { %3835 = vrot.lane.b32.xlu0 %v11139_v35, %s7729_s20 }
 0x4de   : > { %v11694_v21 = vpop.permute.xlu1 %3643 }
 0x4df   : > { %v11696_v19 = vpop.permute.xlu0 %3645 }
 0x4e0   : > { %3837 = vrot.lane.b32.xlu1 %v11142_v40, %s7729_s20  ;;  %v16449_v40 = vld [vmem:[#allocation310_spill] sm:$0xff] }
 0x4e1   : > { %3839 = vrot.lane.b32.xlu0 %v11155_v9, %s7729_s20  ;;  %v16438_v9 = vld [vmem:[#allocation299_spill] sm:$0xff] }
 0x4e2   : > { %v11702_v31 = vpop.permute.xlu1 %3647 }
 0x4e3   : > { %v11704_v39 = vpop.permute.xlu0 %3649 }
 0x4e4   : > { %3841 = vrot.lane.b32.xlu1 %v11158_v20, %s7729_s20 }
 0x4e5   : > { %3843 = vrot.lane.b32.xlu0 %v11171_v8, %s7729_s20 }
 0x4e6   : > { %v11710_v46 = vpop.permute.xlu1 %3651 }
 0x4e7   : > { %v11712_v3 = vpop.permute.xlu0 %3653 }
 0x4e8   : > { %3845 = vrot.lane.b32.xlu1 %v11174_v32, %s7729_s20  ;;  %v16439_v32 = vld [vmem:[#allocation302_spill] sm:$0xff] }
 0x4e9   : > { %3847 = vrot.lane.b32.xlu0 %v16431_v55, %s7729_s20 }
 0x4ea   : > { %v11718_v2 = vpop.permute.xlu1 %3679 }
 0x4eb   : > { %16432 = vst [vmem:[#allocation383_spill] sm:$0xff] %v11718_v2  ;;  %v11720_v44 = vpop.permute.xlu0 %3681 }
 0x4ec   : > { %16433 = vst [vmem:[#allocation384_spill] sm:$0xff] %v11720_v44  ;;  %3849 = vrot.lane.b32.xlu1 %v16434_v49, %s7729_s20  ;;  %v16442_v44 = vld [vmem:[#allocation303_spill] sm:$0xff]  ;;  %v16446_v49 = vld [vmem:[#allocation309_spill] sm:$0xff] }
 0x4ed   : > { %3851 = vrot.lane.b32.xlu0 %v16435_v1, %s7729_s20 }
 0x4ee   : > { %v11726_v8 = vpop.permute.xlu1 %3683 }
 0x4ef   : > { %16436 = vst [vmem:[#allocation385_spill] sm:$0xff] %v11726_v8  ;;  %v11728_v20 = vpop.permute.xlu0 %3685 }
 0x4f0   : > { %16437 = vst [vmem:[#allocation386_spill] sm:$0xff] %v11728_v20  ;;  %3853 = vrot.lane.b32.xlu1 %v16438_v9, %s7729_s20  ;;  %v16445_v20 = vld [vmem:[#allocation306_spill] sm:$0xff] }
 0x4f1   : > { %3855 = vrot.lane.b32.xlu0 %v16439_v32, %s7729_s20 }
 0x4f2   : > { %v11734_v55 = vpop.permute.xlu1 %3687 }
 0x4f3   : > { %16440 = vst [vmem:[#allocation299_spill] sm:$0xff] %v11734_v55  ;;  %v11736_v2 = vpop.permute.xlu0 %3689 }
 0x4f4   : > { %16441 = vst [vmem:[#allocation302_spill] sm:$0xff] %v11736_v2  ;;  %3857 = vrot.lane.b32.xlu1 %v16442_v44, %s7729_s20  ;;  %v3823_v2 = vrot.slane %v16358_v56, 3 }
 0x4f5   : > { %3859 = vrot.lane.b32.xlu0 %v11235_v37, %s7729_s20 }
 0x4f6   : > { %v11742_v1 = vpop.permute.xlu1 %3691 }
 0x4f7   : > { %16443 = vst [vmem:[#allocation303_spill] sm:$0xff] %v11742_v1  ;;  %v11744_v8 = vpop.permute.xlu0 %3693 }
 0x4f8   : > { %16444 = vst [vmem:[#allocation387_spill] sm:$0xff] %v11744_v8  ;;  %3861 = vrot.lane.b32.xlu1 %v16445_v20, %s7729_s20 }
 0x4f9   : > { %3863 = vrot.lane.b32.xlu0 %v16446_v49, %s7729_s20 }
 0x4fa   : > { %v11750_v35 = vpop.permute.xlu1 %3695 }
 0x4fb   : > { %16447 = vst [vmem:[#allocation306_spill] sm:$0xff] %v11750_v35  ;;  %v11752_v55 = vpop.permute.xlu0 %3697  ;;  %v16454_v35 = vrot.slane %v16284_v23, 3 }
 0x4fc   : > { %16448 = vst [vmem:[#allocation309_spill] sm:$0xff] %v11752_v55  ;;  %3865 = vrot.lane.b32.xlu1 %v16449_v40, %s7729_s20  ;;  %v11784_v40 = vsel %vm3040_vm9, %v3825_v57, %v15427_v50  ;;  %v16470_v50 = vld [vmem:[#allocation219_spill] sm:$0xff] }
 0x4fd   : > { %3867 = vrot.lane.b32.xlu0 %v16450_v24, %s7729_s20  ;;  %v11768_v55 = vsel %vm3040_vm9, %v16454_v35, %v3823_v2  ;;  %16460 = vst [vmem:[#allocation394_spill] sm:$0xff] %v11784_v40  ;;  %v16461_v35 = vld [vmem:[#allocation191_spill] sm:$0xff] }
 0x4fe   : > { %v11759_v1 = vpop.permute.xlu1 %3699  ;;  %16455 = vst [vmem:[#allocation390_spill] sm:$0xff] %v11768_v55  ;;  %v4069_v62 = vsel %vm15484_vm2, %v16462_v18, %v16461_v35 }
 0x4ff   : > { %16451 = vst [vmem:[#allocation388_spill] sm:$0xff] %v11759_v1  ;;  %v11761_v8 = vpop.permute.xlu0 %3701 }
 0x500   : > { %16452 = vst [vmem:[#allocation389_spill] sm:$0xff] %v11761_v8  ;;  %3869 = vrot.lane.b32.xlu1 %v16456_v5, %s7729_s20  ;;  %v11779_v8 = vsel %vm3040_vm9, %v3823_v2, %v3825_v57  ;;  %v16463_v5 = vld [vmem:[#allocation202_spill] sm:$0xff]  ;;  %v16468_v2 = vld [vmem:[#allocation124_spill] sm:$0xff]  ;;  %v4093_v57 = vsel %vm15483_vm12, %v4069_v62, %v16469_v30 }
 0x501   : > { %3871 = vrot.lane.b32.xlu0 %v11768_v55, %s7729_s20  ;;  %16459 = vst [vmem:[#allocation393_spill] sm:$0xff] %v11779_v8  ;;  %v4070_v55 = vsel %vm15484_vm2, %v16464_v15, %v16463_v5  ;;  %v4072_v63 = vsel %vm15484_vm2, %v16468_v2, %v16467_v58  ;;  %v16473_v15 = vld [vmem:[#allocation127_spill] sm:$0xff]  ;;  %v16474_v58 = vld [vmem:[#allocation201_spill] sm:$0xff]  ;;  %v16476_v62 = vld [vmem:[#allocation230_spill] sm:$0xff] }
 0x502   : > { %v11774_v24 = vpop.permute.xlu1 %3703  ;;  %v4094_v11 = vsel %vm15483_vm12, %v4070_v55, %v16470_v50  ;;  %v16475_v5 = vld [vmem:[#allocation129_spill] sm:$0xff]  ;;  %v4096_v50 = vsel %vm15483_vm12, %v4072_v63, %v16476_v62  ;;  %v16477_v55 = vld [vmem:[#allocation220_spill] sm:$0xff] }
 0x503   : > { %16457 = vst [vmem:[#allocation391_spill] sm:$0xff] %v11774_v24  ;;  %v11776_v1 = vpop.permute.xlu0 %3705  ;;  %v16466_v24 = vld [vmem:[#allocation118_spill] sm:$0xff]  ;;  %v4074_v30 = vsel %vm15484_vm2, %v16475_v5, %v16474_v58  ;;  %v16482_v5 = vld [vmem:[#allocation71_spill] sm:$0xff] }
 0x504   : > { %16458 = vst [vmem:[#allocation392_spill] sm:$0xff] %v11776_v1  ;;  %v4071_v1 = vsel %vm15484_vm2, %v16466_v24, %v16465_v51  ;;  %3873 = vrot.lane.b32.xlu1 %v11779_v8, %s7729_s20  ;;  %v16472_v51 = vld [vmem:[#allocation198_spill] sm:$0xff] }
 0x505   : > { %v4095_v18 = vsel %vm15483_vm12, %v4071_v1, %v16471_v42  ;;  %3875 = vrot.lane.b32.xlu0 %v11784_v40, %s7729_s20  ;;  %v4073_v24 = vsel %vm15484_vm2, %v16473_v15, %v16472_v51  ;;  %v16478_v1 = vld [vmem:[#allocation224_spill] sm:$0xff]  ;;  %v11826_v51 = vsel %vm2258_vm14, %v4093_v57, %v16438_v9  ;;  %v11830_v15 = vsel %vm2258_vm14, %v4094_v11, %v16439_v32  ;;  %v16483_v11 = vld [vmem:[#allocation143_spill] sm:$0xff]  ;;  %v16484_v32 = vld [vmem:[#allocation130_spill] sm:$0xff] }
 0x506   : > { %v4097_v42 = vsel %vm15483_vm12, %v4073_v24, %v16477_v55  ;;  %v4098_v35 = vsel %vm15483_vm12, %v4074_v30, %v16478_v1  ;;  %v11820_v2 = vpop.permute.xlu1 %3707  ;;  %v11834_v63 = vsel %vm2258_vm14, %v4095_v18, %v16442_v44  ;;  %v16481_v24 = vld [vmem:[#allocation239_spill] sm:$0xff]  ;;  %v4142_v30 = vsel %vm2284_vm1, %v11830_v15, %v16482_v5  ;;  %v16486_v18 = vld [vmem:[#allocation276_spill] sm:$0xff]  ;;  %v16488_v55 = vld [vmem:[#allocation258_spill] sm:$0xff] }
 0x507   : > { %16479 = vst [vmem:[#allocation191_spill] sm:$0xff] %v11820_v2  ;;  %v11822_v40 = vpop.permute.xlu0 %3709  ;;  %v4141_v58 = vsel %vm2284_vm1, %v11826_v51, %v16481_v24  ;;  %v11844_v9 = vsel %vm2258_vm14, %v4096_v50, %v11235_v37  ;;  %v11852_v44 = vsel %vm2258_vm14, %v4097_v42, %v16445_v20  ;;  %v11856_v57 = vsel %vm2258_vm14, %v4098_v35, %v16446_v49  ;;  %v16487_v37 = vld [vmem:[#allocation277_spill] sm:$0xff]  ;;  %v16489_v24 = vld [vmem:[#allocation74_spill] sm:$0xff]  ;;  %v16490_v20 = vld [vmem:[#allocation135_spill] sm:$0xff] }
 0x508   : > { %16480 = vst [vmem:[#allocation115_spill] sm:$0xff] %v11822_v40  ;;  %3907 = vrot.lane.b32.xlu1 %v16483_v11, %s7730_s25  ;;  %16485 = vst [vmem:[#allocation202_spill] sm:$0xff] %v11852_v44  ;;  %v4165_v62 = vsel %vm2310_vm11, %v4141_v58, %v16486_v18  ;;  %v4166_v50 = vsel %vm2310_vm11, %v4142_v30, %v16487_v37  ;;  %v4143_v1 = vsel %vm2284_vm1, %v11834_v63, %v16488_v55  ;;  %v16491_v11 = vld [vmem:[#allocation317_spill] sm:$0xff]  ;;  %v16495_v40 = vld [vmem:[#allocation280_spill] sm:$0xff] }
 0x509   : > { %3909 = vrot.lane.b32.xlu0 %v16484_v32, %s7730_s25  ;;  %v4144_v5 = vsel %vm2284_vm1, %v11844_v9, %v16489_v24  ;;  %v4189_v42 = vsel %vm2336_vm6, %v4165_v62, %v16490_v20  ;;  %v4190_v49 = vsel %vm2336_vm6, %v4166_v50, %v16491_v11  ;;  %v16494_v32 = vld [vmem:[#allocation246_spill] sm:$0xff]  ;;  %v4167_v55 = vsel %vm2310_vm11, %v4143_v1, %v16495_v40  ;;  %v16496_v2 = vld [vmem:[#allocation281_spill] sm:$0xff]  ;;  %v16498_v1 = vld [vmem:[#allocation136_spill] sm:$0xff] }
 0x50a   : > { %v11872_v35 = vpop.permute.xlu1 %3711  ;;  %v4145_v30 = vsel %vm2284_vm1, %v11852_v44, %v16494_v32  ;;  %v4213_v24 = vsel %vm2362_vm13, %v4189_v42, %v11406_v17  ;;  %v4214_v62 = vsel %vm2362_vm13, %v4190_v49, %v11408_v47  ;;  %v4168_v50 = vsel %vm2310_vm11, %v4144_v5, %v16496_v2  ;;  %v16497_v32 = vld [vmem:[#allocation133_spill] sm:$0xff]  ;;  %v16499_v44 = vld [vmem:[#allocation318_spill] sm:$0xff] }
 0x50b   : > { %16492 = vst [vmem:[#allocation134_spill] sm:$0xff] %v11872_v35  ;;  %v11874_v58 = vpop.permute.xlu0 %3713  ;;  %v4237_v35 = vsel %vm2388_vm7, %v4213_v24, %v11502_v38  ;;  %v4191_v42 = vsel %vm2336_vm6, %v4167_v55, %v16499_v44  ;;  %v16500_v24 = vld [vmem:[#allocation319_spill] sm:$0xff] }
 0x50c   : > { %16493 = vst [vmem:[#allocation189_spill] sm:$0xff] %v11874_v58  ;;  %v4238_v58 = vsel %vm2388_vm7, %v4214_v62, %v11504_v33  ;;  %3911 = vrot.lane.b32.xlu1 %v16497_v32, %s7730_s25  ;;  %v4261_v49 = vsel %vm2500_vm3, %v4237_v35, %v11598_v45  ;;  %v4192_v38 = vsel %vm2336_vm6, %v4168_v50, %v16500_v24 }
 0x50d   : > { %3913 = vrot.lane.b32.xlu0 %v16498_v1, %s7730_s25  ;;  %v4262_v5 = vsel %vm2500_vm3, %v4238_v58, %v11600_v54  ;;  %v4286_v62 = vsel %vm4267_vm10, %v4261_v49, %v11694_v21  ;;  %v4215_v55 = vsel %vm2362_vm13, %v4191_v42, %v11414_v7  ;;  %v4216_v45 = vsel %vm2362_vm13, %v4192_v38, %v11416_v60  ;;  %v16501_v58 = vld [vmem:[#allocation88_spill] sm:$0xff]  ;;  %v16502_v42 = vld [vmem:[#allocation142_spill] sm:$0xff] }
 0x50e   : > { %v4287_v32 = vsel %vm4267_vm10, %v4262_v5, %v11696_v19  ;;  %v3716_v1 = vpop.permute.xlu1 %3715  ;;  %v4146_v21 = vsel %vm2284_vm1, %v11856_v57, %v16501_v58  ;;  %v4239_v19 = vsel %vm2388_vm7, %v4215_v55, %v11510_v48  ;;  %v4240_v50 = vsel %vm2388_vm7, %v4216_v45, %v11512_v13  ;;  %v16503_v38 = vld [vmem:[#allocation148_spill] sm:$0xff]  ;;  %v16505_v5 = vld [vmem:[#allocation285_spill] sm:$0xff] }
 0x50f   : > { %v3718_v33 = vpop.permute.xlu0 %3717  ;;  %v11912_v54 = vsel %vm4292_vm4, %v4286_v62, %v3716_v1  ;;  %v16504_v49 = vld [vmem:[#allocation284_spill] sm:$0xff]  ;;  %v4170_v62 = vsel %vm2310_vm11, %v4146_v21, %v16505_v5  ;;  %v4264_v1 = vsel %vm2500_vm3, %v4240_v50, %v11608_v14  ;;  %v16507_v58 = vld [vmem:[#allocation321_spill] sm:$0xff] }
 0x510   : > { %v11915_v35 = vsel %vm4292_vm4, %v4287_v32, %v3718_v33  ;;  %3915 = vrot.lane.b32.xlu1 %v16502_v42, %s7730_s25  ;;  %v4169_v33 = vsel %vm2310_vm11, %v4145_v30, %v16504_v49  ;;  %v4263_v32 = vsel %vm2500_vm3, %v4239_v19, %v11606_v26  ;;  %v16506_v55 = vld [vmem:[#allocation320_spill] sm:$0xff]  ;;  %v4194_v42 = vsel %vm2336_vm6, %v4170_v62, %v16507_v58  ;;  %v16509_v62 = vld [vmem:[#allocation161_spill] sm:$0xff] }
 0x511   : > { %3917 = vrot.lane.b32.xlu0 %v16503_v38, %s7730_s25  ;;  %v4193_v45 = vsel %vm2336_vm6, %v4169_v33, %v16506_v55  ;;  %v4288_v38 = vsel %vm4267_vm10, %v4263_v32, %v11702_v31  ;;  %v4289_v30 = vsel %vm4267_vm10, %v4264_v1, %v11704_v39  ;;  %v4218_v14 = vsel %vm2362_vm13, %v4194_v42, %v11424_v61  ;;  %v16508_v33 = vld [vmem:[#allocation154_spill] sm:$0xff] }
 0x512   : > { %v3720_v13 = vpop.permute.xlu1 %3719  ;;  %v4217_v26 = vsel %vm2362_vm13, %v4193_v45, %v11422_v27  ;;  %v4242_v39 = vsel %vm2388_vm7, %v4218_v14, %v11520_v22  ;;  %v16515_v14 = vld [vmem:[#allocation174_spill] sm:$0xff] }
 0x513   : > { %v3722_v21 = vpop.permute.xlu0 %3721  ;;  %v11949_v19 = vsel %vm4292_vm4, %v4288_v38, %v3720_v13  ;;  %v4241_v31 = vsel %vm2388_vm7, %v4217_v26, %v11518_v41  ;;  %v4266_v13 = vsel %vm2500_vm3, %v4242_v39, %v11616_v0  ;;  %v16510_v26 = vld [vmem:[#allocation145_spill] sm:$0xff] }
 0x514   : > { %v11952_v50 = vsel %vm4292_vm4, %v4289_v30, %v3722_v21  ;;  %3919 = vrot.lane.b32.xlu1 %v16508_v33, %s7730_s25  ;;  %v4265_v32 = vsel %vm2500_vm3, %v4241_v31, %v11614_v25  ;;  %v4291_v45 = vsel %vm4267_vm10, %v4266_v13, %v11712_v3  ;;  %v16511_v25 = vld [vmem:[#allocation151_spill] sm:$0xff]  ;;  %v16518_v33 = vld [vmem:[#allocation165_spill] sm:$0xff] }
 0x515   : > { %3921 = vrot.lane.b32.xlu0 %v16509_v62, %s7730_s25  ;;  %v4290_v1 = vsel %vm4267_vm10, %v4265_v32, %v11710_v46  ;;  %v16514_v3 = vld [vmem:[#allocation159_spill] sm:$0xff]  ;;  %v16672_v41 = vld [vmem:[#allocation217_spill] sm:$0xff] }
 0x516   : > { %v3724_v42 = vpop.permute.xlu1 %3723  ;;  %v16519_v62 = vld [vmem:[#allocation167_spill] sm:$0xff] }
 0x517   : > { %v3726_v38 = vpop.permute.xlu0 %3725  ;;  %v11971_v30 = vsel %vm4292_vm4, %v4290_v1, %v3724_v42  ;;  %v16522_v1 = vld [vmem:[#allocation176_spill] sm:$0xff] }
 0x518   : > { %v11974_v21 = vsel %vm4292_vm4, %v4291_v45, %v3726_v38  ;;  %3923 = vrot.lane.b32.xlu1 %v16510_v26, %s7730_s25  ;;  %v16525_v38 = vld [vmem:[#allocation181_spill] sm:$0xff]  ;;  %v16526_v26 = vld [vmem:[#allocation192_spill] sm:$0xff] }
 0x519   : > { %3925 = vrot.lane.b32.xlu0 %v16511_v25, %s7730_s25 }
 0x51a   : > { %v11980_v0 = vpop.permute.xlu1 %3751 }
 0x51b   : > { %16512 = vst [vmem:[#allocation118_spill] sm:$0xff] %v11980_v0  ;;  %v11982_v46 = vpop.permute.xlu0 %3753  ;;  %v5113_v0 = vld [vmem:[%s15003_s6] sm:$0xff] }
 0x51c   : > { %16513 = vst [vmem:[#allocation197_spill] sm:$0xff] %v11982_v46  ;;  %3927 = vrot.lane.b32.xlu1 %v16514_v3, %s7730_s25 }
 0x51d   : > { %3929 = vrot.lane.b32.xlu0 %v16515_v14, %s7730_s25  ;;  %v3901_v14 = vrot.slane %v16358_v56, 4 }
 0x51e   : > { %v11988_v31 = vpop.permute.xlu1 %3755 }
 0x51f   : > { %16516 = vst [vmem:[#allocation124_spill] sm:$0xff] %v11988_v31  ;;  %v11990_v39 = vpop.permute.xlu0 %3757 }
 0x520   : > { %16517 = vst [vmem:[#allocation270_spill] sm:$0xff] %v11990_v39  ;;  %3931 = vrot.lane.b32.xlu1 %v16518_v33, %s7730_s25  ;;  %v16529_v33 = vld [vmem:[#allocation333_spill] sm:$0xff]  ;;  %v4529_v39 = vrot.slane %v16081_v34, 7 }
 0x521   : > { %3933 = vrot.lane.b32.xlu0 %v16519_v62, %s7730_s25 }
 0x522   : > { %v11996_v32 = vpop.permute.xlu1 %3759 }
 0x523   : > { %16520 = vst [vmem:[#allocation219_spill] sm:$0xff] %v11996_v32  ;;  %v11998_v13 = vpop.permute.xlu0 %3761  ;;  %v16558_v32 = vld [vmem:[#allocation163_spill] sm:$0xff] }
 0x524   : > { %16521 = vst [vmem:[#allocation221_spill] sm:$0xff] %v11998_v13  ;;  %3935 = vrot.lane.b32.xlu1 %v16522_v1, %s7730_s25  ;;  %v16532_v1 = vrot.slane %v16284_v23, 4  ;;  %v16557_v13 = vld [vmem:[#allocation157_spill] sm:$0xff] }
 0x525   : > { %3937 = vrot.lane.b32.xlu0 %v16327_v53, %s7730_s25 }
 0x526   : > { %v12004_v45 = vpop.permute.xlu1 %3763 }
 0x527   : > { %16523 = vst [vmem:[#allocation198_spill] sm:$0xff] %v12004_v45  ;;  %v12006_v42 = vpop.permute.xlu0 %3765 }
 0x528   : > { %16524 = vst [vmem:[#allocation127_spill] sm:$0xff] %v12006_v42  ;;  %3939 = vrot.lane.b32.xlu1 %v16525_v38, %s7730_s25  ;;  %v3902_v38 = vsel %vm16337_vm8, %v16532_v1, %v3901_v14  ;;  %vm15482_vm8 = vcmask 424960  }
 0x529   : > { %3941 = vrot.lane.b32.xlu0 %v16526_v26, %s7730_s25  ;;  %v3903_v26 = vrot.slane %v16359_v28, 4 }
 0x52a   : > { %v12012_v25 = vpop.permute.xlu1 %3767 }
 0x52b   : > { %16527 = vst [vmem:[#allocation201_spill] sm:$0xff] %v12012_v25  ;;  %v12014_v3 = vpop.permute.xlu0 %3769 }
 0x52c   : > { %16528 = vst [vmem:[#allocation129_spill] sm:$0xff] %v12014_v3  ;;  %3943 = vrot.lane.b32.xlu1 %v16529_v33, %s7730_s25  ;;  %v3905_v3 = vrot.slane %v16453_v36, 4 }
 0x52d   : > { %3945 = vrot.lane.b32.xlu0 %v11379_v12, %s7730_s25 }
 0x52e   : > { %v12021_v53 = vpop.permute.xlu1 %3771 }
 0x52f   : > { %16530 = vst [vmem:[#allocation230_spill] sm:$0xff] %v12021_v53  ;;  %v12023_v62 = vpop.permute.xlu0 %3773  ;;  %v3904_v53 = vsel %vm16535_vm15, %v3901_v14, %v3903_v26  ;;  %vm15481_vm15 = vcmask 457728  }
 0x530   : > { %16531 = vst [vmem:[#allocation220_spill] sm:$0xff] %v12023_v62  ;;  %3947 = vrot.lane.b32.xlu1 %v11384_v10, %s7730_s25  ;;  %v3906_v62 = vsel %vm16536_vm0, %v3903_v26, %v3905_v3  ;;  %vm4317_vm0 = vcmask 392192  }
 0x531   : > { %3949 = vrot.lane.b32.xlu0 %v3902_v38, %s7730_s25 }
 0x532   : > { %v12033_v33 = vpop.permute.xlu1 %3775 }
 0x533   : > { %16533 = vst [vmem:[#allocation224_spill] sm:$0xff] %v12033_v33  ;;  %v12035_v12 = vpop.permute.xlu0 %3777  ;;  %v16554_v33 = vld [vmem:[#allocation147_spill] sm:$0xff] }
 0x534   : > { %16534 = vst [vmem:[#allocation239_spill] sm:$0xff] %v12035_v12  ;;  %3951 = vrot.lane.b32.xlu1 %v3904_v53, %s7730_s25  ;;  %v16553_v12 = vld [vmem:[#allocation141_spill] sm:$0xff] }
 0x535   : > { %3953 = vrot.lane.b32.xlu0 %v3906_v62, %s7730_s25 }
 0x536   : > { %v12041_v1 = vpop.permute.xlu1 %3779 }
 0x537   : > { %16537 = vst [vmem:[#allocation71_spill] sm:$0xff] %v12041_v1  ;;  %v12043_v25 = vpop.permute.xlu0 %3781 }
 0x538   : > { %16538 = vst [vmem:[#allocation143_spill] sm:$0xff] %v12043_v25  ;;  %3979 = vrot.lane.b32.xlu1 %v16065_v43, %s15462_s12 }
 0x539   : > { %3981 = vrot.lane.b32.xlu0 %v16066_v59, %s15462_s12 }
 0x53a   : > { %v12049_v10 = vpop.permute.xlu1 %3783 }
 0x53b   : > { %16539 = vst [vmem:[#allocation130_spill] sm:$0xff] %v12049_v10  ;;  %v12051_v14 = vpop.permute.xlu0 %3785  ;;  %v16550_v10 = vld [vmem:[#allocation132_spill] sm:$0xff] }
 0x53c   : > { %16540 = vst [vmem:[#allocation276_spill] sm:$0xff] %v12051_v14  ;;  %3983 = vrot.lane.b32.xlu1 %v16073_v6, %s15462_s12  ;;  %v16545_v14 = vld [vmem:[#allocation106_spill] sm:$0xff] }
 0x53d   : > { %3985 = vrot.lane.b32.xlu0 %v16074_v4, %s15462_s12 }
 0x53e   : > { %v3788_v3 = vpop.permute.xlu1 %3787 }
 0x53f   : > { %v3790_v53 = vpop.permute.xlu0 %3789  ;;  %v12059_v62 = vsel %vm4317_vm0, %v11912_v54, %v3788_v3  ;;  %v16541_v3 = vld [vmem:[#allocation66_spill] sm:$0xff] }
 0x540   : > { %v12063_v38 = vsel %vm4317_vm0, %v11915_v35, %v3790_v53  ;;  %3987 = vrot.lane.b32.xlu1 %v16080_v16, %s15462_s12 }
 0x541   : > { %3989 = vrot.lane.b32.xlu0 %v16081_v34, %s15462_s12 }
 0x542   : > { %v3792_v26 = vpop.permute.xlu1 %3791 }
 0x543   : > { %v3794_v6 = vpop.permute.xlu0 %3793  ;;  %v12071_v43 = vsel %vm4317_vm0, %v11949_v19, %v3792_v26 }
 0x544   : > { %v12075_v54 = vsel %vm4317_vm0, %v11952_v50, %v3794_v6  ;;  %3991 = vrot.lane.b32.xlu1 %v16541_v3, %s15462_s12  ;;  %v16542_v6 = vld [vmem:[#allocation98_spill] sm:$0xff] }
 0x545   : > { %3993 = vrot.lane.b32.xlu0 %v16089_v29, %s15462_s12 }
 0x546   : > { %v3796_v35 = vpop.permute.xlu1 %3795 }
 0x547   : > { %v3798_v53 = vpop.permute.xlu0 %3797  ;;  %v12083_v59 = vsel %vm4317_vm0, %v11971_v30, %v3796_v35  ;;  %v16546_v30 = vld [vmem:[#allocation114_spill] sm:$0xff] }
 0x548   : > { %v12087_v19 = vsel %vm4317_vm0, %v11974_v21, %v3798_v53  ;;  %3995 = vrot.lane.b32.xlu1 %v16095_v52, %s15462_s12  ;;  %v16549_v53 = vld [vmem:[#allocation123_spill] sm:$0xff] }
 0x549   : > { %3997 = vrot.lane.b32.xlu0 %v16542_v6, %s15462_s12 }
 0x54a   : > { %v12093_v50 = vpop.permute.xlu1 %3829 }
 0x54b   : > { %16543 = vst [vmem:[#allocation277_spill] sm:$0xff] %v12093_v50  ;;  %v12095_v26 = vpop.permute.xlu0 %3831 }
 0x54c   : > { %16544 = vst [vmem:[#allocation258_spill] sm:$0xff] %v12095_v26  ;;  %3999 = vrot.lane.b32.xlu1 %v16545_v14, %s15462_s12 }
 0x54d   : > { %4001 = vrot.lane.b32.xlu0 %v16546_v30, %s15462_s12 }
 0x54e   : > { %v12101_v35 = vpop.permute.xlu1 %3833 }
 0x54f   : > { %16547 = vst [vmem:[#allocation74_spill] sm:$0xff] %v12101_v35  ;;  %v12103_v21 = vpop.permute.xlu0 %3835  ;;  %v4527_v35 = vrot.slane %v16080_v16, 7 }
 0x550   : > { %16548 = vst [vmem:[#allocation135_spill] sm:$0xff] %v12103_v21  ;;  %4003 = vrot.lane.b32.xlu1 %v16549_v53, %s15462_s12 }
 0x551   : > { %4005 = vrot.lane.b32.xlu0 %v16550_v10, %s15462_s12 }
 0x552   : > { %v12109_v25 = vpop.permute.xlu1 %3837 }
 0x553   : > { %16551 = vst [vmem:[#allocation317_spill] sm:$0xff] %v12109_v25  ;;  %v12111_v1 = vpop.permute.xlu0 %3839 }
 0x554   : > { %16552 = vst [vmem:[#allocation246_spill] sm:$0xff] %v12111_v1  ;;  %4007 = vrot.lane.b32.xlu1 %v16553_v12, %s15462_s12  ;;  %v4526_v1 = vrot.slane %v16074_v4, 7  ;;  %v4533_v4 = vrot.slane %v16089_v29, 7 }
 0x555   : > { %4009 = vrot.lane.b32.xlu0 %v16554_v33, %s15462_s12 }
 0x556   : > { %v12117_v42 = vpop.permute.xlu1 %3841  ;;  %v4528_v31 = vsel %vm4525_vm5, %v4526_v1, %v4527_v35 }
 0x557   : > { %16555 = vst [vmem:[#allocation280_spill] sm:$0xff] %v12117_v42  ;;  %v12119_v45 = vpop.permute.xlu0 %3843 }
 0x558   : > { %16556 = vst [vmem:[#allocation281_spill] sm:$0xff] %v12119_v45  ;;  %4011 = vrot.lane.b32.xlu1 %v16557_v13, %s15462_s12 }
 0x559   : > { %4013 = vrot.lane.b32.xlu0 %v16558_v32, %s15462_s12 }
 0x55a   : > { %v12125_v21 = vpop.permute.xlu1 %3845 }
 0x55b   : > { %16559 = vst [vmem:[#allocation133_spill] sm:$0xff] %v12125_v21  ;;  %v12127_v25 = vpop.permute.xlu0 %3847  ;;  %v4530_v21 = vsel %vm4525_vm5, %v4527_v35, %v4529_v39  ;;  %v4537_v35 = vrot.slane %v16542_v6, 7 }
 0x55c   : > { %16560 = vst [vmem:[#allocation136_spill] sm:$0xff] %v12127_v25  ;;  %4015 = vrot.lane.b32.xlu1 %v16284_v23, %s15462_s12  ;;  %v4531_v25 = vrot.slane %v16541_v3, 7  ;;  %s17344_s12 = smov 24  }
 0x55d   : > { %4573 = vrot.lane.b32.xlu0 %v4526_v1, %s7719_s27  ;;  %v4535_v1 = vrot.slane %v16095_v52, 7 }
 0x55e   : > { %v12135_v45 = vpop.permute.xlu1 %3849 }
 0x55f   : > { %16561 = vst [vmem:[#allocation318_spill] sm:$0xff] %v12135_v45  ;;  %v12137_v42 = vpop.permute.xlu0 %3851  ;;  %v4532_v45 = vsel %vm4525_vm5, %v4529_v39, %v4531_v25  ;;  %v4538_v3 = vsel %vm4525_vm5, %v4535_v1, %v4537_v35  ;;  %v4539_v39 = vrot.slane %v16545_v14, 7  ;;  %v4547_v14 = vrot.slane %v16553_v12, 7 }
 0x560   : > { %16562 = vst [vmem:[#allocation319_spill] sm:$0xff] %v12137_v42  ;;  %4575 = vrot.lane.b32.xlu1 %v4528_v31, %s7719_s27  ;;  %v4534_v42 = vsel %vm4525_vm5, %v4531_v25, %v4533_v4  ;;  %v4541_v25 = vrot.slane %v16546_v30, 7 }
 0x561   : > { %4577 = vrot.lane.b32.xlu0 %v4530_v21, %s7719_s27  ;;  %v4536_v21 = vsel %vm4525_vm5, %v4533_v4, %v4535_v1  ;;  %v4540_v52 = vsel %vm4525_vm5, %v4537_v35, %v4539_v39  ;;  %v4545_v1 = vrot.slane %v16550_v10, 7 }
 0x562   : > { %v12145_v34 = vpop.permute.xlu1 %3853  ;;  %v4542_v4 = vsel %vm4525_vm5, %v4539_v39, %v4541_v25 }
 0x563   : > { %16563 = vst [vmem:[#allocation88_spill] sm:$0xff] %v12145_v34  ;;  %v12147_v16 = vpop.permute.xlu0 %3855  ;;  %v4548_v12 = vsel %vm4525_vm5, %v4545_v1, %v4547_v14 }
 0x564   : > { %16564 = vst [vmem:[#allocation142_spill] sm:$0xff] %v12147_v16  ;;  %4579 = vrot.lane.b32.xlu1 %v4532_v45, %s7719_s27 }
 0x565   : > { %4581 = vrot.lane.b32.xlu0 %v4534_v42, %s7719_s27  ;;  %v4543_v42 = vrot.slane %v16549_v53, 7 }
 0x566   : > { %v12155_v29 = vpop.permute.xlu1 %3857 }
 0x567   : > { %16565 = vst [vmem:[#allocation148_spill] sm:$0xff] %v12155_v29  ;;  %v12157_v31 = vpop.permute.xlu0 %3859  ;;  %v4546_v39 = vsel %vm4525_vm5, %v4543_v42, %v4545_v1  ;;  %v4559_v29 = vrot.slane %v16359_v28, 7 }
 0x568   : > { %16566 = vst [vmem:[#allocation284_spill] sm:$0xff] %v12157_v31  ;;  %4583 = vrot.lane.b32.xlu1 %v4536_v21, %s7719_s27 }
 0x569   : > { %4585 = vrot.lane.b32.xlu0 %v4538_v3, %s7719_s27  ;;  %v4544_v3 = vsel %vm4525_vm5, %v4541_v25, %v4543_v42  ;;  %v4551_v42 = vrot.slane %v16557_v13, 7 }
 0x56a   : > { %v12165_v6 = vpop.permute.xlu1 %3861 }
 0x56b   : > { %16567 = vst [vmem:[#allocation285_spill] sm:$0xff] %v12165_v6  ;;  %v12167_v45 = vpop.permute.xlu0 %3863 }
 0x56c   : > { %16568 = vst [vmem:[#allocation320_spill] sm:$0xff] %v12167_v45  ;;  %4587 = vrot.lane.b32.xlu1 %v4540_v52, %s7719_s27  ;;  %v4549_v52 = vrot.slane %v16554_v33, 7 }
 0x56d   : > { %4589 = vrot.lane.b32.xlu0 %v4542_v4, %s7719_s27 }
 0x56e   : > { %v3866_v21 = vpop.permute.xlu1 %3865 }
 0x56f   : > { %v3868_v30 = vpop.permute.xlu0 %3867  ;;  %v12179_v53 = vsel %vm15482_vm8, %v12059_v62, %v3866_v21 }
 0x570   : > { %v12183_v35 = vsel %vm15482_vm8, %v12063_v38, %v3868_v30  ;;  %4591 = vrot.lane.b32.xlu1 %v4544_v3, %s7719_s27  ;;  %v4550_v30 = vsel %vm4525_vm5, %v4547_v14, %v4549_v52  ;;  %v4553_v14 = vrot.slane %v16558_v32, 7 }
 0x571   : > { %4593 = vrot.lane.b32.xlu0 %v4546_v39, %s7719_s27 }
 0x572   : > { %v3870_v4 = vpop.permute.xlu1 %3869 }
 0x573   : > { %v3872_v25 = vpop.permute.xlu0 %3871  ;;  %v12192_v62 = vsel %vm15482_vm8, %v12071_v43, %v3870_v4  ;;  %v16571_v4 = vld [vmem:[#allocation162_spill] sm:$0xff] }
 0x574   : > { %v12196_v38 = vsel %vm15482_vm8, %v12075_v54, %v3872_v25  ;;  %4595 = vrot.lane.b32.xlu1 %v4548_v12, %s7719_s27  ;;  %v4552_v54 = vsel %vm4525_vm5, %v4549_v52, %v4551_v42  ;;  %v16574_v25 = vld [vmem:[#allocation169_spill] sm:$0xff] }
 0x575   : > { %4597 = vrot.lane.b32.xlu0 %v4550_v30, %s7719_s27 }
 0x576   : > { %v3874_v21 = vpop.permute.xlu1 %3873 }
 0x577   : > { %v3876_v3 = vpop.permute.xlu0 %3875  ;;  %v12204_v1 = vsel %vm15482_vm8, %v12083_v59, %v3874_v21  ;;  %v4554_v59 = vsel %vm4525_vm5, %v4551_v42, %v4553_v14  ;;  %v4555_v42 = vrot.slane %v16284_v23, 7 }
 0x578   : > { %v12208_v43 = vsel %vm15482_vm8, %v12087_v19, %v3876_v3  ;;  %4599 = vrot.lane.b32.xlu1 %v4552_v54, %s7719_s27  ;;  %v16577_v3 = vld [vmem:[#allocation166_spill] sm:$0xff]  ;;  %v16578_v54 = vld [vmem:[#allocation172_spill] sm:$0xff] }
 0x579   : > { %4417 = vrot.lane.b32.xlu0 %v16554_v33, %s7725_s23 }
 0x57a   : > { %v12215_v12 = vpop.permute.xlu1 %3907 }
 0x57b   : > { %16569 = vst [vmem:[#allocation321_spill] sm:$0xff] %v12215_v12  ;;  %v12217_v39 = vpop.permute.xlu0 %3909 }
 0x57c   : > { %16570 = vst [vmem:[#allocation154_spill] sm:$0xff] %v12217_v39  ;;  %4447 = vrot.lane.b32.xlu1 %v16571_v4, %s7717_s24 }
 0x57d   : > { %4601 = vrot.lane.b32.xlu0 %v4554_v59, %s7719_s27 }
 0x57e   : > { %v12223_v19 = vpop.permute.xlu1 %3911 }
 0x57f   : > { %16572 = vst [vmem:[#allocation161_spill] sm:$0xff] %v12223_v19  ;;  %v12225_v52 = vpop.permute.xlu0 %3913  ;;  %v16637_v19 = vld [vmem:[#allocation4_spill] sm:$0xff] }
 0x580   : > { %16573 = vst [vmem:[#allocation145_spill] sm:$0xff] %v12225_v52  ;;  %4419 = vrot.lane.b32.xlu1 %v16557_v13, %s7725_s23  ;;  %v4556_v13 = vsel %vm4525_vm5, %v4553_v14, %v4555_v42 }
 0x581   : > { %4449 = vrot.lane.b32.xlu0 %v16574_v25, %s7717_s24  ;;  %v4557_v25 = vrot.slane %v16358_v56, 7 }
 0x582   : > { %v12231_v30 = vpop.permute.xlu1 %3915 }
 0x583   : > { %16575 = vst [vmem:[#allocation151_spill] sm:$0xff] %v12231_v30  ;;  %v12233_v21 = vpop.permute.xlu0 %3917 }
 0x584   : > { %16576 = vst [vmem:[#allocation159_spill] sm:$0xff] %v12233_v21  ;;  %4477 = vrot.lane.b32.xlu1 %v16577_v3, %s7718_s26  ;;  %v4558_v3 = vsel %vm4525_vm5, %v4555_v42, %v4557_v25  ;;  %v16588_v42 = vld [vmem:[#allocation190_spill] sm:$0xff] }
 0x585   : > { %4479 = vrot.lane.b32.xlu0 %v16578_v54, %s7718_s26  ;;  %v16583_v54 = vld [vmem:[#allocation178_spill] sm:$0xff] }
 0x586   : > { %v12240_v59 = vpop.permute.xlu1 %3919 }
 0x587   : > { %16579 = vst [vmem:[#allocation174_spill] sm:$0xff] %v12240_v59  ;;  %v12242_v4 = vpop.permute.xlu0 %3921 }
 0x588   : > { %16580 = vst [vmem:[#allocation165_spill] sm:$0xff] %v12242_v4  ;;  %4603 = vrot.lane.b32.xlu1 %v4556_v13, %s7719_s27  ;;  %v16633_v4 = vld [vmem:[#allocation209_spill] sm:$0xff] }
 0x589   : > { %4421 = vrot.lane.b32.xlu0 %v16558_v32, %s7725_s23  ;;  %v4567_v59 = vrot.slane %v16633_v4, 7  ;;  %v12476_v12 = vrot.slane %v16633_v4, 3 }
 0x58a   : > { %v12249_v33 = vpop.permute.xlu1 %3923 }
 0x58b   : > { %16581 = vst [vmem:[#allocation167_spill] sm:$0xff] %v12249_v33  ;;  %v12251_v10 = vpop.permute.xlu0 %3925  ;;  %16640 = vst [vmem:[#allocation209_spill] sm:$0xff] %v12476_v12 }
 0x58c   : > { %16582 = vst [vmem:[#allocation176_spill] sm:$0xff] %v12251_v10  ;;  %4451 = vrot.lane.b32.xlu1 %v16583_v54, %s7717_s24  ;;  %v16589_v54 = vld [vmem:[#allocation183_spill] sm:$0xff]  ;;  %v16623_v10 = vld [vmem:[#allocation394_spill] sm:$0xff] }
 0x58d   : > { %4605 = vrot.lane.b32.xlu0 %v4558_v3, %s7719_s27 }
 0x58e   : > { %v12257_v45 = vpop.permute.xlu1 %3927 }
 0x58f   : > { %16584 = vst [vmem:[#allocation181_spill] sm:$0xff] %v12257_v45  ;;  %v12259_v14 = vpop.permute.xlu0 %3929 }
 0x590   : > { %16585 = vst [vmem:[#allocation192_spill] sm:$0xff] %v12259_v14  ;;  %4649 = vrot.lane.b32.xlu1 %v16284_v23, %s7720_s28 }
 0x591   : > { %4423 = vrot.lane.b32.xlu0 %v16284_v23, %s7725_s23 }
 0x592   : > { %v12265_v13 = vpop.permute.xlu1 %3931 }
 0x593   : > { %16586 = vst [vmem:[#allocation333_spill] sm:$0xff] %v12265_v13  ;;  %v12267_v32 = vpop.permute.xlu0 %3933 }
 0x594   : > { %16587 = vst [vmem:[#allocation162_spill] sm:$0xff] %v12267_v32  ;;  %4453 = vrot.lane.b32.xlu1 %v16588_v42, %s7717_s24  ;;  %v16594_v32 = vld [vmem:[#allocation186_spill] sm:$0xff] }
 0x595   : > { %4481 = vrot.lane.b32.xlu0 %v16589_v54, %s7718_s26  ;;  %v16595_v54 = vld [vmem:[#allocation195_spill] sm:$0xff] }
 0x596   : > { %v12273_v3 = vpop.permute.xlu1 %3935 }
 0x597   : > { %16590 = vst [vmem:[#allocation169_spill] sm:$0xff] %v12273_v3  ;;  %v12275_v6 = vpop.permute.xlu0 %3937 }
 0x598   : > { %16591 = vst [vmem:[#allocation166_spill] sm:$0xff] %v12275_v6  ;;  %4651 = vrot.lane.b32.xlu1 %v16358_v56, %s7720_s28 }
 0x599   : > { %4685 = vrot.lane.b32.xlu0 %v16588_v42, %s7721_s29 }
 0x59a   : > { %v12281_v23 = vpop.permute.xlu1 %3939 }
 0x59b   : > { %16592 = vst [vmem:[#allocation172_spill] sm:$0xff] %v12281_v23  ;;  %v12283_v31 = vpop.permute.xlu0 %3941 }
 0x59c   : > { %16593 = vst [vmem:[#allocation178_spill] sm:$0xff] %v12283_v31  ;;  %4483 = vrot.lane.b32.xlu1 %v16594_v32, %s7718_s26  ;;  %v4560_v31 = vsel %vm4525_vm5, %v4557_v25, %v4559_v29 }
 0x59d   : > { %4687 = vrot.lane.b32.xlu0 %v16595_v54, %s7721_s29 }
 0x59e   : > { %v3944_v6 = vpop.permute.xlu1 %3943 }
 0x59f   : > { %v3946_v3 = vpop.permute.xlu0 %3945  ;;  %v12292_v13 = vsel %vm15481_vm15, %v12179_v53, %v3944_v6  ;;  %v16600_v53 = vld [vmem:[#allocation194_spill] sm:$0xff] }
 0x5a0   : > { %16596 = vst [vmem:[#allocation190_spill] sm:$0xff] %v12292_v13  ;;  %v12296_v42 = vsel %vm15481_vm15, %v12183_v35, %v3946_v3  ;;  %4721 = vrot.lane.b32.xlu1 %v16594_v32, %s7722_s30  ;;  %v16601_v35 = vld [vmem:[#allocation390_spill] sm:$0xff] }
 0x5a1   : > { %16597 = vst [vmem:[#allocation183_spill] sm:$0xff] %v12296_v42  ;;  %4607 = vrot.lane.b32.xlu0 %v4560_v31, %s7719_s27  ;;  %v16616_v42 = vld [vmem:[#allocation200_spill] sm:$0xff] }
 0x5a2   : > { %v3948_v23 = vpop.permute.xlu1 %3947 }
 0x5a3   : > { %v3950_v16 = vpop.permute.xlu0 %3949  ;;  %v12304_v34 = vsel %vm15481_vm15, %v12192_v62, %v3948_v23  ;;  %v4561_v62 = vrot.slane %v16453_v36, 7 }
 0x5a4   : > { %16598 = vst [vmem:[#allocation186_spill] sm:$0xff] %v12304_v34  ;;  %v12308_v6 = vsel %vm15481_vm15, %v12196_v38, %v3950_v16  ;;  %4723 = vrot.lane.b32.xlu1 %v16600_v53, %s7722_s30 }
 0x5a5   : > { %16599 = vst [vmem:[#allocation195_spill] sm:$0xff] %v12308_v6  ;;  %4757 = vrot.lane.b32.xlu0 %v16601_v35, %s7723_s21  ;;  %v4562_v3 = vsel %vm4525_vm5, %v4559_v29, %v4561_v62  ;;  %v16610_v29 = vld [vmem:[#allocation203_spill] sm:$0xff] }
 0x5a6   : > { %v3952_v25 = vpop.permute.xlu1 %3951  ;;  %v16615_v6 = vld [vmem:[#allocation207_spill] sm:$0xff] }
 0x5a7   : > { %v3954_v32 = vpop.permute.xlu0 %3953  ;;  %v12316_v31 = vsel %vm15481_vm15, %v12204_v1, %v3952_v25  ;;  %v4563_v34 = vrot.slane %v16615_v6, 7 }
 0x5a8   : > { %16602 = vst [vmem:[#allocation194_spill] sm:$0xff] %v12316_v31  ;;  %v12320_v23 = vsel %vm15481_vm15, %v12208_v43, %v3954_v32  ;;  %4425 = vrot.lane.b32.xlu1 %v16358_v56, %s7725_s23  ;;  %v16655_v56 = vld [vmem:[#allocation105_spill] sm:$0xff] }
 0x5a9   : > { %16603 = vst [vmem:[#allocation395_spill] sm:$0xff] %v12320_v23  ;;  %4455 = vrot.lane.b32.xlu0 %v16595_v54, %s7717_s24  ;;  %v4564_v45 = vsel %vm4525_vm5, %v4561_v62, %v4563_v34  ;;  %v16626_v62 = vld [vmem:[#allocation208_spill] sm:$0xff] }
 0x5aa   : > { %v12327_v16 = vpop.permute.xlu1 %3979  ;;  %v4565_v33 = vrot.slane %v16626_v62, 7 }
 0x5ab   : > { %16604 = vst [vmem:[#allocation396_spill] sm:$0xff] %v12327_v16  ;;  %v12329_v38 = vpop.permute.xlu0 %3981 }
 0x5ac   : > { %16605 = vst [vmem:[#allocation397_spill] sm:$0xff] %v12329_v38  ;;  %4609 = vrot.lane.b32.xlu1 %v4562_v3, %s7719_s27  ;;  %v4568_v30 = vsel %vm4525_vm5, %v4565_v33, %v4567_v59 }
 0x5ad   : > { %4653 = vrot.lane.b32.xlu0 %v16359_v28, %s7720_s28 }
 0x5ae   : > { %v12335_v1 = vpop.permute.xlu1 %3983 }
 0x5af   : > { %16606 = vst [vmem:[#allocation398_spill] sm:$0xff] %v12335_v1  ;;  %v12337_v43 = vpop.permute.xlu0 %3985 }
 0x5b0   : > { %16607 = vst [vmem:[#allocation399_spill] sm:$0xff] %v12337_v43  ;;  %4759 = vrot.lane.b32.xlu1 %v11779_v8, %s7723_s21  ;;  %v16654_v8 = vld [vmem:[#allocation170_spill] sm:$0xff] }
 0x5b1   : > { %4427 = vrot.lane.b32.xlu0 %v16359_v28, %s7725_s23  ;;  %v4061_v35 = vsel %vm15484_vm2, %v16655_v56, %v16654_v8  ;;  %v16664_v56 = vld [vmem:[#allocation112_spill] sm:$0xff] }
 0x5b2   : > { %v12343_v54 = vpop.permute.xlu1 %3987 }
 0x5b3   : > { %16608 = vst [vmem:[#allocation400_spill] sm:$0xff] %v12343_v54  ;;  %v12345_v25 = vpop.permute.xlu0 %3989 }
 0x5b4   : > { %16609 = vst [vmem:[#allocation401_spill] sm:$0xff] %v12345_v25  ;;  %4457 = vrot.lane.b32.xlu1 %v16610_v29, %s7717_s24  ;;  %v16634_v25 = vld [vmem:[#allocation255_spill] sm:$0xff] }
 0x5b5   : > { %4485 = vrot.lane.b32.xlu0 %v16600_v53, %s7718_s26  ;;  %v16617_v53 = vld [vmem:[#allocation227_spill] sm:$0xff] }
 0x5b6   : > { %v12351_v32 = vpop.permute.xlu1 %3991 }
 0x5b7   : > { %16611 = vst [vmem:[#allocation203_spill] sm:$0xff] %v12351_v32  ;;  %v12353_v3 = vpop.permute.xlu0 %3993 }
 0x5b8   : > { %16612 = vst [vmem:[#allocation402_spill] sm:$0xff] %v12353_v3  ;;  %4655 = vrot.lane.b32.xlu1 %v16453_v36, %s7720_s28  ;;  %v16630_v3 = vrot.slane %v16453_v36, 3 }
 0x5b9   : > { %4689 = vrot.lane.b32.xlu0 %v16610_v29, %s7721_s29 }
 0x5ba   : > { %v12359_v23 = vpop.permute.xlu1 %3995 }
 0x5bb   : > { %16613 = vst [vmem:[#allocation403_spill] sm:$0xff] %v12359_v23  ;;  %v12361_v31 = vpop.permute.xlu0 %3997  ;;  %v16622_v23 = vld [vmem:[#allocation254_spill] sm:$0xff] }
 0x5bc   : > { %16614 = vst [vmem:[#allocation404_spill] sm:$0xff] %v12361_v31  ;;  %4487 = vrot.lane.b32.xlu1 %v16616_v42, %s7718_s26 }
 0x5bd   : > { %4691 = vrot.lane.b32.xlu0 %v16617_v53, %s7721_s29 }
 0x5be   : > { %v12368_v13 = vpop.permute.xlu1 %3999 }
 0x5bf   : > { %16618 = vst [vmem:[#allocation200_spill] sm:$0xff] %v12368_v13  ;;  %v12370_v14 = vpop.permute.xlu0 %4001 }
 0x5c0   : > { %16619 = vst [vmem:[#allocation227_spill] sm:$0xff] %v12370_v14  ;;  %4725 = vrot.lane.b32.xlu1 %v16616_v42, %s7722_s30 }
 0x5c1   : > { %4611 = vrot.lane.b32.xlu0 %v4564_v45, %s7719_s27 }
 0x5c2   : > { %v12376_v29 = vpop.permute.xlu1 %4003 }
 0x5c3   : > { %16620 = vst [vmem:[#allocation405_spill] sm:$0xff] %v12376_v29  ;;  %v12378_v31 = vpop.permute.xlu0 %4005  ;;  %v4507_v29 = vrot.slane %v16615_v6, 3 }
 0x5c4   : > { %16621 = vst [vmem:[#allocation406_spill] sm:$0xff] %v12378_v31  ;;  %4727 = vrot.lane.b32.xlu1 %v16622_v23, %s7722_s30  ;;  %v4566_v31 = vsel %vm4525_vm5, %v4563_v34, %v4565_v33 }
 0x5c5   : > { %4761 = vrot.lane.b32.xlu0 %v16623_v10, %s7723_s21  ;;  %v5117_v10 = vld [vmem:[%s15003_s6 + $0x20] sm:$0xff] }
 0x5c6   : > { %v12384_v13 = vpop.permute.xlu1 %4007 }
 0x5c7   : > { %16624 = vst [vmem:[#allocation254_spill] sm:$0xff] %v12384_v13  ;;  %v12386_v14 = vpop.permute.xlu0 %4009 }
 0x5c8   : > { %16625 = vst [vmem:[#allocation407_spill] sm:$0xff] %v12386_v14  ;;  %4429 = vrot.lane.b32.xlu1 %v16453_v36, %s7725_s23 }
 0x5c9   : > { %4459 = vrot.lane.b32.xlu0 %v16617_v53, %s7717_s24  ;;  %v12409_v53 = vsel %vm3040_vm9, %v16630_v3, %v4507_v29 }
 0x5ca   : > { %v12393_v45 = vpop.permute.xlu1 %4011  ;;  %16631 = vst [vmem:[#allocation411_spill] sm:$0xff] %v12409_v53 }
 0x5cb   : > { %16627 = vst [vmem:[#allocation408_spill] sm:$0xff] %v12393_v45  ;;  %v12395_v42 = vpop.permute.xlu0 %4013 }
 0x5cc   : > { %16628 = vst [vmem:[#allocation409_spill] sm:$0xff] %v12395_v42  ;;  %4613 = vrot.lane.b32.xlu1 %v4566_v31, %s7719_s27  ;;  %v16632_v42 = vld [vmem:[#allocation231_spill] sm:$0xff] }
 0x5cd   : > { %4657 = vrot.lane.b32.xlu0 %v16615_v6, %s7720_s28 }
 0x5ce   : > { %v12402_v14 = vpop.permute.xlu1 %4015 }
 0x5cf   : > { %16629 = vst [vmem:[#allocation410_spill] sm:$0xff] %v12402_v14  ;;  %v12404_v13 = vpop.permute.xlu0 %4573 }
 0x5d0   : > { %4763 = vrot.lane.b32.xlu1 %v12409_v53, %s7723_s21  ;;  %v16648_v53 = vld [vmem:[#allocation82_spill] sm:$0xff] }
 0x5d1   : > { %4431 = vrot.lane.b32.xlu0 %v16615_v6, %s7725_s23 }
 0x5d2   : > { %v12415_v34 = vpop.permute.xlu1 %4575 }
 0x5d3   : > { %v12417_v31 = vpop.permute.xlu0 %4577 }
 0x5d4   : > { %4461 = vrot.lane.b32.xlu1 %v16632_v42, %s7717_s24 }
 0x5d5   : > { %4489 = vrot.lane.b32.xlu0 %v16622_v23, %s7718_s26  ;;  %v16635_v23 = vld [vmem:[#allocation232_spill] sm:$0xff] }
 0x5d6   : > { %v12423_v14 = vpop.permute.xlu1 %4579 }
 0x5d7   : > { %v12425_v3 = vpop.permute.xlu0 %4581 }
 0x5d8   : > { %4659 = vrot.lane.b32.xlu1 %v16626_v62, %s7720_s28 }
 0x5d9   : > { %4693 = vrot.lane.b32.xlu0 %v16632_v42, %s7721_s29  ;;  %v4509_v42 = vrot.slane %v16626_v62, 3 }
 0x5da   : > { %v12431_v45 = vpop.permute.xlu1 %4583 }
 0x5db   : > { %v12433_v32 = vpop.permute.xlu0 %4585  ;;  %v12454_v52 = vsel %vm3040_vm9, %v4507_v29, %v4509_v42  ;;  %v16638_v29 = vld [vmem:[#allocation75_spill] sm:$0xff] }
 0x5dc   : > { %4491 = vrot.lane.b32.xlu1 %v16634_v25, %s7718_s26  ;;  %16636 = vst [vmem:[#allocation231_spill] sm:$0xff] %v12454_v52  ;;  %v16639_v16 = vrot.slane %v16638_v29, 7  ;;  %v16643_v46 = vrot.slane %v16638_v29, 1 }
 0x5dd   : > { %4695 = vrot.lane.b32.xlu0 %v16635_v23, %s7721_s29 }
 0x5de   : > { %v12440_v54 = vpop.permute.xlu1 %4587  ;;  %v4570_v39 = vsel %vm4525_vm5, %v4567_v59, %v16639_v16  ;;  %vm16644_vm5 = vcmask 1046528  }
 0x5df   : > { %v12442_v21 = vpop.permute.xlu0 %4589 }
 0x5e0   : > { %4729 = vrot.lane.b32.xlu1 %v16634_v25, %s7722_s30 }
 0x5e1   : > { %4615 = vrot.lane.b32.xlu0 %v4568_v30, %s7719_s27 }
 0x5e2   : > { %v12449_v43 = vpop.permute.xlu1 %4591 }
 0x5e3   : > { %v12451_v1 = vpop.permute.xlu0 %4593 }
 0x5e4   : > { %4731 = vrot.lane.b32.xlu1 %v16637_v19, %s7722_s30 }
 0x5e5   : > { %4765 = vrot.lane.b32.xlu0 %v12454_v52, %s7723_s21 }
 0x5e6   : > { %v12460_v33 = vpop.permute.xlu1 %4595 }
 0x5e7   : > { %v12462_v38 = vpop.permute.xlu0 %4597 }
 0x5e8   : > { %4433 = vrot.lane.b32.xlu1 %v16626_v62, %s7725_s23 }
 0x5e9   : > { %4463 = vrot.lane.b32.xlu0 %v16635_v23, %s7717_s24  ;;  %v12487_v23 = vsel %vm3040_vm9, %v4509_v42, %v12476_v12 }
 0x5ea   : > { %v12468_v30 = vpop.permute.xlu1 %4599  ;;  %16641 = vst [vmem:[#allocation255_spill] sm:$0xff] %v12487_v23 }
 0x5eb   : > { %v12470_v25 = vpop.permute.xlu0 %4417 }
 0x5ec   : > { %4617 = vrot.lane.b32.xlu1 %v4570_v39, %s7719_s27  ;;  %v16642_v39 = vld [vmem:[#allocation228_spill] sm:$0xff] }
 0x5ed   : > { %4661 = vrot.lane.b32.xlu0 %v16633_v4, %s7720_s28 }
 0x5ee   : > { %v12481_v26 = vpop.permute.xlu1 %4447 }
 0x5ef   : > { %v12483_v62 = vpop.permute.xlu0 %4601 }
 0x5f0   : > { %4767 = vrot.lane.b32.xlu1 %v12487_v23, %s7723_s21 }
 0x5f1   : > { %4435 = vrot.lane.b32.xlu0 %v16633_v4, %s7725_s23  ;;  %v4680_v4 = vsel %vm16644_vm5, %v16642_v39, %v16643_v46  ;;  %v5115_v46 = vld [vmem:[%s15003_s6 + $0x10] sm:$0xff]  ;;  %vm16652_vm5 = vcmask 1045504   ;;  %s16783_s23 = smov 48  }
 0x5f2   : > { %v12493_v59 = vpop.permute.xlu1 %4419 }
 0x5f3   : > { %v12495_v16 = vpop.permute.xlu0 %4449 }
 0x5f4   : > { %4465 = vrot.lane.b32.xlu1 %v16642_v39, %s7717_s24  ;;  %v5116_v39 = vld [vmem:[%s15003_s6 + $0x18] sm:$0xff] }
 0x5f5   : > { %4493 = vrot.lane.b32.xlu0 %v16637_v19, %s7718_s26  ;;  %v5114_v19 = vld [vmem:[%s15003_s6 + $0x8] sm:$0xff] }
 0x5f6   : > { %v12501_v50 = vpop.permute.xlu1 %4477  ;;  %v7528_v6 = vpack.c.bf16 %v5114_v19, %v5113_v0  ;;  %v7532_v0 = vpack.c.bf16 %v5116_v39, %v5115_v46  ;;  %v16653_v46 = vld [vmem:[#allocation83_spill] sm:$0xff] }
 0x5f7   : > { %v12503_v42 = vpop.permute.xlu0 %4479 }
 0x5f8   : > { %4663 = vrot.lane.b32.xlu1 %v16638_v29, %s7720_s28  ;;  %7529 = vmatprep.subr.bf16.mxu1 %v7528_v6 }
 0x5f9   : > { %4697 = vrot.lane.b32.xlu0 %v4680_v4, %s7721_s29  ;;  %7531 = vmatpush3.bf16.msra.mxu1 %v7528_v6  ;;  %v16647_v4 = vld [vmem:[#allocation256_spill] sm:$0xff]  ;;  %v16651_v6 = vrot.slane %v16638_v29, 2 }
 0x5fa   : > { %v12518_v23 = vpop.permute.xlu1 %4603  ;;  %7533 = vmatprep.subr.bf16.mxu1 %v7532_v0 }
 0x5fb   : > { %16645 = vst [vmem:[#allocation232_spill] sm:$0xff] %v12518_v23  ;;  %v12520_v52 = vpop.permute.xlu0 %4421  ;;  %v4716_v28 = vsel %vm16652_vm5, %v16647_v4, %v16651_v6  ;;  %v16658_v6 = vrot.slane %v16638_v29, 3  ;;  %v5119_v29 = vld [vmem:[%s15003_s6 + $0x30] sm:$0xff]  ;;  %vm16723_vm5 = vcmask 1043456  }
 0x5fc   : > { %16646 = vst [vmem:[#allocation4_spill] sm:$0xff] %v12520_v52  ;;  %4495 = vrot.lane.b32.xlu1 %v16647_v4, %s7718_s26  ;;  %s7555_s26 = smul.u32 48, %s17421_s14 }
 0x5fd   : > { %4699 = vrot.lane.b32.xlu0 %v16648_v53, %s7721_s29  ;;  %7535 = vmatpush3.bf16.msra.mxu1 %v7532_v0  ;;  %v5118_v53 = vld [vmem:[%s15003_s6 + $0x28] sm:$0xff]  ;;  %v4752_v52 = vsel %vm3040_vm9, %v12476_v12, %v16658_v6  ;;  %v16671_v12 = vld [vmem:[#allocation214_spill] sm:$0xff] }
 0x5fe   : > { %v12532_v19 = vpop.permute.xlu1 %4451  ;;  %v7536_v39 = vpack.c.bf16 %v5118_v53, %v5117_v10  ;;  %v16662_v10 = vld [vmem:[#allocation107_spill] sm:$0xff] }
 0x5ff   : > { %16649 = vst [vmem:[#allocation75_spill] sm:$0xff] %v12532_v19  ;;  %v12534_v36 = vpop.permute.xlu0 %4605  ;;  %v16659_v19 = vld [vmem:[#allocation160_spill] sm:$0xff]  ;;  %v16666_v6 = vld [vmem:[#allocation215_spill] sm:$0xff] }
 0x600   : > { %16650 = vst [vmem:[#allocation228_spill] sm:$0xff] %v12534_v36  ;;  %4733 = vrot.lane.b32.xlu1 %v4716_v28, %s7722_s30  ;;  %7537 = vmatprep.subr.bf16.mxu1 %v7536_v39  ;;  %v16660_v28 = vld [vmem:[#allocation116_spill] sm:$0xff] }
 0x601   : > { %4619 = vrot.lane.b32.xlu0 %v16653_v46, %s7719_s27  ;;  %v4060_v22 = vsel %vm15484_vm2, %v16660_v28, %v16659_v19  ;;  %v16661_v46 = vld [vmem:[#allocation175_spill] sm:$0xff]  ;;  %v16663_v36 = vld [vmem:[#allocation168_spill] sm:$0xff]  ;;  %7539 = vmatpush3.bf16.msra.mxu1 %v7536_v39  ;;  %v5120_v19 = vld [vmem:[%s15003_s6 + $0x38] sm:$0xff] }
 0x602   : > { %v12552_v4 = vpop.permute.xlu1 %4649  ;;  %v4062_v53 = vsel %vm15484_vm2, %v16662_v10, %v16661_v46  ;;  %v4063_v8 = vsel %vm15484_vm2, %v16664_v56, %v16663_v36  ;;  %v4084_v28 = vsel %vm15483_vm12, %v4060_v22, %v16666_v6  ;;  %v16667_v46 = vld [vmem:[#allocation211_spill] sm:$0xff]  ;;  %v16668_v36 = vld [vmem:[#allocation84_spill] sm:$0xff] }
 0x603   : > { %16656 = vst [vmem:[#allocation256_spill] sm:$0xff] %v12552_v4  ;;  %v12554_v0 = vpop.permute.xlu0 %4423  ;;  %v16665_v4 = vld [vmem:[#allocation218_spill] sm:$0xff]  ;;  %v4086_v10 = vsel %vm15483_vm12, %v4062_v53, %v16667_v46  ;;  %v16669_v39 = vld [vmem:[#allocation184_spill] sm:$0xff]  ;;  %v4087_v23 = vsel %vm15483_vm12, %v4063_v8, %v16671_v12  ;;  %v16673_v22 = vld [vmem:[#allocation283_spill] sm:$0xff] }
 0x604   : > { %16657 = vst [vmem:[#allocation82_spill] sm:$0xff] %v12554_v0  ;;  %v4085_v0 = vsel %vm15483_vm12, %v4061_v35, %v16665_v4  ;;  %4735 = vrot.lane.b32.xlu1 %v16668_v36, %s7722_s30  ;;  %v7540_v35 = vpack.c.bf16 %v5120_v19, %v5119_v29  ;;  %v16670_v4 = vld [vmem:[#allocation117_spill] sm:$0xff]  ;;  %v16678_v29 = vld [vmem:[#allocation110_spill] sm:$0xff] }
 0x605   : > { %4769 = vrot.lane.b32.xlu0 %v4752_v52, %s7723_s21  ;;  %v4064_v56 = vsel %vm15484_vm2, %v16670_v4, %v16669_v39  ;;  %v12593_v6 = vsel %vm2258_vm14, %v4085_v0, %v16673_v22  ;;  %v16677_v52 = vld [vmem:[#allocation177_spill] sm:$0xff]  ;;  %v16679_v36 = vld [vmem:[#allocation282_spill] sm:$0xff]  ;;  %v5122_v4 = vld [vmem:[%s15003_s6 + $0x48] sm:$0xff] }
 0x606   : > { %v4088_v61 = vsel %vm15483_vm12, %v4064_v56, %v16672_v41  ;;  %16674 = vst [vmem:[#allocation83_spill] sm:$0xff] %v12593_v6  ;;  %v12595_v53 = vpop.permute.xlu1 %4453  ;;  %7541 = vmatprep.subr.bf16.mxu1 %v7540_v35  ;;  %v4065_v19 = vsel %vm15484_vm2, %v16678_v29, %v16677_v52  ;;  %v12604_v39 = vsel %vm2258_vm14, %v4084_v28, %v16679_v36  ;;  %v16681_v12 = vld [vmem:[#allocation286_spill] sm:$0xff]  ;;  %v16683_v56 = vld [vmem:[#allocation287_spill] sm:$0xff]  ;;  %v16687_v52 = vld [vmem:[#allocation185_spill] sm:$0xff] }
 0x607   : > { %16675 = vst [vmem:[#allocation170_spill] sm:$0xff] %v12595_v53  ;;  %v12597_v46 = vpop.permute.xlu0 %4481  ;;  %16680 = vst [vmem:[#allocation160_spill] sm:$0xff] %v12604_v39  ;;  %v12608_v41 = vsel %vm2258_vm14, %v4086_v10, %v16681_v12  ;;  %v4818_v0 = vsel %vm2284_vm1, %v12593_v6, %v12415_v34  ;;  %7543 = vmatpush3.bf16.msra.mxu1 %v7540_v35  ;;  %v5121_v8 = vld [vmem:[%s15003_s6 + $0x40] sm:$0xff]  ;;  %v12621_v28 = vsel %vm2258_vm14, %v4087_v23, %v16683_v56  ;;  %v16688_v29 = vld [vmem:[#allocation120_spill] sm:$0xff] }
 0x608   : > { %16676 = vst [vmem:[#allocation105_spill] sm:$0xff] %v12597_v46  ;;  %16682 = vst [vmem:[#allocation116_spill] sm:$0xff] %v12608_v41  ;;  %v4819_v10 = vsel %vm2284_vm1, %v12608_v41, %v12417_v31  ;;  %v16685_v22 = vld [vmem:[#allocation78_spill] sm:$0xff]  ;;  %v7544_v35 = vpack.c.bf16 %v5122_v4, %v5121_v8  ;;  %v4066_v36 = vsel %vm15484_vm2, %v16688_v29, %v16687_v52  ;;  %v16692_v8 = vld [vmem:[#allocation216_spill] sm:$0xff] }
 0x609   : > { %16684 = vst [vmem:[#allocation175_spill] sm:$0xff] %v12621_v28  ;;  %v16686_v34 = vrot.slane %v16685_v22, 7  ;;  %4665 = vrot.lane.b32.xlu0 %v16685_v22, %s7720_s28  ;;  %v16689_v12 = vld [vmem:[#allocation290_spill] sm:$0xff]  ;;  %v4817_v31 = vsel %vm2284_vm1, %v12604_v39, %v12404_v13  ;;  %v4820_v56 = vsel %vm2284_vm1, %v12621_v28, %v12423_v14  ;;  %v4090_v4 = vsel %vm15483_vm12, %v4066_v36, %v16692_v8  ;;  %v16696_v14 = vld [vmem:[#allocation125_spill] sm:$0xff]  ;;  %v16707_v46 = vld [vmem:[#allocation307_spill] sm:$0xff] }
 0x60a   : > { %v12636_v23 = vsel %vm2258_vm14, %v4088_v61, %v16689_v12  ;;  %v16693_v41 = vld [vmem:[#allocation266_spill] sm:$0xff]  ;;  %v12653_v29 = vpop.permute.xlu1 %4651  ;;  %7545 = vmatprep.subr.bf16.mxu1 %v7544_v35  ;;  %v16695_v12 = vld [vmem:[#allocation188_spill] sm:$0xff]  ;;  %v16699_v8 = vld [vmem:[#allocation89_spill] sm:$0xff] }
 0x60b   : > { %4621 = vrot.lane.b32.xlu1 %v16686_v34, %s7719_s27  ;;  %16690 = vst [vmem:[#allocation107_spill] sm:$0xff] %v12636_v23  ;;  %v16691_v34 = vld [vmem:[#allocation222_spill] sm:$0xff]  ;;  %v4843_v52 = vsel %vm2310_vm11, %v4818_v0, %v16693_v41  ;;  %v4821_v61 = vsel %vm2284_vm1, %v12636_v23, %v12425_v3  ;;  %v12655_v13 = vpop.permute.xlu0 %4685  ;;  %v4067_v28 = vsel %vm15484_vm2, %v16696_v14, %v16695_v12  ;;  %v5123_v3 = vld [vmem:[%s15003_s6 + $0x50] sm:$0xff]  ;;  %v5124_v41 = vld [vmem:[%s15003_s6 + $0x58] sm:$0xff] }
 0x60c   : > { %v4089_v22 = vsel %vm15483_vm12, %v4065_v19, %v16691_v34  ;;  %16694 = vst [vmem:[#allocation168_spill] sm:$0xff] %v12655_v13  ;;  %v16697_v19 = vld [vmem:[#allocation196_spill] sm:$0xff]  ;;  %v16698_v34 = vld [vmem:[#allocation113_spill] sm:$0xff]  ;;  %v4844_v0 = vsel %vm2310_vm11, %v4819_v10, %v16699_v8  ;;  %7547 = vmatpush3.bf16.msra.mxu1 %v7544_v35  ;;  %v16703_v10 = vld [vmem:[#allocation87_spill] sm:$0xff]  ;;  %v7548_v35 = vpack.c.bf16 %v5124_v41, %v5123_v3 }
 0x60d   : > { %v4068_v36 = vsel %vm15484_vm2, %v16698_v34, %v16697_v19  ;;  %v16700_v23 = vld [vmem:[#allocation253_spill] sm:$0xff]  ;;  %v16701_v12 = vld [vmem:[#allocation40_spill] sm:$0xff]  ;;  %v16702_v19 = vld [vmem:[#allocation86_spill] sm:$0xff]  ;;  %4667 = vrot.lane.b32.xlu0 %v16703_v10, %s7720_s28 }
 0x60e   : > { %v4842_v6 = vsel %vm2310_vm11, %v4817_v31, %v16700_v23  ;;  %v4845_v14 = vsel %vm2310_vm11, %v4820_v56, %v16701_v12  ;;  %v16704_v34 = vld [vmem:[#allocation291_spill] sm:$0xff]  ;;  %v16705_v39 = vld [vmem:[#allocation294_spill] sm:$0xff]  ;;  %v4868_v31 = vsel %vm2336_vm6, %v4843_v52, %v16707_v46  ;;  %v16710_v13 = vld [vmem:[#allocation308_spill] sm:$0xff]  ;;  %7549 = vmatprep.subr.bf16.mxu1 %v7548_v35 }
 0x60f   : > { %4771 = vrot.lane.b32.xlu1 %v16702_v19, %s7723_s21  ;;  %v12681_v8 = vsel %vm2258_vm14, %v4089_v22, %v16704_v34  ;;  %v12685_v53 = vsel %vm2258_vm14, %v4090_v4, %v16705_v39  ;;  %v16708_v23 = vld [vmem:[#allocation46_spill] sm:$0xff]  ;;  %v16709_v12 = vld [vmem:[#allocation223_spill] sm:$0xff]  ;;  %v4869_v41 = vsel %vm2336_vm6, %v4844_v0, %v16710_v13  ;;  %v12701_v4 = vpop.permute.xlu1 %4483  ;;  %v12703_v52 = vpop.permute.xlu0 %4687  ;;  %v16715_v46 = vld [vmem:[#allocation312_spill] sm:$0xff] }
 0x610   : > { %16706 = vst [vmem:[#allocation112_spill] sm:$0xff] %v12685_v53  ;;  %v4846_v56 = vsel %vm2310_vm11, %v4821_v61, %v16708_v23  ;;  %v4091_v19 = vsel %vm15483_vm12, %v4067_v28, %v16709_v12  ;;  %v4822_v22 = vsel %vm2284_vm1, %v12681_v8, %v12431_v45  ;;  %v4823_v39 = vsel %vm2284_vm1, %v12685_v53, %v12433_v32  ;;  %v16711_v61 = vld [vmem:[#allocation269_spill] sm:$0xff]  ;;  %v16713_v0 = vld [vmem:[#allocation311_spill] sm:$0xff]  ;;  %v5125_v45 = vld [vmem:[%s15003_s6 + $0x60] sm:$0xf] }
 0x611   : > { %v4092_v3 = vsel %vm15483_vm12, %v4068_v36, %v16711_v61  ;;  %v16712_v28 = vld [vmem:[#allocation305_spill] sm:$0xff]  ;;  %v4870_v34 = vsel %vm2336_vm6, %v4845_v14, %v16713_v0  ;;  %7551 = vmatpush3.bf16.msra.mxu1 %v7548_v35  ;;  %v16714_v32 = vld [vmem:[#allocation182_spill] sm:$0xff]  ;;  %v4871_v23 = vsel %vm2336_vm6, %v4846_v56, %v16715_v46  ;;  %v16716_v36 = vrot.slane %v16703_v10, 1  ;;  %v16718_v61 = vld [vmem:[#allocation295_spill] sm:$0xff] }
 0x612   : > { %v4867_v12 = vsel %vm2336_vm6, %v4842_v6, %v16712_v28  ;;  %v4893_v13 = vsel %vm2362_vm13, %v4868_v31, %v16714_v32  ;;  %v16717_v6 = vld [vmem:[#allocation90_spill] sm:$0xff]  ;;  %v12725_v14 = vsel %vm2258_vm14, %v4091_v19, %v16718_v61  ;;  %v16720_v35 = vld [vmem:[#allocation332_spill] sm:$0xff]  ;;  %v16722_v32 = vld [vmem:[#allocation13_spill] sm:$0xff]  ;;  %7444 = vmatprep.subr.msk.mxu1 %vm16723_vm5, %v5125_v45 }
 0x613   : > { %4703 = vrot.lane.b32.xlu0 %v16716_v36, %s7721_s29  ;;  %4701 = vrot.lane.b32.xlu1 %v16717_v6, %s7721_s29  ;;  %16719 = vst [vmem:[#allocation218_spill] sm:$0xff] %v12725_v14  ;;  %v4894_v0 = vsel %vm2362_vm13, %v4869_v41, %v16720_v35  ;;  %v16721_v28 = vld [vmem:[#allocation14_spill] sm:$0xff]  ;;  %v4848_v56 = vsel %vm2310_vm11, %v4823_v39, %v16722_v32  ;;  %v16726_v6 = vld [vmem:[#allocation331_spill] sm:$0xff]  ;;  %v12747_v35 = vpop.permute.xlu0 %4607  ;;  %s7732_s29 = smov 64  }
 0x614   : > { %v4847_v31 = vsel %vm2310_vm11, %v4822_v22, %v16721_v28  ;;  %v16724_v46 = vld [vmem:[#allocation298_spill] sm:$0xff]  ;;  %v4892_v53 = vsel %vm2362_vm13, %v4867_v12, %v16726_v6  ;;  %v4824_v41 = vsel %vm2284_vm1, %v12725_v14, %v12440_v54  ;;  %v12745_v22 = vpop.permute.xlu1 %4721  ;;  %v16728_v39 = vld [vmem:[#allocation335_spill] sm:$0xff]  ;;  %v16731_v54 = vld [vmem:[#allocation316_spill] sm:$0xff]  ;;  %v16732_v28 = vrot.slane %v16703_v10, 2 }
 0x615   : > { %v12736_v36 = vsel %vm2258_vm14, %v4092_v3, %v16724_v46  ;;  %v16727_v19 = vld [vmem:[#allocation334_spill] sm:$0xff]  ;;  %v4896_v32 = vsel %vm2362_vm13, %v4871_v23, %v16728_v39  ;;  %v16729_v3 = vld [vmem:[#allocation351_spill] sm:$0xff]  ;;  %7445 = vmatpush3.msk.msra.mxu1 %vm16723_vm5, %v5125_v45  ;;  %v4873_v6 = vsel %vm2336_vm6, %v4848_v56, %v16731_v54  ;;  %v16734_v39 = vld [vmem:[#allocation352_spill] sm:$0xff]  ;;  %vm16749_vm5 = vcmask 1046528  }
 0x616   : > { %16725 = vst [vmem:[#allocation215_spill] sm:$0xff] %v12736_v36  ;;  %v4895_v61 = vsel %vm2362_vm13, %v4870_v34, %v16727_v19  ;;  %v4825_v46 = vsel %vm2284_vm1, %v12736_v36, %v12442_v21  ;;  %v4918_v12 = vsel %vm2388_vm7, %v4893_v13, %v16729_v3  ;;  %v16730_v34 = vld [vmem:[#allocation315_spill] sm:$0xff]  ;;  %v4919_v21 = vsel %vm2388_vm7, %v4894_v0, %v16734_v39  ;;  %v16735_v36 = vld [vmem:[#allocation25_spill] sm:$0xff]  ;;  %v16736_v45 = vld [vmem:[#allocation350_spill] sm:$0xff] }
 0x617   : > { %v4872_v19 = vsel %vm2336_vm6, %v4847_v31, %v16730_v34  ;;  %4739 = vrot.lane.b32.xlu0 %v16732_v28, %s7722_s30  ;;  %v16733_v23 = vld [vmem:[#allocation91_spill] sm:$0xff]  ;;  %v4849_v13 = vsel %vm2310_vm11, %v4824_v41, %v16735_v36  ;;  %v4917_v3 = vsel %vm2388_vm7, %v4892_v53, %v16736_v45  ;;  %v16737_v31 = vld [vmem:[#allocation353_spill] sm:$0xff]  ;;  %v16738_v56 = vld [vmem:[#allocation32_spill] sm:$0xff]  ;;  %v4826_v28 = vsel %vm2284_vm1, %v11826_v51, %v12449_v43  ;;  %v12784_v41 = vpop.permute.xlu0 %4757 }
 0x618   : > { %4737 = vrot.lane.b32.xlu1 %v16733_v23, %s7722_s30  ;;  %v4920_v34 = vsel %vm2388_vm7, %v4895_v61, %v16737_v31  ;;  %v4850_v54 = vsel %vm2310_vm11, %v4825_v46, %v16738_v56  ;;  %v4827_v0 = vsel %vm2284_vm1, %v11830_v15, %v12451_v1  ;;  %v12782_v23 = vpop.permute.xlu1 %4723  ;;  %v16739_v39 = vld [vmem:[#allocation354_spill] sm:$0xff]  ;;  %v16740_v45 = vld [vmem:[#allocation336_spill] sm:$0xff]  ;;  %v16741_v31 = vld [vmem:[#allocation337_spill] sm:$0xff]  ;;  %v4968_v56 = vrot.slane %v4918_v12, 1 }
 0x619   : > { %v4921_v53 = vsel %vm2388_vm7, %v4896_v32, %v16739_v39  ;;  %v4897_v61 = vsel %vm2362_vm13, %v4872_v19, %v16740_v45  ;;  %v4898_v46 = vsel %vm2362_vm13, %v4873_v6, %v16741_v31  ;;  %v4970_v36 = vrot.slane %v4919_v21, 1  ;;  %v16742_v51 = vld [vmem:[#allocation126_spill] sm:$0xff]  ;;  %v16744_v1 = vld [vmem:[#allocation92_spill] sm:$0xff]  ;;  %v16745_v39 = vld [vmem:[#allocation121_spill] sm:$0xff] }
 0x61a   : > { %v4874_v43 = vsel %vm2336_vm6, %v4849_v13, %v16742_v51  ;;  %v16743_v15 = vrot.slane %v16703_v10, 3  ;;  %v4967_v14 = vrot.slane %v4917_v3, 1  ;;  %v4972_v32 = vrot.slane %v4920_v34, 1  ;;  %vm16750_vm15 = vmmov %vm16749_vm5 }
 0x61b   : > { %v4875_v19 = vsel %vm2336_vm6, %v4850_v54, %v16745_v39  ;;  %v4851_v6 = vsel %vm2310_vm11, %v4826_v28, %v16486_v18  ;;  %v4852_v12 = vsel %vm2310_vm11, %v4827_v0, %v16487_v37  ;;  %v4974_v21 = vrot.slane %v4921_v53, 1  ;;  %v12813_v34 = vpop.permute.xlu0 %4455  ;;  %v16746_v54 = vld [vmem:[#allocation355_spill] sm:$0xff]  ;;  %v16747_v18 = vld [vmem:[#allocation356_spill] sm:$0xff]  ;;  %v16748_v37 = vld [vmem:[#allocation338_spill] sm:$0xff] }
 0x61c   : > { %4775 = vrot.lane.b32.xlu0 %v16743_v15, %s7723_s21  ;;  %4773 = vrot.lane.b32.xlu1 %v16744_v1, %s7723_s21  ;;  %v4828_v10 = vsel %vm2284_vm1, %v11834_v63, %v12460_v33  ;;  %v4829_v13 = vsel %vm2284_vm1, %v11844_v9, %v12462_v38  ;;  %v12811_v3 = vpop.permute.xlu1 %4425  ;;  %v4922_v15 = vsel %vm2388_vm7, %v4897_v61, %v16746_v54  ;;  %v16751_v33 = vld [vmem:[#allocation339_spill] sm:$0xff]  ;;  %vm16778_vm8 = vmmov %vm16749_vm5 }
 0x61d   : > { %v4923_v28 = vsel %vm2388_vm7, %v4898_v46, %v16747_v18  ;;  %v4899_v0 = vsel %vm2362_vm13, %v4874_v43, %v16748_v37  ;;  %v4971_v53 = vsel %vm16749_vm5, %v4968_v56, %v4970_v36  ;;  %v4969_v63 = vsel %vm16750_vm15, %v4967_v14, %v4968_v56  ;;  %vm16752_vm15 = vmmov %vm16749_vm5 }
 0x61e   : > { %v4900_v9 = vsel %vm2362_vm13, %v4875_v19, %v16751_v33  ;;  %v4876_v38 = vsel %vm2336_vm6, %v4851_v6, %v16490_v20  ;;  %v4877_v1 = vsel %vm2336_vm6, %v4852_v12, %v16491_v11  ;;  %v4853_v61 = vsel %vm2310_vm11, %v4828_v10, %v16495_v40  ;;  %v16753_v6 = vld [vmem:[#allocation357_spill] sm:$0xff] }
 0x61f   : > { %v4854_v14 = vsel %vm2310_vm11, %v4829_v13, %v16496_v2  ;;  %v4976_v56 = vrot.slane %v4922_v15, 1  ;;  %v4978_v46 = vrot.slane %v4923_v28, 1  ;;  %v12837_v19 = vpop.permute.xlu0 %4653  ;;  %v4975_v20 = vsel %vm16752_vm15, %v4972_v32, %v4974_v21  ;;  %v16754_v2 = vld [vmem:[#allocation202_spill] sm:$0xff]  ;;  %vm16756_vm15 = vmmov %vm16749_vm5 }
 0x620   : > { %5018 = vrot.lane.b32.xlu0 %v4971_v53, %s7732_s29  ;;  %5016 = vrot.lane.b32.xlu1 %v4969_v63, %s7732_s29  ;;  %v12835_v43 = vpop.permute.xlu1 %4609  ;;  %v4973_v11 = vsel %vm16749_vm5, %v4970_v36, %v4972_v32  ;;  %v4924_v12 = vsel %vm2388_vm7, %v4899_v0, %v16753_v6  ;;  %v4901_v53 = vsel %vm2362_vm13, %v4876_v38, %v11406_v17  ;;  %v16755_v13 = vld [vmem:[#allocation358_spill] sm:$0xff] }
 0x621   : > { %v4902_v40 = vsel %vm2362_vm13, %v4877_v1, %v11408_v47  ;;  %v4830_v10 = vsel %vm2284_vm1, %v16754_v2, %v12468_v30  ;;  %v4925_v15 = vsel %vm2388_vm7, %v4900_v9, %v16755_v13  ;;  %v4878_v28 = vsel %vm2336_vm6, %v4853_v61, %v16499_v44  ;;  %v16757_v9 = vld [vmem:[#allocation359_spill] sm:$0xff]  ;;  %v16758_v1 = vld [vmem:[#allocation360_spill] sm:$0xff] }
 0x622   : > { %v4879_v36 = vsel %vm2336_vm6, %v4854_v14, %v16500_v24  ;;  %v4831_v17 = vsel %vm2284_vm1, %v11856_v57, %v12483_v62  ;;  %v4979_v47 = vsel %vm16756_vm15, %v4976_v56, %v4978_v46  ;;  %v4977_v30 = vsel %vm16749_vm5, %v4974_v21, %v4976_v56  ;;  %vm16760_vm15 = vmmov %vm16749_vm5 }
 0x623   : > { %v4855_v32 = vsel %vm2310_vm11, %v4830_v10, %v16504_v49  ;;  %v12865_v44 = vpop.permute.xlu0 %4427  ;;  %v4980_v63 = vrot.slane %v4924_v12, 1  ;;  %v4982_v24 = vrot.slane %v4925_v15, 1  ;;  %v4926_v38 = vsel %vm2388_vm7, %v4901_v53, %v16757_v9  ;;  %v16767_v9 = vld [vmem:[#allocation228_spill] sm:$0xff] }
 0x624   : > { %5022 = vrot.lane.b32.xlu0 %v4975_v20, %s7732_s29  ;;  %5020 = vrot.lane.b32.xlu1 %v4973_v11, %s7732_s29  ;;  %v4760_v0 = vpop.permute.xlu1 %4759  ;;  %v4903_v57 = vsel %vm2362_vm13, %v4878_v28, %v11414_v7  ;;  %v4904_v62 = vsel %vm2362_vm13, %v4879_v36, %v11416_v60  ;;  %v4856_v21 = vsel %vm2310_vm11, %v4831_v17, %v16505_v5  ;;  %v4984_v14 = vrot.slane %v4926_v38, 1  ;;  %v16759_v11 = vld [vmem:[#allocation361_spill] sm:$0xff] }
 0x625   : > { %v4927_v49 = vsel %vm2388_vm7, %v4902_v40, %v16758_v1  ;;  %v4880_v61 = vsel %vm2336_vm6, %v4855_v32, %v16506_v55  ;;  %v4881_v7 = vsel %vm2336_vm6, %v4856_v21, %v16507_v58  ;;  %v4928_v5 = vsel %vm2388_vm7, %v4903_v57, %v11510_v48  ;;  %v16766_v32 = vld [vmem:[#allocation232_spill] sm:$0xff]  ;;  %v16768_v57 = vld [vmem:[#allocation362_spill] sm:$0xff] }
 0x626   : > { %v4986_v20 = vrot.slane %v4927_v49, 1  ;;  %v4929_v12 = vsel %vm2388_vm7, %v4904_v62, %v16759_v11  ;;  %v4787_v53 = vsel %vm15484_vm2, %v12470_v25, %v12481_v26  ;;  %v4788_v55 = vsel %vm15484_vm2, %v12493_v59, %v12495_v16  ;;  %v16761_v26 = vld [vmem:[#allocation340_spill] sm:$0xff] }
 0x627   : > { %v12885_v60 = vpop.permute.xlu0 %4485  ;;  %v4983_v58 = vsel %vm16760_vm15, %v4980_v63, %v4982_v24  ;;  %v4981_v40 = vsel %vm16749_vm5, %v4978_v46, %v4980_v63  ;;  %v4905_v2 = vsel %vm2362_vm13, %v4880_v61, %v11422_v27  ;;  %v4797_v48 = vsel %vm15483_vm12, %v4787_v53, %v12501_v50  ;;  %vm16762_vm15 = vmmov %vm16749_vm5  ;;  %v16763_v27 = vld [vmem:[#allocation310_spill] sm:$0xff]  ;;  %v16764_v50 = vld [vmem:[#allocation313_spill] sm:$0xff] }
 0x628   : > { %5026 = vrot.lane.b32.xlu0 %v4979_v47, %s7732_s29  ;;  %5024 = vrot.lane.b32.xlu1 %v4977_v30, %s7732_s29  ;;  %v12883_v56 = vpop.permute.xlu1 %4457  ;;  %v4798_v10 = vsel %vm15483_vm12, %v4788_v55, %v12503_v42  ;;  %v4906_v25 = vsel %vm2362_vm13, %v4881_v7, %v16761_v26  ;;  %v4988_v59 = vrot.slane %v4928_v5, 1  ;;  %v4990_v16 = vrot.slane %v4929_v12, 1  ;;  %v16765_v47 = vld [vmem:[#allocation64_spill] sm:$0xff] }
 0x629   : > { %v4987_v28 = vsel %vm16762_vm15, %v4984_v14, %v4986_v20  ;;  %v4807_v36 = vsel %vm2258_vm14, %v4797_v48, %v16763_v27  ;;  %v4808_v17 = vsel %vm2258_vm14, %v4798_v10, %v16764_v50  ;;  %v4985_v42 = vsel %vm16749_vm5, %v4982_v24, %v4984_v14  ;;  %v16769_v21 = vld [vmem:[#allocation256_spill] sm:$0xff]  ;;  %vm16770_vm15 = vmmov %vm16749_vm5  ;;  %v16771_v14 = vld [vmem:[#allocation75_spill] sm:$0xff] }
 0x62a   : > { %v4930_v30 = vsel %vm2388_vm7, %v4905_v2, %v16765_v47  ;;  %v4832_v63 = vsel %vm2284_vm1, %v4807_v36, %v16766_v32  ;;  %v4833_v38 = vsel %vm2284_vm1, %v4808_v17, %v16767_v9  ;;  %v4931_v62 = vsel %vm2388_vm7, %v4906_v25, %v16768_v57  ;;  %v16772_v7 = vld [vmem:[#allocation4_spill] sm:$0xff]  ;;  %v16774_v2 = vld [vmem:[#allocation105_spill] sm:$0xff]  ;;  %v16780_v9 = vld [vmem:[#allocation82_spill] sm:$0xff] }
 0x62b   : > { %v4690_v46 = vpop.permute.xlu0 %4689  ;;  %v4857_v1 = vsel %vm2310_vm11, %v4832_v63, %v16769_v21  ;;  %v4858_v24 = vsel %vm2310_vm11, %v4833_v38, %v12653_v29  ;;  %v4991_v49 = vsel %vm16770_vm15, %v4988_v59, %v4990_v16  ;;  %v4989_v61 = vsel %vm16749_vm5, %v4986_v20, %v4988_v59  ;;  %v16773_v11 = vld [vmem:[#allocation168_spill] sm:$0xff]  ;;  %vm16776_vm15 = vmmov %vm16749_vm5 }
 0x62c   : > { %5030 = vrot.lane.b32.xlu0 %v4983_v58, %s7732_s29  ;;  %5028 = vrot.lane.b32.xlu1 %v4981_v40, %s7732_s29  ;;  %v4656_v15 = vpop.permute.xlu1 %4655  ;;  %v4789_v5 = vsel %vm15484_vm2, %v16772_v7, %v16771_v14  ;;  %v4882_v12 = vsel %vm2336_vm6, %v4857_v1, %v16773_v11  ;;  %v4883_v53 = vsel %vm2336_vm6, %v4858_v24, %v12703_v52  ;;  %v4992_v40 = vrot.slane %v4930_v30, 1  ;;  %v16775_v52 = vld [vmem:[#allocation314_spill] sm:$0xff] }
 0x62d   : > { %v4799_v29 = vsel %vm15483_vm12, %v4789_v5, %v16774_v2  ;;  %v4907_v20 = vsel %vm2362_vm13, %v4882_v12, %v12745_v22  ;;  %v4908_v48 = vsel %vm2362_vm13, %v4883_v53, %v12782_v23  ;;  %v4994_v10 = vrot.slane %v4931_v62, 1  ;;  %v16781_v1 = vld [vmem:[#allocation390_spill] sm:$0xff]  ;;  %v7618_v5 = vld [vmem:[%s14997_s0 + $0x30] sm:$0xff] }
 0x62e   : > { %v4932_v26 = vsel %vm2388_vm7, %v4907_v20, %v12784_v41  ;;  %v4933_v25 = vsel %vm2388_vm7, %v4908_v48, %v4760_v0  ;;  %v4809_v59 = vsel %vm2258_vm14, %v4799_v29, %v16775_v52  ;;  %v4993_v22 = vsel %vm16776_vm15, %v4990_v16, %v4992_v40  ;;  %vm16777_vm15 = vmmov %vm16749_vm5 }
 0x62f   : > { %v4692_v58 = vpop.permute.xlu0 %4691  ;;  %v4834_v23 = vsel %vm2284_vm1, %v4809_v59, %v12747_v35  ;;  %v4996_v36 = vrot.slane %v4932_v26, 1  ;;  %v4998_v50 = vrot.slane %v4933_v25, 1  ;;  %v4995_v41 = vsel %vm16749_vm5, %v4992_v40, %v4994_v10  ;;  %v7620_v26 = vld [vmem:[%s14997_s0 + $0x38] sm:$0xff] }
 0x630   : > { %5034 = vrot.lane.b32.xlu0 %v4987_v28, %s7732_s29  ;;  %5032 = vrot.lane.b32.xlu1 %v4985_v42, %s7732_s29  ;;  %v12938_v55 = vpop.permute.xlu1 %4487  ;;  %v4859_v0 = vsel %vm2310_vm11, %v4834_v23, %v12837_v19  ;;  %v16779_v19 = vld [vmem:[#allocation170_spill] sm:$0xff]  ;;  %v4791_v25 = vsel %vm15484_vm2, %v12811_v3, %v12813_v34  ;;  %v16785_v23 = vld [vmem:[#allocation393_spill] sm:$0xff] }
 0x631   : > { %v4884_v17 = vsel %vm2336_vm6, %v4859_v0, %v4690_v46  ;;  %v4999_v35 = vsel %vm16777_vm15, %v4996_v36, %v4998_v50  ;;  %v4997_v32 = vsel %vm16778_vm8, %v4994_v10, %v4996_v36  ;;  %v4790_v38 = vsel %vm15484_vm2, %v16780_v9, %v16779_v19  ;;  %vm16782_vm8 = vmmov %vm16749_vm5 }
 0x632   : > { %v4800_v21 = vsel %vm15483_vm12, %v4790_v38, %v12701_v4  ;;  %v4792_v19 = vsel %vm15484_vm2, %v12865_v44, %v12883_v56  ;;  %vm16788_vm15 = vmmov %vm16749_vm5 }
 0x633   : > { %v4612_v27 = vpop.permute.xlu0 %4611  ;;  %v4810_v24 = vsel %vm2258_vm14, %v4800_v21, %v16781_v1  ;;  %v16789_v21 = vld [vmem:[#allocation259_spill] sm:$0xff] }
 0x634   : > { %5038 = vrot.lane.b32.xlu0 %v4991_v49, %s7732_s29  ;;  %5036 = vrot.lane.b32.xlu1 %v4989_v61, %s7732_s29  ;;  %v4726_v28 = vpop.permute.xlu1 %4725  ;;  %v4835_v14 = vsel %vm2284_vm1, %v4810_v24, %v12835_v43  ;;  %v7619_v43 = vld [vmem:[%s14997_s0 + $0x40] sm:$0xff]  ;;  %v3041_v1 = vrot.slane %v16789_v21, 3 }
 0x635   : > { %v4909_v42 = vsel %vm2362_vm13, %v4884_v17, %v4726_v28  ;;  %v4860_v7 = vsel %vm2310_vm11, %v4835_v14, %v4656_v15  ;;  %v4801_v28 = vsel %vm15483_vm12, %v4791_v25, %v12885_v60  ;;  %v16790_v14 = vld [vmem:[#allocation394_spill] sm:$0xff]  ;;  %v16797_v25 = vld [vmem:[#allocation139_spill] sm:$0xff] }
 0x636   : > { %v4885_v11 = vsel %vm2336_vm6, %v4860_v7, %v4692_v58  ;;  %v16784_v58 = vld [vmem:[#allocation180_spill] sm:$0xff]  ;;  %v4811_v36 = vsel %vm2258_vm14, %v4801_v28, %v16785_v23  ;;  %v16799_v23 = vld [vmem:[#allocation149_spill] sm:$0xff] }
 0x637   : > { %v4762_v16 = vpop.permute.xlu0 %4761  ;;  %v4836_v0 = vsel %vm2284_vm1, %v4811_v36, %v4612_v27  ;;  %v16798_v28 = vld [vmem:[#allocation108_spill] sm:$0xff]  ;;  %v16800_v36 = vld [vmem:[#allocation97_spill] sm:$0xff] }
 0x638   : > { %5042 = vrot.lane.b32.xlu0 %v4995_v41, %s7732_s29  ;;  %5040 = vrot.lane.b32.xlu1 %v4993_v22, %s7732_s29  ;;  %v4728_v47 = vpop.permute.xlu1 %4727  ;;  %v4934_v30 = vsel %vm2388_vm7, %v4909_v42, %v4762_v16  ;;  %v7621_v22 = vld [vmem:[%s14997_s0 + $0x48] sm:$0xff] }
 0x639   : > { %v5000_v63 = vrot.slane %v4934_v30, 1  ;;  %v4910_v4 = vsel %vm2362_vm13, %v4885_v11, %v4728_v47  ;;  %v16786_v30 = vld [vmem:[#allocation260_spill] sm:$0xff]  ;;  %v16792_v11 = vld [vmem:[#allocation101_spill] sm:$0xff] }
 0x63b   : > { %v12973_v57 = vpop.permute.xlu0 %4459  ;;  %v5001_v62 = vsel %vm16749_vm5, %v4998_v50, %v5000_v63  ;;  %vm16820_vm5 = vcmask 1043456  }
 0x63c   : > { %5046 = vrot.lane.b32.xlu0 %v4999_v35, %s7732_s29  ;;  %5044 = vrot.lane.b32.xlu1 %v4997_v32, %s7732_s29  ;;  %v12971_v46 = vpop.permute.xlu1 %4429  ;;  %v3042_v35 = vrot.slane %v16786_v30, 3  ;;  %v16787_v32 = vld [vmem:[#allocation262_spill] sm:$0xff]  ;;  %v16805_v30 = vld [vmem:[#allocation171_spill] sm:$0xff] }
 0x63e   : > { %v3043_v24 = vsel %vm3040_vm9, %v3041_v1, %v3042_v35  ;;  %v16809_v1 = vld [vmem:[#allocation199_spill] sm:$0xff] }
 0x63f   : > { %v4658_v61 = vpop.permute.xlu0 %4657 }
 0x640   : > { %5048 = vrot.lane.b32.xlu1 %v5001_v62, %s7732_s29  ;;  %v4614_v49 = vpop.permute.xlu1 %4613  ;;  %v4861_v3 = vsel %vm2310_vm11, %v4836_v0, %v4658_v61  ;;  %v4802_v62 = vsel %vm15483_vm12, %v4792_v19, %v12938_v55  ;;  %v16793_v55 = vld [vmem:[#allocation144_spill] sm:$0xff]  ;;  %v16807_v19 = vld [vmem:[#allocation155_spill] sm:$0xff] }
 0x641   : > { %v4812_v44 = vsel %vm2258_vm14, %v4802_v62, %v16790_v14  ;;  %v16801_v0 = vld [vmem:[#allocation164_spill] sm:$0xff] }
 0x643   : > { %v12989_v53 = vpop.permute.xlu0 %4431 }
 0x644   : > { %5772 = vperm.xlu1 %7616, %v7618_v5   ;;  %v4764_v12 = vpop.permute.xlu1 %4763  ;;  %v16791_v5 = vld [vmem:[#allocation138_spill] sm:$0xff] }
 0x645   : > { %v4935_v40 = vsel %vm2388_vm7, %v4910_v4, %v4764_v12  ;;  %v4051_v4 = vsel %vm15484_vm2, %v16792_v11, %v16791_v5  ;;  %v16794_v12 = vld [vmem:[#allocation93_spill] sm:$0xff] }
 0x646   : > { %v5002_v2 = vrot.slane %v4935_v40, 1  ;;  %v4052_v40 = vsel %vm15484_vm2, %v16794_v12, %v16793_v55  ;;  %v4075_v14 = vsel %vm15483_vm12, %v4051_v4, %v16809_v1  ;;  %v16811_v5 = vld [vmem:[#allocation205_spill] sm:$0xff]  ;;  %v16824_v1 = vld [vmem:[#allocation275_spill] sm:$0xff] }
 0x647   : > { %v12997_v29 = vpop.permute.xlu0 %4489 }
 0x648   : > { %5780 = vperm.xlu1 %7616, %v7619_v43   ;;  %v12995_v15 = vpop.permute.xlu1 %4461  ;;  %v5003_v20 = vsel %vm16782_vm8, %v5000_v63, %v5002_v2  ;;  %v3044_v63 = vrot.slane %v16787_v32, 3  ;;  %v16796_v43 = vld [vmem:[#allocation99_spill] sm:$0xff] }
 0x649   : > { %5050 = vrot.lane.b32.xlu0 %v5003_v20, %s7732_s29 }
 0x64a   : > { %v3045_v61 = vsel %vm3040_vm9, %v3042_v35, %v3044_v63  ;;  %v16806_v35 = vld [vmem:[#allocation102_spill] sm:$0xff] }
 0x64b   : > { %v4694_v10 = vpop.permute.xlu0 %4693  ;;  %v4058_v32 = vsel %vm15484_vm2, %v16806_v35, %v16805_v30  ;;  %v16821_v35 = vld [vmem:[#allocation11_spill] sm:$0xff] }
 0x64c   : > { %4017 = vrot.lane.b32.xlu1 %v16784_v58, %s16783_s23  ;;  %v4660_v48 = vpop.permute.xlu1 %4659  ;;  %v4886_v34 = vsel %vm2336_vm6, %v4861_v3, %v4694_v10  ;;  %v4837_v10 = vsel %vm2284_vm1, %v4812_v44, %v4614_v49  ;;  %v16802_v3 = vld [vmem:[#allocation96_spill] sm:$0xff]  ;;  %v16803_v49 = vld [vmem:[#allocation158_spill] sm:$0xff] }
 0x64d   : > { %5776 = vperm.xlu0 %7615, %v7620_v26   ;;  %v7622_v26 = vld [vmem:[%s14997_s0 + $0x50] sm:$0xff] }
 0x64e   : > { %v16810_v44 = vld [vmem:[#allocation204_spill] sm:$0xff] }
 0x64f   : > { %v4696_v59 = vpop.permute.xlu0 %4695 }
 0x650   : > { %v13009_v52 = vpop.permute.xlu1 %4491 }
 0x651   : > { %5784 = vperm.xlu0 %7615, %v7621_v22   ;;  %v4054_v22 = vsel %vm15484_vm2, %v16798_v28, %v16797_v25  ;;  %v16814_v25 = vld [vmem:[#allocation213_spill] sm:$0xff] }
 0x653   : > { %v13018_v41 = vpop.permute.xlu0 %4615 }
 0x654   : > { %v4730_v50 = vpop.permute.xlu1 %4729 }
 0x655   : > { %v4911_v17 = vsel %vm2362_vm13, %v4886_v34, %v4730_v50  ;;  %v4055_v50 = vsel %vm15484_vm2, %v16800_v36, %v16799_v23  ;;  %v4056_v34 = vsel %vm15484_vm2, %v16802_v3, %v16801_v0  ;;  %v16816_v23 = vld [vmem:[#allocation268_spill] sm:$0xff]  ;;  %v13111_v3 = vld [vmem:[%s15005_s8] sm:$0xf] }
 0x656   : > { %v4080_v4 = vsel %vm15483_vm12, %v4056_v34, %v16814_v25  ;;  %v16817_v36 = vld [vmem:[#allocation212_spill] sm:$0xff]  ;;  %v4099_v34 = vsel %vm2258_vm14, %v4075_v14, %v3043_v24  ;;  %7482 = vmatprep.subr.msk.mxu1 %vm16820_vm5, %v13111_v3  ;;  %vm4392_vm5 = vcmask 490496  }
 0x657   : > { %v4766_v42 = vpop.permute.xlu0 %4765 }
 0x658   : > { %v4732_v60 = vpop.permute.xlu1 %4731  ;;  %v4936_v47 = vsel %vm2388_vm7, %v4911_v17, %v4766_v42  ;;  %v4862_v17 = vsel %vm2310_vm11, %v4837_v10, %v4660_v48  ;;  %v16804_v42 = vld [vmem:[#allocation109_spill] sm:$0xff]  ;;  %v4076_v48 = vsel %vm15483_vm12, %v4052_v40, %v16810_v44  ;;  %v16825_v44 = vld [vmem:[#allocation278_spill] sm:$0xff] }
 0x659   : > { %v5004_v16 = vrot.slane %v4936_v47, 1  ;;  %v4057_v47 = vsel %vm15484_vm2, %v16804_v42, %v16803_v49  ;;  %v4887_v21 = vsel %vm2336_vm6, %v4862_v17, %v4696_v59  ;;  %v7623_v40 = vld [vmem:[%s14997_s0 + $0x58] sm:$0xff]  ;;  %v4100_v17 = vsel %vm2258_vm14, %v4076_v48, %v3045_v61 }
 0x65a   : > { %v4912_v55 = vsel %vm2362_vm13, %v4887_v21, %v4732_v60  ;;  %v16815_v60 = vld [vmem:[#allocation267_spill] sm:$0xff]  ;;  %v16818_v49 = vld [vmem:[#allocation9_spill] sm:$0xff] }
 0x65b   : > { %v13032_v9 = vpop.permute.xlu0 %4463  ;;  %v5005_v38 = vsel %vm16788_vm15, %v5002_v2, %v5004_v16  ;;  %v16795_v2 = vld [vmem:[#allocation152_spill] sm:$0xff]  ;;  %v16819_v42 = vrot.slane %v16818_v49, 3  ;;  %v16836_v49 = vld [vmem:[#allocation235_spill] sm:$0xff]  ;;  %vm16918_vm15 = vmmov %vm16782_vm8 }
 0x65c   : > { %v13030_v27 = vpop.permute.xlu1 %4433  ;;  %5052 = vrot.lane.b32.xlu0 %v5005_v38, %s7732_s29  ;;  %v4053_v20 = vsel %vm15484_vm2, %v16796_v43, %v16795_v2  ;;  %v16808_v38 = vld [vmem:[#allocation104_spill] sm:$0xff]  ;;  %v16812_v43 = vld [vmem:[#allocation206_spill] sm:$0xff] }
 0x65d   : > { %v4059_v62 = vsel %vm15484_vm2, %v16808_v38, %v16807_v19  ;;  %v4077_v11 = vsel %vm15483_vm12, %v4053_v20, %v16811_v5  ;;  %v4078_v10 = vsel %vm15483_vm12, %v4054_v22, %v16812_v43  ;;  %v4081_v20 = vsel %vm15483_vm12, %v4057_v47, %v16815_v60  ;;  %v16822_v19 = vld [vmem:[#allocation16_spill] sm:$0xff]  ;;  %v16826_v5 = vld [vmem:[#allocation279_spill] sm:$0xff]  ;;  %v16828_v43 = vld [vmem:[#allocation2_spill] sm:$0xff] }
 0x65e   : > { %v4082_v22 = vsel %vm15483_vm12, %v4058_v32, %v16816_v23  ;;  %v3047_v47 = vsel %vm3040_vm9, %v3044_v63, %v16819_v42  ;;  %v4102_v32 = vsel %vm2258_vm14, %v4078_v10, %v16821_v35  ;;  %v16823_v63 = vld [vmem:[#allocation39_spill] sm:$0xff]  ;;  %v4105_v14 = vsel %vm2258_vm14, %v4081_v20, %v16824_v1  ;;  %v16832_v60 = vld [vmem:[#allocation236_spill] sm:$0xff]  ;;  %v16833_v23 = vld [vmem:[#allocation226_spill] sm:$0xff] }
 0x65f   : > { %v13043_v56 = vpop.permute.xlu0 %4661  ;;  %v4101_v30 = vsel %vm2258_vm14, %v4077_v11, %v3047_v47  ;;  %v4104_v21 = vsel %vm2258_vm14, %v4080_v4, %v16823_v63  ;;  %v4106_v48 = vsel %vm2258_vm14, %v4082_v22, %v16825_v44  ;;  %v16829_v10 = vld [vmem:[#allocation271_spill] sm:$0xff]  ;;  %v16831_v4 = vld [vmem:[#allocation229_spill] sm:$0xff]  ;;  %v4129_v22 = vsel %vm2284_vm1, %v4105_v14, %v16833_v23  ;;  %v16837_v42 = vld [vmem:[#allocation160_spill] sm:$0xff] }
 0x660   : > { %v13045_v7 = vpop.permute.xlu1 %4617  ;;  %5788 = vperm.xlu0 %7615, %v7622_v26   ;;  %v16813_v26 = vld [vmem:[#allocation210_spill] sm:$0xff]  ;;  %v4128_v20 = vsel %vm2284_vm1, %v4104_v21, %v16832_v60  ;;  %v4132_v47 = vsel %vm2284_vm1, %v16837_v42, %v16836_v49  ;;  %v16839_v35 = vld [vmem:[#allocation83_spill] sm:$0xff]  ;;  %v16842_v1 = vld [vmem:[#allocation273_spill] sm:$0xff] }
 0x661   : > { %v4079_v59 = vsel %vm15483_vm12, %v4055_v50, %v16813_v26  ;;  %v4083_v50 = vsel %vm15483_vm12, %v4059_v62, %v16817_v36  ;;  %v4125_v26 = vsel %vm2284_vm1, %v4101_v30, %v16829_v10  ;;  %v16834_v36 = vld [vmem:[#allocation237_spill] sm:$0xff]  ;;  %v16843_v14 = vld [vmem:[#allocation175_spill] sm:$0xff]  ;;  %v16850_v23 = vld [vmem:[#allocation242_spill] sm:$0xff] }
 0x662   : > { %v4103_v38 = vsel %vm2258_vm14, %v4079_v59, %v16822_v19  ;;  %v4107_v11 = vsel %vm2258_vm14, %v4083_v50, %v16826_v5  ;;  %v16830_v59 = vld [vmem:[#allocation272_spill] sm:$0xff]  ;;  %v4130_v50 = vsel %vm2284_vm1, %v4106_v48, %v16834_v36  ;;  %v16838_v30 = vld [vmem:[#allocation5_spill] sm:$0xff]  ;;  %v4135_v44 = vsel %vm2284_vm1, %v16843_v14, %v16842_v1  ;;  %v16845_v5 = vld [vmem:[#allocation107_spill] sm:$0xff] }
 0x663   : > { %v13087_v12 = vpop.permute.xlu0 %4435  ;;  %v4126_v25 = vsel %vm2284_vm1, %v4102_v32, %v16830_v59  ;;  %v4133_v32 = vsel %vm2284_vm1, %v16839_v35, %v16838_v30  ;;  %v16840_v19 = vld [vmem:[#allocation257_spill] sm:$0xff]  ;;  %v16848_v59 = vld [vmem:[#allocation112_spill] sm:$0xff]  ;;  %v16849_v60 = vld [vmem:[#allocation187_spill] sm:$0xff] }
 0x664   : > { %v4768_v2 = vpop.permute.xlu1 %4767  ;;  %5792 = vperm.xlu0 %7615, %v7623_v40   ;;  %v4127_v40 = vsel %vm2284_vm1, %v4103_v38, %v16831_v4  ;;  %v16841_v38 = vld [vmem:[#allocation116_spill] sm:$0xff]  ;;  %v16844_v48 = vld [vmem:[#allocation81_spill] sm:$0xff]  ;;  %v16851_v36 = vld [vmem:[#allocation218_spill] sm:$0xff] }
 0x665   : > { %v13096_v28 = vsel %vm2388_vm7, %v4912_v55, %v4768_v2  ;;  %v16827_v55 = vld [vmem:[#allocation225_spill] sm:$0xff]  ;;  %v16852_v49 = vld [vmem:[#allocation179_spill] sm:$0xff]  ;;  %v16853_v30 = vld [vmem:[#allocation6_spill] sm:$0xff] }
 0x666   : > { %v5006_v0 = vrot.slane %v13096_v28, 1  ;;  %v4123_v2 = vsel %vm2284_vm1, %v4099_v34, %v16827_v55  ;;  %v16835_v34 = vld [vmem:[#allocation233_spill] sm:$0xff]  ;;  %v16846_v55 = vld [vmem:[#allocation238_spill] sm:$0xff]  ;;  %v16856_v14 = vld [vmem:[#allocation248_spill] sm:$0xff] }
 0x667   : > { %v13125_v62 = vpop.permute.xlu0 %4493  ;;  %v16847_v10 = vld [vmem:[#allocation241_spill] sm:$0xff]  ;;  %v4147_v42 = vsel %vm2310_vm11, %v4123_v2, %v16852_v49  ;;  %vm16900_vm9 = vmmov %vm16782_vm8 }
 0x668   : > { %v13127_v24 = vpop.permute.xlu1 %4465  ;;  %v5007_v61 = vsel %vm16782_vm8, %v5004_v16, %v5006_v0  ;;  %v4124_v16 = vsel %vm2284_vm1, %v4100_v17, %v16828_v43  ;;  %v4131_v17 = vsel %vm2284_vm1, %v4107_v11, %v16835_v34  ;;  %v4136_v11 = vsel %vm2284_vm1, %v16845_v5, %v16844_v48  ;;  %v16857_v5 = vld [vmem:[#allocation70_spill] sm:$0xff]  ;;  %v16861_v49 = vld [vmem:[#allocation253_spill] sm:$0xff] }
 0x669   : > { %5054 = vrot.lane.b32.xlu1 %v5007_v61, %s7732_s29  ;;  %v4134_v61 = vsel %vm2284_vm1, %v16841_v38, %v16840_v19  ;;  %v4137_v43 = vsel %vm2284_vm1, %v12681_v8, %v16846_v55  ;;  %v4138_v4 = vsel %vm2284_vm1, %v16848_v59, %v16847_v10  ;;  %v4139_v34 = vsel %vm2284_vm1, %v16851_v36, %v16850_v23  ;;  %v16854_v19 = vld [vmem:[#allocation77_spill] sm:$0xff]  ;;  %v16855_v38 = vld [vmem:[#allocation247_spill] sm:$0xff]  ;;  %v16859_v23 = vld [vmem:[#allocation264_spill] sm:$0xff] }
 0x66a   : > { %v4148_v35 = vsel %vm2310_vm11, %v4124_v16, %v16853_v30  ;;  %v4149_v8 = vsel %vm2310_vm11, %v4125_v26, %v16854_v19  ;;  %v4150_v1 = vsel %vm2310_vm11, %v4126_v25, %v16855_v38  ;;  %v4151_v48 = vsel %vm2310_vm11, %v4127_v40, %v16856_v14  ;;  %v16858_v10 = vld [vmem:[#allocation263_spill] sm:$0xff]  ;;  %v16860_v36 = vld [vmem:[#allocation252_spill] sm:$0xff]  ;;  %v16863_v19 = vld [vmem:[#allocation89_spill] sm:$0xff] }
 0x66b   : > { %v4698_v63 = vpop.permute.xlu0 %4697  ;;  %v4152_v55 = vsel %vm2310_vm11, %v4128_v20, %v16857_v5  ;;  %v4153_v59 = vsel %vm2310_vm11, %v4129_v22, %v16858_v10  ;;  %v4154_v2 = vsel %vm2310_vm11, %v4130_v50, %v16859_v23  ;;  %v4155_v16 = vsel %vm2310_vm11, %v4131_v17, %v16860_v36  ;;  %v16862_v20 = vld [vmem:[#allocation266_spill] sm:$0xff]  ;;  %v16864_v38 = vld [vmem:[#allocation40_spill] sm:$0xff]  ;;  %v16865_v14 = vld [vmem:[#allocation193_spill] sm:$0xff] }
 0x66c   : > { %v13168_v21 = vpop.permute.xlu1 %4663  ;;  %v4156_v26 = vsel %vm2310_vm11, %v4132_v47, %v16861_v49  ;;  %v4793_v25 = vsel %vm15484_vm2, %v12971_v46, %v12973_v57  ;;  %v4157_v22 = vsel %vm2310_vm11, %v4133_v32, %v16862_v20  ;;  %v4158_v50 = vsel %vm2310_vm11, %v4134_v61, %v16863_v19  ;;  %v16866_v46 = vld [vmem:[#allocation46_spill] sm:$0xff]  ;;  %v16868_v23 = vld [vmem:[#allocation13_spill] sm:$0xff]  ;;  %v16870_v49 = vld [vmem:[#allocation288_spill] sm:$0xff] }
 0x66d   : > { %4019 = vrot.lane.b32.xlu1 %v16849_v60, %s16783_s23  ;;  %v4159_v17 = vsel %vm2310_vm11, %v4135_v44, %v16864_v38  ;;  %v4803_v47 = vsel %vm15483_vm12, %v4793_v25, %v12997_v29  ;;  %v4160_v57 = vsel %vm2310_vm11, %v4136_v11, %v16866_v46  ;;  %v16867_v5 = vld [vmem:[#allocation14_spill] sm:$0xff]  ;;  %v4162_v32 = vsel %vm2310_vm11, %v4138_v4, %v16868_v23  ;;  %v16869_v36 = vld [vmem:[#allocation25_spill] sm:$0xff]  ;;  %v16872_v25 = vld [vmem:[#allocation292_spill] sm:$0xff] }
 0x66e   : > { %v4161_v10 = vsel %vm2310_vm11, %v4137_v43, %v16867_v5  ;;  %v4163_v61 = vsel %vm2310_vm11, %v4139_v34, %v16869_v36  ;;  %v4171_v44 = vsel %vm2336_vm6, %v4147_v42, %v16870_v49  ;;  %v16871_v20 = vld [vmem:[#allocation289_spill] sm:$0xff]  ;;  %v4173_v19 = vsel %vm2336_vm6, %v4149_v8, %v16872_v25  ;;  %v16874_v46 = vld [vmem:[#allocation296_spill] sm:$0xff]  ;;  %v16877_v36 = vld [vmem:[#allocation411_spill] sm:$0xff] }
 0x66f   : > { %v13212_v30 = vpop.permute.xlu0 %4699  ;;  %v4172_v29 = vsel %vm2336_vm6, %v4148_v35, %v16871_v20  ;;  %v16873_v38 = vld [vmem:[#allocation293_spill] sm:$0xff]  ;;  %v4175_v43 = vsel %vm2336_vm6, %v4151_v48, %v16874_v46  ;;  %v16876_v23 = vld [vmem:[#allocation300_spill] sm:$0xff]  ;;  %v4813_v42 = vsel %vm2258_vm14, %v4803_v47, %v16877_v36  ;;  %v16881_v46 = vld [vmem:[#allocation307_spill] sm:$0xff] }
 0x670   : > { %v13210_v40 = vpop.permute.xlu1 %4495  ;;  %v4174_v11 = vsel %vm2336_vm6, %v4150_v1, %v16873_v38  ;;  %v16875_v5 = vld [vmem:[#allocation297_spill] sm:$0xff]  ;;  %v4177_v34 = vsel %vm2336_vm6, %v4153_v59, %v16876_v23  ;;  %v16879_v25 = vld [vmem:[#allocation304_spill] sm:$0xff]  ;;  %v4181_v59 = vsel %vm2336_vm6, %v4157_v22, %v16881_v46  ;;  %v16883_v23 = vld [vmem:[#allocation311_spill] sm:$0xff] }
 0x671   : > { %4021 = vrot.lane.b32.xlu1 %v16865_v14, %s16783_s23  ;;  %v4176_v4 = vsel %vm2336_vm6, %v4152_v55, %v16875_v5  ;;  %v16878_v20 = vld [vmem:[#allocation301_spill] sm:$0xff]  ;;  %v4179_v1 = vsel %vm2336_vm6, %v4155_v16, %v16879_v25  ;;  %v4838_v55 = vsel %vm2284_vm1, %v4813_v42, %v13018_v41  ;;  %v16882_v5 = vld [vmem:[#allocation308_spill] sm:$0xff]  ;;  %v4183_v36 = vsel %vm2336_vm6, %v4159_v17, %v16883_v23  ;;  %v16885_v25 = vld [vmem:[#allocation315_spill] sm:$0xff] }
 0x672   : > { %v4178_v8 = vsel %vm2336_vm6, %v4154_v2, %v16878_v20  ;;  %v16880_v38 = vld [vmem:[#allocation305_spill] sm:$0xff]  ;;  %v4182_v47 = vsel %vm2336_vm6, %v4158_v50, %v16882_v5  ;;  %v4863_v2 = vsel %vm2310_vm11, %v4838_v55, %v13043_v56  ;;  %v16884_v20 = vld [vmem:[#allocation312_spill] sm:$0xff]  ;;  %v4187_v50 = vsel %vm2336_vm6, %v4163_v61, %v16742_v51  ;;  %v16887_v42 = vld [vmem:[#allocation322_spill] sm:$0xff] }
 0x673   : > { %v13248_v35 = vpop.permute.xlu0 %4619  ;;  %v4180_v48 = vsel %vm2336_vm6, %v4156_v26, %v16880_v38  ;;  %v4184_v16 = vsel %vm2336_vm6, %v4160_v57, %v16884_v20  ;;  %v4185_v26 = vsel %vm2336_vm6, %v4161_v10, %v16885_v25  ;;  %v16886_v38 = vld [vmem:[#allocation316_spill] sm:$0xff]  ;;  %v4888_v22 = vsel %vm2336_vm6, %v4863_v2, %v4698_v63  ;;  %v16888_v10 = vld [vmem:[#allocation323_spill] sm:$0xff]  ;;  %v16891_v2 = vld [vmem:[#allocation326_spill] sm:$0xff] }
 0x674   : > { %v4734_v49 = vpop.permute.xlu1 %4733  ;;  %v4186_v41 = vsel %vm2336_vm6, %v4162_v32, %v16886_v38  ;;  %v4195_v17 = vsel %vm2362_vm13, %v4171_v44, %v16887_v42  ;;  %v4794_v56 = vsel %vm15484_vm2, %v12989_v53, %v12995_v15  ;;  %v4196_v5 = vsel %vm2362_vm13, %v4172_v29, %v16888_v10  ;;  %v16889_v32 = vld [vmem:[#allocation324_spill] sm:$0xff]  ;;  %v16890_v44 = vld [vmem:[#allocation325_spill] sm:$0xff]  ;;  %v16892_v15 = vld [vmem:[#allocation327_spill] sm:$0xff] }
 0x675   : > { %v4913_v57 = vsel %vm2362_vm13, %v4888_v22, %v4734_v49  ;;  %v4197_v63 = vsel %vm2362_vm13, %v4173_v19, %v16889_v32  ;;  %v4804_v51 = vsel %vm15483_vm12, %v4794_v56, %v13009_v52  ;;  %v4198_v23 = vsel %vm2362_vm13, %v4174_v11, %v16890_v44  ;;  %v16893_v25 = vld [vmem:[#allocation328_spill] sm:$0xff]  ;;  %v16894_v38 = vld [vmem:[#allocation329_spill] sm:$0xff]  ;;  %v16895_v22 = vld [vmem:[#allocation330_spill] sm:$0xff] }
 0x676   : > { %v4199_v53 = vsel %vm2362_vm13, %v4175_v43, %v16891_v2  ;;  %v4200_v49 = vsel %vm2362_vm13, %v4176_v4, %v16892_v15  ;;  %v4201_v29 = vsel %vm2362_vm13, %v4177_v34, %v16893_v25  ;;  %v4202_v19 = vsel %vm2362_vm13, %v4178_v8, %v16894_v38  ;;  %v16896_v42 = vld [vmem:[#allocation331_spill] sm:$0xff]  ;;  %v16897_v11 = vld [vmem:[#allocation182_spill] sm:$0xff]  ;;  %v16898_v43 = vld [vmem:[#allocation332_spill] sm:$0xff] }
 0x677   : > { %v4770_v46 = vpop.permute.xlu0 %4769  ;;  %v4203_v52 = vsel %vm2362_vm13, %v4179_v1, %v16895_v22  ;;  %v4204_v56 = vsel %vm2362_vm13, %v4180_v48, %v16896_v42  ;;  %v16899_v4 = vld [vmem:[#allocation231_spill] sm:$0xff]  ;;  %v16901_v1 = vld [vmem:[#allocation334_spill] sm:$0xff]  ;;  %v4210_v44 = vsel %vm2362_vm13, %v4186_v41, %v16741_v31  ;;  %v4211_v28 = vsel %vm2362_vm13, %v4187_v50, %v16748_v37  ;;  %v16906_v15 = vld [vmem:[#allocation344_spill] sm:$0xff] }
 0x678   : > { %v4736_v55 = vpop.permute.xlu1 %4735  ;;  %v4938_v61 = vsel %vm2388_vm7, %v4913_v57, %v4770_v46  ;;  %v4205_v57 = vsel %vm2362_vm13, %v4181_v59, %v16897_v11  ;;  %v4206_v46 = vsel %vm2362_vm13, %v4182_v47, %v16898_v43  ;;  %v4814_v10 = vsel %vm2258_vm14, %v4804_v51, %v16899_v4  ;;  %v16904_v2 = vld [vmem:[#allocation342_spill] sm:$0xff]  ;;  %v16907_v41 = vld [vmem:[#allocation345_spill] sm:$0xff]  ;;  %v16909_v38 = vld [vmem:[#allocation347_spill] sm:$0xff] }
 0x679   : > { %v5008_v20 = vrot.slane %v4938_v61, 1  ;;  %v4207_v48 = vsel %vm2362_vm13, %v4183_v36, %v16901_v1  ;;  %v16902_v61 = vld [vmem:[#allocation335_spill] sm:$0xff]  ;;  %v4209_v47 = vsel %vm2362_vm13, %v4185_v26, %v16740_v45  ;;  %v4839_v51 = vsel %vm2284_vm1, %v4814_v10, %v13045_v7  ;;  %v16908_v50 = vld [vmem:[#allocation346_spill] sm:$0xff]  ;;  %v16914_v10 = vld [vmem:[#allocation352_spill] sm:$0xff] }
 0x67a   : > { %v4208_v59 = vsel %vm2362_vm13, %v4184_v16, %v16902_v61  ;;  %v4864_v16 = vsel %vm2310_vm11, %v4839_v51, %v13168_v21  ;;  %v4220_v45 = vsel %vm2388_vm7, %v4196_v5, %v16904_v2  ;;  %v16905_v26 = vld [vmem:[#allocation343_spill] sm:$0xff]  ;;  %v4222_v25 = vsel %vm2388_vm7, %v4198_v23, %v16906_v15  ;;  %v16911_v23 = vld [vmem:[#allocation349_spill] sm:$0xff]  ;;  %v16916_v1 = vld [vmem:[#allocation354_spill] sm:$0xff] }
 0x67b   : > { %v13310_v34 = vpop.permute.xlu0 %4665  ;;  %v5009_v8 = vsel %vm16900_vm9, %v5006_v0, %v5008_v20  ;;  %v16903_v0 = vld [vmem:[#allocation341_spill] sm:$0xff]  ;;  %v4221_v7 = vsel %vm2388_vm7, %v4197_v63, %v16905_v26  ;;  %v4889_v31 = vsel %vm2336_vm6, %v4864_v16, %v13212_v30  ;;  %v4223_v37 = vsel %vm2388_vm7, %v4199_v53, %v16907_v41  ;;  %v16910_v63 = vld [vmem:[#allocation348_spill] sm:$0xff]  ;;  %v16912_v30 = vld [vmem:[#allocation350_spill] sm:$0xff] }
 0x67c   : > { %5056 = vrot.lane.b32.xlu0 %v5009_v8, %s7732_s29  ;;  %v4219_v36 = vsel %vm2388_vm7, %v4195_v17, %v16903_v0  ;;  %v4224_v17 = vsel %vm2388_vm7, %v4200_v49, %v16908_v50  ;;  %v4225_v21 = vsel %vm2388_vm7, %v4201_v29, %v16909_v38  ;;  %v4914_v5 = vsel %vm2362_vm13, %v4889_v31, %v4736_v55  ;;  %v7624_v49 = vld [vmem:[%s14997_s0 + $0x60] sm:$0xff]  ;;  %v16913_v55 = vld [vmem:[#allocation351_spill] sm:$0xff]  ;;  %v16925_v31 = vld [vmem:[#allocation137_spill] sm:$0xff] }
 0x67d   : > { %v13308_v32 = vpop.permute.xlu1 %4621  ;;  %v4226_v11 = vsel %vm2388_vm7, %v4202_v19, %v16910_v63  ;;  %v4227_v43 = vsel %vm2388_vm7, %v4203_v52, %v16911_v23  ;;  %v4228_v4 = vsel %vm2388_vm7, %v4204_v56, %v16912_v30  ;;  %v13361_v29 = vsel %vm2388_vm7, %v4205_v57, %v16913_v55  ;;  %v16915_v52 = vld [vmem:[#allocation353_spill] sm:$0xff]  ;;  %v16922_v2 = vld [vmem:[#allocation111_spill] sm:$0xff]  ;;  %v16926_v50 = vld [vmem:[#allocation146_spill] sm:$0xff] }
 0x67e   : > { %v13365_v19 = vsel %vm2388_vm7, %v4206_v46, %v16914_v10  ;;  %v13369_v8 = vsel %vm2388_vm7, %v4207_v48, %v16915_v52  ;;  %v13374_v61 = vsel %vm2388_vm7, %v4208_v59, %v16916_v1  ;;  %v13378_v51 = vsel %vm2388_vm7, %v4209_v47, %v16746_v54  ;;  %v16917_v48 = vld [vmem:[#allocation68_spill] sm:$0xff]  ;;  %v16927_v38 = vld [vmem:[#allocation153_spill] sm:$0xff] }
 0x67f   : > { %v4668_v42 = vpop.permute.xlu0 %4667  ;;  %v13382_v57 = vsel %vm2388_vm7, %v4210_v44, %v16747_v18  ;;  %v13386_v46 = vsel %vm2388_vm7, %v4211_v28, %v16753_v6  ;;  %v4243_v0 = vsel %vm2500_vm3, %v4219_v36, %v16917_v48  ;;  %v4795_v59 = vsel %vm15484_vm2, %v13030_v27, %v13032_v9  ;;  %v16919_v44 = vld [vmem:[#allocation79_spill] sm:$0xff]  ;;  %v16931_v23 = vld [vmem:[#allocation209_spill] sm:$0xff] }
 0x680   : > { %5796 = vperm.xlu0 %7615, %v7624_v49   ;;  %v4796_v54 = vsel %vm15484_vm2, %v13087_v12, %v13127_v24  ;;  %v4244_v6 = vsel %vm2500_vm3, %v4220_v45, %v16919_v44  ;;  %v4805_v28 = vsel %vm15483_vm12, %v4795_v59, %v13125_v62  ;;  %v7625_v27 = vld [vmem:[%s14997_s0 + $0x68] sm:$0xff]  ;;  %v4247_v45 = vsel %vm2500_vm3, %v4223_v37, %v16922_v2  ;;  %v16928_v37 = vld [vmem:[#allocation370_spill] sm:$0xff]  ;;  %v16933_v10 = vld [vmem:[#allocation373_spill] sm:$0xff] }
 0x681   : > { %v4772_v22 = vpop.permute.xlu1 %4771  ;;  %v4806_v36 = vsel %vm15483_vm12, %v4796_v54, %v13210_v40  ;;  %v16920_v9 = vld [vmem:[#allocation95_spill] sm:$0xff]  ;;  %v16924_v40 = vld [vmem:[#allocation128_spill] sm:$0xff]  ;;  %v13423_v41 = vsel %vm2500_vm3, %v4226_v11, %v16925_v31  ;;  %v16941_v31 = vld [vmem:[#allocation277_spill] sm:$0xff]  ;;  %vm5088_vm9 = vcmask 523264   ;;  %vm5133_vm12 = vcmask 818176  }
 0x682   : > { %v13354_v53 = vsel %vm2388_vm7, %v4914_v5, %v4772_v22  ;;  %v4245_v12 = vsel %vm2500_vm3, %v4221_v7, %v16920_v9  ;;  %v16921_v24 = vld [vmem:[#allocation103_spill] sm:$0xff]  ;;  %v13419_v15 = vsel %vm2500_vm3, %v4225_v21, %v16924_v40  ;;  %v13427_v7 = vsel %vm2500_vm3, %v4227_v43, %v16926_v50  ;;  %v16932_v43 = vld [vmem:[#allocation372_spill] sm:$0xff] }
 0x683   : > { %v5010_v56 = vrot.slane %v13354_v53, 1  ;;  %v16923_v62 = vld [vmem:[#allocation119_spill] sm:$0xff]  ;;  %v4268_v5 = vsel %vm4267_vm10, %v4243_v0, %v16928_v37  ;;  %v4816_v11 = vsel %vm2258_vm14, %v4806_v36, %v16931_v23  ;;  %v4270_v55 = vsel %vm4267_vm10, %v4245_v12, %v16932_v43  ;;  %v16936_v54 = vld [vmem:[#allocation384_spill] sm:$0xff]  ;;  %v16938_v36 = vld [vmem:[#allocation386_spill] sm:$0xff] }
 0x684   : > { %5800 = vperm.xlu0 %7615, %v7625_v27   ;;  %v4248_v26 = vsel %vm2500_vm3, %v4224_v17, %v16923_v62  ;;  %v16929_v17 = vld [vmem:[#allocation371_spill] sm:$0xff]  ;;  %v4841_v1 = vsel %vm2284_vm1, %v4816_v11, %v13308_v32  ;;  %v16939_v12 = vld [vmem:[#allocation118_spill] sm:$0xff]  ;;  %v16947_v23 = vld [vmem:[#allocation321_spill] sm:$0xff] }
 0x685   : > { %v4704_v47 = vpop.permute.xlu0 %4703  ;;  %v4702_v16 = vpop.permute.xlu1 %4701  ;;  %v5011_v18 = vsel %vm16918_vm15, %v5008_v20, %v5010_v56  ;;  %v4246_v20 = vsel %vm2500_vm3, %v4222_v25, %v16921_v24  ;;  %v13431_v25 = vsel %vm2500_vm3, %v4228_v4, %v16927_v38  ;;  %v4269_v22 = vsel %vm4267_vm10, %v4244_v6, %v16929_v17  ;;  %v16930_v21 = vld [vmem:[#allocation255_spill] sm:$0xff]  ;;  %v16943_v38 = vld [vmem:[#allocation208_spill] sm:$0xff]  ;;  %v16944_v37 = vld [vmem:[#allocation258_spill] sm:$0xff] }
 0x686   : > { %5058 = vrot.lane.b32.xlu1 %v5011_v18, %s7732_s29  ;;  %v4815_v63 = vsel %vm2258_vm14, %v4805_v28, %v16930_v21  ;;  %v4271_v4 = vsel %vm4267_vm10, %v4246_v20, %v16933_v10  ;;  %v16934_v48 = vld [vmem:[#allocation207_spill] sm:$0xff]  ;;  %v4294_v18 = vsel %vm4292_vm4, %v4269_v22, %v16936_v54  ;;  %v4866_v6 = vsel %vm2310_vm11, %v4841_v1, %v4668_v42  ;;  %v16937_v28 = vld [vmem:[#allocation385_spill] sm:$0xff]  ;;  %v16946_v21 = vld [vmem:[#allocation124_spill] sm:$0xff] }
 0x687   : > { %v4840_v52 = vsel %vm2284_vm1, %v4815_v63, %v13248_v35  ;;  %v16935_v0 = vld [vmem:[#allocation383_spill] sm:$0xff]  ;;  %v4295_v35 = vsel %vm4292_vm4, %v4270_v55, %v16937_v28  ;;  %v4296_v32 = vsel %vm4292_vm4, %v4271_v4, %v16938_v36  ;;  %v4891_v27 = vsel %vm2336_vm6, %v4866_v6, %v4704_v47  ;;  %v16940_v20 = vld [vmem:[#allocation197_spill] sm:$0xff]  ;;  %v16951_v43 = vld [vmem:[#allocation396_spill] sm:$0xff] }
 0x688   : > { %v4293_v59 = vsel %vm4292_vm4, %v4268_v5, %v16935_v0  ;;  %v4865_v44 = vsel %vm2310_vm11, %v4840_v52, %v13310_v34  ;;  %v4319_v2 = vsel %vm4317_vm0, %v4294_v18, %v16940_v20  ;;  %vm16942_vm14 = vcmask 424960   ;;  %v16952_v10 = vld [vmem:[#allocation397_spill] sm:$0xff]  ;;  %v16956_v6 = vld [vmem:[#allocation363_spill] sm:$0xff] }
 0x689   : > { %v4740_v30 = vpop.permute.xlu0 %4739  ;;  %v4890_v9 = vsel %vm2336_vm6, %v4865_v44, %v4702_v16  ;;  %v4318_v24 = vsel %vm4317_vm0, %v4293_v59, %v16939_v12  ;;  %vm16945_vm8 = vmmov %vm16942_vm14  ;;  %v4320_v63 = vsel %vm4317_vm0, %v4295_v35, %v16946_v21  ;;  %vm16948_vm15 = vcmask 457728   ;;  %v16955_v59 = vld [vmem:[#allocation270_spill] sm:$0xff] }
 0x68a   : > { %v4738_v49 = vpop.permute.xlu1 %4737  ;;  %4023 = vrot.lane.b32.xlu1 %v16934_v48, %s16783_s23  ;;  %v4916_v34 = vsel %vm2362_vm13, %v4891_v27, %v4740_v30  ;;  %v4343_v50 = vsel %vm16942_vm14, %v4318_v24, %v16941_v31  ;;  %v4344_v5 = vsel %vm16945_vm8, %v4319_v2, %v16944_v37  ;;  %v16949_v30 = vld [vmem:[#allocation154_spill] sm:$0xff]  ;;  %vm16950_vm14 = vmmov %vm16948_vm15  ;;  %vm16953_vm8 = vcmask 1046528   ;;  %v16963_v24 = vld [vmem:[#allocation299_spill] sm:$0xff] }
 0x68b   : > { %v4915_v42 = vsel %vm2362_vm13, %v4890_v9, %v4738_v49  ;;  %v4368_v11 = vsel %vm16948_vm15, %v4343_v50, %v16947_v23  ;;  %v4369_v49 = vsel %vm16950_vm14, %v4344_v5, %v16949_v30  ;;  %vm16954_vm2 = vmmov %vm16953_vm8  ;;  %v4321_v54 = vsel %vm4317_vm0, %v4296_v32, %v16955_v59  ;;  %v16957_v35 = vld [vmem:[#allocation122_spill] sm:$0xff]  ;;  %v16960_v32 = vld [vmem:[#allocation135_spill] sm:$0xff] }
 0x68c   : > { %v4393_v55 = vsel %vm4392_vm5, %v4368_v11, %v16951_v43  ;;  %v4394_v4 = vsel %vm4392_vm5, %v4369_v49, %v16952_v10  ;;  %v13501_v28 = vsel %vm2500_vm3, %v13361_v29, %v16956_v6  ;;  %v4272_v53 = vsel %vm4267_vm10, %v4247_v45, %v16957_v35  ;;  %v16962_v9 = vld [vmem:[#allocation374_spill] sm:$0xff]  ;;  %v16964_v2 = vld [vmem:[#allocation161_spill] sm:$0xff]  ;;  %v7627_v23 = vld [vmem:[%s14997_s0 + $0x70] sm:$0xff] }
 0x68d   : > { %v4273_v12 = vsel %vm4267_vm10, %v4248_v26, %v16962_v9  ;;  %v4297_v20 = vsel %vm4292_vm4, %v4272_v53, %v16963_v24  ;;  %v16969_v50 = vld [vmem:[#allocation398_spill] sm:$0xff]  ;;  %v16972_v5 = vld [vmem:[#allocation221_spill] sm:$0xff]  ;;  %v16973_v11 = vld [vmem:[#allocation364_spill] sm:$0xff] }
 0x68e   : > { %v4776_v62 = vpop.permute.xlu0 %4775  ;;  %v4774_v40 = vpop.permute.xlu1 %4773  ;;  %4025 = vrot.lane.b32.xlu1 %v16943_v38, %s16783_s23  ;;  %v16974_v30 = vld [vmem:[#allocation131_spill] sm:$0xff]  ;;  %v16975_v43 = vld [vmem:[#allocation317_spill] sm:$0xff]  ;;  %v16976_v10 = vld [vmem:[#allocation246_spill] sm:$0xff] }
 0x68f   : > { %v4941_v47 = vsel %vm2388_vm7, %v4916_v34, %v4776_v62  ;;  %v4940_v16 = vsel %vm2388_vm7, %v4915_v42, %v4774_v40  ;;  %v16965_v34 = vld [vmem:[#allocation145_spill] sm:$0xff]  ;;  %v16967_v42 = vld [vmem:[#allocation302_spill] sm:$0xff]  ;;  %v16968_v40 = vld [vmem:[#allocation219_spill] sm:$0xff]  ;;  %v4274_v49 = vsel %vm4267_vm10, %v13419_v15, %v16974_v30 }
 0x690   : > { %v5014_v17 = vrot.slane %v4941_v47, 1  ;;  %v5012_v22 = vrot.slane %v4940_v16, 1  ;;  %v4298_v62 = vsel %vm4292_vm4, %v4273_v12, %v16967_v42  ;;  %v4322_v31 = vsel %vm4317_vm0, %v4297_v20, %v16968_v40  ;;  %v16970_v47 = vld [vmem:[#allocation399_spill] sm:$0xff]  ;;  %v16984_v6 = vld [vmem:[#allocation198_spill] sm:$0xff]  ;;  %v16985_v53 = vld [vmem:[#allocation400_spill] sm:$0xff] }
 0x691   : > { %v16987_v9 = vld [vmem:[#allocation127_spill] sm:$0xff]  ;;  %v16989_v42 = vld [vmem:[#allocation150_spill] sm:$0xff]  ;;  %v16990_v40 = vld [vmem:[#allocation280_spill] sm:$0xff] }
 0x692   : > { %v5019_v52 = vpop.permute.xlu0 %5018  ;;  %v5017_v1 = vpop.permute.xlu1 %5016  ;;  %v5015_v48 = vsel %vm16953_vm8, %v5012_v22, %v5014_v17  ;;  %v5013_v0 = vsel %vm16954_vm2, %v5010_v56, %v5012_v22  ;;  %v16958_v56 = vld [vmem:[#allocation74_spill] sm:$0xff]  ;;  %vm16959_vm2 = vcmask 424960   ;;  %vm16966_vm8 = vmmov %vm16950_vm14  ;;  %v4323_v17 = vsel %vm4317_vm0, %v4298_v62, %v16972_v5 }
 0x693   : > { %v5090_v18 = vsel %vm5088_vm9, %v4394_v4, %v5019_v52  ;;  %v5089_v44 = vsel %vm5088_vm9, %v4393_v55, %v5017_v1  ;;  %5062 = vrot.lane.b32.xlu1 %v5015_v48, %s7732_s29  ;;  %5060 = vrot.lane.b32.xlu0 %v5013_v0, %s7732_s29  ;;  %v4345_v36 = vsel %vm16959_vm2, %v4320_v63, %v16958_v56  ;;  %vm16961_vm15 = vmmov %vm16959_vm2  ;;  %vm16971_vm2 = vcmask 1043456   ;;  %v7626_v63 = vld [vmem:[%s14997_s0 + $0x78] sm:$0xff]  ;;  %v16978_v52 = vld [vmem:[#allocation140_spill] sm:$0xff] }
 0x694   : > { %v4346_v27 = vsel %vm16961_vm15, %v4321_v54, %v16960_v32  ;;  %7446 = vmatprep.mubr.msk.f32.mxu1 %vm5133_vm12, %v5089_v44  ;;  %v4370_v29 = vsel %vm16950_vm14, %v4345_v36, %v16964_v2  ;;  %v4347_v55 = vsel %vm16961_vm15, %v4322_v31, %v16975_v43  ;;  %vm16977_vm14 = vmmov %vm16961_vm15  ;;  %v4275_v1 = vsel %vm4267_vm10, %v13423_v41, %v16978_v52  ;;  %v16979_v48 = vld [vmem:[#allocation303_spill] sm:$0xff]  ;;  %v16986_v56 = vld [vmem:[#allocation401_spill] sm:$0xff] }
 0x695   : > { %v4371_v45 = vsel %vm16966_vm8, %v4346_v27, %v16965_v34  ;;  %7447 = vmatmul.mubr.msk.f32.vlgmr.msra.gmra.mrb[24].mxu1 %vm5133_vm12, %v5090_v18  ;;  %v4395_v26 = vsel %vm4392_vm5, %v4370_v29, %v16969_v50  ;;  %v4348_v4 = vsel %vm16977_vm14, %v4323_v17, %v16976_v10  ;;  %v4299_v0 = vsel %vm4292_vm4, %v4274_v49, %v16979_v48  ;;  %v16981_v54 = vld [vmem:[#allocation159_spill] sm:$0xff]  ;;  %v7629_v29 = vld [vmem:[%s14997_s0 + $0x80] sm:$0xff]  ;;  %v16988_v34 = vld [vmem:[#allocation365_spill] sm:$0xff] }
 0x696   : > { %v4396_v16 = vsel %vm4392_vm5, %v4371_v45, %v16970_v47  ;;  %v5023_v38 = vpop.permute.xlu0 %5022  ;;  %v5021_v37 = vpop.permute.xlu1 %5020  ;;  %7483 = vmatpush3.msk.msra.mxu1 %vm16971_vm2, %v13111_v3  ;;  %v4254_v3 = vsel %vm2500_vm3, %v13365_v19, %v16973_v11  ;;  %v16980_v19 = vld [vmem:[#allocation151_spill] sm:$0xff]  ;;  %vm16982_vm2 = vmmov %vm16966_vm8  ;;  %v4324_v35 = vsel %vm4317_vm0, %v4299_v0, %v16984_v6  ;;  %v4255_v45 = vsel %vm2500_vm3, %v13369_v8, %v16988_v34  ;;  %v16992_v50 = vld [vmem:[#allocation281_spill] sm:$0xff] }
 0x697   : > { %v5092_v22 = vsel %vm5088_vm9, %v4396_v16, %v5023_v38  ;;  %v5091_v21 = vsel %vm5088_vm9, %v4395_v26, %v5021_v37  ;;  %5808 = vperm.xlu1 %7616, %v7626_v63   ;;  %5804 = vperm.xlu0 %7615, %v7627_v23   ;;  %v4372_v59 = vsel %vm16966_vm8, %v4347_v55, %v16980_v19  ;;  %v16983_v18 = vld [vmem:[#allocation387_spill] sm:$0xff]  ;;  %vm16991_vm15 = vmmov %vm16977_vm14  ;;  %v16993_v47 = vld [vmem:[#allocation156_spill] sm:$0xff] }
 0x698   : > { %7449 = vmatprep.mubr.msk.f32.mxu1 %vm5133_vm12, %v5091_v21  ;;  %v4373_v15 = vsel %vm16982_vm2, %v4348_v4, %v16981_v54  ;;  %v4300_v44 = vsel %vm4292_vm4, %v4275_v1, %v16983_v18  ;;  %v4397_v41 = vsel %vm4392_vm5, %v4372_v59, %v16985_v53  ;;  %v7628_v2 = vld [vmem:[%s14997_s0 + $0x88] sm:$0xff]  ;;  %v4276_v62 = vsel %vm4267_vm10, %v13427_v7, %v16989_v42  ;;  %v16994_v38 = vld [vmem:[#allocation306_spill] sm:$0xff]  ;;  %vm16996_vm8 = vmmov %vm16982_vm2 }
 0x699   : > { %7450 = vmatmul.mubr.msk.f32.gmra.mrb[26].mxu1 %vm5133_vm12, %v5092_v22  ;;  %v4398_v36 = vsel %vm4392_vm5, %v4373_v15, %v16986_v56  ;;  %v4325_v12 = vsel %vm4317_vm0, %v4300_v44, %v16987_v9  ;;  %v4349_v31 = vsel %vm16991_vm15, %v4324_v35, %v16990_v40  ;;  %v4277_v16 = vsel %vm4267_vm10, %v13431_v25, %v16993_v47  ;;  %v16995_v8 = vld [vmem:[#allocation174_spill] sm:$0xff]  ;;  %v16997_v17 = vld [vmem:[#allocation165_spill] sm:$0xff]  ;;  %v17000_v11 = vld [vmem:[#allocation203_spill] sm:$0xff] }
 0x69a   : > { %v5027_v32 = vpop.permute.xlu0 %5026  ;;  %v5025_v27 = vpop.permute.xlu1 %5024  ;;  %v4350_v26 = vsel %vm16977_vm14, %v4325_v12, %v16992_v50  ;;  %v4301_v37 = vsel %vm4292_vm4, %v4276_v62, %v16994_v38  ;;  %v4374_v5 = vsel %vm16996_vm8, %v4349_v31, %v16995_v8  ;;  %v16998_v22 = vld [vmem:[#allocation309_spill] sm:$0xff]  ;;  %v17001_v30 = vld [vmem:[#allocation402_spill] sm:$0xff]  ;;  %v7631_v0 = vld [vmem:[%s14997_s0 + $0x90] sm:$0xff] }
 0x69b   : > { %v5094_v24 = vsel %vm5088_vm9, %v4398_v36, %v5027_v32  ;;  %v5093_v20 = vsel %vm5088_vm9, %v4397_v41, %v5025_v27  ;;  %5816 = vperm.xlu1 %7616, %v7628_v2   ;;  %5812 = vperm.xlu0 %7615, %v7629_v29   ;;  %v4375_v7 = vsel %vm16982_vm2, %v4350_v26, %v16997_v17  ;;  %v16999_v63 = vld [vmem:[#allocation201_spill] sm:$0xff]  ;;  %v17003_v19 = vld [vmem:[#allocation366_spill] sm:$0xff]  ;;  %v17004_v54 = vld [vmem:[#allocation375_spill] sm:$0xff] }
 0x69c   : > { %7452 = vmatprep.mubr.msk.f32.mxu1 %vm5133_vm12, %v5093_v20  ;;  %v4302_v21 = vsel %vm4292_vm4, %v4277_v16, %v16998_v22  ;;  %v4326_v23 = vsel %vm4317_vm0, %v4301_v37, %v16999_v63  ;;  %v4399_v25 = vsel %vm4392_vm5, %v4374_v5, %v17000_v11  ;;  %v4400_v49 = vsel %vm4392_vm5, %v4375_v7, %v17001_v30  ;;  %v17002_v10 = vld [vmem:[#allocation129_spill] sm:$0xff]  ;;  %vm17006_vm15 = vmmov %vm16977_vm14  ;;  %v17007_v6 = vld [vmem:[#allocation136_spill] sm:$0xff] }
 0x69d   : > { %7453 = vmatmul.mubr.msk.f32.gmra.mrb[28].mxu1 %vm5133_vm12, %v5094_v24  ;;  %v4327_v4 = vsel %vm4317_vm0, %v4302_v21, %v17002_v10  ;;  %v7630_v48 = vld [vmem:[%s14997_s0 + $0x98] sm:$0xff]  ;;  %v4256_v59 = vsel %vm2500_vm3, %v13374_v61, %v17003_v19  ;;  %v4278_v15 = vsel %vm4267_vm10, %v13501_v28, %v17004_v54  ;;  %v17008_v53 = vld [vmem:[#allocation376_spill] sm:$0xff]  ;;  %v17010_v32 = vld [vmem:[#allocation167_spill] sm:$0xff] }
 0x69e   : > { %v5031_v43 = vpop.permute.xlu0 %5030  ;;  %v5029_v55 = vpop.permute.xlu1 %5028  ;;  %v17005_v18 = vld [vmem:[#allocation133_spill] sm:$0xff]  ;;  %v4352_v35 = vsel %vm16977_vm14, %v4327_v4, %v17007_v6  ;;  %v4279_v41 = vsel %vm4267_vm10, %v4254_v3, %v17008_v53  ;;  %v17009_v56 = vld [vmem:[#allocation388_spill] sm:$0xff]  ;;  %vm17011_vm8 = vmmov %vm16982_vm2 }
 0x69f   : > { %v5096_v52 = vsel %vm5088_vm9, %v4400_v49, %v5031_v43  ;;  %v5095_v1 = vsel %vm5088_vm9, %v4399_v25, %v5029_v55  ;;  %5824 = vperm.xlu1 %7616, %v7630_v48   ;;  %5820 = vperm.xlu0 %7615, %v7631_v0   ;;  %v4351_v44 = vsel %vm17006_vm15, %v4326_v23, %v17005_v18  ;;  %v17012_v27 = vld [vmem:[#allocation176_spill] sm:$0xff]  ;;  %v17013_v9 = vld [vmem:[#allocation389_spill] sm:$0xff]  ;;  %v17014_v24 = vld [vmem:[#allocation230_spill] sm:$0xff] }
 0x6a0   : > { %7455 = vmatprep.mubr.msk.f32.mxu1 %vm5133_vm12, %v5095_v1  ;;  %v4303_v36 = vsel %vm4292_vm4, %v4278_v15, %v17009_v56  ;;  %v4376_v61 = vsel %vm17011_vm8, %v4351_v44, %v17010_v32  ;;  %v4377_v28 = vsel %vm16982_vm2, %v4352_v35, %v17012_v27  ;;  %v4304_v12 = vsel %vm4292_vm4, %v4279_v41, %v17013_v9  ;;  %v17015_v2 = vld [vmem:[#allocation403_spill] sm:$0xff]  ;;  %v17016_v29 = vld [vmem:[#allocation404_spill] sm:$0xff]  ;;  %v7633_v16 = vld [vmem:[%s14997_s0 + $0xa0] sm:$0xff] }
 0x6a1   : > { %7456 = vmatmul.mubr.msk.f32.gmra.mrb[30].mxu1 %vm5133_vm12, %v5096_v52  ;;  %v4328_v20 = vsel %vm4317_vm0, %v4303_v36, %v17014_v24  ;;  %v4401_v3 = vsel %vm4392_vm5, %v4376_v61, %v17015_v2  ;;  %v4402_v34 = vsel %vm4392_vm5, %v4377_v28, %v17016_v29  ;;  %v17017_v40 = vld [vmem:[#allocation220_spill] sm:$0xff]  ;;  %v7632_v47 = vld [vmem:[%s14997_s0 + $0xa8] sm:$0xff]  ;;  %v17019_v8 = vld [vmem:[#allocation377_spill] sm:$0xff] }
 0x6a2   : > { %v5035_v42 = vpop.permute.xlu0 %5034  ;;  %v5033_v62 = vpop.permute.xlu1 %5032  ;;  %v4329_v31 = vsel %vm4317_vm0, %v4304_v12, %v17017_v40  ;;  %v17018_v38 = vld [vmem:[#allocation367_spill] sm:$0xff]  ;;  %v4280_v5 = vsel %vm4267_vm10, %v4255_v45, %v17019_v8  ;;  %v17020_v17 = vld [vmem:[#allocation318_spill] sm:$0xff]  ;;  %vm17021_vm15 = vmmov %vm16977_vm14 }
 0x6a3   : > { %v5098_v50 = vsel %vm5088_vm9, %v4402_v34, %v5035_v42  ;;  %v5097_v26 = vsel %vm5088_vm9, %v4401_v3, %v5033_v62  ;;  %5832 = vperm.xlu1 %7616, %v7632_v47   ;;  %5828 = vperm.xlu0 %7615, %v7633_v16   ;;  %v4257_v37 = vsel %vm2500_vm3, %v13378_v51, %v17018_v38  ;;  %v17022_v22 = vld [vmem:[#allocation319_spill] sm:$0xff]  ;;  %v17023_v63 = vld [vmem:[#allocation378_spill] sm:$0xff]  ;;  %v17025_v30 = vld [vmem:[#allocation181_spill] sm:$0xff] }
 0x6a4   : > { %v4353_v7 = vsel %vm17021_vm15, %v4328_v20, %v17020_v17  ;;  %v4354_v21 = vsel %vm16977_vm14, %v4329_v31, %v17022_v22  ;;  %7458 = vmatprep.mubr.msk.f32.mxu1 %vm5133_vm12, %v5097_v26  ;;  %v4281_v23 = vsel %vm4267_vm10, %v4256_v59, %v17023_v63  ;;  %v17024_v11 = vld [vmem:[#allocation391_spill] sm:$0xff]  ;;  %vm17026_vm8 = vmmov %vm16982_vm2  ;;  %v17027_v49 = vld [vmem:[#allocation192_spill] sm:$0xff] }
 0x6a5   : > { %v4305_v25 = vsel %vm4292_vm4, %v4280_v5, %v17024_v11  ;;  %v4378_v51 = vsel %vm17026_vm8, %v4353_v7, %v17025_v30  ;;  %v4379_v45 = vsel %vm16982_vm2, %v4354_v21, %v17027_v49  ;;  %7459 = vmatmul.mubr.msk.f32.gmra.mrb[32].mxu1 %vm5133_vm12, %v5098_v50  ;;  %v17028_v43 = vld [vmem:[#allocation392_spill] sm:$0xff]  ;;  %v17031_v48 = vld [vmem:[#allocation227_spill] sm:$0xff]  ;;  %v7634_v6 = vld [vmem:[%s14997_s0 + $0xb8] sm:$0xff] }
 0x6a6   : > { %v4306_v55 = vsel %vm4292_vm4, %v4281_v23, %v17028_v43  ;;  %v17029_v10 = vld [vmem:[#allocation224_spill] sm:$0xff]  ;;  %v4404_v0 = vsel %vm4392_vm5, %v4379_v45, %v17031_v48  ;;  %v5039_v19 = vpop.permute.xlu0 %5038  ;;  %v5037_v59 = vpop.permute.xlu1 %5036  ;;  %v17032_v54 = vld [vmem:[#allocation239_spill] sm:$0xff]  ;;  %vm17036_vm15 = vmmov %vm16977_vm14 }
 0x6a7   : > { %v4330_v4 = vsel %vm4317_vm0, %v4305_v25, %v17029_v10  ;;  %v17030_v52 = vld [vmem:[#allocation200_spill] sm:$0xff]  ;;  %v4331_v15 = vsel %vm4317_vm0, %v4306_v55, %v17032_v54  ;;  %v5100_v18 = vsel %vm5088_vm9, %v4404_v0, %v5039_v19  ;;  %5840 = vperm.xlu1 %7616, %v7634_v6   ;;  %v17034_v56 = vld [vmem:[#allocation379_spill] sm:$0xff]  ;;  %v17037_v27 = vld [vmem:[#allocation142_spill] sm:$0xff] }
 0x6a8   : > { %v4403_v1 = vsel %vm4392_vm5, %v4378_v51, %v17030_v52  ;;  %v7635_v35 = vld [vmem:[%s14997_s0 + $0xb0] sm:$0xff]  ;;  %v4282_v36 = vsel %vm4267_vm10, %v4257_v37, %v17034_v56  ;;  %v4356_v28 = vsel %vm16977_vm14, %v4331_v15, %v17037_v27  ;;  %v17039_v24 = vld [vmem:[#allocation191_spill] sm:$0xff]  ;;  %v17040_v2 = vld [vmem:[#allocation333_spill] sm:$0xff] }
 0x6a9   : > { %v5099_v44 = vsel %vm5088_vm9, %v4403_v1, %v5037_v59  ;;  %5836 = vperm.xlu0 %7615, %v7635_v35   ;;  %v17033_v53 = vld [vmem:[#allocation368_spill] sm:$0xff]  ;;  %v4307_v20 = vsel %vm4292_vm4, %v4282_v36, %v17039_v24  ;;  %vm17041_vm8 = vmmov %vm16982_vm2  ;;  %v17042_v3 = vld [vmem:[#allocation162_spill] sm:$0xff] }
 0x6aa   : > { %v4258_v41 = vsel %vm2500_vm3, %v13382_v57, %v17033_v53  ;;  %v17035_v32 = vld [vmem:[#allocation88_spill] sm:$0xff]  ;;  %7461 = vmatprep.mubr.msk.f32.mxu1 %vm5133_vm12, %v5099_v44  ;;  %v4381_v29 = vsel %vm16982_vm2, %v4356_v28, %v17042_v3  ;;  %v17043_v34 = vld [vmem:[#allocation115_spill] sm:$0xff]  ;;  %v17045_v31 = vld [vmem:[#allocation405_spill] sm:$0xff]  ;;  %v5043_v16 = vpop.permute.xlu0 %5042  ;;  %v5041_v38 = vpop.permute.xlu1 %5040 }
 0x6ab   : > { %v4355_v61 = vsel %vm17036_vm15, %v4330_v4, %v17035_v32  ;;  %v17038_v9 = vld [vmem:[#allocation380_spill] sm:$0xff]  ;;  %7462 = vmatmul.mubr.msk.f32.gmra.mrb[34].mxu1 %vm5133_vm12, %v5100_v18  ;;  %v17044_v62 = vld [vmem:[#allocation71_spill] sm:$0xff]  ;;  %v17046_v26 = vld [vmem:[#allocation406_spill] sm:$0xff] }
 0x6ac   : > { %v4283_v12 = vsel %vm4267_vm10, %v4258_v41, %v17038_v9  ;;  %v4380_v57 = vsel %vm17041_vm8, %v4355_v61, %v17040_v2  ;;  %v4332_v40 = vsel %vm4317_vm0, %v4307_v20, %v17044_v62  ;;  %v4406_v47 = vsel %vm4392_vm5, %v4381_v29, %v17046_v26  ;;  %v17047_v37 = vld [vmem:[#allocation143_spill] sm:$0xff]  ;;  %v7637_v22 = vld [vmem:[%s14997_s0 + $0xc0] sm:$0xff]  ;;  %v17048_v21 = vld [vmem:[#allocation24_spill] sm:$0xff] }
 0x6ad   : > { %v4308_v42 = vsel %vm4292_vm4, %v4283_v12, %v17043_v34  ;;  %v4405_v50 = vsel %vm4392_vm5, %v4380_v57, %v17045_v31  ;;  %v5102_v5 = vsel %vm5088_vm9, %v4406_v47, %v5043_v16  ;;  %v7636_v7 = vld [vmem:[%s14997_s0 + $0xc8] sm:$0xff]  ;;  %5844 = vperm.xlu0 %7615, %v7637_v22   ;;  %v4259_v63 = vsel %vm2500_vm3, %v13386_v46, %v17048_v21  ;;  %v17049_v23 = vld [vmem:[#allocation148_spill] sm:$0xff]  ;;  %vm17050_vm15 = vmmov %vm16977_vm14 }
 0x6ae   : > { %v4333_v8 = vsel %vm4317_vm0, %v4308_v42, %v17047_v37  ;;  %v5101_v17 = vsel %vm5088_vm9, %v4405_v50, %v5041_v38  ;;  %5848 = vperm.xlu1 %7616, %v7636_v7   ;;  %v4357_v11 = vsel %vm17050_vm15, %v4332_v40, %v17049_v23  ;;  %v17051_v25 = vld [vmem:[#allocation284_spill] sm:$0xff]  ;;  %v17052_v51 = vld [vmem:[#allocation381_spill] sm:$0xff]  ;;  %vm17054_vm8 = vmmov %vm16982_vm2  ;;  %v5047_v19 = vpop.permute.xlu0 %5046  ;;  %v5045_v59 = vpop.permute.xlu1 %5044 }
 0x6af   : > { %v4358_v30 = vsel %vm16977_vm14, %v4333_v8, %v17051_v25  ;;  %7464 = vmatprep.mubr.msk.f32.mxu1 %vm5133_vm12, %v5101_v17  ;;  %v4284_v49 = vsel %vm4267_vm10, %v4259_v63, %v17052_v51  ;;  %v17053_v45 = vld [vmem:[#allocation169_spill] sm:$0xff]  ;;  %v17055_v55 = vld [vmem:[#allocation166_spill] sm:$0xff]  ;;  %v17058_v48 = vld [vmem:[#allocation407_spill] sm:$0xff] }
 0x6b0   : > { %v4382_v43 = vsel %vm17054_vm8, %v4357_v11, %v17053_v45  ;;  %v4383_v10 = vsel %vm16982_vm2, %v4358_v30, %v17055_v55  ;;  %7465 = vmatmul.mubr.msk.f32.gmra.mrb[36].mxu1 %vm5133_vm12, %v5102_v5  ;;  %v17056_v46 = vld [vmem:[#allocation134_spill] sm:$0xff]  ;;  %v7638_v6 = vld [vmem:[%s14997_s0 + $0xd8] sm:$0xff]  ;;  %v7639_v35 = vld [vmem:[%s14997_s0 + $0xd0] sm:$0xff] }
 0x6b1   : > { %v4309_v4 = vsel %vm4292_vm4, %v4284_v49, %v17056_v46  ;;  %v17057_v52 = vld [vmem:[#allocation254_spill] sm:$0xff]  ;;  %v4408_v0 = vsel %vm4392_vm5, %v4383_v10, %v17058_v48  ;;  %5852 = vperm.xlu0 %7615, %v7639_v35   ;;  %v17060_v53 = vld [vmem:[#allocation285_spill] sm:$0xff]  ;;  %vm17061_vm15 = vmmov %vm16977_vm14 }
 0x6b2   : > { %v4407_v1 = vsel %vm4392_vm5, %v4382_v43, %v17057_v52  ;;  %v17059_v54 = vld [vmem:[#allocation130_spill] sm:$0xff]  ;;  %v5104_v18 = vsel %vm5088_vm9, %v4408_v0, %v5047_v19  ;;  %5856 = vperm.xlu1 %7616, %v7638_v6   ;;  %v17062_v56 = vld [vmem:[#allocation172_spill] sm:$0xff]  ;;  %vm17063_vm14 = vmmov %vm16982_vm2  ;;  %v5049_v12 = vpop.permute.xlu1 %5048 }
 0x6b3   : > { %v4334_v15 = vsel %vm4317_vm0, %v4309_v4, %v17059_v54  ;;  %v5103_v44 = vsel %vm5088_vm9, %v4407_v1, %v5045_v59  ;;  %v17064_v32 = vld [vmem:[#allocation73_spill] sm:$0xff]  ;;  %v17065_v61 = vld [vmem:[#allocation215_spill] sm:$0xff]  ;;  %v17066_v28 = vld [vmem:[#allocation408_spill] sm:$0xff] }
 0x6b4   : > { %v4359_v41 = vsel %vm17061_vm15, %v4334_v15, %v17060_v53  ;;  %7467 = vmatprep.mubr.msk.f32.mxu1 %vm5133_vm12, %v5103_v44  ;;  %v4140_v27 = vsel %vm2284_vm1, %v17065_v61, %v17064_v32  ;;  %v17067_v24 = vld [vmem:[#allocation32_spill] sm:$0xff]  ;;  %v7640_v57 = vld [vmem:[%s14997_s0 + $0xe8] sm:$0xff]  ;;  %v7641_v3 = vld [vmem:[%s14997_s0 + $0xe0] sm:$0xff] }
 0x6b5   : > { %v4384_v36 = vsel %vm17063_vm14, %v4359_v41, %v17062_v56  ;;  %7468 = vmatmul.mubr.msk.f32.gmra.mrb[38].mxu1 %vm5133_vm12, %v5104_v18  ;;  %v4164_v20 = vsel %vm2310_vm11, %v4140_v27, %v17067_v24  ;;  %5860 = vperm.xlu0 %7615, %v7641_v3   ;;  %v17068_v62 = vld [vmem:[#allocation369_spill] sm:$0xff]  ;;  %v17069_v31 = vld [vmem:[#allocation234_spill] sm:$0xff]  ;;  %v7642_v26 = vld [vmem:[%s14997_s0 + $0xf0] sm:$0xff] }
 0x6b6   : > { %v4409_v9 = vsel %vm4392_vm5, %v4384_v36, %v17066_v28  ;;  %5864 = vperm.xlu1 %7616, %v7640_v57   ;;  %v4188_v29 = vsel %vm2336_vm6, %v4164_v20, %v16745_v39  ;;  %v17070_v50 = vrot.slane %v17069_v31, 6  ;;  %v17071_v39 = vld [vmem:[#allocation382_spill] sm:$0xff]  ;;  %v17072_v16 = vld [vmem:[#allocation189_spill] sm:$0xff]  ;;  %v17073_v38 = vld [vmem:[#allocation276_spill] sm:$0xff] }
 0x6b7   : > { %v5105_v2 = vsel %vm5088_vm9, %v4409_v9, %v5049_v12  ;;  %v4212_v34 = vsel %vm2362_vm13, %v4188_v29, %v16751_v33  ;;  %v17074_v37 = vld [vmem:[#allocation320_spill] sm:$0xff]  ;;  %v17077_v17 = vld [vmem:[#allocation69_spill] sm:$0xff]  ;;  %v17078_v7 = vld [vmem:[#allocation178_spill] sm:$0xff] }
 0x6b8   : > { %7470 = vmatprep.mubr.msk.f32.mxu1 %vm5133_vm12, %v5105_v2  ;;  %v4236_v42 = vsel %vm2388_vm7, %v4212_v34, %v16755_v13  ;;  %v17076_v5 = vld [vmem:[#allocation240_spill] sm:$0xff]  ;;  %vm17079_vm11 = vmmov %vm16982_vm2  ;;  %v17080_v21 = vld [vmem:[#allocation409_spill] sm:$0xff] }
 0x6b9   : > { %v4260_v40 = vsel %vm2500_vm3, %v4236_v42, %v17068_v62  ;;  %5868 = vperm.xlu0 %7615, %v7642_v26   ;;  %vm17075_vm3 = vmmov %vm17061_vm15  ;;  %v17081_v25 = vld [vmem:[#allocation243_spill] sm:$0xff]  ;;  %v17083_v51 = vld [vmem:[#allocation76_spill] sm:$0xff] }
 0x6ba   : > { %6431 = vrot.lane.b32.xlu1 %v17070_v50, %s7720_s28  ;;  %v4285_v47 = vsel %vm4267_vm10, %v4260_v40, %v17071_v39  ;;  %v17082_v30 = vld [vmem:[#allocation7_spill] sm:$0xff]  ;;  %v17084_v49 = vld [vmem:[#allocation244_spill] sm:$0xff]  ;;  %v17085_v45 = vld [vmem:[#allocation261_spill] sm:$0xff] }
 0x6bb   : > { %v4310_v33 = vsel %vm4292_vm4, %v4285_v47, %v17072_v16  ;;  %v5051_v23 = vpop.permute.xlu0 %5050  ;;  %v17086_v43 = vld [vmem:[#allocation249_spill] sm:$0xff]  ;;  %v17088_v10 = vld [vmem:[#allocation94_spill] sm:$0xff]  ;;  %v17091_v19 = vld [vmem:[#allocation100_spill] sm:$0xff] }
 0x6bc   : > { %v4335_v13 = vsel %vm4317_vm0, %v4310_v33, %v17073_v38  ;;  %v17087_v55 = vld [vmem:[#allocation245_spill] sm:$0xff]  ;;  %v17089_v52 = vld [vmem:[#allocation274_spill] sm:$0xff]  ;;  %v17092_v59 = vld [vmem:[#allocation3_spill] sm:$0xff] }
 0x6bd   : > { %v4360_v8 = vsel %vm17075_vm3, %v4335_v13, %v17074_v37  ;;  %6433 = vrot.lane.b32.xlu0 %v17077_v17, %s7720_s28  ;;  %v17090_v1 = vld [vmem:[#allocation250_spill] sm:$0xff]  ;;  %v7644_v44 = vld [vmem:[%s7841_s11 + $0x18] sm:$0xff]  ;;  %v17095_v6 = vld [vmem:[#allocation8_spill] sm:$0xff] }
 0x6be   : > { %6435 = vrot.lane.b32.xlu1 %v17076_v5, %s7720_s28  ;;  %v4385_v22 = vsel %vm17079_vm11, %v4360_v8, %v17078_v7  ;;  %v7643_v54 = vld [vmem:[%s7841_s11 + $0x20] sm:$0xff]  ;;  %vm17096_vm10 = vcmp.eq.s32.totalorder %v17095_v6, 1  ;;  %v7645_v53 = vld [vmem:[%s7841_s11 + $0x30] sm:$0xff]  ;;  %v17097_v41 = vld [vmem:[#allocation15_spill] sm:$0xff] }
 0x6bf   : > { %v4410_v63 = vsel %vm4392_vm5, %v4385_v22, %v17080_v21  ;;  %v17093_v15 = vld [vmem:[#allocation10_spill] sm:$0xff]  ;;  %v5466_v35 = vsel %vm17096_vm10, %v7644_v44, -1e+30  ;;  %vm17098_vm4 = vcmp.eq.s32.totalorder %v17097_v41, 1  ;;  %v7646_v36 = vld [vmem:[%s7841_s11 + $0x38] sm:$0xff]  ;;  %v17103_v20 = vld [vmem:[#allocation27_spill] sm:$0xff] }
 0x6c0   : > { %v5106_v11 = vsel %vm5088_vm9, %v4410_v63, %v5051_v23  ;;  %vm17094_vm13 = vcmp.eq.s32.totalorder %v17093_v15, 1  ;;  %v5469_v56 = vsel %vm17098_vm4, %v7645_v53, -1e+30  ;;  %v17099_v32 = vld [vmem:[#allocation18_spill] sm:$0xff]  ;;  %v17104_v2 = vld [vmem:[#allocation251_spill] sm:$0xff]  ;;  %v17105_v42 = vld [vmem:[#allocation12_spill] sm:$0xff] }
 0x6c1   : > { %6437 = vrot.lane.b32.xlu0 %v17082_v30, %s7720_s28  ;;  %7471 = vmatmul.mubr.msk.f32.gmra.mrb[40].mxu1 %vm5133_vm12, %v5106_v11  ;;  %v5467_v18 = vsel %vm17094_vm13, %v7643_v54, -1e+30  ;;  %vm17100_vm0 = vcmp.eq.s32.totalorder %v17099_v32, 1  ;;  %v17101_v27 = vld [vmem:[#allocation410_spill] sm:$0xff]  ;;  %v5497_v57 = vmax.f32 %v5466_v35, %v5469_v56  ;;  %v7647_v34 = vld [vmem:[%s7841_s11 + $0x28] sm:$0xff]  ;;  %vm17106_vm8 = vcmp.eq.s32.totalorder %v17105_v42, 1 }
 0x6c2   : > { %6439 = vrot.lane.b32.xlu1 %v17081_v25, %s7720_s28  ;;  %v5470_v61 = vsel %vm17100_vm0, %v7646_v36, -1e+30  ;;  %v17102_v28 = vld [vmem:[#allocation190_spill] sm:$0xff]  ;;  %v5468_v62 = vsel %vm17106_vm8, %v7647_v34, -1e+30  ;;  %v17107_v40 = vld [vmem:[#allocation80_spill] sm:$0xff] }
 0x6c3   : > { %v13829_v46 = vpop.permute.xlu1 %5772  ;;  %v4411_v9 = vsel %vm4392_vm5, %v17102_v28, %v17101_v27  ;;  %v5498_v3 = vmax.f32 %v5467_v18, %v5470_v61  ;;  %v17108_v31 = vld [vmem:[#allocation265_spill] sm:$0xff]  ;;  %v7648_v50 = vld [vmem:[%s7841_s11 + $0x40] sm:$0xff]  ;;  %v7649_v47 = vld [vmem:[%s7841_s11 + $0x50] sm:$0xff]  ;;  %vm17126_vm10 = vcmask 1046528  }
 0x6c4   : > { %v17109_v26 = vld [vmem:[#allocation21_spill] sm:$0xff]  ;;  %v17111_v16 = vld [vmem:[#allocation28_spill] sm:$0xff]  ;;  %v7650_v38 = vld [vmem:[%s7841_s11 + $0x48] sm:$0xff] }
 0x6c5   : > { %6441 = vrot.lane.b32.xlu0 %v17084_v49, %s7720_s28  ;;  %vm17110_vm2 = vcmp.eq.s32.totalorder %v17109_v26, 1  ;;  %vm17112_vm15 = vcmp.eq.s32.totalorder %v17111_v16, 1  ;;  %v17113_v13 = vld [vmem:[#allocation26_spill] sm:$0xff]  ;;  %v17115_v17 = vld [vmem:[#allocation183_spill] sm:$0xff]  ;;  %v7651_v11 = vld [vmem:[%s7841_s11 + $0x58] sm:$0xff] }
 0x6c6   : > { %6443 = vrot.lane.b32.xlu1 %v17083_v51, %s7720_s28  ;;  %v5471_v39 = vsel %vm17110_vm2, %v7648_v50, -1e+30  ;;  %v5473_v33 = vsel %vm17112_vm15, %v7649_v47, -1e+30  ;;  %vm17114_vm14 = vcmp.eq.s32.totalorder %v17113_v13, 1  ;;  %v17116_v25 = vld [vmem:[#allocation31_spill] sm:$0xff] }
 0x6c7   : > { %v13839_v0 = vpop.permute.xlu1 %5780  ;;  %v5472_v37 = vsel %vm17114_vm14, %v7650_v38, -1e+30  ;;  %v13882_v8 = vmax.f32 %v5498_v3, %v5473_v33  ;;  %v5499_v63 = vmax.f32 %v5468_v62, %v5471_v39  ;;  %vm17117_vm3 = vcmp.eq.s32.totalorder %v17116_v25, 1  ;;  %v17118_v51 = vld [vmem:[#allocation58_spill] sm:$0xff]  ;;  %v17119_v49 = vld [vmem:[#allocation33_spill] sm:$0xff]  ;;  %v7653_v15 = vld [vmem:[%s7841_s11 + $0x68] sm:$0xff] }
 0x6c8   : > { %v13884_v5 = vmax.f32 %v5497_v57, %v5472_v37  ;;  %v5500_v23 = vmax.f32 %v5469_v56, %v5472_v37  ;;  %v5474_v30 = vsel %vm17117_vm3, %v7651_v11, -1e+30  ;;  %v17122_v18 = vld [vmem:[#allocation36_spill] sm:$0xff]  ;;  %v17124_v6 = vld [vmem:[#allocation19_spill] sm:$0xff]  ;;  %v17125_v35 = vld [vmem:[#allocation65_spill] sm:$0xff]  ;;  %vm17138_vm15 = vcmask 1045504  }
 0x6c9   : > { %6445 = vrot.lane.b32.xlu0 %v17086_v43, %s7720_s28  ;;  %v13904_v54 = vmax.f32 %v5499_v63, %v5474_v30  ;;  %vm17123_vm13 = vcmp.eq.s32.totalorder %v17122_v18, 1  ;;  %v5672_v53 = vrot.slane %v13882_v8, 2  ;;  %v7654_v36 = vld [vmem:[%s7841_s11 + $0x70] sm:$0xff]  ;;  %v17127_v32 = vld [vmem:[#allocation34_spill] sm:$0xff]  ;;  %v17134_v26 = vld [vmem:[#allocation37_spill] sm:$0xff] }
 0x6ca   : > { %6447 = vrot.lane.b32.xlu1 %v17085_v45, %s7720_s28  ;;  %v5573_v45 = vrot.slane %v13882_v8, 1  ;;  %v5572_v43 = vrot.slane %v13884_v5, 1  ;;  %v5476_v44 = vsel %vm17123_vm13, %v7653_v15, -1e+30  ;;  %v5671_v56 = vrot.slane %v13884_v5, 2  ;;  %v17131_v34 = vld [vmem:[#allocation52_spill] sm:$0xff]  ;;  %vm17139_vm14 = vmmov %vm17126_vm10 }
 0x6cb   : > { %v4018_v29 = vpop.permute.xlu1 %4017  ;;  %vm17128_vm4 = vcmp.eq.s32.totalorder %v17127_v32, 1  ;;  %v5504_v28 = vmax.f32 %v5473_v33, %v5476_v44  ;;  %v5575_v3 = vrot.slane %v13904_v54, 1  ;;  %v17132_v42 = vrot.slane %v17131_v34, 6  ;;  %v17133_v62 = vld [vmem:[#allocation22_spill] sm:$0xff]  ;;  %v7657_v16 = vld [vmem:[%s7841_s11 + $0x88] sm:$0xff]  ;;  %v7658_v11 = vld [vmem:[%s7841_s11 + $0x90] sm:$0xff] }
 0x6cc   : > { %v13831_v4 = vpop.permute.xlu0 %5776  ;;  %v4412_v7 = vsel %vm4392_vm5, %v17115_v17, %v4018_v29  ;;  %v5574_v41 = vsel %vm17126_vm10, %v5572_v43, %v5573_v45  ;;  %v7656_v50 = vld [vmem:[%s7841_s11 + $0x80] sm:$0xff]  ;;  %vm17135_vm8 = vcmp.eq.s32.totalorder %v17134_v26, 1  ;;  %v17140_v25 = vld [vmem:[#allocation41_spill] sm:$0xff]  ;;  %vm17144_vm13 = vmmov %vm17126_vm10 }
 0x6cd   : > { %6449 = vrot.lane.b32.xlu0 %v17088_v10, %s7720_s28  ;;  %v7652_v10 = vld [vmem:[%s7841_s11 + $0x60] sm:$0xff]  ;;  %vm17141_vm3 = vcmp.eq.s32.totalorder %v17140_v25, 1  ;;  %v17142_v43 = vld [vmem:[#allocation45_spill] sm:$0xff]  ;;  %v17149_v26 = vld [vmem:[#allocation47_spill] sm:$0xff] }
 0x6ce   : > { %6451 = vrot.lane.b32.xlu1 %v17087_v55, %s7720_s28  ;;  %v5501_v55 = vmax.f32 %v5470_v61, %v5473_v33  ;;  %v5477_v61 = vsel %vm17128_vm4, %v7654_v36, -1e+30  ;;  %v17136_v33 = vld [vmem:[#allocation43_spill] sm:$0xff]  ;;  %v7660_v36 = vld [vmem:[%s7841_s11 + $0xa0] sm:$0xff] }
 0x6cf   : > { %vm17137_vm2 = vcmp.eq.s32.totalorder %v17136_v33, 1 }
 0x6d0   : > { %v13837_v48 = vpop.permute.xlu0 %5784  ;;  %v13942_v38 = vsel %vm17137_vm2, %v7657_v16, -1e+30 }
 0x6d1   : > { %6453 = vrot.lane.b32.xlu0 %v17090_v1, %s7720_s28 }
 0x6d2   : > { %6455 = vrot.lane.b32.xlu1 %v17089_v52, %s7720_s28  ;;  %v17120_v52 = vld [vmem:[#allocation30_spill] sm:$0xff] }
 0x6d3   : > { %vm17121_vm11 = vcmp.eq.s32.totalorder %v17120_v52, 1 }
 0x6d4   : > { %v5053_v12 = vpop.permute.xlu0 %5052  ;;  %v5475_v1 = vsel %vm17121_vm11, %v7652_v10, -1e+30  ;;  %vm17143_vm11 = vcmp.eq.s32.totalorder %v17142_v43, 1 }
 0x6d5   : > { %6457 = vrot.lane.b32.xlu0 %v17092_v59, %s7720_s28  ;;  %v5107_v24 = vsel %vm5088_vm9, %v4411_v9, %v5053_v12  ;;  %v13902_v59 = vmax.f32 %v5500_v23, %v5475_v1  ;;  %v13921_v9 = vmax.f32 %v5501_v55, %v5476_v44  ;;  %v7655_v12 = vld [vmem:[%s7841_s11 + $0x78] sm:$0xff] }
 0x6d6   : > { %6459 = vrot.lane.b32.xlu1 %v17091_v19, %s7720_s28  ;;  %7473 = vmatprep.mubr.msk.f32.mxu1 %vm5133_vm12, %v5107_v24  ;;  %v5502_v19 = vmax.f32 %v5471_v39, %v5474_v30  ;;  %v17129_v24 = vld [vmem:[#allocation38_spill] sm:$0xff]  ;;  %v5479_v39 = vsel %vm17135_vm8, %v7656_v50, -1e+30  ;;  %v7661_v50 = vld [vmem:[%s7841_s11 + $0xb0] sm:$0xff]  ;;  %vm17150_vm8 = vcmp.eq.s32.totalorder %v17149_v26, 1 }
 0x6d7   : > { %vm17130_vm0 = vcmp.eq.s32.totalorder %v17129_v24, 1  ;;  %v5577_v57 = vrot.slane %v13902_v59, 1  ;;  %v13946_v17 = vmax.f32 %v5504_v28, %v5479_v39  ;;  %v5507_v23 = vmax.f32 %v5476_v44, %v5479_v39 }
 0x6d8   : > { %v13919_v27 = vmax.f32 %v5502_v19, %v5477_v61  ;;  %v5678_v28 = vrot.slane %v13921_v9, 2 }
 0x6d9   : > { %6461 = vrot.lane.b32.xlu0 %v17104_v2, %s7720_s28  ;;  %v5503_v2 = vmax.f32 %v5472_v37, %v5475_v1  ;;  %v5579_v37 = vrot.slane %v13921_v9, 1 }
 0x6da   : > { %6463 = vrot.lane.b32.xlu1 %v17103_v20, %s7720_s28  ;;  %v5478_v20 = vsel %vm17130_vm0, %v7655_v12, -1e+30  ;;  %v5581_v13 = vrot.slane %v13919_v27, 1  ;;  %v5680_v44 = vrot.slane %v13919_v27, 2  ;;  %vm17147_vm0 = vmmov %vm17138_vm15 }
 0x6db   : > { %v5055_v22 = vpop.permute.xlu1 %5054  ;;  %v5506_v47 = vmax.f32 %v5475_v1, %v5478_v20  ;;  %v13954_v63 = vmax.f32 %v5503_v2, %v5478_v20  ;;  %v5576_v1 = vsel %vm17144_vm13, %v5573_v45, %v5575_v3 }
 0x6dc   : > { %v5108_v21 = vsel %vm5088_vm9, %v4412_v7, %v5055_v22  ;;  %v5676_v7 = vrot.slane %v13902_v59, 2  ;;  %v5578_v22 = vsel %vm17139_vm14, %v5575_v3, %v5577_v57  ;;  %v5647_v2 = vmax.f32 %v13882_v8, %v5576_v1  ;;  %v17151_v8 = vld [vmem:[#allocation49_spill] sm:$0xff]  ;;  %vm17154_vm14 = vmmov %vm17147_vm0 }
 0x6dd   : > { %6465 = vrot.lane.b32.xlu0 %v17108_v31, %s7720_s28  ;;  %7474 = vmatmul.mubr.msk.f32.gmra.mrb[42].mxu1 %vm5133_vm12, %v5108_v21  ;;  %v5505_v31 = vmax.f32 %v5474_v30, %v5477_v61  ;;  %v5674_v21 = vrot.slane %v13904_v54, 2  ;;  %v13959_v30 = vsel %vm17141_vm3, %v7658_v11, -1e+30  ;;  %v5648_v18 = vmax.f32 %v13904_v54, %v5578_v22  ;;  %v17145_v54 = vld [vmem:[#allocation44_spill] sm:$0xff]  ;;  %vm17155_vm3 = vmmov %vm17126_vm10 }
 0x6de   : > { %6467 = vrot.lane.b32.xlu1 %v17107_v40, %s7720_s28  ;;  %v5646_v40 = vmax.f32 %v13884_v5, %v5574_v41  ;;  %v5673_v5 = vsel %vm17138_vm15, %v5671_v56, %v5672_v53  ;;  %v13968_v10 = vmax.f32 %v5506_v47, %v13959_v30  ;;  %v5583_v45 = vrot.slane %v13954_v63, 1  ;;  %v7662_v47 = vld [vmem:[%s7841_s11 + $0xa8] sm:$0xff]  ;;  %vm17153_vm15 = vmmov %vm17126_vm10 }
 0x6df   : > { %v13928_v29 = vpop.permute.xlu0 %5788  ;;  %v13971_v52 = vmax.f32 %v5505_v31, %v13942_v38  ;;  %v4020_v41 = vpop.permute.xlu1 %4019  ;;  %v5509_v56 = vmax.f32 %v5478_v20, %v13959_v30  ;;  %vm17146_vm4 = vcmp.eq.s32.totalorder %v17145_v54, 1  ;;  %v5675_v34 = vsel %vm17147_vm0, %v5672_v53, %v5674_v21  ;;  %vm17158_vm13 = vmmov %vm17155_vm3  ;;  %v7667_v54 = vld [vmem:[%s7841_s11 + $0xd8] sm:$0xff] }
 0x6e0   : > { %v13974_v19 = vmax.f32 %v5646_v40, %v5673_v5  ;;  %v13993_v32 = vsel %vm17146_vm4, %v7660_v36, -1e+30  ;;  %v15490_v20 = vrot.slane %v13968_v10, 1  ;;  %vm17152_vm2 = vcmp.eq.s32.totalorder %v17151_v8, 1  ;;  %v17160_v8 = vld [vmem:[#allocation50_spill] sm:$0xff]  ;;  %vm17163_vm0 = vmmov %vm17155_vm3 }
 0x6e1   : > { %6469 = vrot.lane.b32.xlu0 %v17119_v49, %s7720_s28  ;;  %v7659_v49 = vld [vmem:[%s7841_s11 + $0x98] sm:$0xff]  ;;  %v5587_v3 = vrot.slane %v13971_v52, 1  ;;  %v14019_v16 = vsel %vm17152_vm2, %v7662_v47, -1e+30  ;;  %v5684_v11 = vrot.slane %v13946_v17, 2  ;;  %v5682_v25 = vrot.slane %v13954_v63, 2 }
 0x6e2   : > { %6471 = vrot.lane.b32.xlu1 %v17118_v51, %s7720_s28  ;;  %v5508_v51 = vmax.f32 %v5477_v61, %v13942_v38  ;;  %v13965_v55 = vsel %vm17143_vm11, %v7659_v49, -1e+30  ;;  %v14033_v22 = vmax.f32 %v5509_v56, %v14019_v16  ;;  %v5512_v1 = vmax.f32 %v13959_v30, %v14019_v16  ;;  %v7664_v47 = vld [vmem:[%s7841_s11 + $0xc0] sm:$0xff] }
 0x6e3   : > { %v13976_v15 = vpop.permute.xlu0 %5792  ;;  %v5510_v61 = vmax.f32 %v5479_v39, %v13965_v55  ;;  %v14001_v24 = vmax.f32 %v5507_v23, %v13965_v55  ;;  %v14014_v39 = vsel %vm17150_vm8, %v7661_v50, -1e+30  ;;  %v5677_v23 = vsel %vm17154_vm14, %v5674_v21, %v5676_v7  ;;  %v4022_v56 = vpop.permute.xlu1 %4021  ;;  %v17156_v50 = vld [vmem:[#allocation51_spill] sm:$0xff]  ;;  %vm17164_vm8 = vmmov %vm17154_vm14 }
 0x6e4   : > { %v13998_v12 = vmax.f32 %v5508_v51, %v13993_v32  ;;  %v14048_v43 = vsel %vm17155_vm3, %v5587_v3, %v15490_v20  ;;  %v5511_v21 = vmax.f32 %v13942_v38, %v13993_v32  ;;  %v15487_v38 = vrot.slane %v14033_v22, 1 }
 0x6e5   : > { %6473 = vrot.lane.b32.xlu0 %v17125_v35, %s7720_s28  ;;  %v5585_v35 = vrot.slane %v13946_v17, 1  ;;  %v14030_v5 = vmax.f32 %v5510_v61, %v14014_v39  ;;  %v15491_v49 = vrot.slane %v14001_v24, 1  ;;  %vm17157_vm11 = vcmp.eq.s32.totalorder %v17156_v50, 1  ;;  %v17185_v61 = vld [vmem:[#allocation194_spill] sm:$0xff] }
 0x6e6   : > { %6475 = vrot.lane.b32.xlu1 %v17124_v6, %s7720_s28  ;;  %v13985_v6 = vsel %vm17126_vm10, %v5579_v37, %v5581_v13  ;;  %v15485_v51 = vrot.slane %v13998_v12, 1  ;;  %vm17159_vm10 = vmmov %vm17155_vm3  ;;  %vm17161_vm4 = vcmp.eq.s32.totalorder %v17160_v8, 1 }
 0x6e7   : > { %v5650_v31 = vmax.f32 %v13921_v9, %v13985_v6  ;;  %v14027_v53 = vsel %vm17153_vm15, %v5583_v45, %v5585_v35  ;;  %vm17167_vm15 = vmmov %vm17164_vm8  ;;  %v7668_v6 = vld [vmem:[%s7841_s11 + $0xe0] sm:$0xff] }
 0x6e8   : > { %v5652_v36 = vmax.f32 %v13954_v63, %v14027_v53  ;;  %v14082_v26 = vsel %vm17159_vm10, %v15491_v49, %v15485_v51  ;;  %v5513_v51 = vmax.f32 %v13965_v55, %v14014_v39  ;;  %v5679_v55 = vsel %vm17164_vm8, %v5676_v7, %v5678_v28  ;;  %vm17174_vm10 = vmmov %vm17163_vm0 }
 0x6e9   : > { %6477 = vrot.lane.b32.xlu0 %v17133_v62, %s7720_s28 }
 0x6ea   : > { %6479 = vrot.lane.b32.xlu1 %v17132_v42, %s7720_s28  ;;  %v17148_v42 = vld [vmem:[#allocation186_spill] sm:$0xff] }
 0x6eb   : > { %v4413_v62 = vsel %vm4392_vm5, %v17148_v42, %v4020_v41  ;;  %v14054_v41 = vmax.f32 %v5647_v2, %v5675_v34  ;;  %v14060_v42 = vmax.f32 %v5648_v18, %v5677_v23  ;;  %v5580_v2 = vsel %vm17158_vm13, %v5577_v57, %v5579_v37  ;;  %vm17173_vm13 = vmmov %vm17163_vm0  ;;  %v17177_v23 = vld [vmem:[#allocation61_spill] sm:$0xff] }
 0x6ec   : > { %v5649_v8 = vmax.f32 %v13902_v59, %v5580_v2 }
 0x6ee   : > { %v5057_v40 = vpop.permute.xlu0 %5056 }
 0x6ef   : > { %v5109_v33 = vsel %vm5088_vm9, %v4413_v62, %v5057_v40  ;;  %v15486_v62 = vrot.slane %v14030_v5, 1  ;;  %v7663_v40 = vld [vmem:[%s7841_s11 + $0xb8] sm:$0xff] }
 0x6f0   : > { %7476 = vmatprep.mubr.msk.f32.mxu1 %vm5133_vm12, %v5109_v33  ;;  %v14067_v30 = vsel %vm17157_vm11, %v7663_v40, -1e+30  ;;  %v14087_v33 = vsel %vm17161_vm4, %v7664_v47, -1e+30  ;;  %v17162_v40 = vld [vmem:[#allocation195_spill] sm:$0xff]  ;;  %vm17172_vm11 = vmmov %vm17163_vm0 }
 0x6f1   : > { %v14091_v57 = vmax.f32 %v5512_v1, %v14087_v33  ;;  %v14094_v37 = vmax.f32 %v5511_v21, %v14067_v30  ;;  %v4414_v50 = vsel %vm4392_vm5, %v17162_v40, %v4022_v56  ;;  %v5514_v47 = vmax.f32 %v13993_v32, %v14067_v30  ;;  %v17165_v40 = vld [vmem:[#allocation55_spill] sm:$0xff] }
 0x6f2   : > { %v14112_v56 = vsel %vm17163_vm0, %v15487_v38, %v15486_v62  ;;  %v5515_v2 = vmax.f32 %v14019_v16, %v14087_v33  ;;  %vm17166_vm2 = vcmp.eq.s32.totalorder %v17165_v40, 1  ;;  %v5681_v1 = vsel %vm17167_vm15, %v5678_v28, %v5680_v44  ;;  %v17168_v62 = vld [vmem:[#allocation53_spill] sm:$0xff]  ;;  %vm17179_vm15 = vmmov %vm17163_vm0 }
 0x6f3   : > { %v15488_v59 = vrot.slane %v14091_v57, 1  ;;  %v15489_v7 = vrot.slane %v14094_v37, 1  ;;  %vm17169_vm14 = vcmp.eq.s32.totalorder %v17168_v62, 1  ;;  %v5871_v16 = vrot.slane %v13831_v4, 1  ;;  %v17170_v40 = vld [vmem:[#allocation57_spill] sm:$0xff] }
 0x6f4   : > { %v5748_v38 = vmax.f32 %v5649_v8, %v5679_v55  ;;  %v5870_v4 = vrot.slane %v13829_v46, 1  ;;  %vm17171_vm3 = vcmp.eq.s32.totalorder %v17170_v40, 1  ;;  %v5873_v8 = vrot.slane %v13839_v0, 1 }
 0x6f5   : > { %v5749_v55 = vmax.f32 %v5650_v31, %v5681_v1  ;;  %v14166_v46 = vsel %vm17172_vm11, %v15489_v7, %v15488_v59  ;;  %v5584_v0 = vsel %vm17174_vm10, %v5581_v13, %v5583_v45  ;;  %v17175_v31 = vld [vmem:[#allocation56_spill] sm:$0xff]  ;;  %v5877_v1 = vrot.slane %v13928_v29, 1  ;;  %vm17183_vm11 = vmmov %vm17163_vm0 }
 0x6f6   : > { %vm17176_vm4 = vcmp.eq.s32.totalorder %v17175_v31, 1  ;;  %v5651_v29 = vmax.f32 %v13919_v27, %v5584_v0  ;;  %v7669_v31 = vld [vmem:[%s7841_s11 + $0xe8] sm:$0xff]  ;;  %vm17186_vm10 = vmmov %vm17163_vm0 }
 0x6f7   : > { %v17180_v0 = vld [vmem:[#allocation59_spill] sm:$0xff] }
 0x6f8   : > { %v5059_v18 = vpop.permute.xlu1 %5058 }
 0x6f9   : > { %v5110_v34 = vsel %vm5088_vm9, %v4414_v50, %v5059_v18  ;;  %v7665_v18 = vld [vmem:[%s7841_s11 + $0xc8] sm:$0xff] }
 0x6fa   : > { %7477 = vmatmul.mubr.msk.f32.gmra.mrb[44].mxu1 %vm5133_vm12, %v5110_v34  ;;  %v14124_v50 = vsel %vm17166_vm2, %v7665_v18, -1e+30  ;;  %v7666_v34 = vld [vmem:[%s7841_s11 + $0xd0] sm:$0xff]  ;;  %vm17178_vm2 = vcmp.eq.s32.totalorder %v17177_v23, 1 }
 0x6fb   : > { %v14134_v32 = vsel %vm17169_vm14, %v7666_v34, -1e+30  ;;  %v5516_v62 = vmax.f32 %v14014_v39, %v14124_v50  ;;  %v14147_v34 = vmax.f32 %v5513_v51, %v14124_v50  ;;  %v5872_v39 = vsel %vm17173_vm13, %v5870_v4, %v5871_v16  ;;  %vm17184_vm13 = vmmov %vm17163_vm0 }
 0x6fc   : > { %v4024_v21 = vpop.permute.xlu1 %4023  ;;  %v14141_v28 = vmax.f32 %v5514_v47, %v14134_v32  ;;  %v5517_v18 = vmax.f32 %v14067_v30, %v14134_v32  ;;  %v14155_v47 = vsel %vm17171_vm3, %v7667_v54, -1e+30  ;;  %v5875_v51 = vrot.slane %v13837_v48, 1  ;;  %vm17182_vm3 = vmmov %vm17163_vm0 }
 0x6fd   : > { %v5491_v54 = vsel %vm17176_vm4, %v7668_v6, -1e+30  ;;  %v5874_v30 = vsel %vm17163_vm0, %v5871_v16, %v5873_v8  ;;  %v15493_v48 = vrot.slane %v14147_v34, 1  ;;  %v5518_v13 = vmax.f32 %v14087_v33, %v14155_v47  ;;  %vm17187_vm4 = vmmov %vm17164_vm8 }
 0x6fe   : > { %v15492_v9 = vrot.slane %v14141_v28, 1  ;;  %v14182_v4 = vmax.f32 %v5516_v62, %v5491_v54  ;;  %v14187_v45 = vmax.f32 %v5515_v2, %v14155_v47  ;;  %v5944_v16 = vmul.f32 %v5872_v39, %v13974_v19  ;;  %v7670_v39 = vld [vmem:[%s7841_s11 + $0xf0] sm:$0xff] }
 0x6ff   : > { %v5797_v40 = vpop.permute.xlu0 %5796  ;;  %v5683_v62 = vsel %vm17164_vm8, %v5680_v44, %v5682_v25  ;;  %v5492_v33 = vsel %vm17178_vm2, %v7669_v31, -1e+30  ;;  %v5945_v2 = vmul.f32 %v5874_v30, %v14054_v41  ;;  %v5876_v7 = vsel %vm17179_vm15, %v5873_v8, %v5875_v51  ;;  %vm17193_vm2 = vmmov %vm17182_vm3 }
 0x700   : > { %v4026_v59 = vpop.permute.xlu1 %4025  ;;  %v5879_v6 = vrot.slane %v13976_v15, 1  ;;  %v5519_v19 = vmax.f32 %v14124_v50, %v5491_v54  ;;  %vm17181_vm14 = vcmp.eq.s32.totalorder %v17180_v0, 1  ;;  %v5878_v27 = vsel %vm17182_vm3, %v5875_v51, %v5877_v1  ;;  %vm17194_vm15 = vmmov %vm17193_vm2 }
 0x701   : > { %v14208_v20 = vsel %vm17181_vm14, %v7670_v39, -1e+30  ;;  %v5881_v44 = vrot.slane %v5797_v40, 1  ;;  %v14218_v41 = vsel %vm17183_vm11, %v15493_v48, %v15492_v9  ;;  %v5609_v15 = vrot.slane %v14182_v4, 1  ;;  %vm17199_vm14 = vmmov %vm17193_vm2 }
 0x702   : > { %v14223_v50 = vmax.f32 %v5518_v13, %v14208_v20  ;;  %v5520_v8 = vmax.f32 %v14134_v32, %v5492_v33  ;;  %v6002_v51 = vrot.slane %v5944_v16, 1  ;;  %v5946_v54 = vmul.f32 %v5876_v7, %v14060_v42  ;;  %v17188_v7 = vld [vmem:[#allocation62_spill] sm:$0xff]  ;;  %v7672_v16 = vld [vmem:[%s7841_s11 + $0xf8] sm:$0xff]  ;;  %vm17201_vm11 = vmmov %vm17193_vm2 }
 0x703   : > { %v14211_v49 = vpop.permute.xlu0 %5800  ;;  %v5750_v30 = vmax.f32 %v5651_v29, %v5683_v62  ;;  %v6003_v40 = vrot.slane %v5945_v2, 1  ;;  %v5947_v31 = vmul.f32 %v5878_v27, %v5748_v38  ;;  %v5880_v39 = vsel %vm17184_vm13, %v5877_v1, %v5879_v6  ;;  %v7671_v38 = vld [vmem:[%s7841_s11 + $0x100] sm:$0xff]  ;;  %v17190_v29 = vld [vmem:[#allocation63_spill] sm:$0xff]  ;;  %vm17202_vm13 = vmmov %vm17193_vm2 }
 0x704   : > { %v5883_v9 = vrot.slane %v14211_v49, 1  ;;  %v14229_v48 = vmax.f32 %v5517_v18, %v5492_v33  ;;  %v4415_v13 = vsel %vm4392_vm5, %v17185_v61, %v4024_v21  ;;  %v5882_v23 = vsel %vm17186_vm10, %v5879_v6, %v5881_v44  ;;  %v17192_v62 = vld [vmem:[#allocation395_spill] sm:$0xff] }
 0x705   : > { %v5063_v0 = vpop.permute.xlu1 %5062  ;;  %v5685_v42 = vsel %vm17187_vm4, %v5682_v25, %v5684_v11  ;;  %vm17189_vm0 = vcmp.eq.s32.totalorder %v17188_v7, 1  ;;  %vm17191_vm8 = vcmp.eq.s32.totalorder %v17190_v29, 1  ;;  %v4416_v61 = vsel %vm4392_vm5, %v17192_v62, %v4026_v59 }
 0x706   : > { %v5495_v1 = vsel %vm17189_vm0, %v7671_v38, -1e+30  ;;  %v5494_v18 = vsel %vm17191_vm8, %v7672_v16, -1e+30  ;;  %v5613_v6 = vrot.slane %v14223_v50, 1  ;;  %v6005_v33 = vrot.slane %v5946_v54, 1  ;;  %vm17205_vm0 = vmmov %vm17193_vm2 }
 0x707   : > { %v5061_v32 = vpop.permute.xlu0 %5060  ;;  %v5948_v2 = vmul.f32 %v5880_v39, %v5749_v55  ;;  %v5112_v25 = vsel %vm5088_vm9, %v4416_v61, %v5063_v0  ;;  %v6007_v27 = vrot.slane %v5947_v31, 1  ;;  %v5949_v7 = vmul.f32 %v5882_v23, %v5750_v30  ;;  %vm17208_vm8 = vmmov %vm17205_vm0 }
 0x708   : > { %v5111_v21 = vsel %vm5088_vm9, %v4415_v13, %v5061_v32  ;;  %v5884_v38 = vsel %vm17193_vm2, %v5881_v44, %v5883_v9  ;;  %v6004_v59 = vsel %vm17194_vm15, %v6002_v51, %v6003_v40  ;;  %v5611_v13 = vrot.slane %v14229_v48, 1  ;;  %vm17198_vm9 = vmmov %vm17193_vm2 }
 0x709   : > { %7479 = vmatprep.mubr.msk.f32.mxu1 %vm5133_vm12, %v5111_v21  ;;  %v14257_v32 = vmax.f32 %v5520_v8, %v5495_v1  ;;  %v14259_v54 = vmax.f32 %v5519_v19, %v5494_v18  ;;  %v5751_v55 = vmax.f32 %v5652_v36, %v5685_v42  ;;  %vm17195_vm5 = vcmask 31744  }
 0x70a   : > { %7480 = vmatmul.mubr.msk.f32.gmra.mrb[46].mxu1 %vm5133_vm12, %v5112_v25  ;;  %v5704_v23 = vrot.slane %v14141_v28, 2  ;;  %v5662_v44 = vmax.f32 %v14147_v34, %v14218_v41  ;;  %v5702_v30 = vrot.slane %v14147_v34, 2  ;;  %vm17196_vm12 = vmmov %vm17193_vm2  ;;  %v17197_v63 = vrot.slane %v14187_v45, 1 }
 0x70b   : > { %7484 = vmatprep.mubr.msk.f32.mxu1 %vm17195_vm5, %v6004_v59  ;;  %v5588_v19 = vsel %vm17196_vm12, %v5585_v35, %v5587_v3  ;;  %v6009_v36 = vrot.slane %v5948_v2, 1  ;;  %v14281_v8 = vmul.f32 %v5884_v38, %v5751_v55  ;;  %v6006_v51 = vsel %vm17199_vm14, %v6003_v40, %v6005_v33  ;;  %vm17200_vm3 = vmmov %vm17195_vm5  ;;  %v7673_v38 = vld [vmem:[%s7841_s11 + $0x108] sm:$0xff] }
 0x70c   : > { %v14279_v53 = vsel %vm17198_vm9, %v17197_v63, %v5609_v15  ;;  %v5708_v31 = vrot.slane %v14182_v4, 2  ;;  %v5706_v39 = vrot.slane %v14187_v45, 2  ;;  %v6011_v0 = vrot.slane %v5949_v7, 1  ;;  %vm17203_vm10 = vmmov %vm17200_vm3  ;;  %v17209_v59 = vld [vmem:[#allocation67_spill] sm:$0xff] }
 0x70d   : > { %v6008_v35 = vsel %vm17201_vm11, %v6005_v33, %v6007_v27  ;;  %v14293_v3 = vsel %vm17202_vm13, %v5611_v13, %v5613_v6  ;;  %v15494_v42 = vrot.slane %v14257_v32, 1  ;;  %v5615_v40 = vrot.slane %v14259_v54, 1  ;;  %vm17211_vm15 = vmmov %vm17200_vm3 }
 0x70e   : > { %7485 = vmatmul.mubr.msk.f32.vlgmr.msra.gmra.mrb[48].mxu1 %vm17200_vm3, %v6006_v51  ;;  %v5653_v1 = vmax.f32 %v13946_v17, %v5588_v19  ;;  %v5664_v16 = vmax.f32 %v14187_v45, %v14279_v53  ;;  %v5521_v29 = vmax.f32 %v14155_v47, %v14208_v20  ;;  %v5712_v18 = vrot.slane %v14223_v50, 2  ;;  %vm17212_vm5 = vmmov %vm17205_vm0 }
 0x70f   : > { %7487 = vmatprep.mubr.msk.f32.mxu1 %vm17203_vm10, %v6008_v35  ;;  %v17204_v62 = vrot.slane %v13971_v52, 2  ;;  %v5710_v21 = vrot.slane %v14229_v48, 2  ;;  %v6013_v33 = vrot.slane %v14281_v8, 1  ;;  %v6010_v2 = vsel %vm17205_vm0, %v6007_v27, %v6009_v36  ;;  %vm17215_vm12 = vmmov %vm17187_vm4 }
 0x710   : > { %v17206_v25 = vrot.slane %v14001_v24, 1  ;;  %v17207_v7 = vrot.slane %v13968_v10, 1  ;;  %vm17210_vm2 = vcmp.eq.s32.totalorder %v17209_v59, 1  ;;  %v17213_v55 = vrot.slane %v13968_v10, 2  ;;  %vm17216_vm9 = vmmov %vm17205_vm0 }
 0x711   : > { %v5687_v61 = vsel %vm17187_vm4, %v5684_v11, %v17204_v62  ;;  %v5496_v17 = vsel %vm17210_vm2, %v7673_v38, -1e+30  ;;  %v6012_v11 = vsel %vm17212_vm5, %v6009_v36, %v6011_v0  ;;  %v17214_v27 = vmov %v17204_v62  ;;  %vm17217_vm14 = vmmov %vm17200_vm3 }
 0x712   : > { %v5592_v20 = vsel %vm17208_vm8, %v17207_v7, %v17206_v25  ;;  %7488 = vmatmul.mubr.msk.f32.gmra.mrb[50].mxu1 %vm17211_vm15, %v6010_v2  ;;  %v5689_v19 = vsel %vm17215_vm12, %v17214_v27, %v17213_v55  ;;  %v14335_v8 = vsel %vm17216_vm9, %v5615_v40, %v15494_v42  ;;  %v5714_v51 = vrot.slane %v14259_v54, 2  ;;  %vm17220_vm3 = vmmov %vm17187_vm4 }
 0x713   : > { %v5752_v35 = vmax.f32 %v5653_v1, %v5687_v61  ;;  %7490 = vmatprep.mubr.msk.f32.mxu1 %vm17217_vm14, %v6012_v11  ;;  %v5655_v7 = vmax.f32 %v13968_v10, %v5592_v20  ;;  %v17218_v38 = vrot.slane %v14001_v24, 2  ;;  %v17219_v59 = vmov %v17213_v55  ;;  %vm17222_vm11 = vmmov %vm17205_vm0 }
 0x714   : > { %v14345_v27 = vmax.f32 %v5521_v29, %v5496_v17  ;;  %v17221_v42 = vmax.f32 %v13971_v52, %v14048_v43  ;;  %v6014_v61 = vsel %vm17222_vm11, %v6011_v0, %v6013_v33  ;;  %v17223_v11 = vrot.slane %v14033_v22, 1  ;;  %vm17225_vm13 = vmmov %vm17205_vm0 }
 0x715   : > { %v5691_v55 = vsel %vm17220_vm3, %v17219_v59, %v17218_v38  ;;  %vm17226_vm10 = vmmov %vm17205_vm0  ;;  %v17229_v52 = vrot.slane %v13998_v12, 2  ;;  %v17230_v43 = vmov %v17218_v38  ;;  %v17232_v59 = vrot.slane %v14030_v5, 2 }
 0x716   : > { %v5805_v62 = vpop.permute.xlu0 %5804  ;;  %v5809_v36 = vpop.permute.xlu1 %5808  ;;  %v5753_v1 = vmax.f32 %v17221_v42, %v5689_v19  ;;  %vm17227_vm4 = vmmov %vm17205_vm0  ;;  %v17233_v49 = vrot.slane %v14033_v22, 2  ;;  %v5619_v41 = vrot.slane %v14345_v27, 1 }
 0x717   : > { %v5885_v2 = vrot.slane %v5805_v62, 1  ;;  %v5887_v25 = vrot.slane %v5809_v36, 1  ;;  %v17224_v62 = vrot.slane %v13998_v12, 1  ;;  %vm17228_vm0 = vmmov %vm17217_vm14 }
 0x718   : > { %7491 = vmatmul.mubr.msk.f32.gmra.mrb[52].mxu1 %vm17228_vm0, %v6014_v61  ;;  %vm17231_vm8 = vmmov %vm17220_vm3  ;;  %v17236_v61 = vrot.slane %v14030_v5, 1 }
 0x719   : > { %v5596_v20 = vsel %vm17225_vm13, %v17224_v62, %v17223_v11  ;;  %v5886_v10 = vsel %vm17226_vm10, %v5883_v9, %v5885_v2  ;;  %v5888_v29 = vsel %vm17227_vm4, %v5885_v2, %v5887_v25  ;;  %v5693_v0 = vsel %vm17231_vm8, %v17230_v43, %v17229_v52  ;;  %vm17234_vm2 = vmmov %vm17220_vm3 }
 0x71a   : > { %v5951_v42 = vmul.f32 %v5886_v10, %v5752_v35  ;;  %v5952_v17 = vmul.f32 %v5888_v29, %v5753_v1  ;;  %v5813_v19 = vpop.permute.xlu0 %5812  ;;  %v5817_v38 = vpop.permute.xlu1 %5816  ;;  %v5697_v9 = vsel %vm17234_vm2, %v17233_v49, %v17232_v59  ;;  %v17235_v2 = vrot.slane %v14094_v37, 1  ;;  %vm17237_vm15 = vmmov %vm17227_vm4 }
 0x71b   : > { %v5754_v62 = vmax.f32 %v5655_v7, %v5691_v55  ;;  %v5889_v36 = vrot.slane %v5813_v19, 1  ;;  %v5891_v63 = vrot.slane %v5817_v38, 1  ;;  %v5657_v35 = vmax.f32 %v13998_v12, %v5596_v20  ;;  %vm17241_vm5 = vmmov %vm17234_vm2 }
 0x71c   : > { %v5600_v11 = vsel %vm17237_vm15, %v17236_v61, %v17235_v2  ;;  %v6015_v1 = vrot.slane %v5951_v42, 1  ;;  %v6017_v10 = vrot.slane %v5952_v17, 1  ;;  %v17238_v29 = vmax.f32 %v14001_v24, %v14082_v26  ;;  %vm17242_vm12 = vmmov %vm17227_vm4 }
 0x71d   : > { %v17239_v43 = vmov %v17233_v49  ;;  %v17240_v59 = vrot.slane %v13998_v12, 2  ;;  %v5890_v47 = vsel %vm17242_vm12, %v5887_v25, %v5889_v36  ;;  %vm17243_vm9 = vmmov %vm17227_vm4  ;;  %v17244_v55 = vmax.f32 %v14033_v22, %v14112_v56 }
 0x71e   : > { %v5755_v52 = vmax.f32 %v17238_v29, %v5693_v0  ;;  %v5892_v7 = vsel %vm17243_vm9, %v5889_v36, %v5891_v63  ;;  %v5659_v42 = vmax.f32 %v14030_v5, %v5600_v11  ;;  %v5953_v17 = vmul.f32 %v5890_v47, %v5754_v62  ;;  %v5821_v24 = vpop.permute.xlu0 %5820  ;;  %v5825_v26 = vpop.permute.xlu1 %5824  ;;  %vm17245_vm14 = vmmov %vm17227_vm4 }
 0x71f   : > { %v5695_v49 = vsel %vm17241_vm5, %v17240_v59, %v17239_v43  ;;  %v5757_v20 = vmax.f32 %v17244_v55, %v5697_v9  ;;  %v6016_v0 = vsel %vm17245_vm14, %v6013_v33, %v6015_v1  ;;  %vm17246_vm3 = vmmov %vm17227_vm4  ;;  %v5893_v2 = vrot.slane %v5821_v24, 1 }
 0x720   : > { %v5954_v19 = vmul.f32 %v5892_v7, %v5755_v52  ;;  %v6018_v12 = vsel %vm17246_vm3, %v6015_v1, %v6017_v10  ;;  %v5756_v38 = vmax.f32 %v5657_v35, %v5695_v49  ;;  %v5895_v61 = vrot.slane %v5825_v26, 1  ;;  %vm17247_vm11 = vmmov %vm17228_vm0 }
 0x721   : > { %7493 = vmatprep.mubr.msk.f32.mxu1 %vm17247_vm11, %v6016_v0  ;;  %v17248_v25 = vrot.slane %v14094_v37, 2  ;;  %v17249_v22 = vrot.slane %v14030_v5, 2  ;;  %vm17250_vm13 = vmmov %vm17234_vm2  ;;  %v6019_v36 = vrot.slane %v5953_v17, 1  ;;  %v17252_v9 = vrot.slane %v14091_v57, 2 }
 0x722   : > { %v6021_v47 = vrot.slane %v5954_v19, 1  ;;  %vm17251_vm10 = vmmov %vm17228_vm0  ;;  %v17255_v62 = vrot.slane %v14147_v34, 1  ;;  %v17256_v35 = vrot.slane %v14091_v57, 1  ;;  %v17262_v59 = vrot.slane %v14187_v45, 1  ;;  %v5829_v19 = vpop.permute.xlu0 %5828  ;;  %v5833_v24 = vpop.permute.xlu1 %5832 }
 0x723   : > { %v5699_v56 = vsel %vm17250_vm13, %v17249_v22, %v17248_v25  ;;  %7494 = vmatmul.mubr.msk.f32.gmra.mrb[54].mxu1 %vm17251_vm10, %v6018_v12  ;;  %v17253_v33 = vmov %v17248_v25  ;;  %vm17254_vm4 = vmmov %vm17234_vm2  ;;  %v17260_v52 = vmov %v17252_v9  ;;  %v17263_v49 = vrot.slane %v14141_v28, 1 }
 0x724   : > { %v5701_v11 = vsel %vm17254_vm4, %v17253_v33, %v17252_v9  ;;  %vm17257_vm0 = vmmov %vm17246_vm3  ;;  %v5758_v0 = vmax.f32 %v5659_v42, %v5699_v56  ;;  %v5897_v12 = vrot.slane %v5829_v19, 1  ;;  %v17268_v33 = vmax.f32 %v14094_v37, %v14166_v46 }
 0x725   : > { %v5604_v1 = vsel %vm17257_vm0, %v17256_v35, %v17255_v62  ;;  %vm17258_vm8 = vmmov %vm17257_vm0  ;;  %v5707_v37 = vsel %vm17254_vm4, %v5704_v23, %v5706_v39  ;;  %v5616_v45 = vsel %vm17257_vm0, %v5613_v6, %v5615_v40 }
 0x726   : > { %v5894_v5 = vsel %vm17258_vm8, %v5891_v63, %v5893_v2  ;;  %vm17259_vm2 = vmmov %vm17257_vm0  ;;  %v5661_v25 = vmax.f32 %v14091_v57, %v5604_v1 }
 0x727   : > { %v5896_v29 = vsel %vm17259_vm2, %v5893_v2, %v5895_v61  ;;  %vm17261_vm15 = vmmov %vm17254_vm4  ;;  %v5955_v55 = vmul.f32 %v5894_v5, %v5756_v38  ;;  %v5899_v2 = vrot.slane %v5833_v24, 1  ;;  %v5759_v38 = vmax.f32 %v17268_v33, %v5701_v11  ;;  %v5841_v11 = vpop.permute.xlu1 %5840 }
 0x728   : > { %v5703_v43 = vsel %vm17261_vm15, %v17260_v52, %v5702_v30  ;;  %vm17264_vm5 = vmmov %vm17257_vm0  ;;  %v5956_v17 = vmul.f32 %v5896_v29, %v5757_v20  ;;  %v5903_v5 = vrot.slane %v5841_v11, 1 }
 0x729   : > { %v5608_v7 = vsel %vm17264_vm5, %v17263_v49, %v17262_v59  ;;  %vm17265_vm12 = vmmov %vm17257_vm0  ;;  %v6023_v22 = vrot.slane %v5955_v55, 1  ;;  %v5760_v35 = vmax.f32 %v5661_v25, %v5703_v43 }
 0x72a   : > { %v6020_v63 = vsel %vm17265_vm12, %v6017_v10, %v6019_v36  ;;  %vm17266_vm9 = vmmov %vm17257_vm0  ;;  %v6025_v9 = vrot.slane %v5956_v17, 1  ;;  %v5663_v57 = vmax.f32 %v14141_v28, %v5608_v7 }
 0x72b   : > { %v6022_v26 = vsel %vm17266_vm9, %v6019_v36, %v6021_v47  ;;  %vm17267_vm14 = vmmov %vm17251_vm10  ;;  %v5837_v36 = vpop.permute.xlu0 %5836  ;;  %v6024_v62 = vsel %vm17257_vm0, %v6021_v47, %v6023_v22 }
 0x72c   : > { %7496 = vmatprep.mubr.msk.f32.mxu1 %vm17267_vm14, %v6020_v63  ;;  %vm17269_vm3 = vmmov %vm17251_vm10  ;;  %v5762_v52 = vmax.f32 %v5663_v57, %v5707_v37 }
 0x72d   : > { %7497 = vmatmul.mubr.msk.f32.gmra.mrb[56].mxu1 %vm17269_vm3, %v6022_v26  ;;  %vm17270_vm11 = vmmov %vm17254_vm4  ;;  %v5849_v7 = vpop.permute.xlu1 %5848  ;;  %v5711_v26 = vsel %vm17254_vm4, %v5708_v31, %v5710_v21 }
 0x72e   : > { %v5705_v10 = vsel %vm17270_vm11, %v5702_v30, %v5704_v23  ;;  %vm17271_vm13 = vmmov %vm17257_vm0 }
 0x72f   : > { %v5898_v20 = vsel %vm17271_vm13, %v5895_v61, %v5897_v12  ;;  %vm17272_vm10 = vmmov %vm17257_vm0  ;;  %v5901_v61 = vrot.slane %v5837_v36, 1  ;;  %v5761_v1 = vmax.f32 %v5662_v44, %v5705_v10  ;;  %v5845_v49 = vpop.permute.xlu0 %5844  ;;  %v5718_v36 = vrot.slane %v14345_v27, 2 }
 0x730   : > { %v5900_v42 = vsel %vm17272_vm10, %v5897_v12, %v5899_v2  ;;  %v5957_v46 = vmul.f32 %v5898_v20, %v5758_v0  ;;  %vm17273_vm8 = vmmov %vm17257_vm0  ;;  %v5905_v17 = vrot.slane %v5845_v49, 1 }
 0x731   : > { %v5958_v56 = vmul.f32 %v5900_v42, %v5759_v38  ;;  %v6026_v30 = vsel %vm17273_vm8, %v6023_v22, %v6025_v9  ;;  %vm17274_vm2 = vmmov %vm17269_vm3  ;;  %v5857_v6 = vpop.permute.xlu1 %5856  ;;  %v17293_v42 = vrot.slane %v14257_v32, 2 }
 0x732   : > { %7499 = vmatprep.mubr.msk.f32.mxu1 %vm17274_vm2, %v6024_v62  ;;  %v6027_v28 = vrot.slane %v5957_v46, 1  ;;  %vm17275_vm15 = vmmov %vm17274_vm2  ;;  %v5911_v33 = vrot.slane %v5857_v6, 1 }
 0x733   : > { %v6029_v29 = vrot.slane %v5958_v56, 1  ;;  %7500 = vmatmul.mubr.msk.f32.gmra.mrb[58].mxu1 %vm17275_vm15, %v6026_v30  ;;  %vm17276_vm5 = vmmov %vm17254_vm4 }
 0x734   : > { %v5709_v23 = vsel %vm17276_vm5, %v5706_v39, %v5708_v31  ;;  %vm17277_vm12 = vmmov %vm17257_vm0 }
 0x735   : > { %v5612_v34 = vsel %vm17277_vm12, %v5609_v15, %v5611_v13  ;;  %vm17278_vm9 = vmmov %vm17257_vm0  ;;  %v5763_v15 = vmax.f32 %v5664_v16, %v5709_v23  ;;  %v5907_v13 = vrot.slane %v5849_v7, 1  ;;  %v5865_v62 = vpop.permute.xlu1 %5864  ;;  %v17301_v23 = vmax.f32 %v14259_v54, %v14335_v8 }
 0x736   : > { %v5902_v44 = vsel %vm17278_vm9, %v5899_v2, %v5901_v61  ;;  %vm17279_vm14 = vmmov %vm17257_vm0  ;;  %v5665_v19 = vmax.f32 %v14182_v4, %v5612_v34  ;;  %v5853_v2 = vpop.permute.xlu0 %5852 }
 0x737   : > { %v5904_v47 = vsel %vm17279_vm14, %v5901_v61, %v5903_v5  ;;  %v5959_v43 = vmul.f32 %v5902_v44, %v5760_v35  ;;  %vm17280_vm3 = vmmov %vm17257_vm0 }
 0x738   : > { %v5960_v59 = vmul.f32 %v5904_v47, %v5761_v1  ;;  %v6028_v55 = vsel %vm17280_vm3, %v6025_v9, %v6027_v28  ;;  %vm17281_vm11 = vmmov %vm17257_vm0  ;;  %v5764_v22 = vmax.f32 %v5665_v19, %v5711_v26  ;;  %v5909_v9 = vrot.slane %v5853_v2, 1  ;;  %v704_v26 = vld [vmem:[%s7841_s11 + $0x128] sm:$0xff] }
 0x739   : > { %v6030_v39 = vsel %vm17281_vm11, %v6027_v28, %v6029_v29  ;;  %vm17282_vm13 = vmmov %vm17274_vm2  ;;  %v6031_v24 = vrot.slane %v5959_v43, 1  ;;  %v5915_v1 = vrot.slane %v5865_v62, 1  ;;  %v17305_v43 = vmov %v17293_v42 }
 0x73a   : > { %7502 = vmatprep.mubr.msk.f32.mxu1 %vm17282_vm13, %v6028_v55  ;;  %v6033_v63 = vrot.slane %v5960_v59, 1  ;;  %vm17283_vm10 = vmmov %vm17274_vm2  ;;  %v5861_v11 = vpop.permute.xlu0 %5860 }
 0x73b   : > { %7503 = vmatmul.mubr.msk.f32.gmra.mrb[60].mxu1 %vm17283_vm10, %v6030_v39  ;;  %vm17284_vm8 = vmmov %vm17257_vm0 }
 0x73c   : > { %v5906_v53 = vsel %vm17284_vm8, %v5903_v5, %v5905_v17  ;;  %vm17285_vm2 = vmmov %vm17257_vm0  ;;  %v5670_v5 = vmax.f32 %v14345_v27, %v5619_v41 }
 0x73d   : > { %v5908_v16 = vsel %vm17285_vm2, %v5905_v17, %v5907_v13  ;;  %vm17286_vm15 = vmmov %vm17254_vm4  ;;  %v5961_v31 = vmul.f32 %v5906_v53, %v5762_v52 }
 0x73e   : > { %v5713_v0 = vsel %vm17286_vm15, %v5710_v21, %v5712_v18  ;;  %vm17287_vm5 = vmmov %vm17254_vm4  ;;  %v5962_v12 = vmul.f32 %v5908_v16, %v5763_v15  ;;  %v5667_v21 = vmax.f32 %v14223_v50, %v5616_v45  ;;  %v17297_v50 = vrot.slane %v14257_v32, 1 }
 0x73f   : > { %v5715_v4 = vsel %vm17287_vm5, %v5712_v18, %v5714_v51  ;;  %vm17288_vm12 = vmmov %vm17257_vm0  ;;  %v6035_v38 = vrot.slane %v5961_v31, 1  ;;  %v17291_v18 = vmax.f32 %v14229_v48, %v14293_v3  ;;  %v5769_v8 = vmax.f32 %v5670_v5, %v5718_v36 }
 0x740   : > { %v6032_v40 = vsel %vm17288_vm12, %v6029_v29, %v6031_v24  ;;  %vm17289_vm9 = vmmov %vm17257_vm0  ;;  %v6037_v10 = vrot.slane %v5962_v12, 1  ;;  %v5766_v61 = vmax.f32 %v5667_v21, %v5715_v4  ;;  %v17315_v16 = vmov 0.0   ;;  %v14550_v12 = vld [vmem:[%s15004_s7] ss:$0 sm:$0xff] }
 0x741   : > { %v6034_v25 = vsel %vm17289_vm9, %v6031_v24, %v6033_v63  ;;  %vm17290_vm14 = vmmov %vm17283_vm10  ;;  %v5765_v20 = vmax.f32 %v17291_v18, %v5713_v0  ;;  %v6036_v30 = vsel %vm17257_vm0, %v6033_v63, %v6035_v38  ;;  %v705_v0 = vld [vmem:[%s7841_s11 + $0x130] sm:$0xff] }
 0x742   : > { %7505 = vmatprep.mubr.msk.f32.mxu1 %vm17290_vm14, %v6032_v40  ;;  %vm17292_vm3 = vmmov %vm17283_vm10 }
 0x743   : > { %7506 = vmatmul.mubr.msk.f32.gmra.mrb[62].mxu1 %vm17292_vm3, %v6034_v25  ;;  %vm17294_vm11 = vmmov %vm17254_vm4 }
 0x744   : > { %v5717_v57 = vsel %vm17294_vm11, %v5714_v51, %v17293_v42  ;;  %vm17295_vm13 = vmmov %vm17257_vm0  ;;  %v5913_v51 = vrot.slane %v5861_v11, 1 }
 0x745   : > { %v5910_v37 = vsel %vm17295_vm13, %v5907_v13, %v5909_v9  ;;  %vm17296_vm10 = vmmov %vm17257_vm0  ;;  %v5767_v34 = vmax.f32 %v17301_v23, %v5717_v57 }
 0x746   : > { %v5912_v46 = vsel %vm17296_vm10, %v5909_v9, %v5911_v33  ;;  %vm17298_vm4 = vmmov %vm17257_vm0  ;;  %v5963_v48 = vmul.f32 %v5910_v37, %v5764_v22 }
 0x747   : > { %v5620_v56 = vsel %vm17298_vm4, %v17297_v50, %v5619_v41  ;;  %v5964_v3 = vmul.f32 %v5912_v46, %v5765_v20  ;;  %vm17299_vm8 = vmmov %vm17257_vm0  ;;  %v5869_v41 = vpop.permute.xlu0 %5868 }
 0x748   : > { %v6038_v35 = vsel %vm17299_vm8, %v6035_v38, %v6037_v10  ;;  %vm17300_vm2 = vmmov %vm17292_vm3  ;;  %v6039_v28 = vrot.slane %v5963_v48, 1  ;;  %v5669_v44 = vmax.f32 %v14257_v32, %v5620_v56  ;;  %v5917_v55 = vrot.slane %v5869_v41, 1 }
 0x749   : > { %7508 = vmatprep.mubr.msk.f32.mxu1 %vm17300_vm2, %v6036_v30  ;;  %v6041_v29 = vrot.slane %v5964_v3, 1  ;;  %vm17302_vm15 = vmmov %vm17300_vm2  ;;  %7369 = vmatmul.mubr.msk.f32.gmra.mrb[74].mxu0 %vm17300_vm2, %v704_v26 }
 0x74a   : > { %7509 = vmatmul.mubr.msk.f32.gmra.mrb[64].mxu1 %vm17302_vm15, %v6038_v35  ;;  %vm17303_vm5 = vmmov %vm17257_vm0  ;;  %v5968_v13 = vmul.f32 %v5917_v55, %v5769_v8 }
 0x74b   : > { %v5914_v47 = vsel %vm17303_vm5, %v5911_v33, %v5913_v51  ;;  %vm17304_vm12 = vmmov %vm17257_vm0  ;;  %vm17316_vm5 = vmmov 0  }
 0x74c   : > { %v5916_v52 = vsel %vm17304_vm12, %v5913_v51, %v5915_v1  ;;  %vm17306_vm9 = vmmov %vm17294_vm11  ;;  %v5965_v49 = vmul.f32 %v5914_v47, %v5766_v61  ;;  %v6049_v45 = vrot.slane %v5968_v13, 1  ;;  %7371 = vmatprep.mubr.msk.f32.mxu0 %vm17316_vm5, %v17315_v16 }
 0x74d   : > { %v5719_v59 = vsel %vm17306_vm9, %v17305_v43, %v5718_v36  ;;  %v5966_v27 = vmul.f32 %v5916_v52, %v5767_v34  ;;  %vm17307_vm14 = vmmov %vm17257_vm0 }
 0x74e   : > { %v6040_v7 = vsel %vm17307_vm14, %v6037_v10, %v6039_v28  ;;  %vm17308_vm3 = vmmov %vm17257_vm0  ;;  %v6043_v39 = vrot.slane %v5965_v49, 1  ;;  %v5768_v15 = vmax.f32 %v5669_v44, %v5719_v59 }
 0x74f   : > { %v6042_v54 = vsel %vm17308_vm3, %v6039_v28, %v6041_v29  ;;  %vm17309_vm11 = vmmov %vm17300_vm2  ;;  %v6045_v17 = vrot.slane %v5966_v27, 1 }
 0x750   : > { %7511 = vmatprep.mubr.msk.f32.mxu1 %vm17309_vm11, %v6040_v7  ;;  %vm17310_vm13 = vmmov %vm17300_vm2 }
 0x751   : > { %7512 = vmatmul.mubr.msk.f32.gmra.mrb[66].mxu1 %vm17310_vm13, %v6042_v54  ;;  %vm17311_vm10 = vmmov %vm17257_vm0  ;;  %v6046_v63 = vsel %vm17257_vm0, %v6043_v39, %v6045_v17 }
 0x752   : > { %v5918_v32 = vsel %vm17311_vm10, %v5915_v1, %v5917_v55  ;;  %vm17312_vm4 = vmmov %vm17257_vm0 }
 0x753   : > { %v5967_v19 = vmul.f32 %v5918_v32, %v5768_v15  ;;  %v6044_v24 = vsel %vm17312_vm4, %v6041_v29, %v6043_v39  ;;  %vm17313_vm8 = vmmov %vm17300_vm2 }
 0x754   : > { %7514 = vmatprep.mubr.msk.f32.mxu1 %vm17313_vm8, %v6044_v24  ;;  %vm17314_vm15 = vmmov %vm17300_vm2  ;;  %vm17322_vm8 = vcmask 1041408  }
 0x755   : > { %v6047_v53 = vrot.slane %v5967_v19, 1  ;;  %7515 = vmatmul.mubr.msk.f32.gmra.mrb[68].mxu1 %vm17314_vm15, %v6046_v63  ;;  %vm17317_vm12 = vmmov %vm17257_vm0 }
 0x756   : > { %vm17318_vm9 = vmmov %vm17257_vm0 }
 0x757   : > { %v6048_v4 = vsel %vm17317_vm12, %v6045_v17, %v6047_v53  ;;  %v6050_v31 = vsel %vm17318_vm9, %v6047_v53, %v6049_v45  ;;  %vm17319_vm14 = vmmov %vm17300_vm2 }
 0x758   : > { %7517 = vmatprep.mubr.msk.f32.mxu1 %vm17319_vm14, %v6048_v4  ;;  %vm17320_vm3 = vmmov %vm17300_vm2 }
 0x759   : > { %7372 = vmatmul.mubr.msk.f32.gmra.mrb[76].mxu0 %vm17320_vm3, %v705_v0  ;;  %vm17321_vm11 = vmmov %vm17300_vm2 }
 0x75a   : > { %7518 = vmatmul.mubr.msk.f32.gmra.mrb[70].mxu1 %vm17321_vm11, %v6050_v31  ;;  %vm17323_vm5 = vmmov %vm17322_vm8 }
 0x75b   : > { %vm17324_vm12 = vmmov %vm17323_vm5 }
 0x75c   : > { %vm17325_vm3 = vmmov %vm17323_vm5 }
 0x75d   : > { %vm17326_vm11 = vmmov %vm17325_vm3 }
 0x768   : > { %v7448_v2 = vpop.f32.mrb[24].mxu1 }
 0x769   : > { %v5281_v6 = vadd.f32 %v7448_v2, %v14550_v12  ;;  %v5275_v40 = vpop.f32.mrb[25].mxu1 }
 0x76a   : > { %v5276_v25 = vadd.f32 %v14550_v12, %v5275_v40 }
 0x76b   : > { %vm5395_vm13 = vcmp.ge.f32.partialorder %v5281_v6, 0.0  ;;  %v5419_v22 = vmul.f32 0.2, %v5281_v6 }
 0x76c   : > { %vm5394_vm10 = vcmp.ge.f32.partialorder %v5276_v25, 0.0  ;;  %v5418_v9 = vmul.f32 0.2, %v5276_v25  ;;  %v7451_v33 = vpop.f32.mrb[26].mxu1 }
 0x76d   : > { %v5443_v21 = vsel %vm5395_vm13, %v5281_v6, %v5419_v22  ;;  %v5291_v38 = vadd.f32 %v7451_v33, %v14550_v12  ;;  %v5285_v10 = vpop.f32.mrb[27].mxu1 }
 0x76e   : > { %v6531_v18 = vrot.slane %v5443_v21, 6  ;;  %v5442_v20 = vsel %vm5394_vm10, %v5276_v25, %v5418_v9  ;;  %v5286_v42 = vadd.f32 %v14550_v12, %v5285_v10 }
 0x76f   : > { %v6530_v57 = vrot.slane %v5442_v20, 6  ;;  %vm5397_vm4 = vcmp.ge.f32.partialorder %v5291_v38, 0.0  ;;  %v5421_v37 = vmul.f32 0.2, %v5291_v38 }
 0x770   : > { %vm5396_vm0 = vcmp.ge.f32.partialorder %v5286_v42, 0.0  ;;  %v5420_v46 = vmul.f32 0.2, %v5286_v42  ;;  %v7454_v50 = vpop.f32.mrb[28].mxu1 }
 0x771   : > { %v5445_v56 = vsel %vm5397_vm4, %v5291_v38, %v5421_v37  ;;  %v5301_v36 = vadd.f32 %v7454_v50, %v14550_v12  ;;  %6577 = vrot.lane.b32.xlu0 %v6530_v57, %s7722_s30  ;;  %v5295_v48 = vpop.f32.mrb[29].mxu1  ;;  %v6532_v3 = vsel %vm17322_vm8, %v6530_v57, %v6531_v18  ;;  %vm17327_vm4 = vmmov %vm17325_vm3 }
 0x772   : > { %v6535_v11 = vrot.slane %v5445_v56, 6  ;;  %v5444_v62 = vsel %vm5396_vm0, %v5286_v42, %v5420_v46  ;;  %v5296_v30 = vadd.f32 %v14550_v12, %v5295_v48  ;;  %6579 = vrot.lane.b32.xlu1 %v6532_v3, %s7722_s30  ;;  %vm17328_vm0 = vmmov %vm17325_vm3 }
 0x773   : > { %v6533_v35 = vrot.slane %v5444_v62, 6  ;;  %vm5399_vm2 = vcmp.ge.f32.partialorder %v5301_v36, 0.0  ;;  %v5423_v61 = vmul.f32 0.2, %v5301_v36 }
 0x774   : > { %vm5398_vm15 = vcmp.ge.f32.partialorder %v5296_v30, 0.0  ;;  %v5422_v51 = vmul.f32 0.2, %v5296_v30  ;;  %v7457_v1 = vpop.f32.mrb[30].mxu1 }
 0x775   : > { %v5447_v5 = vsel %vm5399_vm2, %v5301_v36, %v5423_v61  ;;  %v5311_v28 = vadd.f32 %v7457_v1, %v14550_v12  ;;  %v5305_v29 = vpop.f32.mrb[31].mxu1  ;;  %v6536_v23 = vsel %vm17323_vm5, %v6533_v35, %v6535_v11  ;;  %v6534_v34 = vsel %vm17324_vm12, %v6531_v18, %v6533_v35  ;;  %vm17330_vm5 = vmmov %vm17328_vm0 }
 0x776   : > { %v6539_v44 = vrot.slane %v5447_v5, 6  ;;  %v5446_v47 = vsel %vm5398_vm15, %v5296_v30, %v5422_v51  ;;  %v5306_v52 = vadd.f32 %v14550_v12, %v5305_v29  ;;  %6583 = vrot.lane.b32.xlu1 %v6536_v23, %s7722_s30  ;;  %6581 = vrot.lane.b32.xlu0 %v6534_v34, %s7722_s30  ;;  %vm17329_vm15 = vmmov %vm17328_vm0 }
 0x777   : > { %v6537_v43 = vrot.slane %v5446_v47, 6  ;;  %vm5401_vm9 = vcmp.ge.f32.partialorder %v5311_v28, 0.0  ;;  %v5425_v59 = vmul.f32 0.2, %v5311_v28 }
 0x778   : > { %vm5400_vm14 = vcmp.ge.f32.partialorder %v5306_v52, 0.0  ;;  %v5424_v49 = vmul.f32 0.2, %v5306_v52  ;;  %v7460_v27 = vpop.f32.mrb[32].mxu1 }
 0x779   : > { %v5449_v41 = vsel %vm5401_vm9, %v5311_v28, %v5425_v59  ;;  %v5321_v7 = vadd.f32 %v7460_v27, %v14550_v12  ;;  %v5315_v54 = vpop.f32.mrb[33].mxu1  ;;  %v6540_v8 = vsel %vm17325_vm3, %v6537_v43, %v6539_v44  ;;  %v6538_v55 = vsel %vm17326_vm11, %v6535_v11, %v6537_v43  ;;  %vm17332_vm3 = vmmov %vm17328_vm0 }
 0x77a   : > { %v6543_v39 = vrot.slane %v5449_v41, 6  ;;  %v5448_v17 = vsel %vm5400_vm14, %v5306_v52, %v5424_v49  ;;  %v5316_v15 = vadd.f32 %v14550_v12, %v5315_v54  ;;  %6587 = vrot.lane.b32.xlu1 %v6540_v8, %s7722_s30  ;;  %6585 = vrot.lane.b32.xlu0 %v6538_v55, %s7722_s30  ;;  %vm17331_vm14 = vmmov %vm17328_vm0 }
 0x77b   : > { %v6541_v32 = vrot.slane %v5448_v17, 6  ;;  %vm5403_vm13 = vcmp.ge.f32.partialorder %v5321_v7, 0.0  ;;  %v5427_v13 = vmul.f32 0.2, %v5321_v7 }
 0x77c   : > { %vm5402_vm10 = vcmp.ge.f32.partialorder %v5316_v15, 0.0  ;;  %v5426_v19 = vmul.f32 0.2, %v5316_v15 }
 0x77d   : > { %v5451_v63 = vsel %vm5403_vm13, %v5321_v7, %v5427_v13  ;;  %v6544_v53 = vsel %vm17327_vm4, %v6541_v32, %v6543_v39  ;;  %v6542_v16 = vsel %vm17328_vm0, %v6539_v44, %v6541_v32  ;;  %vm17334_vm4 = vmmov %vm17328_vm0 }
 0x77e   : > { %v7463_v24 = vpop.f32.mrb[34].mxu1  ;;  %v6547_v0 = vrot.slane %v5451_v63, 6  ;;  %v5450_v4 = vsel %vm5402_vm10, %v5316_v15, %v5426_v19  ;;  %6591 = vrot.lane.b32.xlu1 %v6544_v53, %s7722_s30  ;;  %6589 = vrot.lane.b32.xlu0 %v6542_v16, %s7722_s30  ;;  %vm17333_vm10 = vmmov %vm17328_vm0 }
 0x77f   : > { %v5331_v26 = vadd.f32 %v7463_v24, %v14550_v12  ;;  %v5325_v45 = vpop.f32.mrb[35].mxu1  ;;  %v6545_v2 = vrot.slane %v5450_v4, 6 }
 0x780   : > { %v5326_v31 = vadd.f32 %v14550_v12, %v5325_v45 }
 0x781   : > { %vm5405_vm8 = vcmp.ge.f32.partialorder %v5331_v26, 0.0  ;;  %v5429_v6 = vmul.f32 0.2, %v5331_v26  ;;  %v6548_v21 = vsel %vm17329_vm15, %v6545_v2, %v6547_v0  ;;  %v6546_v38 = vsel %vm17330_vm5, %v6543_v39, %v6545_v2  ;;  %vm17336_vm5 = vmmov %vm17328_vm0 }
 0x782   : > { %vm5404_vm2 = vcmp.ge.f32.partialorder %v5326_v31, 0.0  ;;  %v5428_v40 = vmul.f32 0.2, %v5326_v31  ;;  %6595 = vrot.lane.b32.xlu1 %v6548_v21, %s7722_s30  ;;  %6593 = vrot.lane.b32.xlu0 %v6546_v38, %s7722_s30 }
 0x783   : > { %v7466_v25 = vpop.f32.mrb[36].mxu1  ;;  %v5453_v22 = vsel %vm5405_vm8, %v5331_v26, %v5429_v6  ;;  %vm17335_vm8 = vmmov %vm17328_vm0 }
 0x784   : > { %v5341_v9 = vadd.f32 %v7466_v25, %v14550_v12  ;;  %v5335_v33 = vpop.f32.mrb[37].mxu1  ;;  %v6551_v10 = vrot.slane %v5453_v22, 6  ;;  %v5452_v18 = vsel %vm5404_vm2, %v5326_v31, %v5428_v40 }
 0x785   : > { %v5336_v20 = vadd.f32 %v14550_v12, %v5335_v33  ;;  %v6549_v42 = vrot.slane %v5452_v18, 6 }
 0x786   : > { %vm5407_vm12 = vcmp.ge.f32.partialorder %v5341_v9, 0.0  ;;  %v5431_v57 = vmul.f32 0.2, %v5341_v9 }
 0x787   : > { %vm5406_vm9 = vcmp.ge.f32.partialorder %v5336_v20, 0.0  ;;  %v5430_v37 = vmul.f32 0.2, %v5336_v20  ;;  %v6552_v48 = vsel %vm17331_vm14, %v6549_v42, %v6551_v10  ;;  %v6550_v3 = vsel %vm17332_vm3, %v6547_v0, %v6549_v42  ;;  %vm17338_vm3 = vmmov %vm17328_vm0 }
 0x788   : > { %v7469_v46 = vpop.f32.mrb[38].mxu1  ;;  %v5455_v50 = vsel %vm5407_vm12, %v5341_v9, %v5431_v57  ;;  %6599 = vrot.lane.b32.xlu1 %v6552_v48, %s7722_s30  ;;  %6597 = vrot.lane.b32.xlu0 %v6550_v3, %s7722_s30  ;;  %vm17337_vm12 = vmmov %vm17328_vm0  ;;  %v14621_v57 = vpop.permute.xlu0 %6433  ;;  %v14630_v48 = vld [vmem:[%s15006_s9] ss:$0 sm:$0xff] }
 0x789   : > { %v5351_v56 = vadd.f32 %v7469_v46, %v14550_v12  ;;  %v5345_v36 = vpop.f32.mrb[39].mxu1  ;;  %v6555_v11 = vrot.slane %v5455_v50, 6  ;;  %v5454_v62 = vsel %vm5406_vm9, %v5336_v20, %v5430_v37 }
 0x78a   : > { %v5346_v30 = vadd.f32 %v14550_v12, %v5345_v36  ;;  %v6553_v35 = vrot.slane %v5454_v62, 6 }
 0x78b   : > { %vm5409_vm11 = vcmp.ge.f32.partialorder %v5351_v56, 0.0  ;;  %v5433_v61 = vmul.f32 0.2, %v5351_v56 }
 0x78c   : > { %vm5408_vm13 = vcmp.ge.f32.partialorder %v5346_v30, 0.0  ;;  %v5432_v51 = vmul.f32 0.2, %v5346_v30  ;;  %v6556_v5 = vsel %vm17333_vm10, %v6553_v35, %v6555_v11  ;;  %v6554_v28 = vsel %vm17334_vm4, %v6551_v10, %v6553_v35  ;;  %v14613_v10 = vpop.permute.xlu1 %6431  ;;  %vm17340_vm4 = vmmov %vm17328_vm0 }
 0x78d   : > { %v5457_v1 = vsel %vm5409_vm11, %v5351_v56, %v5433_v61  ;;  %6603 = vrot.lane.b32.xlu1 %v6556_v5, %s7722_s30  ;;  %6601 = vrot.lane.b32.xlu0 %v6554_v28, %s7722_s30  ;;  %vm17339_vm11 = vmmov %vm17328_vm0 }
 0x78e   : > { %v6559_v29 = vrot.slane %v5457_v1, 6  ;;  %v5456_v23 = vsel %vm5408_vm13, %v5346_v30, %v5432_v51 }
 0x78f   : > { %v6557_v34 = vrot.slane %v5456_v23, 6 }
 0x790   : > { %v14619_v42 = vpop.permute.xlu1 %6435 }
 0x791   : > { %v6560_v44 = vsel %vm17328_vm0, %v6557_v34, %v6559_v29  ;;  %v6558_v47 = vsel %vm17335_vm8, %v6555_v11, %v6557_v34  ;;  %v14632_v11 = vpop.permute.xlu0 %6437 }
 0x792   : > { %6607 = vrot.lane.b32.xlu1 %v6560_v44, %s7722_s30  ;;  %6605 = vrot.lane.b32.xlu0 %v6558_v47, %s7722_s30 }
 0x794   : > { %v7472_v52 = vpop.f32.mrb[40].mxu1  ;;  %v14624_v56 = vpop.permute.xlu1 %6439 }
 0x795   : > { %v5361_v43 = vadd.f32 %v7472_v52, %v14550_v12  ;;  %v5355_v59 = vpop.f32.mrb[41].mxu1 }
 0x796   : > { %v5356_v49 = vadd.f32 %v14550_v12, %v5355_v59 }
 0x797   : > { %vm5411_vm2 = vcmp.ge.f32.partialorder %v5361_v43, 0.0  ;;  %v5435_v27 = vmul.f32 0.2, %v5361_v43 }
 0x798   : > { %vm5410_vm15 = vcmp.ge.f32.partialorder %v5356_v49, 0.0  ;;  %v5434_v41 = vmul.f32 0.2, %v5356_v49  ;;  %v14636_v23 = vpop.permute.xlu1 %6443 }
 0x799   : > { %v5459_v7 = vsel %vm5411_vm2, %v5361_v43, %v5435_v27 }
 0x79a   : > { %v6563_v54 = vrot.slane %v5459_v7, 6  ;;  %v5458_v8 = vsel %vm5410_vm15, %v5356_v49, %v5434_v41  ;;  %v14640_v49 = vpop.permute.xlu0 %6441 }
 0x79b   : > { %v6561_v55 = vrot.slane %v5458_v8, 6 }
 0x79d   : > { %v6564_v39 = vsel %vm17336_vm5, %v6561_v55, %v6563_v54  ;;  %v6562_v17 = vsel %vm17337_vm12, %v6559_v29, %v6561_v55  ;;  %vm17341_vm12 = vmmov %vm17328_vm0 }
 0x79e   : > { %6611 = vrot.lane.b32.xlu1 %v6564_v39, %s7722_s30  ;;  %6609 = vrot.lane.b32.xlu0 %v6562_v17, %s7722_s30 }
 0x7b0   : > { %v7475_v15 = vpop.f32.mrb[42].mxu1 }
 0x7b1   : > { %v5371_v32 = vadd.f32 %v7475_v15, %v14550_v12  ;;  %v5365_v13 = vpop.f32.mrb[43].mxu1 }
 0x7b2   : > { %v5366_v19 = vadd.f32 %v14550_v12, %v5365_v13 }
 0x7b3   : > { %vm5413_vm9 = vcmp.ge.f32.partialorder %v5371_v32, 0.0  ;;  %v5437_v24 = vmul.f32 0.2, %v5371_v32 }
 0x7b4   : > { %vm5412_vm14 = vcmp.ge.f32.partialorder %v5366_v19, 0.0  ;;  %v5436_v63 = vmul.f32 0.2, %v5366_v19 }
 0x7b5   : > { %v5461_v26 = vsel %vm5413_vm9, %v5371_v32, %v5437_v24  ;;  %v14648_v24 = vpop.permute.xlu1 %6447 }
 0x7b6   : > { %v6567_v45 = vrot.slane %v5461_v26, 6  ;;  %v5460_v53 = vsel %vm5412_vm14, %v5366_v19, %v5436_v63  ;;  %vm17342_vm14 = vmmov %vm17328_vm0 }
 0x7b7   : > { %v6565_v16 = vrot.slane %v5460_v53, 6 }
 0x7b9   : > { %v6568_v0 = vsel %vm17338_vm3, %v6565_v16, %v6567_v45  ;;  %v6566_v4 = vsel %vm17339_vm11, %v6563_v54, %v6565_v16  ;;  %vm17343_vm11 = vmmov %vm17328_vm0 }
 0x7ba   : > { %6615 = vrot.lane.b32.xlu1 %v6568_v0, %s7722_s30  ;;  %6613 = vrot.lane.b32.xlu0 %v6566_v4, %s7722_s30  ;;  %v14652_v0 = vpop.permute.xlu0 %6445 }
 0x7cd   : > { %v7478_v31 = vpop.f32.mrb[44].mxu1 }
 0x7ce   : > { %v5381_v2 = vadd.f32 %v7478_v31, %v14550_v12  ;;  %v5375_v6 = vpop.f32.mrb[45].mxu1 }
 0x7cf   : > { %v5376_v40 = vadd.f32 %v14550_v12, %v5375_v6 }
 0x7d0   : > { %vm5415_vm13 = vcmp.ge.f32.partialorder %v5381_v2, 0.0  ;;  %v5439_v25 = vmul.f32 0.2, %v5381_v2 }
 0x7d1   : > { %vm5414_vm10 = vcmp.ge.f32.partialorder %v5376_v40, 0.0  ;;  %v5438_v22 = vmul.f32 0.2, %v5376_v40 }
 0x7d2   : > { %v5463_v9 = vsel %vm5415_vm13, %v5381_v2, %v5439_v25 }
 0x7d3   : > { %v6571_v33 = vrot.slane %v5463_v9, 6  ;;  %v5462_v21 = vsel %vm5414_vm10, %v5376_v40, %v5438_v22 }
 0x7d4   : > { %v6569_v38 = vrot.slane %v5462_v21, 6 }
 0x7d6   : > { %v6572_v18 = vsel %vm17340_vm4, %v6569_v38, %v6571_v33  ;;  %v6570_v20 = vsel %vm17328_vm0, %v6567_v45, %v6569_v38  ;;  %vm17345_vm4 = vmmov %vm17328_vm0 }
 0x7d7   : > { %6619 = vrot.lane.b32.xlu1 %v6572_v18, %s7722_s30  ;;  %6617 = vrot.lane.b32.xlu0 %v6570_v20, %s7722_s30 }
 0x7dd   : > { %v7481_v37 = vpop.f32.mrb[46].mxu1 }
 0x7de   : > { %v5391_v46 = vadd.f32 %v7481_v37, %v14550_v12  ;;  %v5385_v50 = vpop.f32.mrb[47].mxu1 }
 0x7df   : > { %v5386_v36 = vadd.f32 %v14550_v12, %v5385_v50 }
 0x7e0   : > { %vm5417_vm8 = vcmp.ge.f32.partialorder %v5391_v46, 0.0  ;;  %v5441_v3 = vmul.f32 0.2, %v5391_v46 }
 0x7e1   : > { %vm5416_vm2 = vcmp.ge.f32.partialorder %v5386_v36, 0.0  ;;  %v5440_v62 = vmul.f32 0.2, %v5386_v36  ;;  %v7486_v30 = vpop.f32.mrb[48].mxu1 }
 0x7e2   : > { %v5465_v35 = vsel %vm5417_vm8, %v5391_v46, %v5441_v3  ;;  %v6174_v61 = vadd.f32 %v7486_v30, %v14630_v48  ;;  %v6168_v51 = vpop.f32.mrb[49].mxu1  ;;  %vm17346_vm8 = vmmov %vm17328_vm0  ;;  %v14665_v46 = vpop.permute.xlu0 %6449 }
 0x7e3   : > { %v6575_v1 = vrot.slane %v5465_v35, 6  ;;  %v5464_v5 = vsel %vm5416_vm2, %v5386_v36, %v5440_v62  ;;  %v6169_v12 = vadd.f32 %v14630_v48, %v6168_v51  ;;  %vm17347_vm2 = vmmov %vm17328_vm0 }
 0x7e4   : > { %v6573_v28 = vrot.slane %v5464_v5, 6  ;;  %vm6288_vm15 = vcmp.ge.f32.partialorder %v6174_v61, 0.0  ;;  %v6312_v29 = vmul.f32 0.2, %v6174_v61 }
 0x7e5   : > { %vm6287_vm5 = vcmp.ge.f32.partialorder %v6169_v12, 0.0  ;;  %v6311_v34 = vmul.f32 0.2, %v6169_v12  ;;  %v7489_v44 = vpop.f32.mrb[50].mxu1 }
 0x7e6   : > { %v6336_v47 = vsel %vm6288_vm15, %v6174_v61, %v6312_v29  ;;  %v6184_v52 = vadd.f32 %v7489_v44, %v14630_v48  ;;  %v6178_v43 = vpop.f32.mrb[51].mxu1  ;;  %v6576_v59 = vsel %vm17341_vm12, %v6573_v28, %v6575_v1  ;;  %v6574_v55 = vsel %vm17342_vm14, %v6571_v33, %v6573_v28  ;;  %v14658_v33 = vpop.permute.xlu1 %6451  ;;  %vm17348_vm14 = vmmov %vm17328_vm0 }
 0x7e7   : > { %v6677_v27 = vrot.slane %v6336_v47, 6  ;;  %v6335_v41 = vsel %vm6287_vm5, %v6169_v12, %v6311_v34  ;;  %v6179_v7 = vadd.f32 %v14630_v48, %v6178_v43  ;;  %6623 = vrot.lane.b32.xlu1 %v6576_v59, %s7722_s30  ;;  %6621 = vrot.lane.b32.xlu0 %v6574_v55, %s7722_s30  ;;  %v14673_v44 = vpop.permute.xlu0 %6453 }
 0x7e8   : > { %v6676_v54 = vrot.slane %v6335_v41, 6  ;;  %vm6290_vm9 = vcmp.ge.f32.partialorder %v6184_v52, 0.0  ;;  %v6314_v8 = vmul.f32 0.2, %v6184_v52 }
 0x7e9   : > { %vm6289_vm3 = vcmp.ge.f32.partialorder %v6179_v7, 0.0  ;;  %v6313_v39 = vmul.f32 0.2, %v6179_v7 }
 0x7ea   : > { %v6338_v15 = vsel %vm6290_vm9, %v6184_v52, %v6314_v8  ;;  %v6678_v19 = vsel %vm17343_vm11, %v6676_v54, %v6677_v27  ;;  %v14671_v5 = vpop.permute.xlu1 %6455 }
 0x7eb   : > { %v7492_v17 = vpop.f32.mrb[52].mxu1  ;;  %v6681_v63 = vrot.slane %v6338_v15, 6  ;;  %v6337_v26 = vsel %vm6289_vm3, %v6179_v7, %v6313_v39  ;;  %6723 = vrot.lane.b32.xlu1 %v6676_v54, %s17344_s12  ;;  %6625 = vrot.lane.b32.xlu0 %v6575_v1, %s7722_s30  ;;  %vm17349_vm3 = vmmov %vm17328_vm0  ;;  %s7554_s30 = smul.u32 24, %s17423_s13 }
 0x7ec   : > { %v6194_v32 = vadd.f32 %v7492_v17, %v14630_v48  ;;  %v6188_v13 = vpop.f32.mrb[53].mxu1  ;;  %v6679_v53 = vrot.slane %v6337_v26, 6 }
 0x7ed   : > { %v6189_v45 = vadd.f32 %v14630_v48, %v6188_v13  ;;  %s393_s21 = sadd.s32 %s7555_s26, %s7554_s30 }
 0x7ee   : > { %vm6292_vm13 = vcmp.ge.f32.partialorder %v6194_v32, 0.0  ;;  %v6316_v16 = vmul.f32 0.2, %v6194_v32  ;;  %v6680_v2 = vsel %vm17345_vm4, %v6677_v27, %v6679_v53  ;;  %v6682_v6 = vsel %vm17328_vm0, %v6679_v53, %v6681_v63  ;;  %v14681_v15 = vpop.permute.xlu1 %6459  ;;  %vm17351_vm4 = vmmov %vm17328_vm0  ;;  %s7001_s25 = sshll.u32 %s393_s21, 3 }
 0x7ef   : > { %vm6291_vm10 = vcmp.ge.f32.partialorder %v6189_v45, 0.0  ;;  %v6315_v4 = vmul.f32 0.2, %v6189_v45  ;;  %6727 = vrot.lane.b32.xlu1 %v6680_v2, %s17344_s12  ;;  %6725 = vrot.lane.b32.xlu0 %v6678_v19, %s17344_s12  ;;  %s14791_s13 = scalar_lea.vmem %s15007_s10, %s7001_s25 }
 0x7f0   : > { %v6340_v31 = vsel %vm6292_vm13, %v6194_v32, %v6316_v16 }
 0x7f1   : > { %v6685_v40 = vrot.slane %v6340_v31, 6  ;;  %v6339_v25 = vsel %vm6291_vm10, %v6189_v45, %v6315_v4  ;;  %vm17350_vm10 = vmmov %vm17328_vm0  ;;  %v14689_v4 = vpop.permute.xlu0 %6457 }
 0x7f2   : > { %v6683_v22 = vrot.slane %v6339_v25, 6 }
 0x7f3   : > { %6729 = vrot.lane.b32.xlu0 %v6682_v6, %s17344_s12 }
 0x7f4   : > { %v6684_v20 = vsel %vm17346_vm8, %v6681_v63, %v6683_v22  ;;  %v6686_v37 = vsel %vm17347_vm2, %v6683_v22, %v6685_v40 }
 0x7f5   : > { %6731 = vrot.lane.b32.xlu1 %v6684_v20, %s17344_s12 }
 0x7f6   : > { %v7495_v9 = vpop.f32.mrb[54].mxu1 }
 0x7f7   : > { %v6204_v21 = vadd.f32 %v7495_v9, %v14630_v48  ;;  %v6198_v38 = vpop.f32.mrb[55].mxu1  ;;  %6733 = vrot.lane.b32.xlu0 %v6686_v37, %s17344_s12 }
 0x7f8   : > { %v6199_v18 = vadd.f32 %v14630_v48, %v6198_v38 }
 0x7f9   : > { %vm6294_vm15 = vcmp.ge.f32.partialorder %v6204_v21, 0.0  ;;  %v6318_v50 = vmul.f32 0.2, %v6204_v21 }
 0x7fa   : > { %vm6293_vm5 = vcmp.ge.f32.partialorder %v6199_v18, 0.0  ;;  %v6317_v36 = vmul.f32 0.2, %v6199_v18 }
 0x7fb   : > { %v6342_v62 = vsel %vm6294_vm15, %v6204_v21, %v6318_v50  ;;  %vm17352_vm15 = vmmov %vm17347_vm2  ;;  %v14697_v50 = vpop.permute.xlu1 %6463 }
 0x7fc   : > { %v6689_v61 = vrot.slane %v6342_v62, 6  ;;  %v6341_v51 = vsel %vm6293_vm5, %v6199_v18, %v6317_v36 }
 0x7fd   : > { %v6687_v12 = vrot.slane %v6341_v51, 6 }
 0x7ff   : > { %v6688_v59 = vsel %vm17348_vm14, %v6685_v40, %v6687_v12  ;;  %v6690_v27 = vsel %vm17349_vm3, %v6687_v12, %v6689_v61  ;;  %vm17354_vm14 = vmmov %vm17347_vm2 }
 0x800   : > { %v7498_v3 = vpop.f32.mrb[56].mxu1  ;;  %6735 = vrot.lane.b32.xlu1 %v6688_v59, %s17344_s12  ;;  %6737 = vrot.lane.b32.xlu0 %v6690_v27, %s17344_s12 }
 0x801   : > { %v6214_v30 = vadd.f32 %v7498_v3, %v14630_v48  ;;  %v6208_v35 = vpop.f32.mrb[57].mxu1 }
 0x802   : > { %v6209_v1 = vadd.f32 %v14630_v48, %v6208_v35  ;;  %v14699_v35 = vpop.permute.xlu0 %6461 }
 0x803   : > { %vm6296_vm12 = vcmp.ge.f32.partialorder %v6214_v30, 0.0  ;;  %v6320_v28 = vmul.f32 0.2, %v6214_v30 }
 0x804   : > { %vm6295_vm9 = vcmp.ge.f32.partialorder %v6209_v1, 0.0  ;;  %v6319_v29 = vmul.f32 0.2, %v6209_v1 }
 0x805   : > { %v6344_v47 = vsel %vm6296_vm12, %v6214_v30, %v6320_v28 }
 0x806   : > { %v7501_v34 = vpop.f32.mrb[58].mxu1  ;;  %v6693_v41 = vrot.slane %v6344_v47, 6  ;;  %v6343_v7 = vsel %vm6295_vm9, %v6209_v1, %v6319_v29  ;;  %vm17353_vm9 = vmmov %vm17347_vm2 }
 0x807   : > { %v6224_v52 = vadd.f32 %v7501_v34, %v14630_v48  ;;  %v6218_v43 = vpop.f32.mrb[59].mxu1  ;;  %v6691_v8 = vrot.slane %v6343_v7, 6 }
 0x808   : > { %v6219_v54 = vadd.f32 %v14630_v48, %v6218_v43 }
 0x809   : > { %vm6298_vm11 = vcmp.ge.f32.partialorder %v6224_v52, 0.0  ;;  %v6322_v55 = vmul.f32 0.2, %v6224_v52  ;;  %v6692_v63 = vsel %vm17350_vm10, %v6689_v61, %v6691_v8  ;;  %v6694_v26 = vsel %vm17351_vm4, %v6691_v8, %v6693_v41  ;;  %vm17356_vm10 = vmmov %vm17347_vm2 }
 0x80a   : > { %vm6297_vm13 = vcmp.ge.f32.partialorder %v6219_v54, 0.0  ;;  %v6321_v39 = vmul.f32 0.2, %v6219_v54  ;;  %6739 = vrot.lane.b32.xlu1 %v6692_v63, %s17344_s12  ;;  %6741 = vrot.lane.b32.xlu0 %v6694_v26, %s17344_s12 }
 0x80b   : > { %v6346_v32 = vsel %vm6298_vm11, %v6224_v52, %v6322_v55 }
 0x80c   : > { %v6697_v45 = vrot.slane %v6346_v32, 6  ;;  %v6345_v53 = vsel %vm6297_vm13, %v6219_v54, %v6321_v39  ;;  %vm17355_vm13 = vmmov %vm17347_vm2 }
 0x80d   : > { %v6695_v31 = vrot.slane %v6345_v53, 6 }
 0x80e   : > { %v7504_v17 = vpop.f32.mrb[60].mxu1 }
 0x80f   : > { %v6234_v13 = vadd.f32 %v7504_v17, %v14630_v48  ;;  %v6228_v19 = vpop.f32.mrb[61].mxu1  ;;  %v6696_v21 = vsel %vm17347_vm2, %v6693_v41, %v6695_v31  ;;  %v6698_v38 = vsel %vm17352_vm15, %v6695_v31, %v6697_v45  ;;  %v14707_v41 = vpop.permute.xlu1 %6467 }
 0x810   : > { %v6229_v16 = vadd.f32 %v14630_v48, %v6228_v19  ;;  %6743 = vrot.lane.b32.xlu1 %v6696_v21, %s17344_s12  ;;  %6745 = vrot.lane.b32.xlu0 %v6698_v38, %s17344_s12  ;;  %v14715_v19 = vpop.permute.xlu0 %6465 }
 0x811   : > { %vm6300_vm0 = vcmp.ge.f32.partialorder %v6234_v13, 0.0  ;;  %v6324_v2 = vmul.f32 0.2, %v6234_v13 }
 0x812   : > { %vm6299_vm8 = vcmp.ge.f32.partialorder %v6229_v16, 0.0  ;;  %v6323_v6 = vmul.f32 0.2, %v6229_v16 }
 0x813   : > { %v6348_v25 = vsel %vm6300_vm0, %v6234_v13, %v6324_v2  ;;  %v14722_v38 = vpop.permute.xlu1 %6471 }
 0x814   : > { %v6701_v18 = vrot.slane %v6348_v25, 6  ;;  %v6347_v20 = vsel %vm6299_vm8, %v6229_v16, %v6323_v6  ;;  %vm17357_vm8 = vmmov %vm17347_vm2 }
 0x815   : > { %v6699_v36 = vrot.slane %v6347_v20, 6 }
 0x816   : > { %v7507_v40 = vpop.f32.mrb[62].mxu1 }
 0x817   : > { %v6244_v22 = vadd.f32 %v7507_v40, %v14630_v48  ;;  %v6238_v9 = vpop.f32.mrb[63].mxu1  ;;  %v6700_v12 = vsel %vm17353_vm9, %v6697_v45, %v6699_v36  ;;  %v6702_v28 = vsel %vm17354_vm14, %v6699_v36, %v6701_v18  ;;  %vm17359_vm9 = vmmov %vm17347_vm2 }
 0x818   : > { %v6239_v37 = vadd.f32 %v14630_v48, %v6238_v9  ;;  %6747 = vrot.lane.b32.xlu1 %v6700_v12, %s17344_s12  ;;  %6749 = vrot.lane.b32.xlu0 %v6702_v28, %s17344_s12 }
 0x819   : > { %vm6302_vm5 = vcmp.ge.f32.partialorder %v6244_v22, 0.0  ;;  %v6326_v3 = vmul.f32 0.2, %v6244_v22 }
 0x81a   : > { %vm6301_vm12 = vcmp.ge.f32.partialorder %v6239_v37, 0.0  ;;  %v6325_v62 = vmul.f32 0.2, %v6239_v37 }
 0x81b   : > { %v6350_v61 = vsel %vm6302_vm5, %v6244_v22, %v6326_v3 }
 0x81c   : > { %v6705_v29 = vrot.slane %v6350_v61, 6  ;;  %v6349_v34 = vsel %vm6301_vm12, %v6239_v37, %v6325_v62  ;;  %v1087_v45 = vpop.f32.mrb[74].mxu0  ;;  %vm17358_vm12 = vmmov %vm17347_vm2 }
 0x81d   : > { %v7510_v30 = vpop.f32.mrb[64].mxu1  ;;  %v6703_v52 = vrot.slane %v6349_v34, 6  ;;  %v7370_v6 = vpop.f32.mrb[75].mxu0 }
 0x81e   : > { %v6254_v51 = vadd.f32 %v7510_v30, %v14630_v48  ;;  %v6248_v1 = vpop.f32.mrb[65].mxu1  ;;  %v14725_v30 = vpop.permute.xlu0 %6469 }
 0x81f   : > { %v6249_v47 = vadd.f32 %v14630_v48, %v6248_v1  ;;  %v6704_v55 = vsel %vm17355_vm13, %v6701_v18, %v6703_v52  ;;  %v6706_v39 = vsel %vm17356_vm10, %v6703_v52, %v6705_v29  ;;  %vm17361_vm13 = vmmov %vm17347_vm2 }
 0x820   : > { %vm6304_vm3 = vcmp.ge.f32.partialorder %v6254_v51, 0.0  ;;  %v6328_v43 = vmul.f32 0.2, %v6254_v51  ;;  %6751 = vrot.lane.b32.xlu1 %v6704_v55, %s17344_s12  ;;  %6753 = vrot.lane.b32.xlu0 %v6706_v39, %s17344_s12  ;;  %vm17362_vm10 = vmmov %vm17347_vm2 }
 0x821   : > { %vm6303_vm11 = vcmp.ge.f32.partialorder %v6249_v47, 0.0  ;;  %v6327_v59 = vmul.f32 0.2, %v6249_v47 }
 0x822   : > { %v6352_v7 = vsel %vm6304_vm3, %v6254_v51, %v6328_v43 }
 0x823   : > { %v6709_v17 = vrot.slane %v6352_v7, 6  ;;  %v6351_v32 = vsel %vm6303_vm11, %v6249_v47, %v6327_v59  ;;  %v14733_v7 = vpop.permute.xlu1 %6475  ;;  %vm17360_vm11 = vmmov %vm17347_vm2 }
 0x824   : > { %v7513_v27 = vpop.f32.mrb[66].mxu1  ;;  %v6707_v63 = vrot.slane %v6351_v32, 6 }
 0x825   : > { %v6264_v54 = vadd.f32 %v7513_v27, %v14630_v48  ;;  %v6258_v8 = vpop.f32.mrb[67].mxu1 }
 0x826   : > { %v6259_v13 = vadd.f32 %v14630_v48, %v6258_v8  ;;  %v6708_v2 = vsel %vm17357_vm8, %v6705_v29, %v6707_v63  ;;  %v6710_v21 = vsel %vm17347_vm2, %v6707_v63, %v6709_v17  ;;  %vm6873_vm8 = vcmask 261122  }
 0x827   : > { %vm6306_vm4 = vcmp.ge.f32.partialorder %v6264_v54, 0.0  ;;  %v6330_v26 = vmul.f32 0.2, %v6264_v54  ;;  %6755 = vrot.lane.b32.xlu1 %v6708_v2, %s17344_s12  ;;  %6757 = vrot.lane.b32.xlu0 %v6710_v21, %s17344_s12 }
 0x828   : > { %vm6305_vm0 = vcmp.ge.f32.partialorder %v6259_v13, 0.0  ;;  %v6329_v53 = vmul.f32 0.2, %v6259_v13  ;;  %v7516_v31 = vpop.f32.mrb[68].mxu1 }
 0x829   : > { %v6354_v16 = vsel %vm6306_vm4, %v6264_v54, %v6330_v26  ;;  %v6274_v22 = vadd.f32 %v7516_v31, %v14630_v48  ;;  %v6268_v9 = vpop.f32.mrb[69].mxu1  ;;  %vm17363_vm4 = vmmov %vm17347_vm2  ;;  %v14744_v26 = vpop.permute.xlu1 %6479 }
 0x82a   : > { %v6713_v40 = vrot.slane %v6354_v16, 6  ;;  %v6353_v25 = vsel %vm6305_vm0, %v6259_v13, %v6329_v53  ;;  %v6269_v20 = vadd.f32 %v14630_v48, %v6268_v9  ;;  %vm17365_vm0 = vcmask 64512  }
 0x82b   : > { %v6711_v18 = vrot.slane %v6353_v25, 6  ;;  %vm6308_vm15 = vcmp.ge.f32.partialorder %v6274_v22, 0.0  ;;  %v6332_v36 = vmul.f32 0.2, %v6274_v22  ;;  %vm17367_vm2 = vmmov %vm17365_vm0 }
 0x82c   : > { %v1091_v37 = vpop.f32.mrb[76].mxu0  ;;  %vm6307_vm5 = vcmp.ge.f32.partialorder %v6269_v20, 0.0  ;;  %v6331_v61 = vmul.f32 0.2, %v6269_v20 }
 0x82d   : > { %v7519_v3 = vpop.f32.mrb[70].mxu1  ;;  %v7373_v62 = vpop.f32.mrb[77].mxu0  ;;  %v6712_v12 = vsel %vm17358_vm12, %v6709_v17, %v6711_v18  ;;  %v6356_v28 = vsel %vm6308_vm15, %v6274_v22, %v6332_v36  ;;  %v6714_v34 = vsel %vm17359_vm9, %v6711_v18, %v6713_v40  ;;  %vm17369_vm15 = vmmov %vm17365_vm0 }
 0x82e   : > { %v6284_v51 = vadd.f32 %v7519_v3, %v14630_v48  ;;  %v6278_v1 = vpop.f32.mrb[71].mxu1  ;;  %6759 = vrot.lane.b32.xlu1 %v6712_v12, %s17344_s12  ;;  %v6717_v47 = vrot.slane %v6356_v28, 6  ;;  %v6355_v52 = vsel %vm6307_vm5, %v6269_v20, %v6331_v61  ;;  %6761 = vrot.lane.b32.xlu0 %v6714_v34, %s17344_s12  ;;  %v14738_v17 = vpop.permute.xlu0 %6473  ;;  %vm17371_vm5 = vmmov %vm17365_vm0 }
 0x82f   : > { %v6279_v29 = vadd.f32 %v14630_v48, %v6278_v1  ;;  %v6715_v59 = vrot.slane %v6355_v52, 6  ;;  %v6580_v53 = vpop.permute.xlu1 %6579  ;;  %v17364_v52 = vld [vmem:[#allocation17_spill] sm:$0xff]  ;;  %vm17373_vm12 = vmmov %vm17365_vm0 }
 0x830   : > { %vm6310_vm14 = vcmp.ge.f32.partialorder %v6284_v51, 0.0  ;;  %v6334_v43 = vmul.f32 0.2, %v6284_v51  ;;  %vm17375_vm9 = vmmov %vm17365_vm0 }
 0x831   : > { %vm6309_vm3 = vcmp.ge.f32.partialorder %v6279_v29, 0.0  ;;  %v6333_v27 = vmul.f32 0.2, %v6279_v29  ;;  %v6716_v48 = vsel %vm17360_vm11, %v6713_v40, %v6715_v59  ;;  %v6718_v39 = vsel %vm17361_vm13, %v6715_v59, %v6717_v47  ;;  %vm17381_vm11 = vmmov %vm17365_vm0 }
 0x832   : > { %v6358_v54 = vsel %vm6310_vm14, %v6284_v51, %v6334_v43  ;;  %6763 = vrot.lane.b32.xlu1 %v6716_v48, %s17344_s12  ;;  %6765 = vrot.lane.b32.xlu0 %v6718_v39, %s17344_s12  ;;  %v14747_v45 = vpop.permute.xlu0 %6477  ;;  %v6798_v43 = vsel %vm17365_vm0, %v17364_v52, %v14613_v10  ;;  %vm17377_vm14 = vmmov %vm17365_vm0 }
 0x833   : > { %v6721_v8 = vrot.slane %v6358_v54, 6  ;;  %v6357_v55 = vsel %vm6309_vm3, %v6279_v29, %v6333_v27  ;;  %v6584_v31 = vpop.permute.xlu1 %6583  ;;  %vm17379_vm3 = vmmov %vm17365_vm0 }
 0x834   : > { %v6719_v32 = vrot.slane %v6357_v55, 6  ;;  %v17366_v55 = vld [vmem:[#allocation23_spill] sm:$0xff]  ;;  %vm17383_vm13 = vmmov %vm17365_vm0 }
 0x835   : > { %v6800_v10 = vsel %vm17367_vm2, %v17366_v55, %v14619_v42  ;;  %vm17392_vm2 = vmmov %vm17365_vm0 }
 0x836   : > { %v6720_v13 = vsel %vm17362_vm10, %v6717_v47, %v6719_v32  ;;  %v6722_v63 = vsel %vm17363_vm4, %v6719_v32, %v6721_v8  ;;  %v6578_v16 = vpop.permute.xlu0 %6577  ;;  %v17368_v32 = vld [vmem:[#allocation20_spill] sm:$0xff]  ;;  %vm17385_vm10 = vmmov %vm17365_vm0 }
 0x837   : > { %6767 = vrot.lane.b32.xlu1 %v6720_v13, %s17344_s12  ;;  %6769 = vrot.lane.b32.xlu0 %v6722_v63, %s17344_s12  ;;  %v6588_v6 = vpop.permute.xlu1 %6587  ;;  %v6823_v59 = vsel %vm2284_vm1, %v6798_v43, %v6578_v16  ;;  %v6799_v13 = vsel %vm17369_vm15, %v17368_v32, %v14621_v57  ;;  %v17370_v43 = vld [vmem:[#allocation35_spill] sm:$0xff]  ;;  %vm17387_vm4 = vmmov %vm17365_vm0 }
 0x838   : > { %v6824_v16 = vsel %vm2284_vm1, %v6799_v13, %v6580_v53  ;;  %v6802_v42 = vsel %vm17371_vm5, %v17370_v43, %v14624_v56  ;;  %vm17394_vm15 = vmmov %vm17365_vm0 }
 0x839   : > { %vm17396_vm5 = vmmov %vm17365_vm0 }
 0x83a   : > { %v6582_v2 = vpop.permute.xlu0 %6581 }
 0x83b   : > { %6771 = vrot.lane.b32.xlu1 %v6721_v8, %s17344_s12  ;;  %v14751_v25 = vpop.permute.xlu1 %6591  ;;  %v6825_v48 = vsel %vm2284_vm1, %v6800_v10, %v6582_v2 }
 0x83e   : > { %v6586_v40 = vpop.permute.xlu0 %6585 }
 0x83f   : > { %v14753_v9 = vpop.permute.xlu1 %6595 }
 0x842   : > { %v6590_v22 = vpop.permute.xlu0 %6589 }
 0x843   : > { %v14755_v18 = vpop.permute.xlu1 %6599 }
 0x846   : > { %v6594_v21 = vpop.permute.xlu0 %6593 }
 0x847   : > { %v14759_v37 = vpop.permute.xlu1 %6603 }
 0x84a   : > { %v14757_v20 = vpop.permute.xlu0 %6597 }
 0x84b   : > { %v14763_v3 = vpop.permute.xlu1 %6607 }
 0x84e   : > { %v14761_v36 = vpop.permute.xlu0 %6601 }
 0x84f   : > { %v14767_v61 = vpop.permute.xlu1 %6611 }
 0x852   : > { %v14765_v62 = vpop.permute.xlu0 %6605 }
 0x853   : > { %v14771_v1 = vpop.permute.xlu1 %6615 }
 0x856   : > { %v14769_v51 = vpop.permute.xlu0 %6609 }
 0x857   : > { %v14777_v28 = vpop.permute.xlu1 %6619 }
 0x85a   : > { %v14775_v12 = vpop.permute.xlu0 %6613 }
 0x85b   : > { %v14781_v34 = vpop.permute.xlu1 %6623 }
 0x85e   : > { %v14779_v29 = vpop.permute.xlu0 %6617 }
 0x85f   : > { %v6724_v27 = vpop.permute.xlu1 %6723 }
 0x860   : > { %v6848_v54 = vsel %vm2336_vm6, %v6823_v59, %v6724_v27  ;;  %v6827_v59 = vsel %vm2284_vm1, %v6802_v42, %v6586_v40  ;;  %v17372_v27 = vld [vmem:[#allocation29_spill] sm:$0xff]  ;;  %v17374_v40 = vld [vmem:[#allocation42_spill] sm:$0xff] }
 0x861   : > { %6874 = vst.msk [vmem:[%s14791_s13 - $0x2] sm:$0xfc] %vm6873_vm8, %v6848_v54  ;;  %v6801_v54 = vsel %vm17373_vm12, %v17372_v27, %v14632_v11  ;;  %v17382_v27 = vld [vmem:[#allocation66_spill] sm:$0xff]  ;;  %vm17390_vm8 = vmmov %vm17365_vm0 }
 0x862   : > { %v14783_v47 = vpop.permute.xlu0 %6621  ;;  %v6826_v55 = vsel %vm2284_vm1, %v6801_v54, %v6584_v31  ;;  %v6807_v54 = vsel %vm17383_vm13, %v17382_v27, %v14665_v46  ;;  %vm17398_vm12 = vmmov %vm17365_vm0 }
 0x863   : > { %v6728_v39 = vpop.permute.xlu1 %6727  ;;  %vm17407_vm13 = vmmov %vm17365_vm0 }
 0x864   : > { %v6850_v63 = vsel %vm2336_vm6, %v6825_v48, %v6728_v39  ;;  %v6803_v48 = vsel %vm17375_vm9, %v17374_v40, %v14640_v49  ;;  %v17376_v39 = vld [vmem:[#allocation48_spill] sm:$0xff]  ;;  %v17378_v49 = vld [vmem:[#allocation54_spill] sm:$0xff]  ;;  %v17386_v40 = vld [vmem:[#allocation85_spill] sm:$0xff] }
 0x865   : > { %6876 = vst.msk [vmem:[%s14791_s13 + $0xe] sm:$0xff] %vm2388_vm7, %v6850_v63  ;;  %v6804_v11 = vsel %vm17377_vm14, %v17376_v39, %v14636_v23  ;;  %v6828_v32 = vsel %vm2284_vm1, %v6803_v48, %v6588_v6  ;;  %v6805_v43 = vsel %vm17379_vm3, %v17378_v49, %v14652_v0  ;;  %v17380_v23 = vld [vmem:[#allocation60_spill] sm:$0xff]  ;;  %vm17400_vm9 = vmmov %vm17365_vm0 }
 0x866   : > { %v14795_v8 = vpop.permute.xlu0 %6625  ;;  %v6829_v31 = vsel %vm2284_vm1, %v6804_v11, %v6590_v22  ;;  %v6806_v6 = vsel %vm17381_vm11, %v17380_v23, %v14648_v24  ;;  %v6830_v22 = vsel %vm2284_vm1, %v6805_v43, %v14751_v25  ;;  %v17384_v24 = vld [vmem:[#allocation72_spill] sm:$0xff]  ;;  %v17393_v23 = vld [vmem:[#allocation123_spill] sm:$0xff]  ;;  %vm17402_vm14 = vmmov %vm17365_vm0 }
 0x867   : > { %v6732_v57 = vpop.permute.xlu1 %6731  ;;  %v6808_v25 = vsel %vm17385_vm10, %v17384_v24, %v14658_v33  ;;  %v6809_v33 = vsel %vm17387_vm4, %v17386_v40, %v14673_v44  ;;  %vm17404_vm3 = vmmov %vm17365_vm0 }
 0x868   : > { %v6852_v53 = vsel %vm2336_vm6, %v6827_v59, %v6732_v57  ;;  %vm17406_vm11 = vmmov %vm17365_vm0 }
 0x869   : > { %6878 = vst.msk [vmem:[%s14791_s13 + $0x1e] sm:$0xff] %vm2388_vm7, %v6852_v53  ;;  %vm17408_vm10 = vmmov %vm17365_vm0 }
 0x86a   : > { %v6726_v52 = vpop.permute.xlu0 %6725  ;;  %vm17409_vm4 = vmmov %vm17365_vm0 }
 0x86b   : > { %v6849_v2 = vsel %vm2336_vm6, %v6824_v16, %v6726_v52 }
 0x86c   : > { %6875 = vst.msk [vmem:[%s14791_s13 + $0x6] sm:$0xff] %vm2388_vm7, %v6849_v2  ;;  %v6831_v2 = vsel %vm2284_vm1, %v6806_v6, %v6594_v21  ;;  %v6832_v21 = vsel %vm2284_vm1, %v6807_v54, %v14753_v9  ;;  %v17388_v9 = vld [vmem:[#allocation98_spill] sm:$0xff] }
 0x86d   : > { %v6810_v48 = vsel %vm17365_vm0, %v17388_v9, %v14671_v5  ;;  %vm6898_vm0 = vcmask 254976  }
 0x86e   : > { %v6730_v10 = vpop.permute.xlu0 %6729  ;;  %v6835_v11 = vsel %vm2284_vm1, %v6810_v48, %v14761_v36 }
 0x86f   : > { %v6851_v56 = vsel %vm2336_vm6, %v6826_v55, %v6730_v10  ;;  %v6833_v55 = vsel %vm2284_vm1, %v6808_v25, %v14757_v20  ;;  %v6834_v20 = vsel %vm2284_vm1, %v6809_v33, %v14755_v18  ;;  %v17391_v18 = vld [vmem:[#allocation114_spill] sm:$0xff] }
 0x870   : > { %6877 = vst.msk [vmem:[%s14791_s13 + $0x16] sm:$0xff] %vm2388_vm7, %v6851_v56 }
 0x872   : > { %v6734_v13 = vpop.permute.xlu0 %6733  ;;  %v6736_v16 = vpop.permute.xlu1 %6735 }
 0x873   : > { %v6853_v63 = vsel %vm2336_vm6, %v6828_v32, %v6734_v13  ;;  %v6854_v52 = vsel %vm2336_vm6, %v6829_v31, %v6736_v16  ;;  %v17389_v31 = vld [vmem:[#allocation106_spill] sm:$0xff] }
 0x874   : > { %6879 = vst.msk [vmem:[%s14791_s13 + $0x26] sm:$0xff] %vm2388_vm7, %v6853_v63  ;;  %6880 = vst.msk [vmem:[%s14791_s13 + $0x2e] sm:$0xff] %vm2388_vm7, %v6854_v52  ;;  %v6811_v5 = vsel %vm17390_vm8, %v17389_v31, %v14689_v4  ;;  %v6812_v63 = vsel %vm17392_vm2, %v17391_v18, %v14681_v15  ;;  %v6813_v15 = vsel %vm17394_vm15, %v17393_v23, %v14699_v35 }
 0x875   : > { %v6836_v36 = vsel %vm2284_vm1, %v6811_v5, %v14759_v37  ;;  %v6837_v52 = vsel %vm2284_vm1, %v6812_v63, %v14765_v62  ;;  %v17395_v37 = vld [vmem:[#allocation132_spill] sm:$0xff]  ;;  %v6838_v62 = vsel %vm2284_vm1, %v6813_v15, %v14763_v3  ;;  %v17399_v3 = vld [vmem:[#allocation147_spill] sm:$0xff] }
 0x876   : > { %v6738_v42 = vpop.permute.xlu0 %6737  ;;  %v6814_v6 = vsel %vm17396_vm5, %v17395_v37, %v14697_v50 }
 0x877   : > { %v6855_v59 = vsel %vm2336_vm6, %v6830_v22, %v6738_v42  ;;  %v6839_v42 = vsel %vm2284_vm1, %v6814_v6, %v14769_v51 }
 0x878   : > { %6881 = vst.msk [vmem:[%s14791_s13 + $0x36] sm:$0xff] %vm2388_vm7, %v6855_v59 }
 0x87c   : > { %v6740_v57 = vpop.permute.xlu1 %6739  ;;  %v6742_v53 = vpop.permute.xlu0 %6741 }
 0x87d   : > { %v6856_v0 = vsel %vm2336_vm6, %v6831_v2, %v6740_v57  ;;  %v6857_v10 = vsel %vm2336_vm6, %v6832_v21, %v6742_v53  ;;  %v17397_v57 = vld [vmem:[#allocation141_spill] sm:$0xff] }
 0x87e   : > { %6882 = vst.msk [vmem:[%s14791_s13 + $0x3e] sm:$0xff] %vm2388_vm7, %v6856_v0  ;;  %6883 = vst.msk [vmem:[%s14791_s13 + $0x46] sm:$0xff] %vm2388_vm7, %v6857_v10  ;;  %v6815_v50 = vsel %vm17398_vm12, %v17397_v57, %v14715_v19  ;;  %v6816_v0 = vsel %vm17400_vm9, %v17399_v3, %v14707_v41  ;;  %v17401_v21 = vld [vmem:[#allocation157_spill] sm:$0xff] }
 0x87f   : > { %v6840_v51 = vsel %vm2284_vm1, %v6815_v50, %v14767_v61  ;;  %v6841_v54 = vsel %vm2284_vm1, %v6816_v0, %v14775_v12  ;;  %v6817_v53 = vsel %vm17402_vm14, %v17401_v21, %v14725_v30  ;;  %v17403_v12 = vld [vmem:[#allocation163_spill] sm:$0xff] }
 0x880   : > { %v6842_v41 = vsel %vm2284_vm1, %v6817_v53, %v14771_v1 }
 0x882   : > { %v6744_v56 = vpop.permute.xlu1 %6743  ;;  %v6746_v39 = vpop.permute.xlu0 %6745 }
 0x883   : > { %v6858_v46 = vsel %vm2336_vm6, %v6833_v55, %v6744_v56  ;;  %v6859_v32 = vsel %vm2336_vm6, %v6834_v20, %v6746_v39  ;;  %v6818_v55 = vsel %vm17404_vm3, %v17403_v12, %v14722_v38 }
 0x884   : > { %6884 = vst.msk [vmem:[%s14791_s13 + $0x4e] sm:$0xff] %vm2388_vm7, %v6858_v46  ;;  %6885 = vst.msk [vmem:[%s14791_s13 + $0x56] sm:$0xff] %vm2388_vm7, %v6859_v32  ;;  %v6843_v56 = vsel %vm2284_vm1, %v6818_v55, %v14779_v29  ;;  %v17405_v46 = vld [vmem:[#allocation173_spill] sm:$0xff]  ;;  %v6820_v29 = vsel %vm17407_vm13, %v16784_v58, %v14733_v7  ;;  %v6822_v7 = vsel %vm17409_vm4, %v16865_v14, %v14744_v26 }
 0x885   : > { %v6819_v40 = vsel %vm17406_vm11, %v17405_v46, %v14738_v17  ;;  %v6845_v48 = vsel %vm2284_vm1, %v6820_v29, %v14783_v47 }
 0x886   : > { %v6844_v33 = vsel %vm2284_vm1, %v6819_v40, %v14777_v28  ;;  %v6821_v28 = vsel %vm17408_vm10, %v16849_v60, %v14747_v45 }
 0x887   : > { %v6846_v39 = vsel %vm2284_vm1, %v6821_v28, %v14781_v34 }
 0x88a   : > { %v6748_v13 = vpop.permute.xlu1 %6747  ;;  %v6750_v16 = vpop.permute.xlu0 %6749 }
 0x88b   : > { %v6860_v44 = vsel %vm2336_vm6, %v6835_v11, %v6748_v13  ;;  %v6861_v49 = vsel %vm2336_vm6, %v6836_v36, %v6750_v16  ;;  %v6847_v11 = vsel %vm2284_vm1, %v6822_v7, %v14795_v8 }
 0x88c   : > { %6886 = vst.msk [vmem:[%s14791_s13 + $0x5e] sm:$0xff] %vm2388_vm7, %v6860_v44  ;;  %6887 = vst.msk [vmem:[%s14791_s13 + $0x66] sm:$0xff] %vm2388_vm7, %v6861_v49 }
 0x892   : > { %v6752_v43 = vpop.permute.xlu1 %6751  ;;  %v6754_v22 = vpop.permute.xlu0 %6753 }
 0x893   : > { %v6862_v4 = vsel %vm2336_vm6, %v6837_v52, %v6752_v43  ;;  %v6863_v2 = vsel %vm2336_vm6, %v6838_v62, %v6754_v22 }
 0x894   : > { %6888 = vst.msk [vmem:[%s14791_s13 + $0x6e] sm:$0xff] %vm2388_vm7, %v6862_v4  ;;  %6889 = vst.msk [vmem:[%s14791_s13 + $0x76] sm:$0xff] %vm2388_vm7, %v6863_v2 }
 0x899   : > { %v6756_v59 = vpop.permute.xlu1 %6755  ;;  %v6758_v27 = vpop.permute.xlu0 %6757 }
 0x89a   : > { %v6864_v35 = vsel %vm2336_vm6, %v6839_v42, %v6756_v59  ;;  %v6865_v24 = vsel %vm2336_vm6, %v6840_v51, %v6758_v27 }
 0x89b   : > { %6890 = vst.msk [vmem:[%s14791_s13 + $0x7e] sm:$0xff] %vm2388_vm7, %v6864_v35  ;;  %6891 = vst.msk [vmem:[%s14791_s13 + $0x86] sm:$0xff] %vm2388_vm7, %v6865_v24 }
 0x8a0   : > { %v6760_v25 = vpop.permute.xlu1 %6759  ;;  %v6762_v61 = vpop.permute.xlu0 %6761 }
 0x8a1   : > { %v6866_v19 = vsel %vm2336_vm6, %v6841_v54, %v6760_v25  ;;  %v6867_v10 = vsel %vm2336_vm6, %v6842_v41, %v6762_v61 }
 0x8a2   : > { %6892 = vst.msk [vmem:[%s14791_s13 + $0x8e] sm:$0xff] %vm2388_vm7, %v6866_v19  ;;  %6893 = vst.msk [vmem:[%s14791_s13 + $0x96] sm:$0xff] %vm2388_vm7, %v6867_v10 }
 0x8a4   : > { %v6764_v30 = vpop.permute.xlu1 %6763  ;;  %v6766_v38 = vpop.permute.xlu0 %6765 }
 0x8a5   : > { %v6868_v1 = vsel %vm2336_vm6, %v6843_v56, %v6764_v30  ;;  %v6869_v9 = vsel %vm2336_vm6, %v6844_v33, %v6766_v38 }
 0x8a6   : > { %6894 = vst.msk [vmem:[%s14791_s13 + $0x9e] sm:$0xff] %vm2388_vm7, %v6868_v1  ;;  %6895 = vst.msk [vmem:[%s14791_s13 + $0xa6] sm:$0xff] %vm2388_vm7, %v6869_v9 }
 0x8a9   : > { %v6768_v17 = vpop.permute.xlu1 %6767  ;;  %v6770_v58 = vpop.permute.xlu0 %6769 }
 0x8aa   : > { %v6870_v20 = vsel %vm2336_vm6, %v6845_v48, %v6768_v17  ;;  %v6871_v47 = vsel %vm2336_vm6, %v6846_v39, %v6770_v58 }
 0x8ab   : > { %6896 = vst.msk [vmem:[%s14791_s13 + $0xae] sm:$0xff] %vm2388_vm7, %v6870_v20  ;;  %6897 = vst.msk [vmem:[%s14791_s13 + $0xb6] sm:$0xff] %vm2388_vm7, %v6871_v47 }
 0x8ad   : > { %v6772_v60 = vpop.permute.xlu1 %6771 }
 0x8ae   : > { %v6872_v45 = vsel %vm2336_vm6, %v6847_v11, %v6772_v60 }
 0x8af   : > { %6899 = vst.msk [vmem:[%s14791_s13 + $0xbe] sm:$0x3] %vm6898_vm0, %v6872_v45 }
 0x8b0 PF: > { %s20_s17 = sadd.s32 1, %s7712_s17   ;;  %s17410_s13 = smov %s7704_s15 }
 0x8b1   : > { %p17_p9 = scmp.ge.s32.totalorder %s20_s17, 6   ;;  %s17411_s14 = smov %s7708_s16 }
 0x8b2   : > { %s17412_s15 = smov %s17415_s18  ;;  %s17413_s16 = smov %s17419_s19 }
 0x8b3   :  { %19 = sbr.rel (!%p17_p9) target bundleno = 3 (0x3), region = 90 }

</bundles_post_ra>
